<compile_context>
chip_gen: v6e
topology: v6e:2x2x1
jax: 0.10.0
libtpu: 0.0.40
codegen_flags: <defaults>
</compile_context>

<pallas_src>
import jax
import jax.numpy as jnp
import numpy as np
from jax import lax
from jax.experimental import pallas as pl
from jax.experimental.pallas import tpu as pltpu

NV = 6890          # SMPL vertex count
VP = 6912          # padded vertex count (multiple of 128)
NT = 2             # vertex tiles (even -> balanced megacore split on v7x)
VT = VP // NT      # 3456, multiple of 128
NJ = 24            # joints
NB = 10            # shape betas
NPOSE = 207        # 23 * 9 pose-blend features

# real SMPL kinematic tree: PARENT[i-1] is the parent of joint i (i = 1..23)
PARENT = [0, 0, 0, 1, 2, 3, 4, 5, 6, 7, 8, 9, 9, 9, 12, 13, 14, 16, 17, 18, 19, 20, 21]


def _kin_levels():
    """Group joints 1..23 by tree depth so FK becomes ~8 batched matmuls."""
    depth = [0] * NJ
    for i in range(1, NJ):
        depth[i] = depth[PARENT[i - 1]] + 1
    levels = []
    for d in range(1, max(depth) + 1):
        idx = tuple(i for i in range(1, NJ) if depth[i] == d)
        par = tuple(PARENT[i - 1] for i in idx)
        levels.append((idx, par))
    return levels


KIN_LEVELS = _kin_levels()


# ---------------------------------------------------------------------------
# Pallas kernel: fused shape blendshapes + pose blendshapes + LBS per tile
# ---------------------------------------------------------------------------
def skinning_kernel(beta_ref, lrot_ref, gaw_ref, shapedirs_ref, posedirs_ref,
                    vtemplate_ref, weights_ref, out_ref):
    # beta: (B, 10) f32            lrot: (B, 207) f32
    # gaw:  (12B, 24) bf16         row ((c*4+j)*B + b) over k = G[b,k,c,j]
    # shapedirs: (10, 3*VT) bf16   posedirs: (207, 3*VT) bf16 (permuted lanes)
    # vtemplate: (1, 3*VT) f32     weights: (24, VT) bf16
    # out: (B, 3*VT) f32
    f32 = jnp.float32
    bf16 = jnp.bfloat16
    B = beta_ref.shape[0]

    # v_posed = v_template + shapedirs . beta + posedirs . lrotmin
    vp = (vtemplate_ref[...]
          + jnp.dot(beta_ref[...].astype(bf16), shapedirs_ref[...],
                    preferred_element_type=f32)
          + jnp.dot(lrot_ref[...].astype(bf16), posedirs_ref[...],
                    preferred_element_type=f32))                             # (B, 3*VT)

    # All 12 (coord c, matrix column j) skinning coefficient maps in one MXU
    # matmul: T[(c*4+j)*B + b, v] = sum_k G[b,k,c,j] * w[k,v]
    T = jnp.dot(gaw_ref[...], weights_ref[...],
                preferred_element_type=f32)                                  # (12B, VT)

    for c in range(3):
        acc = T[(c * 4 + 3) * B:(c * 4 + 4) * B, :]                          # translation
        for j in range(3):
            acc = acc + (T[(c * 4 + j) * B:(c * 4 + j + 1) * B, :]
                         * vp[:, j * VT:(j + 1) * VT])
        out_ref[:, c * VT:(c + 1) * VT] = acc


# ---------------------------------------------------------------------------
# Glue (plain JAX): Rodrigues, kinematic chain, parameter prep
# ---------------------------------------------------------------------------
def rodrigues(r):
    # r: (N, 3) axis-angle -> (N, 3, 3) rotation matrices
    theta = jnp.sqrt(jnp.sum(r * r, axis=1, keepdims=True) + 1e-8)
    u = r / theta
    ux, uy, uz = u[:, 0], u[:, 1], u[:, 2]
    z = jnp.zeros_like(ux)
    K = jnp.stack([z, -uz, uy, uz, z, -ux, -uy, ux, z], axis=1).reshape(-1, 3, 3)
    I = jnp.eye(3, dtype=jnp.float32)[None]
    s = jnp.sin(theta)[:, :, None]
    c = jnp.cos(theta)[:, :, None]
    return I + s * K + (1.0 - c) * jnp.matmul(K, K)


def _to_lane_layout(x):
    # x: (NV, 3, D) -> (D, 3*VP) with lane order [tile][coord][vertex-in-tile]
    D = x.shape[-1]
    xp = jnp.pad(x, ((0, VP - NV), (0, 0), (0, 0)))                          # (VP, 3, D)
    xp = xp.reshape(NT, VT, 3, D)
    return jnp.transpose(xp, (3, 0, 2, 1)).reshape(D, 3 * VP)


def make_params(key):
    f32 = jnp.float32
    HP = jax.lax.Precision.HIGHEST
    k = jax.random.split(key, 5)
    v_template = 0.1 * jax.random.normal(k[0], (NV, 3), f32)
    shapedirs = 0.01 * jax.random.normal(k[1], (NV, 3, NB), f32)
    posedirs = 0.01 * jax.random.normal(k[2], (NV, 3, NPOSE), f32)
    weights = jax.nn.softmax(2.0 * jax.random.normal(k[3], (NV, NJ), f32), axis=1)
    jr = jax.random.uniform(k[4], (NJ, NV), f32)
    J_regressor = jr / jnp.sum(jr, axis=1, keepdims=True)

    # Algebraic fold of the joint regression:
    #   J(b) = J_regressor @ (v_template + shapedirs . beta)
    #        = J_template + (J_regressor @ shapedirs) . beta
    J_template = jnp.einsum('jv,vc->jc', J_regressor, v_template,
                            precision=HP)                                    # (24, 3)
    J_dirs = jnp.einsum('jv,vck->kjc', J_regressor, shapedirs,
                        precision=HP).reshape(NB, NJ * 3)                    # (10, 72)

    return dict(
        # canonical (PyTorch-style) buffers
        v_template=v_template, shapedirs=shapedirs, posedirs=posedirs,
        weights=weights, J_regressor=J_regressor,
        # kernel-side layouts (permuted lanes, bf16 for the MXU streams)
        shapedirsP=_to_lane_layout(shapedirs).astype(jnp.bfloat16),          # (10, 3*VP)
        posedirsP=_to_lane_layout(posedirs).astype(jnp.bfloat16),            # (207, 3*VP)
        v_templateP=_to_lane_layout(v_template[:, :, None]),                 # (1, 3*VP) f32
        weightsL=jnp.pad(weights.T, ((0, 0), (0, VP - NV))).astype(jnp.bfloat16),
        # folded joint-regression constants
        J_template=J_template, J_dirs=J_dirs,
    )


def smpl_forward(pose, beta, p):
    f32 = jnp.float32
    HP = jax.lax.Precision.HIGHEST
    B = pose.shape[0]

    # ---- joints via folded regression: a (B,10)x(10,72) matmul (free) ----
    J = (jnp.dot(beta, p['J_dirs'], precision=HP)
         + p['J_template'].reshape(1, NJ * 3)).reshape(B, NJ, 3)

    # ---- pose to rotation matrices (tiny; plain JAX) ----
    eye3 = jnp.eye(3, dtype=f32)
    if pose.ndim == 4:
        R = pose
    else:
        R = rodrigues(pose.reshape(-1, 3)).reshape(B, NJ, 3, 3)
    lrotmin = (R[:, 1:, :, :] - eye3[None, None]).reshape(B, NPOSE)

    # ---- forward kinematics (level-batched: ~8 dependent matmuls) ----
    parent = jnp.array(PARENT, dtype=jnp.int32)
    J_rel = J.at[:, 1:, :].set(J[:, 1:, :] - J[:, parent, :])
    G_ = jnp.concatenate([R, J_rel[..., None]], axis=-1)                     # (B,24,3,4)
    pad_row = jnp.broadcast_to(jnp.array([0., 0., 0., 1.], f32).reshape(1, 1, 1, 4),
                               (B, NJ, 1, 4))
    G_ = jnp.concatenate([G_, pad_row], axis=2)                              # (B,24,4,4)
    G = G_
    for idx, par in KIN_LEVELS:
        G = G.at[:, list(idx)].set(jnp.matmul(G[:, list(par)], G_[:, list(idx)]))
    # subtract the rest-pose joint translation (only the last column changes)
    t = jnp.einsum('bkij,bkj->bki', G[..., :3], J)                           # (B,24,4)
    G = G.at[..., 3].add(-t)

    # stacked skinning operand: row ((c*4+j)*B + b) holds G[b, :, c, j]
    gaw = jnp.transpose(G, (2, 3, 0, 1))[:3].reshape(12 * B, NJ).astype(jnp.bfloat16)

    # ---- single fused Pallas kernel: blendshapes + LBS over vertex tiles ----
    voutP = pl.pallas_call(
        skinning_kernel,
        grid=(NT,),
        in_specs=[
            pl.BlockSpec((B, NB), lambda v: (0, 0)),
            pl.BlockSpec((B, NPOSE), lambda v: (0, 0)),
            pl.BlockSpec((12 * B, NJ), lambda v: (0, 0)),
            pl.BlockSpec((NB, 3 * VT), lambda v: (0, v)),
            pl.BlockSpec((NPOSE, 3 * VT), lambda v: (0, v)),
            pl.BlockSpec((1, 3 * VT), lambda v: (0, v)),
            pl.BlockSpec((NJ, VT), lambda v: (0, v)),
        ],
        out_specs=pl.BlockSpec((B, 3 * VT), lambda v: (0, v)),
        out_shape=jax.ShapeDtypeStruct((B, 3 * VP), f32),
        compiler_params=pltpu.CompilerParams(
            dimension_semantics=("parallel",),
            vmem_limit_bytes=32 * 1024 * 1024),
    )(beta, lrotmin, gaw, p['shapedirsP'], p['posedirsP'],
      p['v_templateP'], p['weightsL'])

    # un-permute lanes -> (B, NV, 3)   (tiny; left to XLA to fuse downstream)
    v = voutP.reshape(B, NT, 3, VT).transpose(0, 1, 3, 2).reshape(B, VP, 3)[:, :NV, :]
    return v


# ---------------------------------------------------------------------------
# Pure-JAX reference (mirrors the PyTorch forward) for verification
# ---------------------------------------------------------------------------
def smpl_reference(pose, beta, p):
    HP = jax.lax.Precision.HIGHEST
    f32 = jnp.float32
    B = pose.shape[0]
    shapedirs_flat = p['shapedirs'].reshape(-1, NB)
    v_shaped = jnp.einsum('nk,bk->bn', shapedirs_flat, beta,
                          precision=HP).reshape(B, NV, 3) + p['v_template'][None]
    J = jnp.einsum('jv,bvc->bjc', p['J_regressor'], v_shaped, precision=HP)
    if pose.ndim == 4:
        R = pose
    else:
        R = rodrigues(pose.reshape(-1, 3)).reshape(B, NJ, 3, 3)
    lrotmin = (R[:, 1:] - jnp.eye(3, dtype=f32)).reshape(B, NPOSE)
    posedirs_flat = p['posedirs'].reshape(-1, NPOSE)
    v_posed = v_shaped + jnp.einsum('nk,bk->bn', posedirs_flat, lrotmin,
                                    precision=HP).reshape(B, NV, 3)
    parent = jnp.array(PARENT, dtype=jnp.int32)
    J_rel = J.at[:, 1:].set(J[:, 1:] - J[:, parent])
    G_ = jnp.concatenate([R, J_rel[..., None]], axis=-1)
    pad_row = jnp.broadcast_to(jnp.array([0., 0., 0., 1.], f32).reshape(1, 1, 1, 4),
                               (B, NJ, 1, 4))
    G_ = jnp.concatenate([G_, pad_row], axis=2)
    Gs = [G_[:, 0]]
    for i in range(1, NJ):
        Gs.append(jnp.matmul(Gs[PARENT[i - 1]], G_[:, i], precision=HP))
    G = jnp.stack(Gs, axis=1)
    rest = jnp.concatenate([J, jnp.zeros((B, NJ, 1), f32)], axis=2)[..., None]
    rest = jnp.concatenate([jnp.zeros((B, NJ, 4, 3), f32), rest], axis=-1)
    G = G - jnp.matmul(G, rest, precision=HP)
    T = jnp.einsum('vk,bkij->bvij', p['weights'], G, precision=HP)
    h = jnp.concatenate([v_posed, jnp.ones((B, NV, 1), f32)], axis=-1)
    return jnp.einsum('bvij,bvj->bvi', T, h, precision=HP)[:, :, :3]


if __name__ == "__main__":
    key = jax.random.PRNGKey(0)
    kp, kpose, kbeta = jax.random.split(key, 3)
    params = make_params(kp)

    B = 2
    pose = 0.2 * jax.random.normal(kpose, (B, 72), jnp.float32)
    beta = jax.random.normal(kbeta, (B, NB), jnp.float32)

    verts = jax.jit(smpl_forward)(pose, beta, params)
    verts = jax.block_until_ready(verts)
    assert verts.shape == (B, NV, 3) and verts.dtype == jnp.float32

    ref = jax.block_until_ready(smpl_reference(pose, beta, params))
    if not np.allclose(np.asarray(verts), np.asarray(ref), rtol=1e-2, atol=1e-2):
        err = float(jnp.max(jnp.abs(verts - ref)))
        raise AssertionError(f"Pallas SMPL mismatch vs reference, max abs err {err}")

    print("KERNEL_OK")
</pallas_src>

<mosaic_0001>
module attributes {stable_mosaic.version = 11 : i64} {
  func.func @skinning_kernel(%arg0: i32, %arg1: memref<2x10xf32, #tpu.memory_space<vmem>>, %arg2: memref<2x207xf32, #tpu.memory_space<vmem>>, %arg3: memref<24x24xbf16, #tpu.memory_space<vmem>>, %arg4: memref<10x10368xbf16, #tpu.memory_space<vmem>>, %arg5: memref<207x10368xbf16, #tpu.memory_space<vmem>>, %arg6: memref<1x10368xf32, #tpu.memory_space<vmem>>, %arg7: memref<24x3456xbf16, #tpu.memory_space<vmem>>, %arg8: memref<2x10368xf32, #tpu.memory_space<vmem>>) attributes {dimension_semantics = [#tpu.dimension_semantics<parallel>], iteration_bounds = array<i64: 2>, scalar_prefetch = 0 : i64, scratch_operands = 0 : i64, tpu.core_type = #tpu.core_type<tc>, window_params = [{pipeline_mode = #tpu.pipeline_mode<synchronous>, transform_indices = @transform_0, window_bounds = array<i64: 2, 10>}, {pipeline_mode = #tpu.pipeline_mode<synchronous>, transform_indices = @transform_1, window_bounds = array<i64: 2, 207>}, {pipeline_mode = #tpu.pipeline_mode<synchronous>, transform_indices = @transform_2, window_bounds = array<i64: 24, 24>}, {transform_indices = @transform_3, window_bounds = array<i64: 10, 10368>}, {transform_indices = @transform_4, window_bounds = array<i64: 207, 10368>}, {transform_indices = @transform_5, window_bounds = array<i64: 1, 10368>}, {transform_indices = @transform_6, window_bounds = array<i64: 24, 3456>}, {transform_indices = @transform_7, window_bounds = array<i64: 2, 10368>}]} {
    %c0 = arith.constant 0 : index
    %c0_0 = arith.constant 0 : index
    %0 = vector.load %arg6[%c0, %c0_0] : memref<1x10368xf32, #tpu.memory_space<vmem>>, vector<1x10368xf32>
    %c0_1 = arith.constant 0 : index
    %c0_2 = arith.constant 0 : index
    %1 = vector.load %arg1[%c0_1, %c0_2] : memref<2x10xf32, #tpu.memory_space<vmem>>, vector<2x10xf32>
    %2 = arith.truncf %1 : vector<2x10xf32> to vector<2x10xbf16>
    %c0_3 = arith.constant 0 : index
    %c0_4 = arith.constant 0 : index
    %3 = vector.load %arg4[%c0_3, %c0_4] : memref<10x10368xbf16, #tpu.memory_space<vmem>>, vector<10x10368xbf16>
    %cst = arith.constant dense<0.000000e+00> : vector<2x10368xf32>
    %4 = tpu.matmul %2, %3, %cst {dimension_numbers = #tpu.dot_dimension_numbers<[1], [0], [0], [1], [0, 0, 1, 1], [], []>} : vector<2x10xbf16>, vector<10x10368xbf16>, vector<2x10368xf32> -> vector<2x10368xf32>
    %5 = vector.broadcast %0 : vector<1x10368xf32> to vector<2x10368xf32>
    %6 = arith.addf %5, %4 : vector<2x10368xf32>
    %c0_5 = arith.constant 0 : index
    %c0_6 = arith.constant 0 : index
    %7 = vector.load %arg2[%c0_5, %c0_6] : memref<2x207xf32, #tpu.memory_space<vmem>>, vector<2x207xf32>
    %8 = arith.truncf %7 : vector<2x207xf32> to vector<2x207xbf16>
    %c0_7 = arith.constant 0 : index
    %c0_8 = arith.constant 0 : index
    %9 = vector.load %arg5[%c0_7, %c0_8] : memref<207x10368xbf16, #tpu.memory_space<vmem>>, vector<207x10368xbf16>
    %cst_9 = arith.constant dense<0.000000e+00> : vector<2x10368xf32>
    %10 = tpu.matmul %8, %9, %cst_9 {dimension_numbers = #tpu.dot_dimension_numbers<[1], [0], [0], [1], [0, 0, 1, 1], [], []>} : vector<2x207xbf16>, vector<207x10368xbf16>, vector<2x10368xf32> -> vector<2x10368xf32>
    %11 = arith.addf %6, %10 : vector<2x10368xf32>
    %c0_10 = arith.constant 0 : index
    %c0_11 = arith.constant 0 : index
    %12 = vector.load %arg3[%c0_10, %c0_11] : memref<24x24xbf16, #tpu.memory_space<vmem>>, vector<24x24xbf16>
    %c0_12 = arith.constant 0 : index
    %c0_13 = arith.constant 0 : index
    %13 = vector.load %arg7[%c0_12, %c0_13] : memref<24x3456xbf16, #tpu.memory_space<vmem>>, vector<24x3456xbf16>
    %cst_14 = arith.constant dense<0.000000e+00> : vector<24x3456xf32>
    %14 = tpu.matmul %12, %13, %cst_14 {dimension_numbers = #tpu.dot_dimension_numbers<[1], [0], [0], [1], [0, 0, 1, 1], [], []>} : vector<24x24xbf16>, vector<24x3456xbf16>, vector<24x3456xf32> -> vector<24x3456xf32>
    %15 = vector.extract_strided_slice %14 {offsets = [6, 0], sizes = [2, 3456], strides = [1, 1]} : vector<24x3456xf32> to vector<2x3456xf32>
    %16 = vector.extract_strided_slice %14 {offsets = [0, 0], sizes = [2, 3456], strides = [1, 1]} : vector<24x3456xf32> to vector<2x3456xf32>
    %17 = vector.extract_strided_slice %11 {offsets = [0, 0], sizes = [2, 3456], strides = [1, 1]} : vector<2x10368xf32> to vector<2x3456xf32>
    %18 = arith.mulf %16, %17 : vector<2x3456xf32>
    %19 = arith.addf %15, %18 : vector<2x3456xf32>
    %20 = vector.extract_strided_slice %14 {offsets = [2, 0], sizes = [2, 3456], strides = [1, 1]} : vector<24x3456xf32> to vector<2x3456xf32>
    %21 = vector.extract_strided_slice %11 {offsets = [0, 3456], sizes = [2, 3456], strides = [1, 1]} : vector<2x10368xf32> to vector<2x3456xf32>
    %22 = arith.mulf %20, %21 : vector<2x3456xf32>
    %23 = arith.addf %19, %22 : vector<2x3456xf32>
    %24 = vector.extract_strided_slice %14 {offsets = [4, 0], sizes = [2, 3456], strides = [1, 1]} : vector<24x3456xf32> to vector<2x3456xf32>
    %25 = vector.extract_strided_slice %11 {offsets = [0, 6912], sizes = [2, 3456], strides = [1, 1]} : vector<2x10368xf32> to vector<2x3456xf32>
    %26 = arith.mulf %24, %25 : vector<2x3456xf32>
    %27 = arith.addf %23, %26 : vector<2x3456xf32>
    %c0_15 = arith.constant 0 : index
    %c0_16 = arith.constant 0 : index
    %28 = vector.load %arg8[%c0_15, %c0_16] : memref<2x10368xf32, #tpu.memory_space<vmem>>, vector<2x3456xf32>
    tpu.vector_store %arg8[%c0_15, %c0_16], %27 {strides = array<i32>} : memref<2x10368xf32, #tpu.memory_space<vmem>>, vector<2x3456xf32>,
    %29 = vector.extract_strided_slice %14 {offsets = [14, 0], sizes = [2, 3456], strides = [1, 1]} : vector<24x3456xf32> to vector<2x3456xf32>
    %30 = vector.extract_strided_slice %14 {offsets = [8, 0], sizes = [2, 3456], strides = [1, 1]} : vector<24x3456xf32> to vector<2x3456xf32>
    %31 = vector.extract_strided_slice %11 {offsets = [0, 0], sizes = [2, 3456], strides = [1, 1]} : vector<2x10368xf32> to vector<2x3456xf32>
    %32 = arith.mulf %30, %31 : vector<2x3456xf32>
    %33 = arith.addf %29, %32 : vector<2x3456xf32>
    %34 = vector.extract_strided_slice %14 {offsets = [10, 0], sizes = [2, 3456], strides = [1, 1]} : vector<24x3456xf32> to vector<2x3456xf32>
    %35 = vector.extract_strided_slice %11 {offsets = [0, 3456], sizes = [2, 3456], strides = [1, 1]} : vector<2x10368xf32> to vector<2x3456xf32>
    %36 = arith.mulf %34, %35 : vector<2x3456xf32>
    %37 = arith.addf %33, %36 : vector<2x3456xf32>
    %38 = vector.extract_strided_slice %14 {offsets = [12, 0], sizes = [2, 3456], strides = [1, 1]} : vector<24x3456xf32> to vector<2x3456xf32>
    %39 = vector.extract_strided_slice %11 {offsets = [0, 6912], sizes = [2, 3456], strides = [1, 1]} : vector<2x10368xf32> to vector<2x3456xf32>
    %40 = arith.mulf %38, %39 : vector<2x3456xf32>
    %41 = arith.addf %37, %40 : vector<2x3456xf32>
    %c0_17 = arith.constant 0 : index
    %c3456 = arith.constant 3456 : index
    %42 = vector.load %arg8[%c0_17, %c3456] : memref<2x10368xf32, #tpu.memory_space<vmem>>, vector<2x3456xf32>
    tpu.vector_store %arg8[%c0_17, %c3456], %41 {strides = array<i32>} : memref<2x10368xf32, #tpu.memory_space<vmem>>, vector<2x3456xf32>,
    %43 = vector.extract_strided_slice %14 {offsets = [22, 0], sizes = [2, 3456], strides = [1, 1]} : vector<24x3456xf32> to vector<2x3456xf32>
    %44 = vector.extract_strided_slice %14 {offsets = [16, 0], sizes = [2, 3456], strides = [1, 1]} : vector<24x3456xf32> to vector<2x3456xf32>
    %45 = vector.extract_strided_slice %11 {offsets = [0, 0], sizes = [2, 3456], strides = [1, 1]} : vector<2x10368xf32> to vector<2x3456xf32>
    %46 = arith.mulf %44, %45 : vector<2x3456xf32>
    %47 = arith.addf %43, %46 : vector<2x3456xf32>
    %48 = vector.extract_strided_slice %14 {offsets = [18, 0], sizes = [2, 3456], strides = [1, 1]} : vector<24x3456xf32> to vector<2x3456xf32>
    %49 = vector.extract_strided_slice %11 {offsets = [0, 3456], sizes = [2, 3456], strides = [1, 1]} : vector<2x10368xf32> to vector<2x3456xf32>
    %50 = arith.mulf %48, %49 : vector<2x3456xf32>
    %51 = arith.addf %47, %50 : vector<2x3456xf32>
    %52 = vector.extract_strided_slice %14 {offsets = [20, 0], sizes = [2, 3456], strides = [1, 1]} : vector<24x3456xf32> to vector<2x3456xf32>
    %53 = vector.extract_strided_slice %11 {offsets = [0, 6912], sizes = [2, 3456], strides = [1, 1]} : vector<2x10368xf32> to vector<2x3456xf32>
    %54 = arith.mulf %52, %53 : vector<2x3456xf32>
    %55 = arith.addf %51, %54 : vector<2x3456xf32>
    %c0_18 = arith.constant 0 : index
    %c6912 = arith.constant 6912 : index
    %56 = vector.load %arg8[%c0_18, %c6912] : memref<2x10368xf32, #tpu.memory_space<vmem>>, vector<2x3456xf32>
    tpu.vector_store %arg8[%c0_18, %c6912], %55 {strides = array<i32>} : memref<2x10368xf32, #tpu.memory_space<vmem>>, vector<2x3456xf32>,
    return
  }
  func.func @transform_0(%arg0: i32) -> (i32, i32) {
    %c0_i32 = arith.constant 0 : i32
    %c0_i32_0 = arith.constant 0 : i32
    %c0_i32_1 = arith.constant 0 : i32
    return %c0_i32, %c0_i32_0 : i32, i32
  }
  func.func @transform_1(%arg0: i32) -> (i32, i32) {
    %c0_i32 = arith.constant 0 : i32
    %c0_i32_0 = arith.constant 0 : i32
    %c0_i32_1 = arith.constant 0 : i32
    return %c0_i32, %c0_i32_0 : i32, i32
  }
  func.func @transform_2(%arg0: i32) -> (i32, i32) {
    %c0_i32 = arith.constant 0 : i32
    %c0_i32_0 = arith.constant 0 : i32
    %c0_i32_1 = arith.constant 0 : i32
    return %c0_i32, %c0_i32_0 : i32, i32
  }
  func.func @transform_3(%arg0: i32) -> (i32, i32) {
    %c0_i32 = arith.constant 0 : i32
    %c0_i32_0 = arith.constant 0 : i32
    return %c0_i32, %arg0 : i32, i32
  }
  func.func @transform_4(%arg0: i32) -> (i32, i32) {
    %c0_i32 = arith.constant 0 : i32
    %c0_i32_0 = arith.constant 0 : i32
    return %c0_i32, %arg0 : i32, i32
  }
  func.func @transform_5(%arg0: i32) -> (i32, i32) {
    %c0_i32 = arith.constant 0 : i32
    %c0_i32_0 = arith.constant 0 : i32
    return %c0_i32, %arg0 : i32, i32
  }
  func.func @transform_6(%arg0: i32) -> (i32, i32) {
    %c0_i32 = arith.constant 0 : i32
    %c0_i32_0 = arith.constant 0 : i32
    return %c0_i32, %arg0 : i32, i32
  }
  func.func @transform_7(%arg0: i32) -> (i32, i32) {
    %c0_i32 = arith.constant 0 : i32
    %c0_i32_0 = arith.constant 0 : i32
    return %c0_i32, %arg0 : i32, i32
  }
}

</mosaic_0001>

<bundles_post_ra>
// kernel: smpl_forward.1
= control target key start
LH: loop header
LB: loop body
LE: loop exit
PB: predicated region body
PF: predicated region fallthrough
CT: control target
= control target key end

     0   :  { %s21650_s0 = inlined_call_operand.hbm [shape: f32[2,10], index: 0, kind: input, shape index: {}]   ;;  %s21651_s1 = inlined_call_operand.vmem [shape: f32[2,207], index: 1, kind: input, shape index: {}]   ;;  %s21652_s2 = inlined_call_operand.vmem [shape: bf16[24,24], index: 2, kind: input, shape index: {}]   ;;  %s21653_s3 = inlined_call_operand.hbm [shape: bf16[10,20736], index: 3, kind: input, shape index: {}]   ;;  %s21654_s4 = inlined_call_operand.hbm [shape: bf16[207,20736], index: 4, kind: input, shape index: {}]   ;;  %s21655_s5 = inlined_call_operand.hbm [shape: f32[1,20736], index: 5, kind: input, shape index: {}]   ;;  %s21656_s6 = inlined_call_operand.hbm [shape: bf16[24,6912], index: 6, kind: input, shape index: {}]   ;;  %s21657_s7 = inlined_call_operand.vmem [shape: f32[2,20736], index: 7, kind: output, shape index: {}]  }
   0x1   :  { %21733 = sst [smem:[#allocation86_spill]] %s21650_s0 }
   0x2   :  { %21734 = sst [smem:[#allocation87_spill]] %s21653_s3 }
   0x3   :  { %12 = vsyncpa [#allocation3], 0 }
   0x4   :  { %13 = vsyncpa [#allocation5], 0 }
   0x5   :  { %15 = vsyncpa [#allocation5 + $0x1], 0 }
   0x6   :  { %16 = vsyncpa [#allocation8], 0 }
   0x7   :  { %18 = vsyncpa [#allocation8 + $0x1], 0  ;;  %s18101_s24 = smov 0   ;;  %s18103_s25 = smov 0  }
   0x8   :  { %s18105_s26 = smov 0   ;;  %s18107_s27 = smov 0  }
   0x9 LB: > { %s18122_s28 = sadd.s32 1, %s18043_s27   ;;  %s94_s29 = sadd.s32 1, %s18039_s26  ;;  %s18043_s27 = sphi %s18107_s27, %s21999_s27   ;;  %s18039_s26 = sphi %s18105_s26, %s21998_s26   ;;  %s18035_s25 = sphi %s18103_s25, %s21997_s25   ;;  %s18031_s24 = sphi %s18101_s24, %s21996_s24  }
   0xa   : > { %s91_s30 = ssub.s32 %s18043_s27, %s18122_s28  ;;  %p101_p0 = scmp.ne.s32.totalorder %s18039_s26, %s18035_s25 }
   0xb   : > { %p92_p1 = scmp.eq.s32.totalorder %s91_s30, 0  ;;  %p102_p2 = scmp.eq.s32.totalorder %s18043_s27, 0 }
   0xc   : > { %p16052_p3 = scmp.lt.s32.totalorder %s18043_s27, 2  ;;  %s21659_s9 = sand.u32 1, %s18043_s27  }
   0xd   : > { %s18132_s8 = scalar_select %p92_p1, %s18039_s26, %s94_s29  }
   0xe   : > { %p103_p4 = por %p102_p2, %p101_p0  ;;  %s18136_s10 = sand.u32 1, %s18039_s26  }
   0xf   : > { %21735 = sst [smem:[#allocation13_spill]] %s18132_s8  ;;  %s16014_s11 = smul.u32 648, %s18136_s10 }
  0x10   : > { %p18139_p5 = pnand %p16052_p3, %p103_p4  ;;  %s21658_s13 = smul.u32 5184, %s18043_s27 }
  0x11   : > { %s21737_s3 = sld [smem:[#allocation87_spill]]  ;;  %s256_s17 = scalar_lea.vmem [#allocation4], %s16014_s11 }
  0x12   : > { %s263_s18 = sshll.u32 %s256_s17, 4  ;;  %s18155_s19 = scalar_lea.sflag [#allocation5], %s21659_s9  ;;  %s18151_s18 = int_to_ptr.vmem [resolvable:$true] %s263_s18 }
  0x13   : > { %p18161_p7 = pneg %p18139_p5 }
  0x17   : > { %s18149_s16 = scalar_lea.hbm %s21737_s3, %s21658_s13  ;;  %s17868_s29 = scalar_lea.hbm %s21737_s3, 20736 }
  0x18   : > { %s17863_s20 = scalar_lea.hbm %s18149_s16, 10368  ;;  %p17869_p10 = scmp.lt.s32.totalorder %s18149_s16, %s21737_s3 }
  0x19   : > { %p17864_p6 = scmp.ne.s32.totalorder %s18149_s16, %s17863_s20  ;;  %p17870_p11 = scmp.lt.s32.totalorder %s17868_s29, %s17863_s20 }
  0x1b   : > { %p17866_p8 = pnand %p18161_p7, %p17864_p6  ;;  %p17871_p12 = por %p17870_p11, %p17869_p10 }
  0x1d   : > { %p17867_p9 = pneg %p17866_p8 }
  0x1f   : > { %p17872_p13 = pnand %p17871_p12, %p17867_p9 }
  0x21   : > { %17875 = shalt.err (!%p17872_p13)
}
  0x22   : > { %s17876_s14 = scalar_lea.vmem %s18151_s18, 10368  ;;  %s18045_s15 = smov [#allocation4]  }
  0x23   : > { %p17877_p0 = scmp.ne.s32.totalorder %s18151_s18, %s17876_s14  ;;  %s17881_s17 = sshll.u32 %s18045_s15, 4  ;;  %s17882_s17 = int_to_ptr.vmem [resolvable:$false] %s17881_s17 }
  0x24   : > { %s17883_s22 = scalar_lea.vmem %s17882_s17, 20736  ;;  %p17884_p3 = scmp.lt.s32.totalorder %s18151_s18, %s17882_s17 }
  0x25   : > { %p17879_p1 = pnand %p17877_p0, %p18161_p7  ;;  %p17885_p4 = scmp.lt.s32.totalorder %s17883_s22, %s17876_s14 }
  0x27   : > { %p17880_p2 = pneg %p17879_p1  ;;  %p17886_p6 = por %p17885_p4, %p17884_p3 }
  0x29   : > { %p17887_p8 = pnand %p17886_p6, %p17880_p2 }
  0x2b   : > { %17890 = shalt.err (!%p17887_p8)
}
  0x2c   : > { %s21660_s20 = smov 10368   ;;  %s21661_s23 = smov 5184  }
  0x2d   : > { %s21662_s29 = smov 324   ;;  %s16016_s30 = smul.u32 81, %s18136_s10 }
  0x2e   : > { %16041 = dma.hbm_to_vmem [thread:$0]  (!%p18139_p5), %s18149_s16, 10368, %s18151_s18, %s18155_s19, %s21660_s20, %s21661_s23, %s21662_s29  }
  0x2f   : > { %s15991_s11 = smul.u32 1296, %s18043_s27  ;;  %s18190_s14 = sadd.s32 4294967295, %s18043_s27  }
  0x30   : > { %s298_s13 = scalar_lea.vmem [#allocation7], %s16016_s30  ;;  %s21739_s3 = sand.u32 1, %s18043_s27  }
  0x31   : > { %s18195_s22 = scalar_lea.hbm %s21655_s5, %s15991_s11  ;;  %s306_s9 = sshll.u32 %s298_s13, 4  ;;  %s307_s9 = int_to_ptr.vmem [resolvable:$true] %s306_s9 }
  0x32   : > { %s18201_s8 = scalar_lea.sflag [#allocation8], %s21739_s3  ;;  %s17891_s16 = scalar_lea.hbm %s18195_s22, 1296 }
  0x33   : > { %p17892_p10 = scmp.ne.s32.totalorder %s18195_s22, %s17891_s16  ;;  %s17896_s11 = scalar_lea.hbm %s21655_s5, 2592 }
  0x34   : > { %p17897_p13 = scmp.lt.s32.totalorder %s18195_s22, %s21655_s5  ;;  %p17898_p0 = scmp.lt.s32.totalorder %s17896_s11, %s17891_s16 }
  0x35   : > { %p17894_p11 = pnand %p17892_p10, %p18161_p7 }
  0x36   : > { %p17899_p1 = por %p17898_p0, %p17897_p13 }
  0x37   : > { %p17895_p12 = pneg %p17894_p11 }
  0x39   : > { %p17900_p2 = pnand %p17899_p1, %p17895_p12 }
  0x3b   : > { %17903 = shalt.err (!%p17900_p2)
}
  0x3c   : > { %s17904_s13 = scalar_lea.vmem %s307_s9, 1296  ;;  %s18049_s3 = smov [#allocation7]  }
  0x3d   : > { %p17905_p3 = scmp.ne.s32.totalorder %s307_s9, %s17904_s13  ;;  %s17909_s30 = sshll.u32 %s18049_s3, 4  ;;  %s17910_s30 = int_to_ptr.vmem [resolvable:$false] %s17909_s30 }
  0x3e   : > { %s17911_s23 = scalar_lea.vmem %s17910_s30, 2592  ;;  %p17912_p8 = scmp.lt.s32.totalorder %s307_s9, %s17910_s30 }
  0x3f   : > { %p17907_p4 = pnand %p17905_p3, %p18161_p7  ;;  %p17913_p10 = scmp.lt.s32.totalorder %s17911_s23, %s17904_s13 }
  0x41   : > { %p17908_p6 = pneg %p17907_p4  ;;  %p17914_p11 = por %p17913_p10, %p17912_p8 }
  0x43   : > { %p17915_p9 = pnand %p17914_p11, %p17908_p6 }
  0x45   : > { %17918 = shalt.err (!%p17915_p9)
}
  0x46   : > { %16047 = dma.hbm_to_vmem [thread:$0]  (!%p18139_p5), %s18195_s22, 1296, %s307_s9, %s18201_s8  }
  0x47   : > { %p21664_p12 = scmp.eq.s32.totalorder %s18190_s14, 0  ;;  %p14622_p13 = scmp.ge.s32.totalorder %s18043_s27, 1 }
  0x48   : > { %p222_p0 = scmp.lt.s32.totalorder %s18043_s27, 3  ;;  %p21740_p9 = scmp.ne.s32.totalorder %s18035_s25, %s18031_s24 }
  0x49   : > { %s18050_s16 = smov [#allocation2]   ;;  %s16015_s11 = smul.u32 8424, %s18136_s10 }
  0x4a   : > { %p18228_p1 = por %p21664_p12, %p21740_p9  ;;  %p18232_p2 = pnand %p14622_p13, %p222_p0 }
  0x4b   : > { %s235_s18 = sshll.u32 %s18050_s16, 4  ;;  %s21743_s9 = smul.u32 5184, %s18043_s27  ;;  %s236_s18 = int_to_ptr.vmem [resolvable:$true] %s235_s18 }
  0x4c   : > { %s21741_s20 = scalar_select %p18228_p1, 1, 0 }
  0x4d   : > { %s21742_s23 = scalar_select %p18232_p2, 1, 0 }
  0x4e   : > { %p16034_p3 = pneg %p18232_p2  ;;  %s18244_s24 = scalar_lea.hbm %s21654_s4, %s21743_s9 }
  0x4f   : > { %s277_s3 = scalar_lea.vmem [#allocation6], %s16015_s11  ;;  %s17930_s29 = scalar_lea.vmem %s236_s18, 32 }
  0x50   : > { %p18249_p4 = pnand %p16034_p3, %p21664_p12  ;;  %s284_s30 = sshll.u32 %s277_s3, 4  ;;  %s18253_s30 = int_to_ptr.vmem [resolvable:$true] %s284_s30 }
  0x51   : > { %p17931_p8 = scmp.ne.s32.totalorder %s236_s18, %s17930_s29  ;;  %p17938_p13 = scmp.lt.s32.totalorder %s236_s18, %s236_s18 }
  0x52   : > { %p17921_p6 = pneg %p18249_p4  ;;  %p17939_p0 = scmp.lt.s32.totalorder %s17930_s29, %s17930_s29 }
  0x54   : > { %p17933_p10 = pnand %p17931_p8, %p17921_p6  ;;  %p17940_p9 = por %p17939_p0, %p17938_p13 }
  0x56   : > { %p17934_p11 = pneg %p17933_p10 }
  0x58   : > { %p17941_p1 = pnand %p17940_p9, %p17934_p11 }
  0x5a   : > { %17944 = shalt.err (!%p17941_p1)
}
  0x5b   : > { %s21745_s0 = sld [smem:[#allocation86_spill]]  ;;  %s17945_s11 = scalar_lea.hbm %s18244_s24, 134784 }
  0x5c   : > { %p17946_p3 = scmp.ne.s32.totalorder %s18244_s24, %s17945_s11  ;;  %s17950_s3 = scalar_lea.hbm %s21654_s4, 269568 }
  0x5d   : > { %p17951_p1 = scmp.lt.s32.totalorder %s18244_s24, %s21654_s4  ;;  %p17952_p10 = scmp.lt.s32.totalorder %s17950_s3, %s17945_s11 }
  0x5e   : > { %p17948_p6 = pnand %p17946_p3, %p18161_p7 }
  0x5f   : > { %p17953_p11 = por %p17952_p10, %p17951_p1 }
  0x60   : > { %p17949_p8 = pneg %p17948_p6 }
  0x61   : > { %16037 = dma.hbm_to_vmem [thread:$0]  (!%p18249_p4), %s21745_s0, 32, %s236_s18, [#allocation3]  }
  0x62   : > { %p17954_p13 = pnand %p17953_p11, %p17949_p8 }
  0x64   : > { %17957 = shalt.err (!%p17954_p13)
}
  0x65   : > { %s17958_s18 = scalar_lea.vmem %s18253_s30, 134784  ;;  %s18051_s13 = smov [#allocation6]  }
  0x66   : > { %p17959_p4 = scmp.ne.s32.totalorder %s18253_s30, %s17958_s18  ;;  %s17963_s9 = sshll.u32 %s18051_s13, 4  ;;  %s17964_s9 = int_to_ptr.vmem [resolvable:$false] %s17963_s9 }
  0x67   : > { %s17965_s22 = scalar_lea.vmem %s17964_s9, 269568  ;;  %p17966_p3 = scmp.lt.s32.totalorder %s18253_s30, %s17964_s9 }
  0x68   : > { %p17961_p0 = pnand %p17959_p4, %p18161_p7  ;;  %p17967_p6 = scmp.lt.s32.totalorder %s17965_s22, %s17958_s18 }
  0x6a   : > { %p17962_p9 = pneg %p17961_p0  ;;  %p17968_p12 = por %p17967_p6, %p17966_p3 }
  0x6c   : > { %p17969_p2 = pnand %p17968_p12, %p17962_p9 }
  0x6e   : > { %17972 = shalt.err (!%p17969_p2)
}
  0x6f   : > { %s21746_s17 = smov 324   ;;  %s21747_s16 = smov 5184  }
  0x70   : > { %s21748_s11 = smov 10368   ;;  %s21749_s15 = smul.u32 1728, %s18043_s27 }
  0x71   : > { %16044 = dma.hbm_to_vmem [thread:$0]  (!%p18139_p5), %s18244_s24, 134784, %s18253_s30, %s18155_s19, %s21748_s11, %s21747_s16, %s21746_s17  }
  0x72   : > { %s18292_s18 = scalar_lea.hbm %s21656_s6, %s21749_s15  ;;  %s21750_s13 = smul.u32 324, %s18136_s10 }
  0x73   : > { %s17973_s0 = scalar_lea.hbm %s18292_s18, 5184  ;;  %s17978_s24 = scalar_lea.hbm %s21656_s6, 10368 }
  0x74   : > { %s317_s9 = scalar_lea.vmem [#allocation9], %s21750_s13  ;;  %p17974_p12 = scmp.ne.s32.totalorder %s18292_s18, %s17973_s0 }
  0x75   : > { %s324_s22 = sshll.u32 %s317_s9, 4  ;;  %p17979_p1 = scmp.lt.s32.totalorder %s18292_s18, %s21656_s6  ;;  %s18296_s22 = int_to_ptr.vmem [resolvable:$true] %s324_s22 }
  0x76   : > { %p17976_p2 = pnand %p17974_p12, %p18161_p7  ;;  %p17980_p10 = scmp.lt.s32.totalorder %s17978_s24, %s17973_s0 }
  0x78   : > { %p17977_p8 = pneg %p17976_p2  ;;  %p17981_p11 = por %p17980_p10, %p17979_p1 }
  0x7a   : > { %p17982_p13 = pnand %p17981_p11, %p17977_p8 }
  0x7c   : > { %17985 = shalt.err (!%p17982_p13)
}
  0x7d   : > { %s17986_s10 = scalar_lea.vmem %s18296_s22, 5184  ;;  %s18052_s16 = smov [#allocation9]  }
  0x7e   : > { %p17987_p4 = scmp.ne.s32.totalorder %s18296_s22, %s17986_s10  ;;  %s17991_s11 = sshll.u32 %s18052_s16, 4  ;;  %s17992_s11 = int_to_ptr.vmem [resolvable:$false] %s17991_s11 }
  0x7f   : > { %s17993_s15 = scalar_lea.vmem %s17992_s11, 10368  ;;  %p17994_p3 = scmp.lt.s32.totalorder %s18296_s22, %s17992_s11 }
  0x80   : > { %p17989_p0 = pnand %p17987_p4, %p18161_p7  ;;  %p17995_p6 = scmp.lt.s32.totalorder %s17993_s15, %s17986_s10 }
  0x82   : > { %p17990_p9 = pneg %p17989_p0  ;;  %p17996_p12 = por %p17995_p6, %p17994_p3 }
  0x84   : > { %p17997_p2 = pnand %p17996_p12, %p17990_p9 }
  0x86   : > { %18000 = shalt.err (!%p17997_p2)
}
  0x87   : > { %s18053_s0 = smov 3456   ;;  %s18054_s29 = smov 1728  }
  0x88   : > { %s18055_s3 = smov 108   ;;  %p21751_p7 = scmp.ne.s32.totalorder %s21742_s23, 0 }
  0x89   : > { %16050 = dma.hbm_to_vmem [thread:$0]  (!%p18139_p5), %s18292_s18, 5184, %s18296_s22, %s18201_s8, %s18053_s0, %s18054_s29, %s18055_s3  }
  0x8a   : > { %336 = sbr.rel (%p21751_p7) target bundleno = 1787 (0x6fb), region = 48 }
  0x8f   : > { %p21752_p8 = scmp.eq.s32.totalorder %s18190_s14, 0 }
  0x91   : > { %18018 = dma.done.wait (%p21752_p8), [#allocation3], 32   ;;  %p21753_p1 = pmov %p21752_p8 }
  0x92   : > { %s342_s21 = sand.u32 1, %s18190_s14   ;;  %s18327_s13 = sand.u32 1, %s18035_s25  }
  0x93   : > { %18020 = vsyncadd (%p21753_p1), [#allocation3], 4294967264  ;;  %s16018_s9 = smul.u32 648, %s18327_s13  ;;  %s343_s19 = scalar_lea.sflag [#allocation5], %s342_s21 }
  0x94   : > { %p21754_p5 = scmp.ne.s32.totalorder %s21741_s20, 0 }
  0x95   : > { %s18330_s12 = scalar_lea.vmem [#allocation4], %s16018_s9 }
  0x96   : > { %18022 = dma.done.wait (%p21754_p5), %s343_s19, 145152  }
  0x97   : > { %18024 = vsyncadd (%p21754_p5), %s343_s19, 4294822144  ;;  %s16019_s8 = smul.u32 8424, %s18327_s13  ;;  %s361_s22 = scalar_lea.sflag [#allocation8], %s342_s21 }
  0x98   : > { %s16020_s23 = smul.u32 81, %s18327_s13 }
  0x99   : > { %s18338_s18 = scalar_lea.vmem [#allocation6], %s16019_s8 }
  0x9a   : > { %s18340_s27 = scalar_lea.vmem [#allocation7], %s16020_s23 }
  0x9b   : > { %18026 = dma.done.wait (%p21754_p5), %s361_s22, 6480  }
  0x9c   : > { %18028 = vsyncadd (%p21754_p5), %s361_s22, 4294960816  ;;  %v21666_v0 = vmov 0   ;;  %vm854_vm0 = vcmask 1044480   ;;  %v16098_v1 = vld [vmem:[%s18330_s12 + $0x4] ss:$324 sps:$4 sm:$0x1f]  }
  0x9d   : > { %1130 = vmatprep.mubr.bf16.mxu0 %v21666_v0  ;;  %1171 = vmatprep.mubr.bf16.mxu1 %v21666_v0  ;;  %v16100_v2 = vld [vmem:[%s18330_s12 + $0xc] ss:$324 sps:$4 sm:$0x1f]   ;;  %v16102_v3 = vld [vmem:[%s18330_s12] ss:$324 sps:$4 sm:$0x1f]  }
  0x9e   : > { %14713 = vmatprep.subr.msk.bf16.mxu0 %vm854_vm0, %v16098_v1  ;;  %v16103_v4 = vld [vmem:[%s18330_s12 + $0x8] ss:$324 sps:$4 sm:$0x1f]   ;;  %14715 = vmatprep.subr.msk.bf16.mxu1 %vm854_vm0, %v16100_v2  ;;  %v441_v5 = vld [vmem:[#allocation2] sm:$0x3]  ;;  %vm850_vm1 = vcmask 80896  }
  0x9f   : > { %v856_v6 = vsel %vm854_vm0, %v16102_v3, 0  ;;  %v862_v7 = vsel %vm854_vm0, %v16103_v4, 0  ;;  %v18356_v8 = vpack.c.bf16 %v441_v5, %v441_v5  ;;  %v16104_v9 = vld [vmem:[%s18330_s12 + $0x1c] ss:$324 sps:$4 sm:$0x1f]   ;;  %vm9552_vm2 = vcmask 646144  }
  0xa0   : > { %1113 = vmatpush1.bf16.msra.mxu0 %v856_v6  ;;  %1154 = vmatpush1.bf16.msra.mxu1 %v862_v7  ;;  %v16106_v10 = vld [vmem:[%s18330_s12 + $0x18] ss:$324 sps:$4 sm:$0x1f]   ;;  %v16109_v12 = vld [vmem:[%s18330_s12 + $0x10] ss:$324 sps:$4 sm:$0x1f]  }
  0xa1   : > { %14719 = vmatprep.subr.msk.bf16.mxu1 %vm854_vm0, %v16104_v9  ;;  %v16107_v11 = vld [vmem:[%s18330_s12 + $0x14] ss:$324 sps:$4 sm:$0x1f]   ;;  %v874_v13 = vsel %vm854_vm0, %v16106_v10, 0  ;;  %v868_v15 = vsel %vm854_vm0, %v16109_v12, 0  ;;  %vm18058_vm3 = vmmov 0  }
  0xa2   : > { %v16110_v14 = vld [vmem:[%s18330_s12 + $0x2c] ss:$324 sps:$4 sm:$0x1f]   ;;  %14717 = vmatprep.subr.msk.bf16.mxu0 %vm854_vm0, %v16107_v11  ;;  %v16113_v17 = vld [vmem:[%s18330_s12 + $0x24] ss:$324 sps:$4 sm:$0x1f]  }
  0xa3   : > { %14714 = vmatmul.mubr.msk.bf16.vlgmr.msra.gmra.mxu0 %vm850_vm1, %v18356_v8  ;;  %14716 = vmatmul.mubr.msk.bf16.vlgmr.msra.gmra.mxu1 %vm850_vm1, %v18356_v8  ;;  %v16112_v16 = vld [vmem:[%s18330_s12 + $0x28] ss:$324 sps:$4 sm:$0x1f]   ;;  %v16115_v18 = vld [vmem:[%s18330_s12 + $0x20] ss:$324 sps:$4 sm:$0x1f]  }
  0xa4   : > { %1236 = vmatpush1.bf16.msra.mxu1 %v874_v13  ;;  %1195 = vmatpush1.bf16.msra.mxu0 %v868_v15  ;;  %v16116_v19 = vld [vmem:[%s18330_s12 + $0x3c] ss:$324 sps:$4 sm:$0x1f]   ;;  %v886_v20 = vsel %vm854_vm0, %v16112_v16, 0  ;;  %v880_v21 = vsel %vm854_vm0, %v16115_v18, 0  ;;  %vm9556_vm4 = vcmask 1046528  }
  0xa5   : > { %1212 = vmatprep.mubr.bf16.mxu0 %v21666_v0  ;;  %1253 = vmatprep.mubr.bf16.mxu1 %v21666_v0  ;;  %v16119_v22 = vld [vmem:[%s18330_s12 + $0x34] ss:$324 sps:$4 sm:$0x1f]   ;;  %v16122_v27 = vld [vmem:[%s18330_s12 + $0x4c] ss:$324 sps:$4 sm:$0x1f]  }
  0xa6   : > { %14723 = vmatprep.subr.msk.bf16.mxu1 %vm854_vm0, %v16110_v14  ;;  %14721 = vmatprep.subr.msk.bf16.mxu0 %vm854_vm0, %v16113_v17  ;;  %v16118_v23 = vld [vmem:[%s18330_s12 + $0x38] ss:$324 sps:$4 sm:$0x1f]   ;;  %v16121_v24 = vld [vmem:[%s18330_s12 + $0x30] ss:$324 sps:$4 sm:$0x1f]  }
  0xa7   : > { %v898_v25 = vsel %vm854_vm0, %v16118_v23, 0  ;;  %v892_v26 = vsel %vm854_vm0, %v16121_v24, 0  ;;  %v16125_v28 = vld [vmem:[%s18330_s12 + $0x44] ss:$324 sps:$4 sm:$0x1f]   ;;  %vm9557_vm5 = vcmask 1047552  }
  0xa8   : > { %v16124_v29 = vld [vmem:[%s18330_s12 + $0x48] ss:$324 sps:$4 sm:$0x1f]   ;;  %v16127_v30 = vld [vmem:[%s18330_s12 + $0x40] ss:$324 sps:$4 sm:$0x1f]  }
  0xa9   : > { %v910_v31 = vsel %vm854_vm0, %v16124_v29, 0  ;;  %v904_v32 = vsel %vm854_vm0, %v16127_v30, 0  ;;  %v16128_v33 = vld [vmem:[%s18330_s12 + $0x5c] ss:$324 sps:$4 sm:$0x1f]   ;;  %s16021_s30 = smul.u32 324, %s18327_s13 }
  0xaa   : > { %v16131_v34 = vld [vmem:[%s18330_s12 + $0x54] ss:$324 sps:$4 sm:$0x1f]   ;;  %v16134_v39 = vld [vmem:[%s18330_s12 + $0x6c] ss:$324 sps:$4 sm:$0x1f]  }
  0xab   : > { %14718 = vmatmul.mubr.msk.bf16.vlgmr.msra.gmra.mxu0 %vm850_vm1, %v18356_v8  ;;  %14720 = vmatmul.mubr.msk.bf16.vlgmr.msra.gmra.mxu1 %vm850_vm1, %v18356_v8  ;;  %v16130_v35 = vld [vmem:[%s18330_s12 + $0x58] ss:$324 sps:$4 sm:$0x1f]   ;;  %v16133_v36 = vld [vmem:[%s18330_s12 + $0x50] ss:$324 sps:$4 sm:$0x1f]  }
  0xac   : > { %1318 = vmatpush1.bf16.msra.mxu1 %v886_v20  ;;  %1277 = vmatpush1.bf16.msra.mxu0 %v880_v21  ;;  %v922_v37 = vsel %vm854_vm0, %v16130_v35, 0  ;;  %v916_v38 = vsel %vm854_vm0, %v16133_v36, 0  ;;  %v16137_v40 = vld [vmem:[%s18330_s12 + $0x64] ss:$324 sps:$4 sm:$0x1f]   ;;  %s20218_s17 = scalar_lea.vmem [#allocation9], %s16021_s30 }
  0xad   : > { %1294 = vmatprep.mubr.bf16.mxu0 %v21666_v0  ;;  %1335 = vmatprep.mubr.bf16.mxu1 %v21666_v0  ;;  %v16136_v41 = vld [vmem:[%s18330_s12 + $0x68] ss:$324 sps:$4 sm:$0x1f]   ;;  %v16139_v42 = vld [vmem:[%s18330_s12 + $0x60] ss:$324 sps:$4 sm:$0x1f]  }
  0xae   : > { %14727 = vmatprep.subr.msk.bf16.mxu1 %vm854_vm0, %v16116_v19  ;;  %14725 = vmatprep.subr.msk.bf16.mxu0 %vm854_vm0, %v16119_v22  ;;  %v934_v43 = vsel %vm854_vm0, %v16136_v41, 0  ;;  %v928_v44 = vsel %vm854_vm0, %v16139_v42, 0  ;;  %v16140_v45 = vld [vmem:[%s18330_s12 + $0x7c] ss:$324 sps:$4 sm:$0x1f]   ;;  %vm11828_vm6 = vcmask 1043456  }
  0xaf   : > { %v16143_v46 = vld [vmem:[%s18330_s12 + $0x74] ss:$324 sps:$4 sm:$0x1f]   ;;  %v16146_v49 = vld [vmem:[%s18330_s12 + $0x8c] ss:$324 sps:$4 sm:$0x1f]  }
  0xb0   : > { %v16142_v47 = vld [vmem:[%s18330_s12 + $0x78] ss:$324 sps:$4 sm:$0x1f]   ;;  %v16145_v48 = vld [vmem:[%s18330_s12 + $0x70] ss:$324 sps:$4 sm:$0x1f]  }
  0xb1   : > { %v946_v50 = vsel %vm854_vm0, %v16142_v47, 0  ;;  %v940_v51 = vsel %vm854_vm0, %v16145_v48, 0  ;;  %v16149_v52 = vld [vmem:[%s18330_s12 + $0x84] ss:$324 sps:$4 sm:$0x1f]   ;;  %vm11821_vm7 = vcmask 195584  }
  0xb2   : > { %v16148_v53 = vld [vmem:[%s18330_s12 + $0x88] ss:$324 sps:$4 sm:$0x1f]   ;;  %v16151_v54 = vld [vmem:[%s18330_s12 + $0x80] ss:$324 sps:$4 sm:$0x1f]  }
  0xb3   : > { %14722 = vmatmul.mubr.msk.bf16.vlgmr.msra.gmra.mxu0 %vm850_vm1, %v18356_v8  ;;  %14724 = vmatmul.mubr.msk.bf16.vlgmr.msra.gmra.mxu1 %vm850_vm1, %v18356_v8  ;;  %v958_v55 = vsel %vm854_vm0, %v16148_v53, 0  ;;  %v952_v56 = vsel %vm854_vm0, %v16151_v54, 0  ;;  %v16152_v57 = vld [vmem:[%s18330_s12 + $0x9c] ss:$324 sps:$4 sm:$0x1f]   ;;  %s423_s0 = smul.u32 81, %s18190_s14 }
  0xb4   : > { %1400 = vmatpush1.bf16.msra.mxu1 %v898_v25  ;;  %1359 = vmatpush1.bf16.msra.mxu0 %v892_v26  ;;  %v16155_v58 = vld [vmem:[%s18330_s12 + $0x94] ss:$324 sps:$4 sm:$0x1f]   ;;  %v16158_v63 = vld [vmem:[%s18330_s12 + $0xac] ss:$324 sps:$4 sm:$0x1f]  }
  0xb5   : > { %1376 = vmatprep.mubr.bf16.mxu0 %v21666_v0  ;;  %1417 = vmatprep.mubr.bf16.mxu1 %v21666_v0  ;;  %v16154_v59 = vld [vmem:[%s18330_s12 + $0x98] ss:$324 sps:$4 sm:$0x1f]   ;;  %v16157_v60 = vld [vmem:[%s18330_s12 + $0x90] ss:$324 sps:$4 sm:$0x1f]  }
  0xb6   : > { %14731 = vmatprep.subr.msk.bf16.mxu1 %vm854_vm0, %v16122_v27  ;;  %14729 = vmatprep.subr.msk.bf16.mxu0 %vm854_vm0, %v16125_v28  ;;  %v970_v61 = vsel %vm854_vm0, %v16154_v59, 0  ;;  %v964_v62 = vsel %vm854_vm0, %v16157_v60, 0  ;;  %v16161_v1 = vld [vmem:[%s18330_s12 + $0xa4] ss:$324 sps:$4 sm:$0x1f]   ;;  %p20884_p10 = scmp.lt.s32.totalorder %s423_s0, 161 }
  0xb7   : > { %v16160_v2 = vld [vmem:[%s18330_s12 + $0xa8] ss:$324 sps:$4 sm:$0x1f]   ;;  %v16163_v3 = vld [vmem:[%s18330_s12 + $0xa0] ss:$324 sps:$4 sm:$0x1f]  }
  0xb8   : > { %v982_v4 = vsel %vm854_vm0, %v16160_v2, 0  ;;  %v976_v5 = vsel %vm854_vm0, %v16163_v3, 0  ;;  %v16164_v6 = vld [vmem:[%s18330_s12 + $0xbc] ss:$324 sps:$4 sm:$0x1f]   ;;  %v18057_v2 = vmov 0.0  }
  0xb9   : > { %v16167_v7 = vld [vmem:[%s18330_s12 + $0xb4] ss:$324 sps:$4 sm:$0x1f]   ;;  %v16170_v13 = vld [vmem:[%s18330_s12 + $0xcc] ss:$324 sps:$4 sm:$0x1f]  }
  0xba   : > { %v16166_v9 = vld [vmem:[%s18330_s12 + $0xb8] ss:$324 sps:$4 sm:$0x1f]   ;;  %v16169_v10 = vld [vmem:[%s18330_s12 + $0xb0] ss:$324 sps:$4 sm:$0x1f]  }
  0xbb   : > { %14726 = vmatmul.mubr.msk.bf16.vlgmr.msra.gmra.mxu0 %vm850_vm1, %v18356_v8  ;;  %14728 = vmatmul.mubr.msk.bf16.vlgmr.msra.gmra.mxu1 %vm850_vm1, %v18356_v8  ;;  %v994_v11 = vsel %vm854_vm0, %v16166_v9, 0  ;;  %v988_v12 = vsel %vm854_vm0, %v16169_v10, 0  ;;  %v16173_v14 = vld [vmem:[%s18330_s12 + $0xc4] ss:$324 sps:$4 sm:$0x1f]   ;;  %s22001_s0 = smov (!%p20884_p10, %s423_s0), 161 }
  0xbc   : > { %1482 = vmatpush1.bf16.msra.mxu1 %v910_v31  ;;  %1441 = vmatpush1.bf16.msra.mxu0 %v904_v32  ;;  %v16172_v15 = vld [vmem:[%s18330_s12 + $0xc8] ss:$324 sps:$4 sm:$0x1f]   ;;  %v16175_v16 = vld [vmem:[%s18330_s12 + $0xc0] ss:$324 sps:$4 sm:$0x1f]  }
  0xbd   : > { %1458 = vmatprep.mubr.bf16.mxu0 %v21666_v0  ;;  %1499 = vmatprep.mubr.bf16.mxu1 %v21666_v0  ;;  %v1006_v17 = vsel %vm854_vm0, %v16172_v15, 0  ;;  %v1000_v18 = vsel %vm854_vm0, %v16175_v16, 0  ;;  %v16176_v19 = vld [vmem:[%s18330_s12 + $0xdc] ss:$324 sps:$4 sm:$0x1f]   ;;  %s14631_s14 = sshll.u32 %s22001_s0, 1 }
  0xbe   : > { %14735 = vmatprep.subr.msk.bf16.mxu1 %vm854_vm0, %v16128_v33  ;;  %14733 = vmatprep.subr.msk.bf16.mxu0 %vm854_vm0, %v16131_v34  ;;  %v16179_v20 = vld [vmem:[%s18330_s12 + $0xd4] ss:$324 sps:$4 sm:$0x1f]   ;;  %v16182_v25 = vld [vmem:[%s18330_s12 + $0xec] ss:$324 sps:$4 sm:$0x1f]   ;;  %s20924_s13 = scalar_lea.vmem %s21657_s7, %s14631_s14 }
  0xbf   : > { %v16178_v21 = vld [vmem:[%s18330_s12 + $0xd8] ss:$324 sps:$4 sm:$0x1f]   ;;  %v16181_v22 = vld [vmem:[%s18330_s12 + $0xd0] ss:$324 sps:$4 sm:$0x1f]  }
  0xc0   : > { %v1018_v23 = vsel %vm854_vm0, %v16178_v21, 0  ;;  %v1012_v24 = vsel %vm854_vm0, %v16181_v22, 0  ;;  %v16185_v26 = vld [vmem:[%s18330_s12 + $0xe4] ss:$324 sps:$4 sm:$0x1f]  }
  0xc1   : > { %v16184_v27 = vld [vmem:[%s18330_s12 + $0xe8] ss:$324 sps:$4 sm:$0x1f]   ;;  %v16187_v28 = vld [vmem:[%s18330_s12 + $0xe0] ss:$324 sps:$4 sm:$0x1f]  }
  0xc2   : > { %v1030_v29 = vsel %vm854_vm0, %v16184_v27, 0  ;;  %v1024_v30 = vsel %vm854_vm0, %v16187_v28, 0  ;;  %v16188_v31 = vld [vmem:[%s18330_s12 + $0xfc] ss:$324 sps:$4 sm:$0x1f]   ;;  %v18059_v28 = vmov 65535  }
  0xc3   : > { %14730 = vmatmul.mubr.msk.bf16.vlgmr.msra.gmra.mxu0 %vm850_vm1, %v18356_v8  ;;  %14732 = vmatmul.mubr.msk.bf16.vlgmr.msra.gmra.mxu1 %vm850_vm1, %v18356_v8  ;;  %v16191_v32 = vld [vmem:[%s18330_s12 + $0xf4] ss:$324 sps:$4 sm:$0x1f]   ;;  %v16227_v10 = vld [vmem:[%s18338_s18 + $0xcac] ss:$324 sps:$4 sm:$0xff]  }
  0xc4   : > { %1564 = vmatpush1.bf16.msra.mxu1 %v922_v37  ;;  %1523 = vmatpush1.bf16.msra.mxu0 %v916_v38  ;;  %v16190_v33 = vld [vmem:[%s18330_s12 + $0xf8] ss:$324 sps:$4 sm:$0x1f]   ;;  %v16193_v34 = vld [vmem:[%s18330_s12 + $0xf0] ss:$324 sps:$4 sm:$0x1f]  }
  0xc5   : > { %1540 = vmatprep.mubr.bf16.mxu0 %v21666_v0  ;;  %1581 = vmatprep.mubr.bf16.mxu1 %v21666_v0  ;;  %v1042_v35 = vsel %vm854_vm0, %v16190_v33, 0  ;;  %v1036_v36 = vsel %vm854_vm0, %v16193_v34, 0  ;;  %v16194_v37 = vld [vmem:[%s18330_s12 + $0x10c] ss:$324 sps:$4 sm:$0x1f]  }
  0xc6   : > { %14739 = vmatprep.subr.msk.bf16.mxu1 %vm854_vm0, %v16134_v39  ;;  %14737 = vmatprep.subr.msk.bf16.mxu0 %vm854_vm0, %v16137_v40  ;;  %v16197_v38 = vld [vmem:[%s18330_s12 + $0x104] ss:$324 sps:$4 sm:$0x1f]   ;;  %v16231_v15 = vld [vmem:[%s18338_s18 + $0xa20] ss:$324 sps:$4 sm:$0xff]  }
  0xc7   : > { %v16196_v39 = vld [vmem:[%s18330_s12 + $0x108] ss:$324 sps:$4 sm:$0x1f]   ;;  %v16199_v40 = vld [vmem:[%s18330_s12 + $0x100] ss:$324 sps:$4 sm:$0x1f]  }
  0xc8   : > { %v1054_v41 = vsel %vm854_vm0, %v16196_v39, 0  ;;  %v1048_v42 = vsel %vm854_vm0, %v16199_v40, 0  ;;  %v16234_v16 = vld [vmem:[%s18338_s18 + $0xf38] ss:$324 sps:$4 sm:$0xff]   ;;  %v16248_v21 = vld [vmem:[%s18338_s18 + $0xa2c] ss:$324 sps:$4 sm:$0xff]  }
  0xc9   : > { %v16243_v22 = vld [vmem:[%s18338_s18 + $0x510] ss:$324 sps:$4 sm:$0xff]   ;;  %v16252_v27 = vld [vmem:[%s18338_s18 + $0x7a0] ss:$324 sps:$4 sm:$0xff]   ;;  %v16258_v34 = vld [vmem:[%s18338_s18 + $0x518] ss:$324 sps:$4 sm:$0xff]  }
  0xca   : > { %v16255_v33 = vld [vmem:[%s18338_s18] ss:$324 sps:$4 sm:$0xff]   ;;  %v16264_v39 = vld [vmem:[%s18338_s18 + $0x290] ss:$324 sps:$4 sm:$0xff]  }
  0xcb   : > { %14734 = vmatmul.mubr.msk.bf16.vlgmr.msra.gmra.mxu0 %vm850_vm1, %v18356_v8  ;;  %14736 = vmatmul.mubr.msk.bf16.vlgmr.msra.gmra.mxu1 %vm850_vm1, %v18356_v8 }
  0xcc   : > { %1646 = vmatpush1.bf16.msra.mxu1 %v934_v43  ;;  %1605 = vmatpush1.bf16.msra.mxu0 %v928_v44  ;;  %v16200_v43 = vld [vmem:[%s18330_s12 + $0x11c] ss:$324 sps:$4 sm:$0x1f]   ;;  %v16203_v44 = vld [vmem:[%s18330_s12 + $0x114] ss:$324 sps:$4 sm:$0x1f]  }
  0xcd   : > { %1622 = vmatprep.mubr.bf16.mxu0 %v21666_v0  ;;  %1663 = vmatprep.mubr.bf16.mxu1 %v21666_v0 }
  0xce   : > { %14743 = vmatprep.subr.msk.bf16.mxu1 %vm854_vm0, %v16140_v45  ;;  %14741 = vmatprep.subr.msk.bf16.mxu0 %vm854_vm0, %v16143_v46  ;;  %v16202_v45 = vld [vmem:[%s18330_s12 + $0x118] ss:$324 sps:$4 sm:$0x1f]   ;;  %v16205_v46 = vld [vmem:[%s18330_s12 + $0x110] ss:$324 sps:$4 sm:$0x1f]  }
  0xcf   : > { %v1066_v47 = vsel %vm854_vm0, %v16202_v45, 0  ;;  %v1060_v48 = vsel %vm854_vm0, %v16205_v46, 0  ;;  %v16270_v45 = vld [vmem:[%s18338_s18 + $0x8] ss:$324 sps:$4 sm:$0xff]  }
  0xd0   : > { %v16276_v46 = vld [vmem:[%s18338_s18 + $0x1e68] ss:$324 sps:$4 sm:$0xff]  }
  0xd3   : > { %14738 = vmatmul.mubr.msk.bf16.vlgmr.msra.gmra.mxu0 %vm850_vm1, %v18356_v8  ;;  %14740 = vmatmul.mubr.msk.bf16.vlgmr.msra.gmra.mxu1 %vm850_vm1, %v18356_v8 }
  0xd4   : > { %1728 = vmatpush1.bf16.msra.mxu1 %v946_v50  ;;  %1687 = vmatpush1.bf16.msra.mxu0 %v940_v51  ;;  %v16209_v50 = vld [vmem:[%s18330_s12 + $0x124] ss:$324 sps:$4 sm:$0x1f]  }
  0xd5   : > { %1704 = vmatprep.mubr.bf16.mxu0 %v21666_v0  ;;  %1745 = vmatprep.mubr.bf16.mxu1 %v21666_v0  ;;  %v16208_v51 = vld [vmem:[%s18330_s12 + $0x128] ss:$324 sps:$4 sm:$0x1f]  }
  0xd6   : > { %14747 = vmatprep.subr.msk.bf16.mxu1 %vm854_vm0, %v16146_v49  ;;  %14745 = vmatprep.subr.msk.bf16.mxu0 %vm854_vm0, %v16149_v52  ;;  %v16206_v49 = vld [vmem:[%s18330_s12 + $0x12c] ss:$324 sps:$4 sm:$0x1f]   ;;  %v16211_v52 = vld [vmem:[%s18330_s12 + $0x120] ss:$324 sps:$4 sm:$0x1f]  }
  0xd7   : > { %v1078_v53 = vsel %vm854_vm0, %v16208_v51, 0  ;;  %v1072_v54 = vsel %vm854_vm0, %v16211_v52, 0  ;;  %v16281_v51 = vld [vmem:[%s18338_s18 + $0x16cc] ss:$324 sps:$4 sm:$0xff]   ;;  %v16284_v52 = vld [vmem:[%s18338_s18 + $0x1be4] ss:$324 sps:$4 sm:$0xff]  }
  0xdb   : > { %14742 = vmatmul.mubr.msk.bf16.vlgmr.msra.gmra.mxu0 %vm850_vm1, %v18356_v8  ;;  %14744 = vmatmul.mubr.msk.bf16.vlgmr.msra.gmra.mxu1 %vm850_vm1, %v18356_v8 }
  0xdc   : > { %1810 = vmatpush1.bf16.msra.mxu1 %v958_v55  ;;  %1769 = vmatpush1.bf16.msra.mxu0 %v952_v56  ;;  %v16212_v55 = vld [vmem:[%s18330_s12 + $0x13c] ss:$324 sps:$4 sm:$0x1f]   ;;  %v16215_v56 = vld [vmem:[%s18330_s12 + $0x134] ss:$324 sps:$4 sm:$0x1f]  }
  0xdd   : > { %1786 = vmatprep.mubr.bf16.mxu0 %v21666_v0  ;;  %1827 = vmatprep.mubr.bf16.mxu1 %v21666_v0 }
  0xde   : > { %14751 = vmatprep.subr.msk.bf16.mxu1 %vm854_vm0, %v16152_v57  ;;  %14749 = vmatprep.subr.msk.bf16.mxu0 %vm854_vm0, %v16155_v58  ;;  %v16214_v57 = vld [vmem:[%s18330_s12 + $0x138] ss:$324 sps:$4 sm:$0x1f]   ;;  %v16217_v58 = vld [vmem:[%s18330_s12 + $0x130] ss:$324 sps:$4 sm:$0x1f]  }
  0xdf   : > { %v1090_v59 = vsel %vm854_vm0, %v16214_v57, 0  ;;  %v1084_v60 = vsel %vm854_vm0, %v16217_v58, 0 }
  0xe3   : > { %14746 = vmatmul.mubr.msk.bf16.vlgmr.msra.gmra.mxu0 %vm850_vm1, %v18356_v8  ;;  %14748 = vmatmul.mubr.msk.bf16.vlgmr.msra.gmra.mxu1 %vm850_vm1, %v18356_v8 }
  0xe4   : > { %1892 = vmatpush1.bf16.msra.mxu1 %v970_v61  ;;  %1851 = vmatpush1.bf16.msra.mxu0 %v964_v62  ;;  %v16220_v61 = vld [vmem:[%s18338_s18 + $0x11bc] ss:$324 sps:$4 sm:$0xff]   ;;  %v18622_v62 = vld.sshfl [vmem:[%s21651_s1] sm:$0x33 pattern:$0x76325410] }
  0xe5   : > { %1868 = vmatprep.mubr.bf16.mxu0 %v21666_v0  ;;  %1909 = vmatprep.mubr.bf16.mxu1 %v21666_v0  ;;  %v3284_v3 = vcombine.high %v18622_v62, %v18622_v62 }
  0xe6   : > { %14755 = vmatprep.subr.msk.bf16.mxu1 %vm854_vm0, %v16158_v63  ;;  %14753 = vmatprep.subr.msk.bf16.mxu0 %vm854_vm0, %v16161_v1  ;;  %v16224_v63 = vld [vmem:[%s18330_s12 + $0x140] ss:$324 sps:$4 sm:$0x1f]   ;;  %v16218_v1 = vld [vmem:[%s18338_s18 + $0x11b8] ss:$324 sps:$4 sm:$0xff]  }
  0xe7   : > { %v18638_v9 = vpack.c.bf16 %v3284_v3, %v3284_v3 }
  0xeb   : > { %14750 = vmatmul.mubr.msk.bf16.vlgmr.msra.gmra.mxu0 %vm850_vm1, %v18356_v8  ;;  %14752 = vmatmul.mubr.msk.bf16.vlgmr.msra.gmra.mxu1 %vm850_vm1, %v18356_v8 }
  0xec   : > { %1974 = vmatpush1.bf16.msra.mxu1 %v982_v4  ;;  %1933 = vmatpush1.bf16.msra.mxu0 %v976_v5  ;;  %v16223_v4 = vld [vmem:[%s18338_s18 + $0xf34] ss:$324 sps:$4 sm:$0xff]   ;;  %v1096_v5 = vsel %vm854_vm0, %v16224_v63, 0 }
  0xed   : > { %1950 = vmatprep.mubr.bf16.mxu0 %v21666_v0  ;;  %1991 = vmatprep.mubr.bf16.mxu1 %v21666_v0  ;;  %v16288_v63 = vld [vmem:[%s18338_s18 + $0x1958] ss:$324 sps:$4 sm:$0xff]  }
  0xee   : > { %14759 = vmatprep.subr.msk.bf16.mxu1 %vm854_vm0, %v16164_v6  ;;  %14757 = vmatprep.subr.msk.bf16.mxu0 %vm854_vm0, %v16167_v7  ;;  %v16221_v6 = vld [vmem:[%s18338_s18 + $0xf30] ss:$324 sps:$4 sm:$0xff]   ;;  %v16230_v7 = vld [vmem:[%s18338_s18 + $0x11c4] ss:$324 sps:$4 sm:$0xff]  }
  0xf3   : > { %14754 = vmatmul.mubr.msk.bf16.vlgmr.msra.gmra.mxu0 %vm850_vm1, %v18356_v8  ;;  %14756 = vmatmul.mubr.msk.bf16.vlgmr.msra.gmra.mxu1 %vm850_vm1, %v18356_v8 }
  0xf4   : > { %2056 = vmatpush1.bf16.msra.mxu1 %v994_v11  ;;  %2015 = vmatpush1.bf16.msra.mxu0 %v988_v12  ;;  %v16225_v11 = vld [vmem:[%s18338_s18 + $0xca8] ss:$324 sps:$4 sm:$0xff]   ;;  %v16228_v12 = vld [vmem:[%s18338_s18 + $0x11c0] ss:$324 sps:$4 sm:$0xff]  }
  0xf5   : > { %2032 = vmatprep.mubr.bf16.mxu0 %v21666_v0  ;;  %2073 = vmatprep.mubr.bf16.mxu1 %v21666_v0 }
  0xf6   : > { %14763 = vmatprep.subr.msk.bf16.mxu1 %vm854_vm0, %v16170_v13  ;;  %14761 = vmatprep.subr.msk.bf16.mxu0 %vm854_vm0, %v16173_v14  ;;  %v16233_v13 = vld [vmem:[%s18338_s18 + $0xa24] ss:$324 sps:$4 sm:$0xff]   ;;  %v16236_v14 = vld [vmem:[%s18338_s18 + $0xf3c] ss:$324 sps:$4 sm:$0xff]  }
  0xfb   : > { %14758 = vmatmul.mubr.msk.bf16.vlgmr.msra.gmra.mxu0 %vm850_vm1, %v18356_v8  ;;  %14760 = vmatmul.mubr.msk.bf16.vlgmr.msra.gmra.mxu1 %vm850_vm1, %v18356_v8 }
  0xfc   : > { %2138 = vmatpush1.bf16.msra.mxu1 %v1006_v17  ;;  %2097 = vmatpush1.bf16.msra.mxu0 %v1000_v18  ;;  %v16239_v17 = vld [vmem:[%s18338_s18 + $0x79c] ss:$324 sps:$4 sm:$0xff]   ;;  %v16242_v18 = vld [vmem:[%s18338_s18 + $0xcb4] ss:$324 sps:$4 sm:$0xff]  }
  0xfd   : > { %2114 = vmatprep.mubr.bf16.mxu0 %v21666_v0  ;;  %2155 = vmatprep.mubr.bf16.mxu1 %v21666_v0 }
  0xfe   : > { %14767 = vmatprep.subr.msk.bf16.mxu1 %vm854_vm0, %v16176_v19  ;;  %14765 = vmatprep.subr.msk.bf16.mxu0 %vm854_vm0, %v16179_v20  ;;  %v16237_v19 = vld [vmem:[%s18338_s18 + $0x798] ss:$324 sps:$4 sm:$0xff]   ;;  %v16240_v20 = vld [vmem:[%s18338_s18 + $0xcb0] ss:$324 sps:$4 sm:$0xff]  }
 0x103   : > { %14762 = vmatmul.mubr.msk.bf16.vlgmr.msra.gmra.mxu0 %vm850_vm1, %v18356_v8  ;;  %14764 = vmatmul.mubr.msk.bf16.vlgmr.msra.gmra.mxu1 %vm850_vm1, %v18356_v8 }
 0x104   : > { %2220 = vmatpush1.bf16.msra.mxu1 %v1018_v23  ;;  %2179 = vmatpush1.bf16.msra.mxu0 %v1012_v24  ;;  %v16246_v23 = vld [vmem:[%s18338_s18 + $0xa28] ss:$324 sps:$4 sm:$0xff]  }
 0x105   : > { %2196 = vmatprep.mubr.bf16.mxu0 %v21666_v0  ;;  %2237 = vmatprep.mubr.bf16.mxu1 %v21666_v0  ;;  %v16251_v24 = vld [vmem:[%s18338_s18 + $0x28c] ss:$324 sps:$4 sm:$0xff]  }
 0x106   : > { %14771 = vmatprep.subr.msk.bf16.mxu1 %vm854_vm0, %v16182_v25  ;;  %14769 = vmatprep.subr.msk.bf16.mxu0 %vm854_vm0, %v16185_v26  ;;  %v16254_v25 = vld [vmem:[%s18338_s18 + $0x7a4] ss:$324 sps:$4 sm:$0xff]  }
 0x107   : > { %v16249_v26 = vld [vmem:[%s18338_s18 + $0x288] ss:$324 sps:$4 sm:$0xff]  }
 0x10b   : > { %14766 = vmatmul.mubr.msk.bf16.vlgmr.msra.gmra.mxu0 %vm850_vm1, %v18356_v8  ;;  %14768 = vmatmul.mubr.msk.bf16.vlgmr.msra.gmra.mxu1 %vm850_vm1, %v18356_v8 }
 0x10c   : > { %2302 = vmatpush1.bf16.msra.mxu1 %v1030_v29  ;;  %2261 = vmatpush1.bf16.msra.mxu0 %v1024_v30  ;;  %v9558_v29 = vsel %vm9556_vm4, 4294967295, %v18059_v28  ;;  %v16257_v30 = vld [vmem:[%s18338_s18 + $0x4] ss:$324 sps:$4 sm:$0xff]   ;;  %v16311_v28 = vld [vmem:[%s18338_s18 + $0xa34] ss:$324 sps:$4 sm:$0xff]  }
 0x10d   : > { %2278 = vmatprep.mubr.bf16.mxu0 %v21666_v0  ;;  %2319 = vmatprep.mubr.bf16.mxu1 %v21666_v0 }
 0x10e   : > { %14775 = vmatprep.subr.msk.bf16.mxu1 %vm854_vm0, %v16188_v31  ;;  %14773 = vmatprep.subr.msk.bf16.mxu0 %vm854_vm0, %v16191_v32  ;;  %v16260_v31 = vld [vmem:[%s18338_s18 + $0x51c] ss:$324 sps:$4 sm:$0xff]   ;;  %v16263_v32 = vld [vmem:[%s18338_s18 + $0x1e64] ss:$324 sps:$4 sm:$0xff]  }
 0x113   : > { %14770 = vmatmul.mubr.msk.bf16.vlgmr.msra.gmra.mxu0 %vm850_vm1, %v18356_v8  ;;  %14772 = vmatmul.mubr.msk.bf16.vlgmr.msra.gmra.mxu1 %vm850_vm1, %v18356_v8 }
 0x114   : > { %2384 = vmatpush1.bf16.msra.mxu1 %v1042_v35  ;;  %2343 = vmatpush1.bf16.msra.mxu0 %v1036_v36  ;;  %v16261_v35 = vld [vmem:[%s18338_s18 + $0x1e60] ss:$324 sps:$4 sm:$0xff]   ;;  %v18675_v36 = vsel %vm9557_vm5, %v9558_v29, 0 }
 0x115   : > { %2360 = vmatprep.mubr.bf16.mxu0 %v21666_v0  ;;  %2401 = vmatprep.mubr.bf16.mxu1 %v21666_v0  ;;  %v9561_v40 = vand.u32 %v16261_v35, %v18675_v36 }
 0x116   : > { %14779 = vmatprep.subr.msk.bf16.mxu1 %vm854_vm0, %v16194_v37  ;;  %14777 = vmatprep.subr.msk.bf16.mxu0 %vm854_vm0, %v16197_v38  ;;  %v9564_v37 = vand.u32 %v16263_v32, %v18675_v36  ;;  %v16266_v38 = vld [vmem:[%s18338_s18 + $0x294] ss:$324 sps:$4 sm:$0xff]  }
 0x117   : > { %v16309_v32 = vld [vmem:[%s18338_s18 + $0xa30] ss:$324 sps:$4 sm:$0xff]  }
 0x11b   : > { %14774 = vmatmul.mubr.msk.bf16.vlgmr.msra.gmra.mxu0 %vm850_vm1, %v18356_v8  ;;  %14776 = vmatmul.mubr.msk.bf16.vlgmr.msra.gmra.mxu1 %vm850_vm1, %v18356_v8 }
 0x11c   : > { %2466 = vmatpush1.bf16.msra.mxu1 %v1054_v41  ;;  %2425 = vmatpush1.bf16.msra.mxu0 %v1048_v42  ;;  %v16269_v41 = vld [vmem:[%s18338_s18 + $0x1bdc] ss:$324 sps:$4 sm:$0xff]   ;;  %v16272_v42 = vld [vmem:[%s18338_s18 + $0xc] ss:$324 sps:$4 sm:$0xff]  }
 0x11d   : > { %2442 = vmatprep.mubr.bf16.mxu0 %v21666_v0  ;;  %2483 = vmatprep.mubr.bf16.mxu1 %v21666_v0 }
 0x11e   : > { %14783 = vmatprep.subr.msk.bf16.mxu1 %vm854_vm0, %v16200_v43  ;;  %14781 = vmatprep.subr.msk.bf16.mxu0 %vm854_vm0, %v16203_v44  ;;  %v16278_v43 = vld [vmem:[%s18338_s18 + $0x1e6c] ss:$324 sps:$4 sm:$0xff]   ;;  %v16267_v44 = vld [vmem:[%s18338_s18 + $0x1bd8] ss:$324 sps:$4 sm:$0xff]  }
 0x123   : > { %14778 = vmatmul.mubr.msk.bf16.vlgmr.msra.gmra.mxu0 %vm850_vm1, %v18356_v8  ;;  %14780 = vmatmul.mubr.msk.bf16.vlgmr.msra.gmra.mxu1 %vm850_vm1, %v18356_v8 }
 0x124   : > { %2548 = vmatpush1.bf16.msra.mxu1 %v1066_v47  ;;  %2507 = vmatpush1.bf16.msra.mxu0 %v1060_v48  ;;  %v16275_v47 = vld [vmem:[%s18338_s18 + $0x1954] ss:$324 sps:$4 sm:$0xff]   ;;  %v9570_v48 = vand.u32 %v16278_v43, %v18675_v36 }
 0x125   : > { %2524 = vmatprep.mubr.bf16.mxu0 %v21666_v0  ;;  %2565 = vmatprep.mubr.bf16.mxu1 %v21666_v0 }
 0x126   : > { %14787 = vmatprep.subr.msk.bf16.mxu1 %vm854_vm0, %v16206_v49  ;;  %14785 = vmatprep.subr.msk.bf16.mxu0 %vm854_vm0, %v16209_v50  ;;  %v16273_v49 = vld [vmem:[%s18338_s18 + $0x1950] ss:$324 sps:$4 sm:$0xff]   ;;  %v9567_v50 = vand.u32 %v16276_v46, %v18675_v36 }
 0x12b   : > { %14782 = vmatmul.mubr.msk.bf16.vlgmr.msra.gmra.mxu0 %vm850_vm1, %v18356_v8  ;;  %14784 = vmatmul.mubr.msk.bf16.vlgmr.msra.gmra.mxu1 %vm850_vm1, %v18356_v8 }
 0x12c   : > { %2630 = vmatpush1.bf16.msra.mxu1 %v1078_v53  ;;  %2589 = vmatpush1.bf16.msra.mxu0 %v1072_v54  ;;  %v16279_v53 = vld [vmem:[%s18338_s18 + $0x16c8] ss:$324 sps:$4 sm:$0xff]   ;;  %v16282_v54 = vld [vmem:[%s18338_s18 + $0x1be0] ss:$324 sps:$4 sm:$0xff]  }
 0x12d   : > { %2606 = vmatprep.mubr.bf16.mxu0 %v21666_v0  ;;  %2647 = vmatprep.mubr.bf16.mxu1 %v21666_v0 }
 0x12e   : > { %14791 = vmatprep.subr.msk.bf16.mxu1 %vm854_vm0, %v16212_v55  ;;  %14789 = vmatprep.subr.msk.bf16.mxu0 %vm854_vm0, %v16215_v56 }
 0x133   : > { %14786 = vmatmul.mubr.msk.bf16.vlgmr.msra.gmra.mxu0 %vm850_vm1, %v18356_v8  ;;  %14788 = vmatmul.mubr.msk.bf16.vlgmr.msra.gmra.mxu1 %vm850_vm1, %v18356_v8 }
 0x134   : > { %2712 = vmatpush1.bf16.msra.mxu1 %v1090_v59  ;;  %2671 = vmatpush1.bf16.msra.mxu0 %v1084_v60  ;;  %v16287_v59 = vld [vmem:[%s18338_s18 + $0x1444] ss:$324 sps:$4 sm:$0xff]   ;;  %v16290_v60 = vld [vmem:[%s18338_s18 + $0x195c] ss:$324 sps:$4 sm:$0xff]  }
 0x135   : > { %2688 = vmatprep.mubr.bf16.mxu0 %v21666_v0  ;;  %2729 = vmatprep.mubr.bf16.mxu1 %v21666_v0  ;;  %v16413_v0 = vld [vmem:[%s18338_s18 + $0x24] ss:$324 sps:$4 sm:$0xff]  }
 0x136   : > { %9803 = vmatprep.subr.bf16.mxu1 %v16220_v61  ;;  %15999 = vmatprep.subr.bf16.mxu0 %v18057_v2  ;;  %v16285_v61 = vld [vmem:[%s18338_s18 + $0x1440] ss:$324 sps:$4 sm:$0xff]  }
 0x13b   : > { %14790 = vmatmul.mubr.msk.bf16.vlgmr.msra.gmra.mxu0 %vm850_vm1, %v18356_v8  ;;  %14792 = vmatmul.mubr.msk.bf16.vlgmr.msra.gmra.mxu1 %vm850_vm1, %v18356_v8 }
 0x13c   : > { %9804 = vmatpush1.bf16.msra.mxu1 %v16218_v1  ;;  %16000 = vmatpush3.bf16.msra.mxu0 %v1096_v5  ;;  %v16293_v5 = vld [vmem:[%s18338_s18 + $0x16d4] ss:$324 sps:$4 sm:$0xff]  }
 0x13d   : > { %9805 = vmatprep.subr.bf16.mxu1 %v16223_v4  ;;  %16001 = vmatprep.mubr.msk.bf16.mxu0 %vm18058_vm3, %v18057_v2 }
 0x13e   : > { %9844 = vmatprep.subr.bf16.mxu0 %v16230_v7  ;;  %15849 = vmatprep.mubr.msk.bf16.mxu1 %vm9552_vm2, %v18638_v9  ;;  %v16291_v7 = vld [vmem:[%s18338_s18 + $0x16d0] ss:$324 sps:$4 sm:$0xff]  }
 0x140   : > { %9806 = vmatpush1.bf16.msra.mxu1 %v16221_v6  ;;  %v16296_v6 = vld [vmem:[%s18338_s18 + $0x11cc] ss:$324 sps:$4 sm:$0xff]  }
 0x141   : > { %9807 = vmatprep.subr.bf16.mxu1 %v16227_v10  ;;  %v16294_v10 = vld [vmem:[%s18338_s18 + $0x11c8] ss:$324 sps:$4 sm:$0xff]  }
 0x143   : > { %16002 = vmatmul.mubr.msk.bf16.vlgmr.msra.gmra.mxu0 %vm850_vm1, %v18356_v8  ;;  %v16245_v8 = vld [vmem:[%s18338_s18 + $0x514] ss:$324 sps:$4 sm:$0xff]  }
 0x144   : > { %9808 = vmatpush1.bf16.msra.mxu1 %v16225_v11  ;;  %9845 = vmatpush1.bf16.msra.mxu0 %v16228_v12 }
 0x145   : > { %9809 = vmatprep.subr.bf16.mxu1 %v16233_v13  ;;  %9846 = vmatprep.subr.bf16.mxu0 %v16236_v14  ;;  %v18717_v13 = vpack.c.bf16 %v18622_v62, %v18622_v62 }
 0x146   : > { %15850 = vmatprep.mubr.msk.bf16.mxu0 %vm9552_vm2, %v18638_v9 }
 0x148   : > { %9810 = vmatpush1.bf16.msra.mxu1 %v16231_v15  ;;  %9847 = vmatpush1.bf16.msra.mxu0 %v16234_v16  ;;  %v16299_v16 = vld [vmem:[%s18338_s18 + $0x144c] ss:$324 sps:$4 sm:$0xff]  }
 0x149   : > { %9811 = vmatprep.subr.bf16.mxu1 %v16239_v17  ;;  %9848 = vmatprep.subr.bf16.mxu0 %v16242_v18  ;;  %v16302_v17 = vld [vmem:[%s18338_s18 + $0xf44] ss:$324 sps:$4 sm:$0xff]  }
 0x14a   : > { %v16297_v18 = vld [vmem:[%s18338_s18 + $0x1448] ss:$324 sps:$4 sm:$0xff]  }
 0x14c   : > { %9812 = vmatpush1.bf16.msra.mxu1 %v16237_v19  ;;  %9849 = vmatpush1.bf16.msra.mxu0 %v16240_v20  ;;  %v16300_v19 = vld [vmem:[%s18338_s18 + $0xf40] ss:$324 sps:$4 sm:$0xff]  }
 0x14d   : > { %9813 = vmatprep.subr.bf16.mxu1 %v16245_v8  ;;  %9850 = vmatprep.subr.bf16.mxu0 %v16248_v21 }
 0x150   : > { %9814 = vmatpush1.bf16.msra.mxu1 %v16243_v22  ;;  %9851 = vmatpush1.bf16.msra.mxu0 %v16246_v23  ;;  %v16305_v22 = vld [vmem:[%s18338_s18 + $0xcbc] ss:$324 sps:$4 sm:$0xff]   ;;  %v16308_v23 = vld [vmem:[%s18338_s18 + $0x11d4] ss:$324 sps:$4 sm:$0xff]  }
 0x151   : > { %9815 = vmatprep.subr.bf16.mxu1 %v16251_v24  ;;  %9852 = vmatprep.subr.bf16.mxu0 %v16254_v25  ;;  %v16303_v24 = vld [vmem:[%s18338_s18 + $0xcb8] ss:$324 sps:$4 sm:$0xff]  }
 0x154   : > { %9816 = vmatpush1.bf16.msra.mxu1 %v16249_v26  ;;  %9853 = vmatpush1.bf16.msra.mxu0 %v16252_v27  ;;  %v16306_v27 = vld [vmem:[%s18338_s18 + $0x11d0] ss:$324 sps:$4 sm:$0xff]  }
 0x155   : > { %9817 = vmatprep.subr.bf16.mxu1 %v16257_v30  ;;  %9854 = vmatprep.subr.bf16.mxu0 %v16260_v31  ;;  %v16314_v31 = vld [vmem:[%s18338_s18 + $0xf4c] ss:$324 sps:$4 sm:$0xff]  }
 0x158   : > { %9818 = vmatpush1.bf16.msra.mxu1 %v16255_v33  ;;  %9855 = vmatpush1.bf16.msra.mxu0 %v16258_v34  ;;  %v16312_v33 = vld [vmem:[%s18338_s18 + $0xf48] ss:$324 sps:$4 sm:$0xff]  }
 0x159   : > { %9825 = vmatprep.subr.bf16.mxu1 %v9564_v37  ;;  %9856 = vmatprep.subr.bf16.mxu0 %v16266_v38 }
 0x15c   : > { %9826 = vmatpush2.bf16.msra.mxu1 %v9561_v40  ;;  %9857 = vmatpush1.bf16.msra.mxu0 %v16264_v39  ;;  %v16317_v39 = vld [vmem:[%s18338_s18 + $0x7ac] ss:$324 sps:$4 sm:$0xff]   ;;  %v16320_v40 = vld [vmem:[%s18338_s18 + $0xcc4] ss:$324 sps:$4 sm:$0xff]  }
 0x15d   : > { %9827 = vmatprep.subr.bf16.mxu1 %v16269_v41  ;;  %9858 = vmatprep.subr.bf16.mxu0 %v16272_v42  ;;  %v16315_v41 = vld [vmem:[%s18338_s18 + $0x7a8] ss:$324 sps:$4 sm:$0xff]  }
 0x160   : > { %9828 = vmatpush2.bf16.msra.mxu1 %v16267_v44  ;;  %9859 = vmatpush1.bf16.msra.mxu0 %v16270_v45  ;;  %v16318_v44 = vld [vmem:[%s18338_s18 + $0xcc0] ss:$324 sps:$4 sm:$0xff]  }
 0x161   : > { %9829 = vmatprep.subr.bf16.mxu1 %v16275_v47  ;;  %9866 = vmatprep.subr.bf16.mxu0 %v9570_v48  ;;  %v16323_v45 = vld [vmem:[%s18338_s18 + $0x524] ss:$324 sps:$4 sm:$0xff]   ;;  %v16326_v48 = vld [vmem:[%s18338_s18 + $0xa3c] ss:$324 sps:$4 sm:$0xff]  }
 0x163   : > { %v18695_v55 = vpop.f32.mrf.mxu1  ;;  %v18697_v56 = vpop.f32.mrf.mxu0 }
 0x164   : > { %9830 = vmatpush2.bf16.msra.mxu1 %v16273_v49  ;;  %9867 = vmatpush2.bf16.msra.mxu0 %v9567_v50  ;;  %v16321_v49 = vld [vmem:[%s18338_s18 + $0x520] ss:$324 sps:$4 sm:$0xff]   ;;  %v16324_v50 = vld [vmem:[%s18338_s18 + $0xa38] ss:$324 sps:$4 sm:$0xff]  }
 0x165   : > { %v18699_v57 = vpop.f32.mrf.mxu1  ;;  %9831 = vmatprep.subr.bf16.mxu1 %v16281_v51  ;;  %9868 = vmatprep.subr.bf16.mxu0 %v16284_v52  ;;  %v18701_v58 = vpop.f32.mrf.mxu0 }
 0x167   : > { %v1177_v1 = vpop.f32.mrf.mxu1  ;;  %v1136_v2 = vpop.f32.mrf.mxu0 }
 0x168   : > { %9832 = vmatpush2.bf16.msra.mxu1 %v16279_v53  ;;  %9869 = vmatpush2.bf16.msra.mxu0 %v16282_v54  ;;  %v16327_v1 = vld [vmem:[%s18338_s18 + $0x298] ss:$324 sps:$4 sm:$0xff]   ;;  %v16330_v2 = vld [vmem:[%s18338_s18 + $0x7b0] ss:$324 sps:$4 sm:$0xff]  }
 0x169   : > { %v1178_v3 = vpop.f32.mrf.mxu1  ;;  %9833 = vmatprep.subr.bf16.mxu1 %v16287_v59  ;;  %9870 = vmatprep.subr.bf16.mxu0 %v16290_v60  ;;  %v1137_v4 = vpop.f32.mrf.mxu0  ;;  %v16329_v59 = vld [vmem:[%s18338_s18 + $0x29c] ss:$324 sps:$4 sm:$0xff]   ;;  %v16332_v60 = vld [vmem:[%s18338_s18 + $0x7b4] ss:$324 sps:$4 sm:$0xff]  }
 0x16a   : > { %v16335_v3 = vld [vmem:[%s18338_s18 + $0x14] ss:$324 sps:$4 sm:$0xff]  }
 0x16b   : > { %v18711_v11 = vpop.f32.mrf.mxu1  ;;  %v18713_v12 = vpop.f32.mrf.mxu0 }
 0x16c   : > { %9834 = vmatpush2.bf16.msra.mxu1 %v16285_v61  ;;  %9871 = vmatpush2.bf16.msra.mxu0 %v16288_v63 }
 0x16d   : > { %v18719_v14 = vpop.f32.mrf.mxu1  ;;  %9872 = vmatprep.subr.bf16.mxu0 %v16293_v5  ;;  %9885 = vmatprep.subr.bf16.mxu1 %v16296_v6  ;;  %v18721_v15 = vpop.f32.mrf.mxu0  ;;  %v16338_v6 = vld [vmem:[%s18338_s18 + $0x52c] ss:$324 sps:$4 sm:$0xff]  }
 0x16f   : > { %9836 = vmatmul.mubr.bf16.vlgmr.msra.gmra.mxu1 %v18717_v13  ;;  %v1259_v62 = vpop.f32.mrf.mxu1  ;;  %v1218_v20 = vpop.f32.mrf.mxu0 }
 0x170   : > { %9873 = vmatpush2.bf16.msra.mxu0 %v16291_v7  ;;  %9886 = vmatpush1.bf16.msra.mxu1 %v16294_v10  ;;  %v16341_v7 = vld [vmem:[%s18338_s18 + $0x1e74] ss:$324 sps:$4 sm:$0xff]   ;;  %v2789_v10 = vlaneseq }
 0x171   : > { %v1260_v8 = vpop.f32.mrf.mxu1  ;;  %9874 = vmatprep.subr.bf16.mxu0 %v16299_v16  ;;  %9887 = vmatprep.subr.bf16.mxu1 %v16302_v17  ;;  %v1219_v21 = vpop.f32.mrf.mxu0  ;;  %v16333_v16 = vld [vmem:[%s18338_s18 + $0x10] ss:$324 sps:$4 sm:$0xff]   ;;  %v16336_v17 = vld [vmem:[%s18338_s18 + $0x528] ss:$324 sps:$4 sm:$0xff]  }
 0x172   : > { %15851 = vmatprep.mubr.msk.bf16.mxu1 %vm9552_vm2, %v18638_v9  ;;  %v9576_v21 = vand.u32 %v16341_v7, %v18675_v36 }
 0x173   : > { %v18733_v25 = vpop.f32.mrf.mxu1  ;;  %v18735_v26 = vpop.f32.mrf.mxu0 }
 0x174   : > { %9875 = vmatpush2.bf16.msra.mxu0 %v16297_v18  ;;  %9888 = vmatpush1.bf16.msra.mxu1 %v16300_v19  ;;  %v16339_v18 = vld [vmem:[%s18338_s18 + $0x1e70] ss:$324 sps:$4 sm:$0xff]  }
 0x175   : > { %v18739_v29 = vpop.f32.mrf.mxu1  ;;  %9889 = vmatprep.subr.bf16.mxu1 %v16305_v22  ;;  %9926 = vmatprep.subr.bf16.mxu0 %v16308_v23  ;;  %v18741_v30 = vpop.f32.mrf.mxu0  ;;  %v16344_v22 = vld [vmem:[%s18338_s18 + $0x2a4] ss:$324 sps:$4 sm:$0xff]   ;;  %v18785_v23 = vshrl.u32 %v2789_v10, 7 }
 0x176   : > { %v16351_v10 = vld [vmem:[%s18338_s18 + $0x1960] ss:$324 sps:$4 sm:$0xff]  }
 0x177   : > { %9877 = vmatmul.mubr.bf16.vlgmr.msra.gmra.mxu0 %v18717_v13  ;;  %v1341_v34 = vpop.f32.mrf.mxu1  ;;  %v1300_v35 = vpop.f32.mrf.mxu0  ;;  %21755 = vst [vmem:[#allocation14_spill] sm:$0xff] %v18785_v23 }
 0x178   : > { %9890 = vmatpush1.bf16.msra.mxu1 %v16303_v24  ;;  %9927 = vmatpush1.bf16.msra.mxu0 %v16306_v27  ;;  %v16342_v24 = vld [vmem:[%s18338_s18 + $0x2a0] ss:$324 sps:$4 sm:$0xff]  }
 0x179   : > { %v1342_v37 = vpop.f32.mrf.mxu1  ;;  %9891 = vmatprep.subr.bf16.mxu1 %v16311_v28  ;;  %9928 = vmatprep.subr.bf16.mxu0 %v16314_v31  ;;  %v1301_v38 = vpop.f32.mrf.mxu0  ;;  %v9573_v31 = vand.u32 %v16339_v18, %v18675_v36 }
 0x17a   : > { %15852 = vmatprep.mubr.msk.bf16.mxu0 %vm9552_vm2, %v18638_v9  ;;  %v433_v37 = vld [vmem:[%s18340_s27 + $0x18] sm:$0xff]  ;;  %v16356_v38 = vld [vmem:[%s18338_s18 + $0x1e7c] ss:$324 sps:$4 sm:$0xff]  }
 0x17b   : > { %v18752_v42 = vpop.f32.mrf.mxu1  ;;  %v18754_v43 = vpop.f32.mrf.mxu0 }
 0x17c   : > { %9892 = vmatpush1.bf16.msra.mxu1 %v16309_v32  ;;  %9929 = vmatpush1.bf16.msra.mxu0 %v16312_v33  ;;  %v16347_v32 = vld [vmem:[%s18338_s18 + $0x1bec] ss:$324 sps:$4 sm:$0xff]   ;;  %v16350_v33 = vld [vmem:[%s18338_s18 + $0x1c] ss:$324 sps:$4 sm:$0xff]  }
 0x17d   : > { %v18758_v46 = vpop.f32.mrf.mxu1  ;;  %9893 = vmatprep.subr.bf16.mxu1 %v16317_v39  ;;  %9930 = vmatprep.subr.bf16.mxu0 %v16320_v40  ;;  %v18760_v47 = vpop.f32.mrf.mxu0  ;;  %v18802_v39 = vsub.s32 2, %v18785_v23  ;;  %v18805_v40 = vsub.s32 0, %v18785_v23 }
 0x17f   : > { %v1423_v51 = vpop.f32.mrf.mxu1  ;;  %v1382_v52 = vpop.f32.mrf.mxu0 }
 0x180   : > { %9894 = vmatpush1.bf16.msra.mxu1 %v16315_v41  ;;  %9931 = vmatpush1.bf16.msra.mxu0 %v16318_v44  ;;  %v16345_v41 = vld [vmem:[%s18338_s18 + $0x1be8] ss:$324 sps:$4 sm:$0xff]   ;;  %v16348_v44 = vld [vmem:[%s18338_s18 + $0x18] ss:$324 sps:$4 sm:$0xff]   ;;  %v2896_v51 = vrot.slane %v433_v37, %v18802_v39  ;;  %v2888_v52 = vrot.slane %v433_v37, %v18805_v40 }
 0x181   : > { %v1424_v53 = vpop.f32.mrf.mxu1  ;;  %9895 = vmatprep.subr.bf16.mxu1 %v16323_v45  ;;  %9932 = vmatprep.subr.bf16.mxu0 %v16326_v48  ;;  %v1383_v54 = vpop.f32.mrf.mxu0  ;;  %v16354_v45 = vld [vmem:[%s18338_s18 + $0x1e78] ss:$324 sps:$4 sm:$0xff]  }
 0x183   : > { %v18767_v61 = vpop.f32.mrf.mxu1  ;;  %v18769_v63 = vpop.f32.mrf.mxu0 }
 0x184   : > { %9896 = vmatpush1.bf16.msra.mxu1 %v16321_v49  ;;  %9933 = vmatpush1.bf16.msra.mxu0 %v16324_v50  ;;  %v18811_v50 = vsub.s32 1, %v18785_v23 }
 0x185   : > { %v18774_v4 = vpop.f32.mrf.mxu1  ;;  %9897 = vmatprep.subr.bf16.mxu1 %v16329_v59  ;;  %9934 = vmatprep.subr.bf16.mxu0 %v16332_v60  ;;  %v18776_v5 = vpop.f32.mrf.mxu0  ;;  %v16353_v59 = vld [vmem:[%s18338_s18 + $0x1964] ss:$324 sps:$4 sm:$0xff]   ;;  %v9582_v60 = vand.u32 %v16356_v38, %v18675_v36 }
 0x187   : > { %v1505_v19 = vpop.f32.mrf.mxu1  ;;  %v1464_v62 = vpop.f32.mrf.mxu0 }
 0x188   : > { %9898 = vmatpush1.bf16.msra.mxu1 %v16327_v1  ;;  %9935 = vmatpush1.bf16.msra.mxu0 %v16330_v2  ;;  %v2892_v1 = vrot.slane %v433_v37, %v18811_v50  ;;  %v16359_v19 = vld [vmem:[%s18338_s18 + $0x16dc] ss:$324 sps:$4 sm:$0xff]   ;;  %v16362_v62 = vld [vmem:[%s18338_s18 + $0x1bf4] ss:$324 sps:$4 sm:$0xff]   ;;  %v16368_v37 = vld [vmem:[%s18338_s18 + $0x196c] ss:$324 sps:$4 sm:$0xff]  }
 0x189   : > { %v1506_v20 = vpop.f32.mrf.mxu1  ;;  %9899 = vmatprep.subr.bf16.mxu1 %v16335_v3  ;;  %9936 = vmatprep.subr.bf16.mxu0 %v16338_v6  ;;  %v1465_v8 = vpop.f32.mrf.mxu0 }
 0x18b   : > { %v18788_v27 = vpop.f32.mrf.mxu1  ;;  %v18790_v28 = vpop.f32.mrf.mxu0 }
 0x18c   : > { %9900 = vmatpush1.bf16.msra.mxu1 %v16333_v16  ;;  %9937 = vmatpush1.bf16.msra.mxu0 %v16336_v17  ;;  %v9579_v16 = vand.u32 %v16354_v45, %v18675_v36  ;;  %v16366_v45 = vld [vmem:[%s18338_s18 + $0x1968] ss:$324 sps:$4 sm:$0xff]  }
 0x18d   : > { %v18795_v34 = vpop.f32.mrf.mxu1  ;;  %9907 = vmatprep.subr.bf16.mxu1 %v9576_v21  ;;  %9938 = vmatprep.subr.bf16.mxu0 %v16344_v22  ;;  %v18797_v35 = vpop.f32.mrf.mxu0  ;;  %v16357_v22 = vld [vmem:[%s18338_s18 + $0x16d8] ss:$324 sps:$4 sm:$0xff]  }
 0x18f   : > { %v1587_v48 = vpop.f32.mrf.mxu1  ;;  %v1546_v49 = vpop.f32.mrf.mxu0 }
 0x190   : > { %9908 = vmatpush2.bf16.msra.mxu1 %v9573_v31  ;;  %9939 = vmatpush1.bf16.msra.mxu0 %v16342_v24  ;;  %v16360_v24 = vld [vmem:[%s18338_s18 + $0x1bf0] ss:$324 sps:$4 sm:$0xff]  }
 0x191   : > { %v1588_v53 = vpop.f32.mrf.mxu1  ;;  %9909 = vmatprep.subr.bf16.mxu1 %v16347_v32  ;;  %9940 = vmatprep.subr.bf16.mxu0 %v16350_v33  ;;  %v1547_v54 = vpop.f32.mrf.mxu0  ;;  %v16365_v33 = vld [vmem:[%s18338_s18 + $0x1454] ss:$324 sps:$4 sm:$0xff]  }
 0x193   : > { %v1665_v2 = vpop.f32.mrf.mxu1  ;;  %v1624_v3 = vpop.f32.mrf.mxu0 }
 0x194   : > { %v18818_v6 = vadd.f32 %v2896_v51, %v1665_v2  ;;  %9910 = vmatpush2.bf16.msra.mxu1 %v16345_v41  ;;  %9941 = vmatpush1.bf16.msra.mxu0 %v16348_v44  ;;  %v18820_v7 = vadd.f32 %v2888_v52, %v1624_v3  ;;  %v16363_v44 = vld [vmem:[%s18338_s18 + $0x1450] ss:$324 sps:$4 sm:$0xff]   ;;  %v16371_v51 = vld [vmem:[%s18338_s18 + $0x16e4] ss:$324 sps:$4 sm:$0xff]   ;;  %v16374_v52 = vld [vmem:[%s18338_s18 + $0x11dc] ss:$324 sps:$4 sm:$0xff]  }
 0x195   : > { %v18824_v17 = vpop.f32.mrf.mxu1  ;;  %9911 = vmatprep.subr.bf16.mxu1 %v16353_v59  ;;  %9948 = vmatprep.subr.bf16.mxu0 %v9582_v60  ;;  %v1626_v18 = vpop.f32.mrf.mxu0  ;;  %v16369_v59 = vld [vmem:[%s18338_s18 + $0x16e0] ss:$324 sps:$4 sm:$0xff]   ;;  %v16372_v60 = vld [vmem:[%s18338_s18 + $0x11d8] ss:$324 sps:$4 sm:$0xff]  }
 0x196   : > { %v18828_v20 = vadd.f32 %v2892_v1, %v1626_v18  ;;  %v16377_v3 = vld [vmem:[%s18338_s18 + $0x145c] ss:$324 sps:$4 sm:$0xff]  }
 0x197   : > { %v1669_v8 = vpop.f32.mrf.mxu1  ;;  %v1628_v21 = vpop.f32.mrf.mxu0 }
 0x198   : > { %9912 = vmatpush2.bf16.msra.mxu1 %v16351_v10  ;;  %9949 = vmatpush2.bf16.msra.mxu0 %v9579_v16  ;;  %v16380_v10 = vld [vmem:[%s18338_s18 + $0xf54] ss:$324 sps:$4 sm:$0xff]  }
 0x199   : > { %v1670_v31 = vpop.f32.mrf.mxu1  ;;  %9913 = vmatprep.subr.bf16.mxu1 %v16359_v19  ;;  %9950 = vmatprep.subr.bf16.mxu0 %v16362_v62  ;;  %v1629_v32 = vpop.f32.mrf.mxu0  ;;  %v16375_v19 = vld [vmem:[%s18338_s18 + $0x1458] ss:$324 sps:$4 sm:$0xff]   ;;  %v16378_v62 = vld [vmem:[%s18338_s18 + $0xf50] ss:$324 sps:$4 sm:$0xff]  }
 0x19b   : > { %v18834_v38 = vpop.f32.mrf.mxu1  ;;  %v18836_v41 = vpop.f32.mrf.mxu0 }
 0x19c   : > { %9914 = vmatpush2.bf16.msra.mxu1 %v16357_v22  ;;  %9951 = vmatpush2.bf16.msra.mxu0 %v16360_v24  ;;  %v16383_v22 = vld [vmem:[%s18338_s18 + $0xccc] ss:$324 sps:$4 sm:$0xff]   ;;  %v16386_v24 = vld [vmem:[%s18338_s18 + $0x11e4] ss:$324 sps:$4 sm:$0xff]  }
 0x19d   : > { %v18840_v48 = vpop.f32.mrf.mxu1  ;;  %9915 = vmatprep.subr.bf16.mxu1 %v16365_v33  ;;  %9952 = vmatprep.subr.bf16.mxu0 %v16368_v37  ;;  %v18842_v49 = vpop.f32.mrf.mxu0  ;;  %v16381_v33 = vld [vmem:[%s18338_s18 + $0xcc8] ss:$324 sps:$4 sm:$0xff]   ;;  %v16384_v37 = vld [vmem:[%s18338_s18 + $0x11e0] ss:$324 sps:$4 sm:$0xff]  }
 0x19f   : > { %v1751_v53 = vpop.f32.mrf.mxu1  ;;  %v1710_v54 = vpop.f32.mrf.mxu0 }
 0x1a0   : > { %9916 = vmatpush2.bf16.msra.mxu1 %v16363_v44  ;;  %9953 = vmatpush2.bf16.msra.mxu0 %v16366_v45  ;;  %v16387_v53 = vld [vmem:[%s18338_s18 + $0xa40] ss:$324 sps:$4 sm:$0xff]   ;;  %v16390_v54 = vld [vmem:[%s18338_s18 + $0xf58] ss:$324 sps:$4 sm:$0xff]  }
 0x1a1   : > { %v1752_v1 = vpop.f32.mrf.mxu1  ;;  %9954 = vmatprep.subr.bf16.mxu0 %v16371_v51  ;;  %9967 = vmatprep.subr.bf16.mxu1 %v16374_v52  ;;  %v1711_v2 = vpop.f32.mrf.mxu0  ;;  %v16389_v51 = vld [vmem:[%s18338_s18 + $0xa44] ss:$324 sps:$4 sm:$0xff]   ;;  %v16392_v52 = vld [vmem:[%s18338_s18 + $0xf5c] ss:$324 sps:$4 sm:$0xff]  }
 0x1a3   : > { %9918 = vmatmul.mubr.bf16.vlgmr.msra.gmra.mxu1 %v18717_v13  ;;  %v18851_v16 = vpop.f32.mrf.mxu1  ;;  %v18853_v18 = vpop.f32.mrf.mxu0 }
 0x1a4   : > { %21756 = vst [vmem:[#allocation15_spill] sm:$0xff] %v18851_v16  ;;  %9955 = vmatpush2.bf16.msra.mxu0 %v16369_v59  ;;  %9968 = vmatpush1.bf16.msra.mxu1 %v16372_v60  ;;  %v18947_v16 = vsub.s32 4, %v18785_v23 }
 0x1a5   : > { %v18857_v8 = vpop.f32.mrf.mxu1  ;;  %9956 = vmatprep.subr.bf16.mxu0 %v16377_v3  ;;  %9969 = vmatprep.subr.bf16.mxu1 %v16380_v10  ;;  %v18859_v21 = vpop.f32.mrf.mxu0  ;;  %v16395_v3 = vld [vmem:[%s18338_s18 + $0x7bc] ss:$324 sps:$4 sm:$0xff]   ;;  %v16398_v10 = vld [vmem:[%s18338_s18 + $0xcd4] ss:$324 sps:$4 sm:$0xff]  }
 0x1a6   : > { %21757 = vst [vmem:[#allocation16_spill] sm:$0xff] %v18857_v8  ;;  %21758 = vst [vmem:[#allocation17_spill] sm:$0xff] %v18859_v21  ;;  %15853 = vmatprep.mubr.msk.bf16.mxu1 %vm9552_vm2, %v18638_v9 }
 0x1a7   : > { %v1833_v31 = vpop.f32.mrf.mxu1  ;;  %v1792_v32 = vpop.f32.mrf.mxu0 }
 0x1a8   : > { %9957 = vmatpush2.bf16.msra.mxu0 %v16375_v19  ;;  %9970 = vmatpush1.bf16.msra.mxu1 %v16378_v62  ;;  %v16393_v19 = vld [vmem:[%s18338_s18 + $0x7b8] ss:$324 sps:$4 sm:$0xff]  }
 0x1a9   : > { %v1834_v44 = vpop.f32.mrf.mxu1  ;;  %9971 = vmatprep.subr.bf16.mxu1 %v16383_v22  ;;  %10008 = vmatprep.subr.bf16.mxu0 %v16386_v24  ;;  %v1793_v45 = vpop.f32.mrf.mxu0  ;;  %v16396_v24 = vld [vmem:[%s18338_s18 + $0xcd0] ss:$324 sps:$4 sm:$0xff]  }
 0x1aa   : > { %v16401_v31 = vld [vmem:[%s18338_s18 + $0x534] ss:$324 sps:$4 sm:$0xff]   ;;  %v16402_v45 = vld [vmem:[%s18338_s18 + $0xa48] ss:$324 sps:$4 sm:$0xff]  }
 0x1ab   : > { %9959 = vmatmul.mubr.bf16.vlgmr.msra.gmra.mxu0 %v18717_v13  ;;  %v18872_v59 = vpop.f32.mrf.mxu1  ;;  %v18874_v60 = vpop.f32.mrf.mxu0  ;;  %v16399_v44 = vld [vmem:[%s18338_s18 + $0x530] ss:$324 sps:$4 sm:$0xff]  }
 0x1ac   : > { %21759 = vst [vmem:[#allocation18_spill] sm:$0xff] %v18872_v59  ;;  %21760 = vst [vmem:[#allocation19_spill] sm:$0xff] %v18874_v60  ;;  %9972 = vmatpush1.bf16.msra.mxu1 %v16381_v33  ;;  %10009 = vmatpush1.bf16.msra.mxu0 %v16384_v37  ;;  %v16404_v37 = vld [vmem:[%s18338_s18 + $0xa4c] ss:$324 sps:$4 sm:$0xff]  }
 0x1ad   : > { %v18876_v1 = vpop.f32.mrf.mxu1  ;;  %9973 = vmatprep.subr.bf16.mxu1 %v16389_v51  ;;  %10010 = vmatprep.subr.bf16.mxu0 %v16392_v52  ;;  %v18878_v2 = vpop.f32.mrf.mxu0 }
 0x1ae   : > { %21761 = vst [vmem:[#allocation20_spill] sm:$0xff] %v18876_v1  ;;  %21762 = vst [vmem:[#allocation21_spill] sm:$0xff] %v18878_v2  ;;  %15854 = vmatprep.mubr.msk.bf16.mxu0 %vm9552_vm2, %v18638_v9 }
 0x1af   : > { %v1915_v62 = vpop.f32.mrf.mxu1  ;;  %v1874_v22 = vpop.f32.mrf.mxu0 }
 0x1b0   : > { %9974 = vmatpush1.bf16.msra.mxu1 %v16387_v53  ;;  %10011 = vmatpush1.bf16.msra.mxu0 %v16390_v54  ;;  %v16405_v62 = vld [vmem:[%s18338_s18 + $0x2a8] ss:$324 sps:$4 sm:$0xff]   ;;  %v16408_v22 = vld [vmem:[%s18338_s18 + $0x7c0] ss:$324 sps:$4 sm:$0xff]  }
 0x1b1   : > { %v1916_v32 = vpop.f32.mrf.mxu1  ;;  %9975 = vmatprep.subr.bf16.mxu1 %v16395_v3  ;;  %10012 = vmatprep.subr.bf16.mxu0 %v16398_v10  ;;  %v1875_v33 = vpop.f32.mrf.mxu0  ;;  %v16407_v3 = vld [vmem:[%s18338_s18 + $0x2ac] ss:$324 sps:$4 sm:$0xff]   ;;  %v16410_v10 = vld [vmem:[%s18338_s18 + $0x7c4] ss:$324 sps:$4 sm:$0xff]  }
 0x1b3   : > { %v18890_v51 = vpop.f32.mrf.mxu1  ;;  %v18892_v52 = vpop.f32.mrf.mxu0 }
 0x1b4   : > { %21763 = vst [vmem:[#allocation22_spill] sm:$0xff] %v18890_v51  ;;  %21764 = vst [vmem:[#allocation23_spill] sm:$0xff] %v18892_v52  ;;  %9976 = vmatpush1.bf16.msra.mxu1 %v16393_v19  ;;  %10013 = vmatpush1.bf16.msra.mxu0 %v16396_v24  ;;  %v16414_v51 = vld [vmem:[%s18338_s18 + $0x538] ss:$324 sps:$4 sm:$0xff]  }
 0x1b5   : > { %v18894_v53 = vpop.f32.mrf.mxu1  ;;  %9977 = vmatprep.subr.bf16.mxu1 %v16401_v31  ;;  %10014 = vmatprep.subr.bf16.mxu0 %v16404_v37  ;;  %v18896_v54 = vpop.f32.mrf.mxu0  ;;  %v16416_v31 = vld [vmem:[%s18338_s18 + $0x53c] ss:$324 sps:$4 sm:$0xff]   ;;  %v16419_v37 = vld [vmem:[%s18338_s18 + $0x1e84] ss:$324 sps:$4 sm:$0xff]  }
 0x1b6   : > { %21765 = vst [vmem:[#allocation24_spill] sm:$0xff] %v18894_v53  ;;  %21766 = vst [vmem:[#allocation25_spill] sm:$0xff] %v18896_v54  ;;  %v16411_v53 = vld [vmem:[%s18338_s18 + $0x20] ss:$324 sps:$4 sm:$0xff]  }
 0x1b7   : > { %v1997_v32 = vpop.f32.mrf.mxu1  ;;  %v1956_v33 = vpop.f32.mrf.mxu0  ;;  %v16417_v54 = vld [vmem:[%s18338_s18 + $0x1e80] ss:$324 sps:$4 sm:$0xff]  }
 0x1b8   : > { %9978 = vmatpush1.bf16.msra.mxu1 %v16399_v44  ;;  %10015 = vmatpush1.bf16.msra.mxu0 %v16402_v45  ;;  %v18919_v32 = vld [vmem:[%s18340_s27 + $0x30] sm:$0xff] }
 0x1b9   : > { %v1998_v19 = vpop.f32.mrf.mxu1  ;;  %9979 = vmatprep.subr.bf16.mxu1 %v16407_v3  ;;  %10016 = vmatprep.subr.bf16.mxu0 %v16410_v10  ;;  %v1957_v24 = vpop.f32.mrf.mxu0  ;;  %v9588_v3 = vand.u32 %v16419_v37, %v18675_v36  ;;  %v16422_v10 = vld [vmem:[%s18338_s18 + $0x2b4] ss:$324 sps:$4 sm:$0xff]   ;;  %v16425_v37 = vld [vmem:[%s18338_s18 + $0x1bfc] ss:$324 sps:$4 sm:$0xff]  }
 0x1ba   : > { %v9585_v24 = vand.u32 %v16417_v54, %v18675_v36  ;;  %v16432_v54 = vld [vmem:[%s18338_s18 + $0x1e88] ss:$324 sps:$4 sm:$0xff]  }
 0x1bb   : > { %v18908_v52 = vpop.f32.mrf.mxu1  ;;  %v18910_v1 = vpop.f32.mrf.mxu0 }
 0x1bc   : > { %21767 = vst [vmem:[#allocation26_spill] sm:$0xff] %v18908_v52  ;;  %21768 = vst [vmem:[#allocation27_spill] sm:$0xff] %v18910_v1  ;;  %9980 = vmatpush1.bf16.msra.mxu1 %v16405_v62  ;;  %10017 = vmatpush1.bf16.msra.mxu0 %v16408_v22  ;;  %v18922_v62 = vsub.s32 3, %v18785_v23  ;;  %v2992_v22 = vrot.slane %v18919_v32, %v18802_v39  ;;  %v16434_v52 = vld [vmem:[%s18338_s18 + $0x1e8c] ss:$324 sps:$4 sm:$0xff]   ;;  %v2988_v1 = vrot.slane %v18919_v32, %v18811_v50 }
 0x1bd   : > { %v18912_v44 = vpop.f32.mrf.mxu1  ;;  %9981 = vmatprep.subr.bf16.mxu1 %v16413_v0  ;;  %10018 = vmatprep.subr.bf16.mxu0 %v16416_v31  ;;  %v18914_v45 = vpop.f32.mrf.mxu0  ;;  %v16420_v0 = vld [vmem:[%s18338_s18 + $0x2b0] ss:$324 sps:$4 sm:$0xff]   ;;  %v2984_v31 = vrot.slane %v18919_v32, %v18805_v40  ;;  %v9594_v8 = vand.u32 %v16434_v52, %v18675_v36  ;;  %v9591_v52 = vand.u32 %v16432_v54, %v18675_v36 }
 0x1be   : > { %21769 = vst [vmem:[#allocation28_spill] sm:$0xff] %v18912_v44  ;;  %21770 = vst [vmem:[#allocation29_spill] sm:$0xff] %v18914_v45  ;;  %v16428_v44 = vld [vmem:[%s18338_s18 + $0x2c] ss:$324 sps:$4 sm:$0xff]  }
 0x1bf   : > { %v2079_v33 = vpop.f32.mrf.mxu1  ;;  %v2038_v19 = vpop.f32.mrf.mxu0  ;;  %v16426_v45 = vld [vmem:[%s18338_s18 + $0x28] ss:$324 sps:$4 sm:$0xff]  }
 0x1c0   : > { %9982 = vmatpush1.bf16.msra.mxu1 %v16411_v53  ;;  %10019 = vmatpush1.bf16.msra.mxu0 %v16414_v51  ;;  %v2996_v51 = vrot.slane %v18919_v32, %v18922_v62  ;;  %v16423_v53 = vld [vmem:[%s18338_s18 + $0x1bf8] ss:$324 sps:$4 sm:$0xff]  }
 0x1c1   : > { %v2080_v33 = vpop.f32.mrf.mxu1  ;;  %9989 = vmatprep.subr.bf16.mxu1 %v9588_v3  ;;  %10020 = vmatprep.subr.bf16.mxu0 %v16422_v10  ;;  %v2039_v19 = vpop.f32.mrf.mxu0 }
 0x1c2   : > { %v16431_v19 = vld [vmem:[%s18338_s18 + $0x1974] ss:$324 sps:$4 sm:$0xff]  }
 0x1c3   : > { %v2157_v59 = vpop.f32.mrf.mxu1  ;;  %v2116_v2 = vpop.f32.mrf.mxu0 }
 0x1c4   : > { %v18940_v60 = vadd.f32 %v2992_v22, %v2157_v59  ;;  %9990 = vmatpush2.bf16.msra.mxu1 %v9585_v24  ;;  %10021 = vmatpush1.bf16.msra.mxu0 %v16420_v0  ;;  %v18942_v3 = vadd.f32 %v2984_v31, %v2116_v2  ;;  %v18954_v2 = vsub.s32 5, %v18785_v23  ;;  %v3000_v24 = vrot.slane %v18919_v32, %v18947_v16 }
 0x1c5   : > { %v2159_v10 = vpop.f32.mrf.mxu1  ;;  %9991 = vmatprep.subr.bf16.mxu1 %v16425_v37  ;;  %10022 = vmatprep.subr.bf16.mxu0 %v16428_v44  ;;  %v2118_v33 = vpop.f32.mrf.mxu0  ;;  %v16429_v44 = vld [vmem:[%s18338_s18 + $0x1970] ss:$324 sps:$4 sm:$0xff]  }
 0x1c6   : > { %v18949_v21 = vadd.f32 %v2996_v51, %v2159_v10  ;;  %v18951_v59 = vadd.f32 %v2988_v1, %v2118_v33  ;;  %v16437_v37 = vld [vmem:[%s18338_s18 + $0x16ec] ss:$324 sps:$4 sm:$0xff]   ;;  %v16440_v51 = vld [vmem:[%s18338_s18 + $0x1c04] ss:$324 sps:$4 sm:$0xff]  }
 0x1c7   : > { %v2161_v0 = vpop.f32.mrf.mxu1  ;;  %v2120_v22 = vpop.f32.mrf.mxu0  ;;  %v16435_v33 = vld [vmem:[%s18338_s18 + $0x16e8] ss:$324 sps:$4 sm:$0xff]  }
 0x1c8   : > { %9992 = vmatpush2.bf16.msra.mxu1 %v16423_v53  ;;  %10023 = vmatpush1.bf16.msra.mxu0 %v16426_v45  ;;  %v3004_v53 = vrot.slane %v18919_v32, %v18954_v2  ;;  %v16443_v22 = vld [vmem:[%s18338_s18 + $0x1464] ss:$324 sps:$4 sm:$0xff]   ;;  %v16446_v32 = vld [vmem:[%s18338_s18 + $0x197c] ss:$324 sps:$4 sm:$0xff]  }
 0x1c9   : > { %v2162_v31 = vpop.f32.mrf.mxu1  ;;  %9993 = vmatprep.subr.bf16.mxu1 %v16431_v19  ;;  %10030 = vmatprep.subr.bf16.mxu0 %v9594_v8  ;;  %v2121_v1 = vpop.f32.mrf.mxu0  ;;  %v16438_v19 = vld [vmem:[%s18338_s18 + $0x1c00] ss:$324 sps:$4 sm:$0xff]  }
 0x1cb   : > { %v18964_v45 = vpop.f32.mrf.mxu1  ;;  %v2198_v10 = vpop.f32.mrf.mxu0 }
 0x1cc   : > { %21771 = vst [vmem:[#allocation30_spill] sm:$0xff] %v18964_v45  ;;  %9994 = vmatpush2.bf16.msra.mxu1 %v16429_v44  ;;  %10031 = vmatpush2.bf16.msra.mxu0 %v9591_v52  ;;  %v18966_v54 = vadd.f32 %v3000_v24, %v2198_v10  ;;  %v16441_v52 = vld [vmem:[%s18338_s18 + $0x1460] ss:$324 sps:$4 sm:$0xff]   ;;  %v16444_v24 = vld [vmem:[%s18338_s18 + $0x1978] ss:$324 sps:$4 sm:$0xff]  }
 0x1cd   : > { %v18970_v8 = vpop.f32.mrf.mxu1  ;;  %9995 = vmatprep.subr.bf16.mxu1 %v16437_v37  ;;  %10032 = vmatprep.subr.bf16.mxu0 %v16440_v51  ;;  %v2200_v0 = vpop.f32.mrf.mxu0  ;;  %v16449_v51 = vld [vmem:[%s18338_s18 + $0x16f4] ss:$324 sps:$4 sm:$0xff]  }
 0x1ce   : > { %21772 = vst [vmem:[#allocation31_spill] sm:$0xff] %v18966_v54  ;;  %21773 = vst [vmem:[#allocation32_spill] sm:$0xff] %v18970_v8  ;;  %v18974_v31 = vadd.f32 %v3004_v53, %v2200_v0  ;;  %v16452_v8 = vld [vmem:[%s18338_s18 + $0x11ec] ss:$324 sps:$4 sm:$0xff]  }
 0x1cf   : > { %v2243_v1 = vpop.f32.mrf.mxu1  ;;  %v2202_v44 = vpop.f32.mrf.mxu0 }
 0x1d0   : > { %21774 = vst [vmem:[#allocation33_spill] sm:$0xff] %v18974_v31  ;;  %9996 = vmatpush2.bf16.msra.mxu1 %v16435_v33  ;;  %10033 = vmatpush2.bf16.msra.mxu0 %v16438_v19  ;;  %v16447_v33 = vld [vmem:[%s18338_s18 + $0x16f0] ss:$324 sps:$4 sm:$0xff]   ;;  %v16450_v19 = vld [vmem:[%s18338_s18 + $0x11e8] ss:$324 sps:$4 sm:$0xff]  }
 0x1d1   : > { %v2244_v10 = vpop.f32.mrf.mxu1  ;;  %9997 = vmatprep.subr.bf16.mxu1 %v16443_v22  ;;  %10034 = vmatprep.subr.bf16.mxu0 %v16446_v32  ;;  %v2203_v37 = vpop.f32.mrf.mxu0  ;;  %v16455_v32 = vld [vmem:[%s18338_s18 + $0x146c] ss:$324 sps:$4 sm:$0xff]   ;;  %v16458_v1 = vld [vmem:[%s18338_s18 + $0xf64] ss:$324 sps:$4 sm:$0xff]  }
 0x1d3   : > { %v18980_v45 = vpop.f32.mrf.mxu1  ;;  %v18982_v53 = vpop.f32.mrf.mxu0 }
 0x1d4   : > { %21775 = vst [vmem:[#allocation34_spill] sm:$0xff] %v18980_v45  ;;  %21776 = vst [vmem:[#allocation35_spill] sm:$0xff] %v18982_v53  ;;  %9998 = vmatpush2.bf16.msra.mxu1 %v16441_v52  ;;  %10035 = vmatpush2.bf16.msra.mxu0 %v16444_v24  ;;  %v16453_v52 = vld [vmem:[%s18338_s18 + $0x1468] ss:$324 sps:$4 sm:$0xff]   ;;  %v16456_v24 = vld [vmem:[%s18338_s18 + $0xf60] ss:$324 sps:$4 sm:$0xff]  }
 0x1d5   : > { %v18986_v0 = vpop.f32.mrf.mxu1  ;;  %10036 = vmatprep.subr.bf16.mxu0 %v16449_v51  ;;  %10049 = vmatprep.subr.bf16.mxu1 %v16452_v8  ;;  %v18988_v22 = vpop.f32.mrf.mxu0  ;;  %v16461_v51 = vld [vmem:[%s18338_s18 + $0xcdc] ss:$324 sps:$4 sm:$0xff]   ;;  %v16465_v45 = vld [vmem:[%s18338_s18 + $0xa50] ss:$324 sps:$4 sm:$0xff]  }
 0x1d6   : > { %21777 = vst [vmem:[#allocation36_spill] sm:$0xff] %v18986_v0  ;;  %21778 = vst [vmem:[#allocation37_spill] sm:$0xff] %v18988_v22  ;;  %v16464_v0 = vld [vmem:[%s18338_s18 + $0x11f4] ss:$324 sps:$4 sm:$0xff]   ;;  %v16468_v22 = vld [vmem:[%s18338_s18 + $0xf68] ss:$324 sps:$4 sm:$0xff]  }
 0x1d7   : > { %10000 = vmatmul.mubr.bf16.vlgmr.msra.gmra.mxu1 %v18717_v13  ;;  %v2325_v44 = vpop.f32.mrf.mxu1  ;;  %v2284_v10 = vpop.f32.mrf.mxu0 }
 0x1d8   : > { %10037 = vmatpush2.bf16.msra.mxu0 %v16447_v33  ;;  %10050 = vmatpush1.bf16.msra.mxu1 %v16450_v19  ;;  %v16459_v19 = vld [vmem:[%s18338_s18 + $0xcd8] ss:$324 sps:$4 sm:$0xff]   ;;  %v16462_v10 = vld [vmem:[%s18338_s18 + $0x11f0] ss:$324 sps:$4 sm:$0xff]  }
 0x1d9   : > { %v2326_v37 = vpop.f32.mrf.mxu1  ;;  %10038 = vmatprep.subr.bf16.mxu0 %v16455_v32  ;;  %10051 = vmatprep.subr.bf16.mxu1 %v16458_v1  ;;  %v2285_v8 = vpop.f32.mrf.mxu0 }
 0x1da   : > { %15855 = vmatprep.mubr.msk.bf16.mxu1 %vm9552_vm2, %v18638_v9  ;;  %v16467_v37 = vld [vmem:[%s18338_s18 + $0xa54] ss:$324 sps:$4 sm:$0xff]   ;;  %v16470_v8 = vld [vmem:[%s18338_s18 + $0xf6c] ss:$324 sps:$4 sm:$0xff]  }
 0x1db   : > { %v18999_v44 = vpop.f32.mrf.mxu1  ;;  %v19001_v33 = vpop.f32.mrf.mxu0 }
 0x1dc   : > { %21779 = vst [vmem:[#allocation38_spill] sm:$0xff] %v18999_v44  ;;  %21780 = vst [vmem:[#allocation39_spill] sm:$0xff] %v19001_v33  ;;  %10039 = vmatpush2.bf16.msra.mxu0 %v16453_v52  ;;  %10052 = vmatpush1.bf16.msra.mxu1 %v16456_v24 }
 0x1dd   : > { %v19005_v32 = vpop.f32.mrf.mxu1  ;;  %10053 = vmatprep.subr.bf16.mxu1 %v16461_v51  ;;  %10090 = vmatprep.subr.bf16.mxu0 %v16464_v0  ;;  %v19007_v1 = vpop.f32.mrf.mxu0  ;;  %v16473_v51 = vld [vmem:[%s18338_s18 + $0x7cc] ss:$324 sps:$4 sm:$0xff]  }
 0x1de   : > { %21781 = vst [vmem:[#allocation40_spill] sm:$0xff] %v19005_v32  ;;  %21782 = vst [vmem:[#allocation41_spill] sm:$0xff] %v19007_v1  ;;  %v16476_v32 = vld [vmem:[%s18338_s18 + $0xce4] ss:$324 sps:$4 sm:$0xff]  }
 0x1df   : > { %10041 = vmatmul.mubr.bf16.vlgmr.msra.gmra.mxu0 %v18717_v13  ;;  %v2407_v44 = vpop.f32.mrf.mxu1  ;;  %v2366_v52 = vpop.f32.mrf.mxu0  ;;  %v16471_v1 = vld [vmem:[%s18338_s18 + $0x7c8] ss:$324 sps:$4 sm:$0xff]  }
 0x1e0   : > { %10054 = vmatpush1.bf16.msra.mxu1 %v16459_v19  ;;  %10091 = vmatpush1.bf16.msra.mxu0 %v16462_v10  ;;  %v16474_v52 = vld [vmem:[%s18338_s18 + $0xce0] ss:$324 sps:$4 sm:$0xff]  }
 0x1e1   : > { %v2408_v24 = vpop.f32.mrf.mxu1  ;;  %10055 = vmatprep.subr.bf16.mxu1 %v16467_v37  ;;  %10092 = vmatprep.subr.bf16.mxu0 %v16470_v8  ;;  %v2367_v0 = vpop.f32.mrf.mxu0  ;;  %v16479_v19 = vld [vmem:[%s18338_s18 + $0x544] ss:$324 sps:$4 sm:$0xff]   ;;  %v16482_v8 = vld [vmem:[%s18338_s18 + $0xa5c] ss:$324 sps:$4 sm:$0xff]  }
 0x1e2   : > { %15856 = vmatprep.mubr.msk.bf16.mxu0 %vm9552_vm2, %v18638_v9  ;;  %v16477_v24 = vld [vmem:[%s18338_s18 + $0x540] ss:$324 sps:$4 sm:$0xff]   ;;  %v16480_v0 = vld [vmem:[%s18338_s18 + $0xa58] ss:$324 sps:$4 sm:$0xff]  }
 0x1e3   : > { %v19019_v33 = vpop.f32.mrf.mxu1  ;;  %v19021_v44 = vpop.f32.mrf.mxu0 }
 0x1e4   : > { %21783 = vst [vmem:[#allocation42_spill] sm:$0xff] %v19019_v33  ;;  %21784 = vst [vmem:[#allocation43_spill] sm:$0xff] %v19021_v44  ;;  %10056 = vmatpush1.bf16.msra.mxu1 %v16465_v45  ;;  %10093 = vmatpush1.bf16.msra.mxu0 %v16468_v22 }
 0x1e5   : > { %v19025_v10 = vpop.f32.mrf.mxu1  ;;  %10057 = vmatprep.subr.bf16.mxu1 %v16473_v51  ;;  %10094 = vmatprep.subr.bf16.mxu0 %v16476_v32  ;;  %v19027_v37 = vpop.f32.mrf.mxu0  ;;  %v16485_v51 = vld [vmem:[%s18338_s18 + $0x2bc] ss:$324 sps:$4 sm:$0xff]   ;;  %v16488_v32 = vld [vmem:[%s18338_s18 + $0x7d4] ss:$324 sps:$4 sm:$0xff]  }
 0x1e6   : > { %21785 = vst [vmem:[#allocation44_spill] sm:$0xff] %v19025_v10  ;;  %21786 = vst [vmem:[#allocation45_spill] sm:$0xff] %v19027_v37  ;;  %v16483_v10 = vld [vmem:[%s18338_s18 + $0x2b8] ss:$324 sps:$4 sm:$0xff]   ;;  %v16486_v37 = vld [vmem:[%s18338_s18 + $0x7d0] ss:$324 sps:$4 sm:$0xff]  }
 0x1e7   : > { %v2489_v33 = vpop.f32.mrf.mxu1  ;;  %v2448_v44 = vpop.f32.mrf.mxu0 }
 0x1e8   : > { %10058 = vmatpush1.bf16.msra.mxu1 %v16471_v1  ;;  %10095 = vmatpush1.bf16.msra.mxu0 %v16474_v52  ;;  %v16491_v33 = vld [vmem:[%s18338_s18 + $0x34] ss:$324 sps:$4 sm:$0xff]   ;;  %v16494_v52 = vld [vmem:[%s18338_s18 + $0x54c] ss:$324 sps:$4 sm:$0xff]  }
 0x1e9   : > { %v2490_v45 = vpop.f32.mrf.mxu1  ;;  %10059 = vmatprep.subr.bf16.mxu1 %v16479_v19  ;;  %10096 = vmatprep.subr.bf16.mxu0 %v16482_v8  ;;  %v2449_v22 = vpop.f32.mrf.mxu0  ;;  %v16497_v19 = vld [vmem:[%s18338_s18 + $0x1e94] ss:$324 sps:$4 sm:$0xff]  }
 0x1ea   : > { %v16489_v8 = vld [vmem:[%s18338_s18 + $0x30] ss:$324 sps:$4 sm:$0xff]   ;;  %v16492_v45 = vld [vmem:[%s18338_s18 + $0x548] ss:$324 sps:$4 sm:$0xff]  }
 0x1eb   : > { %v19036_v53 = vpop.f32.mrf.mxu1  ;;  %v19038_v31 = vpop.f32.mrf.mxu0  ;;  %v16495_v22 = vld [vmem:[%s18338_s18 + $0x1e90] ss:$324 sps:$4 sm:$0xff]  }
 0x1ec   : > { %21787 = vst [vmem:[#allocation46_spill] sm:$0xff] %v19036_v53  ;;  %21788 = vst [vmem:[#allocation47_spill] sm:$0xff] %v19038_v31  ;;  %10060 = vmatpush1.bf16.msra.mxu1 %v16477_v24  ;;  %10097 = vmatpush1.bf16.msra.mxu0 %v16480_v0 }
 0x1ed   : > { %v19041_v1 = vpop.f32.mrf.mxu1  ;;  %10061 = vmatprep.subr.bf16.mxu1 %v16485_v51  ;;  %10098 = vmatprep.subr.bf16.mxu0 %v16488_v32  ;;  %v19043_v44 = vpop.f32.mrf.mxu0  ;;  %v9600_v51 = vand.u32 %v16497_v19, %v18675_v36  ;;  %v16500_v32 = vld [vmem:[%s18338_s18 + $0x2c4] ss:$324 sps:$4 sm:$0xff]   ;;  %v16512_v19 = vld [vmem:[%s18338_s18 + $0x1e9c] ss:$324 sps:$4 sm:$0xff]  }
 0x1ee   : > { %21789 = vst [vmem:[#allocation48_spill] sm:$0xff] %v19041_v1  ;;  %21790 = vst [vmem:[#allocation49_spill] sm:$0xff] %v19043_v44 }
 0x1ef   : > { %v2571_v54 = vpop.f32.mrf.mxu1  ;;  %v2530_v53 = vpop.f32.mrf.mxu0 }
 0x1f0   : > { %10062 = vmatpush1.bf16.msra.mxu1 %v16483_v10  ;;  %10099 = vmatpush1.bf16.msra.mxu0 %v16486_v37  ;;  %v16498_v54 = vld [vmem:[%s18338_s18 + $0x2c0] ss:$324 sps:$4 sm:$0xff]   ;;  %v9597_v53 = vand.u32 %v16495_v22, %v18675_v36  ;;  %v16503_v10 = vld [vmem:[%s18338_s18 + $0x1c0c] ss:$324 sps:$4 sm:$0xff]  }
 0x1f1   : > { %v2572_v24 = vpop.f32.mrf.mxu1  ;;  %10063 = vmatprep.subr.bf16.mxu1 %v16491_v33  ;;  %10100 = vmatprep.subr.bf16.mxu0 %v16494_v52  ;;  %v2531_v0 = vpop.f32.mrf.mxu0  ;;  %v16506_v52 = vld [vmem:[%s18338_s18 + $0x3c] ss:$324 sps:$4 sm:$0xff]  }
 0x1f2   : > { %v16501_v24 = vld [vmem:[%s18338_s18 + $0x1c08] ss:$324 sps:$4 sm:$0xff]   ;;  %v16504_v0 = vld [vmem:[%s18338_s18 + $0x38] ss:$324 sps:$4 sm:$0xff]  }
 0x1f3   : > { %v19052_v1 = vpop.f32.mrf.mxu1  ;;  %v19054_v44 = vpop.f32.mrf.mxu0 }
 0x1f4   : > { %21791 = vst [vmem:[#allocation50_spill] sm:$0xff] %v19052_v1  ;;  %21792 = vst [vmem:[#allocation51_spill] sm:$0xff] %v19054_v44  ;;  %10064 = vmatpush1.bf16.msra.mxu1 %v16489_v8  ;;  %10101 = vmatpush1.bf16.msra.mxu0 %v16492_v45  ;;  %v16510_v1 = vld [vmem:[%s18338_s18 + $0x1e98] ss:$324 sps:$4 sm:$0xff]  }
 0x1f5   : > { %v19059_v37 = vpop.f32.mrf.mxu1  ;;  %10071 = vmatprep.subr.bf16.mxu1 %v9600_v51  ;;  %10102 = vmatprep.subr.bf16.mxu0 %v16500_v32  ;;  %v19061_v33 = vpop.f32.mrf.mxu0  ;;  %v16509_v51 = vld [vmem:[%s18338_s18 + $0x1984] ss:$324 sps:$4 sm:$0xff]   ;;  %v9606_v32 = vand.u32 %v16512_v19, %v18675_v36  ;;  %v16518_v19 = vld [vmem:[%s18338_s18 + $0x1c14] ss:$324 sps:$4 sm:$0xff]  }
 0x1f6   : > { %21793 = vst [vmem:[#allocation52_spill] sm:$0xff] %v19059_v37  ;;  %21794 = vst [vmem:[#allocation53_spill] sm:$0xff] %v19061_v33 }
 0x1f7   : > { %v2653_v44 = vpop.f32.mrf.mxu1  ;;  %v2612_v8 = vpop.f32.mrf.mxu0 }
 0x1f8   : > { %10072 = vmatpush2.bf16.msra.mxu1 %v9597_v53  ;;  %10103 = vmatpush1.bf16.msra.mxu0 %v16498_v54  ;;  %v16507_v44 = vld [vmem:[%s18338_s18 + $0x1980] ss:$324 sps:$4 sm:$0xff]   ;;  %v9603_v54 = vand.u32 %v16510_v1, %v18675_v36 }
 0x1f9   : > { %v2654_v45 = vpop.f32.mrf.mxu1  ;;  %10073 = vmatprep.subr.bf16.mxu1 %v16503_v10  ;;  %10104 = vmatprep.subr.bf16.mxu0 %v16506_v52  ;;  %v2613_v22 = vpop.f32.mrf.mxu0  ;;  %v16515_v52 = vld [vmem:[%s18338_s18 + $0x16fc] ss:$324 sps:$4 sm:$0xff]  }
 0x1fb   : > { %v19070_v37 = vpop.f32.mrf.mxu1  ;;  %v19072_v33 = vpop.f32.mrf.mxu0 }
 0x1fc   : > { %21795 = vst [vmem:[#allocation54_spill] sm:$0xff] %v19070_v37  ;;  %21796 = vst [vmem:[#allocation55_spill] sm:$0xff] %v19072_v33  ;;  %10074 = vmatpush2.bf16.msra.mxu1 %v16501_v24  ;;  %10105 = vmatpush1.bf16.msra.mxu0 %v16504_v0  ;;  %v16513_v24 = vld [vmem:[%s18338_s18 + $0x16f8] ss:$324 sps:$4 sm:$0xff]   ;;  %v16516_v0 = vld [vmem:[%s18338_s18 + $0x1c10] ss:$324 sps:$4 sm:$0xff]  }
 0x1fd   : > { %v19076_v53 = vpop.f32.mrf.mxu1  ;;  %10075 = vmatprep.subr.bf16.mxu1 %v16509_v51  ;;  %10112 = vmatprep.subr.bf16.mxu0 %v9606_v32  ;;  %v19078_v10 = vpop.f32.mrf.mxu0  ;;  %v16521_v51 = vld [vmem:[%s18338_s18 + $0x1474] ss:$324 sps:$4 sm:$0xff]   ;;  %v16524_v32 = vld [vmem:[%s18338_s18 + $0x198c] ss:$324 sps:$4 sm:$0xff]   ;;  %v16581_v37 = vld [vmem:[%s18338_s18 + $0x1c1c] ss:$324 sps:$4 sm:$0xff]  }
 0x1fe   : > { %21797 = vst [vmem:[#allocation56_spill] sm:$0xff] %v19076_v53  ;;  %21798 = vst [vmem:[#allocation57_spill] sm:$0xff] %v19078_v10  ;;  %v16588_v10 = vld [vmem:[%s18338_s18 + $0x1ea8] ss:$324 sps:$4 sm:$0xff]  }
 0x1ff   : > { %v2735_v8 = vpop.f32.mrf.mxu1  ;;  %v2694_v45 = vpop.f32.mrf.mxu0 }
 0x200   : > { %10076 = vmatpush2.bf16.msra.mxu1 %v16507_v44  ;;  %10113 = vmatpush2.bf16.msra.mxu0 %v9603_v54  ;;  %v16519_v8 = vld [vmem:[%s18338_s18 + $0x1470] ss:$324 sps:$4 sm:$0xff]   ;;  %v16522_v44 = vld [vmem:[%s18338_s18 + $0x1988] ss:$324 sps:$4 sm:$0xff]  }
 0x201   : > { %v2736_v1 = vpop.f32.mrf.mxu1  ;;  %10077 = vmatprep.subr.bf16.mxu1 %v16515_v52  ;;  %10114 = vmatprep.subr.bf16.mxu0 %v16518_v19  ;;  %v2695_v22 = vpop.f32.mrf.mxu0  ;;  %v16527_v45 = vld [vmem:[%s18338_s18 + $0x1704] ss:$324 sps:$4 sm:$0xff]   ;;  %v16530_v52 = vld [vmem:[%s18338_s18 + $0x11fc] ss:$324 sps:$4 sm:$0xff]  }
 0x202   : > { %v16525_v1 = vld [vmem:[%s18338_s18 + $0x1700] ss:$324 sps:$4 sm:$0xff]   ;;  %v16528_v22 = vld [vmem:[%s18338_s18 + $0x11f8] ss:$324 sps:$4 sm:$0xff]  }
 0x203   : > { %v19086_v53 = vpop.f32.mrf.mxu0 }
 0x204   : > { %21799 = vst [vmem:[#allocation58_spill] sm:$0xff] %v19086_v53  ;;  %10078 = vmatpush2.bf16.msra.mxu1 %v16513_v24  ;;  %10115 = vmatpush2.bf16.msra.mxu0 %v16516_v0  ;;  %v16533_v0 = vld [vmem:[%s18338_s18 + $0x147c] ss:$324 sps:$4 sm:$0xff]  }
 0x205   : > { %10079 = vmatprep.subr.bf16.mxu1 %v16521_v51  ;;  %10116 = vmatprep.subr.bf16.mxu0 %v16524_v32  ;;  %v16003_v54 = vpop.f32.mrf.mxu0  ;;  %v16536_v51 = vld [vmem:[%s18338_s18 + $0xf74] ss:$324 sps:$4 sm:$0xff]   ;;  %v16564_v53 = vld [vmem:[%s18338_s18 + $0x7e0] ss:$324 sps:$4 sm:$0xff]  }
 0x206   : > { %v16531_v32 = vld [vmem:[%s18338_s18 + $0x1478] ss:$324 sps:$4 sm:$0xff]   ;;  %v16542_v54 = vld [vmem:[%s18338_s18 + $0x1204] ss:$324 sps:$4 sm:$0xff]  }
 0x207   : > { %v2775_v19 = vpop.f32.mrf.mxu0 }
 0x208   : > { %10080 = vmatpush2.bf16.msra.mxu1 %v16519_v8  ;;  %10117 = vmatpush2.bf16.msra.mxu0 %v16522_v44  ;;  %v16534_v8 = vld [vmem:[%s18338_s18 + $0xf70] ss:$324 sps:$4 sm:$0xff]   ;;  %v16545_v19 = vld [vmem:[%s18338_s18 + $0xa64] ss:$324 sps:$4 sm:$0xff]  }
 0x209   : > { %10118 = vmatprep.subr.bf16.mxu0 %v16527_v45  ;;  %10131 = vmatprep.subr.bf16.mxu1 %v16530_v52  ;;  %v16004_v24 = vpop.f32.mrf.mxu0  ;;  %v16539_v44 = vld [vmem:[%s18338_s18 + $0xcec] ss:$324 sps:$4 sm:$0xff]   ;;  %v16540_v52 = vld [vmem:[%s18338_s18 + $0x1200] ss:$324 sps:$4 sm:$0xff]  }
 0x20a   : > { %v16537_v45 = vld [vmem:[%s18338_s18 + $0xce8] ss:$324 sps:$4 sm:$0xff]   ;;  %v16546_v24 = vld [vmem:[%s18338_s18 + $0xf78] ss:$324 sps:$4 sm:$0xff]  }
 0x20b   : > { %10082 = vmatmul.mubr.bf16.vlgmr.msra.gmra.mxu1 %v18717_v13 }
 0x20c   : > { %10119 = vmatpush2.bf16.msra.mxu0 %v16525_v1  ;;  %10132 = vmatpush1.bf16.msra.mxu1 %v16528_v22  ;;  %v16548_v1 = vld [vmem:[%s18338_s18 + $0xf7c] ss:$324 sps:$4 sm:$0xff]  }
 0x20d   : > { %10120 = vmatprep.subr.bf16.mxu0 %v16533_v0  ;;  %10133 = vmatprep.subr.bf16.mxu1 %v16536_v51  ;;  %v16543_v22 = vld [vmem:[%s18338_s18 + $0xa60] ss:$324 sps:$4 sm:$0xff]   ;;  %v16554_v51 = vld [vmem:[%s18338_s18 + $0xcf4] ss:$324 sps:$4 sm:$0xff]  }
 0x20e   : > { %15857 = vmatprep.mubr.msk.bf16.mxu1 %vm9552_vm2, %v18638_v9  ;;  %v16551_v0 = vld [vmem:[%s18338_s18 + $0x7dc] ss:$324 sps:$4 sm:$0xff]  }
 0x210   : > { %10121 = vmatpush2.bf16.msra.mxu0 %v16531_v32  ;;  %10134 = vmatpush1.bf16.msra.mxu1 %v16534_v8  ;;  %v16549_v32 = vld [vmem:[%s18338_s18 + $0x7d8] ss:$324 sps:$4 sm:$0xff]   ;;  %v16552_v8 = vld [vmem:[%s18338_s18 + $0xcf0] ss:$324 sps:$4 sm:$0xff]  }
 0x211   : > { %10135 = vmatprep.subr.bf16.mxu1 %v16539_v44  ;;  %10172 = vmatprep.subr.bf16.mxu0 %v16542_v54  ;;  %v16557_v44 = vld [vmem:[%s18338_s18 + $0x554] ss:$324 sps:$4 sm:$0xff]   ;;  %v16560_v54 = vld [vmem:[%s18338_s18 + $0xa6c] ss:$324 sps:$4 sm:$0xff]  }
 0x213   : > { %10123 = vmatmul.mubr.bf16.vlgmr.msra.gmra.mxu0 %v18717_v13 }
 0x214   : > { %10136 = vmatpush1.bf16.msra.mxu1 %v16537_v45  ;;  %10173 = vmatpush1.bf16.msra.mxu0 %v16540_v52  ;;  %v16555_v45 = vld [vmem:[%s18338_s18 + $0x550] ss:$324 sps:$4 sm:$0xff]   ;;  %v16558_v52 = vld [vmem:[%s18338_s18 + $0xa68] ss:$324 sps:$4 sm:$0xff]  }
 0x215   : > { %10137 = vmatprep.subr.bf16.mxu1 %v16545_v19  ;;  %10174 = vmatprep.subr.bf16.mxu0 %v16548_v1  ;;  %v16563_v19 = vld [vmem:[%s18338_s18 + $0x2cc] ss:$324 sps:$4 sm:$0xff]   ;;  %v16566_v1 = vld [vmem:[%s18338_s18 + $0x7e4] ss:$324 sps:$4 sm:$0xff]  }
 0x216   : > { %15858 = vmatprep.mubr.msk.bf16.mxu0 %vm9552_vm2, %v18638_v9 }
 0x218   : > { %10138 = vmatpush1.bf16.msra.mxu1 %v16543_v22  ;;  %10175 = vmatpush1.bf16.msra.mxu0 %v16546_v24  ;;  %v16561_v22 = vld [vmem:[%s18338_s18 + $0x2c8] ss:$324 sps:$4 sm:$0xff]  }
 0x219   : > { %10139 = vmatprep.subr.bf16.mxu1 %v16551_v0  ;;  %10176 = vmatprep.subr.bf16.mxu0 %v16554_v51  ;;  %v16569_v24 = vld [vmem:[%s18338_s18 + $0x44] ss:$324 sps:$4 sm:$0xff]   ;;  %v16572_v0 = vld [vmem:[%s18338_s18 + $0x55c] ss:$324 sps:$4 sm:$0xff]  }
 0x21a   : > { %v16575_v51 = vld [vmem:[%s18338_s18 + $0x1ea4] ss:$324 sps:$4 sm:$0xff]  }
 0x21c   : > { %10140 = vmatpush1.bf16.msra.mxu1 %v16549_v32  ;;  %10177 = vmatpush1.bf16.msra.mxu0 %v16552_v8  ;;  %v16567_v32 = vld [vmem:[%s18338_s18 + $0x40] ss:$324 sps:$4 sm:$0xff]   ;;  %v16570_v8 = vld [vmem:[%s18338_s18 + $0x558] ss:$324 sps:$4 sm:$0xff]  }
 0x21d   : > { %10141 = vmatprep.subr.bf16.mxu1 %v16557_v44  ;;  %10178 = vmatprep.subr.bf16.mxu0 %v16560_v54  ;;  %v16573_v44 = vld [vmem:[%s18338_s18 + $0x1ea0] ss:$324 sps:$4 sm:$0xff]   ;;  %v9612_v54 = vand.u32 %v16575_v51, %v18675_v36  ;;  %v16582_v51 = vld [vmem:[%s18338_s18 + $0x48] ss:$324 sps:$4 sm:$0xff]  }
 0x220   : > { %10142 = vmatpush1.bf16.msra.mxu1 %v16555_v45  ;;  %10179 = vmatpush1.bf16.msra.mxu0 %v16558_v52  ;;  %v16578_v45 = vld [vmem:[%s18338_s18 + $0x2d4] ss:$324 sps:$4 sm:$0xff]  }
 0x221   : > { %10143 = vmatprep.subr.bf16.mxu1 %v16563_v19  ;;  %10180 = vmatprep.subr.bf16.mxu0 %v16566_v1  ;;  %v19133_v52 = vld [vmem:[%s18340_s27] sm:$0xff]  ;;  %v9609_v1 = vand.u32 %v16573_v44, %v18675_v36 }
 0x222   : > { %v16576_v19 = vld [vmem:[%s18338_s18 + $0x2d0] ss:$324 sps:$4 sm:$0xff]  }
 0x224   : > { %10144 = vmatpush1.bf16.msra.mxu1 %v16561_v22  ;;  %10181 = vmatpush1.bf16.msra.mxu0 %v16564_v53  ;;  %v16584_v53 = vld [vmem:[%s18338_s18 + $0x4c] ss:$324 sps:$4 sm:$0xff]  }
 0x225   : > { %10145 = vmatprep.subr.bf16.mxu1 %v16569_v24  ;;  %10182 = vmatprep.subr.bf16.mxu0 %v16572_v0  ;;  %v16590_v22 = vld [vmem:[%s18338_s18 + $0x1eac] ss:$324 sps:$4 sm:$0xff]   ;;  %v2792_v24 = vrot.slane %v19133_v52, %v18805_v40  ;;  %v16579_v0 = vld [vmem:[%s18338_s18 + $0x1c18] ss:$324 sps:$4 sm:$0xff]  }
 0x226   : > { %v9618_v44 = vand.u32 %v16590_v22, %v18675_v36  ;;  %v16596_v22 = vld [vmem:[%s18338_s18 + $0x1c24] ss:$324 sps:$4 sm:$0xff]  }
 0x228   : > { %10146 = vmatpush1.bf16.msra.mxu1 %v16567_v32  ;;  %10183 = vmatpush1.bf16.msra.mxu0 %v16570_v8  ;;  %v2796_v32 = vrot.slane %v19133_v52, %v18811_v50  ;;  %v16587_v8 = vld [vmem:[%s18338_s18 + $0x1994] ss:$324 sps:$4 sm:$0xff]  }
 0x229   : > { %10153 = vmatprep.subr.bf16.mxu1 %v9612_v54  ;;  %10184 = vmatprep.subr.bf16.mxu0 %v16578_v45  ;;  %v3194_v54 = vadd.f32 %v2792_v24, %v18697_v56  ;;  %v2800_v56 = vrot.slane %v19133_v52, %v18802_v39 }
 0x22a   : > { %v3195_v33 = vadd.f32 %v2796_v32, %v18701_v58 }
 0x22c   : > { %10154 = vmatpush2.bf16.msra.mxu1 %v9609_v1  ;;  %10185 = vmatpush1.bf16.msra.mxu0 %v16576_v19  ;;  %v16585_v1 = vld [vmem:[%s18338_s18 + $0x1990] ss:$324 sps:$4 sm:$0xff]   ;;  %v9615_v19 = vand.u32 %v16588_v10, %v18675_v36  ;;  %v16591_v10 = vld [vmem:[%s18338_s18 + $0x1708] ss:$324 sps:$4 sm:$0xff]  }
 0x22d   : > { %10155 = vmatprep.subr.bf16.mxu1 %v16581_v37  ;;  %10186 = vmatprep.subr.bf16.mxu0 %v16584_v53  ;;  %v16593_v53 = vld [vmem:[%s18338_s18 + $0x170c] ss:$324 sps:$4 sm:$0xff]  }
 0x22f   : > { %v9837_v45 = vpop.f32.mrf.mxu1 }
 0x230   : > { %v19151_v31 = vadd.f32 %v9837_v45, %v3194_v54  ;;  %10156 = vmatpush2.bf16.msra.mxu1 %v16579_v0  ;;  %10187 = vmatpush1.bf16.msra.mxu0 %v16582_v51  ;;  %v2804_v0 = vrot.slane %v19133_v52, %v18922_v62  ;;  %v16594_v51 = vld [vmem:[%s18338_s18 + $0x1c20] ss:$324 sps:$4 sm:$0xff]  }
 0x231   : > { %v9839_v37 = vpop.f32.mrf.mxu1  ;;  %10157 = vmatprep.subr.bf16.mxu1 %v16587_v8  ;;  %10194 = vmatprep.subr.bf16.mxu0 %v9618_v44  ;;  %v16599_v8 = vld [vmem:[%s18338_s18 + $0x1484] ss:$324 sps:$4 sm:$0xff]   ;;  %v16602_v44 = vld [vmem:[%s18338_s18 + $0x199c] ss:$324 sps:$4 sm:$0xff]  }
 0x232   : > { %21800 = vst [vmem:[#allocation59_spill] sm:$0xff] %v19151_v31  ;;  %v19159_v58 = vadd.f32 %v9839_v37, %v3195_v33  ;;  %v3196_v33 = vadd.f32 %v2800_v56, %v18695_v55  ;;  %v3197_v45 = vadd.f32 %v2804_v0, %v18699_v57  ;;  %v16603_v57 = vld [vmem:[%s18338_s18 + $0x1710] ss:$324 sps:$4 sm:$0xff]   ;;  %v16606_v0 = vld [vmem:[%s18338_s18 + $0x1208] ss:$324 sps:$4 sm:$0xff]  }
 0x233   : > { %v9841_v24 = vpop.f32.mrf.mxu1 }
 0x234   : > { %21801 = vst [vmem:[#allocation60_spill] sm:$0xff] %v19159_v58  ;;  %10158 = vmatpush2.bf16.msra.mxu1 %v16585_v1  ;;  %10195 = vmatpush2.bf16.msra.mxu0 %v9615_v19  ;;  %v16597_v1 = vld [vmem:[%s18338_s18 + $0x1480] ss:$324 sps:$4 sm:$0xff]   ;;  %v16600_v19 = vld [vmem:[%s18338_s18 + $0x1998] ss:$324 sps:$4 sm:$0xff]  }
 0x235   : > { %v9842_v32 = vpop.f32.mrf.mxu1  ;;  %10159 = vmatprep.subr.bf16.mxu1 %v16593_v53  ;;  %10196 = vmatprep.subr.bf16.mxu0 %v16596_v22  ;;  %v16605_v22 = vld [vmem:[%s18338_s18 + $0x1714] ss:$324 sps:$4 sm:$0xff]   ;;  %v16608_v24 = vld [vmem:[%s18338_s18 + $0x120c] ss:$324 sps:$4 sm:$0xff]  }
 0x236   : > { %v16614_v32 = vld [vmem:[%s18338_s18 + $0xf84] ss:$324 sps:$4 sm:$0xff]  }
 0x237   : > { %v9878_v54 = vpop.f32.mrf.mxu0 }
 0x238   : > { %v19169_v37 = vadd.f32 %v9878_v54, %v3196_v33  ;;  %10160 = vmatpush2.bf16.msra.mxu1 %v16591_v10  ;;  %10197 = vmatpush2.bf16.msra.mxu0 %v16594_v51  ;;  %v16611_v51 = vld [vmem:[%s18338_s18 + $0x148c] ss:$324 sps:$4 sm:$0xff]   ;;  %v16617_v33 = vld [vmem:[%s18338_s18 + $0xcfc] ss:$324 sps:$4 sm:$0xff]   ;;  %v16620_v54 = vld [vmem:[%s18338_s18 + $0x1214] ss:$324 sps:$4 sm:$0xff]  }
 0x239   : > { %v9880_v53 = vpop.f32.mrf.mxu0  ;;  %10161 = vmatprep.subr.bf16.mxu1 %v16599_v8  ;;  %10198 = vmatprep.subr.bf16.mxu0 %v16602_v44  ;;  %v16609_v8 = vld [vmem:[%s18338_s18 + $0x1488] ss:$324 sps:$4 sm:$0xff]   ;;  %v16612_v44 = vld [vmem:[%s18338_s18 + $0xf80] ss:$324 sps:$4 sm:$0xff]  }
 0x23a   : > { %21802 = vst [vmem:[#allocation61_spill] sm:$0xff] %v19169_v37  ;;  %v19175_v55 = vadd.f32 %v9880_v53, %v3197_v45  ;;  %v16615_v45 = vld [vmem:[%s18338_s18 + $0xcf8] ss:$324 sps:$4 sm:$0xff]   ;;  %v16626_v53 = vld [vmem:[%s18338_s18 + $0xf8c] ss:$324 sps:$4 sm:$0xff]  }
 0x23b   : > { %v9882_v56 = vpop.f32.mrf.mxu0  ;;  %v21851_v37 = vld [vmem:[#allocation41_spill] sm:$0xff] }
 0x23c   : > { %21803 = vst [vmem:[#allocation62_spill] sm:$0xff] %v19175_v55  ;;  %10162 = vmatpush2.bf16.msra.mxu1 %v16597_v1  ;;  %10199 = vmatpush2.bf16.msra.mxu0 %v16600_v19  ;;  %v16618_v1 = vld [vmem:[%s18338_s18 + $0x1210] ss:$324 sps:$4 sm:$0xff]  }
 0x23d   : > { %10200 = vmatprep.subr.bf16.mxu0 %v16605_v22  ;;  %10213 = vmatprep.subr.bf16.mxu1 %v16608_v24  ;;  %v9883_v10 = vpop.f32.mrf.mxu0  ;;  %v16623_v19 = vld [vmem:[%s18338_s18 + $0xa74] ss:$324 sps:$4 sm:$0xff]   ;;  %v16624_v24 = vld [vmem:[%s18338_s18 + $0xf88] ss:$324 sps:$4 sm:$0xff]  }
 0x23e   : > { %v16621_v22 = vld [vmem:[%s18338_s18 + $0xa70] ss:$324 sps:$4 sm:$0xff]   ;;  %v16630_v10 = vld [vmem:[%s18338_s18 + $0xd00] ss:$324 sps:$4 sm:$0xff]  }
 0x23f   : > { %10164 = vmatmul.mubr.bf16.vlgmr.msra.gmra.mxu1 %v18717_v13  ;;  %v16629_v56 = vld [vmem:[%s18338_s18 + $0x7ec] ss:$324 sps:$4 sm:$0xff]  }
 0x240   : > { %10201 = vmatpush2.bf16.msra.mxu0 %v16603_v57  ;;  %10214 = vmatpush1.bf16.msra.mxu1 %v16606_v0  ;;  %v16632_v57 = vld [vmem:[%s18338_s18 + $0xd04] ss:$324 sps:$4 sm:$0xff]  }
 0x241   : > { %10202 = vmatprep.subr.bf16.mxu0 %v16611_v51  ;;  %10215 = vmatprep.subr.bf16.mxu1 %v16614_v32  ;;  %v16627_v0 = vld [vmem:[%s18338_s18 + $0x7e8] ss:$324 sps:$4 sm:$0xff]   ;;  %v16638_v32 = vld [vmem:[%s18338_s18 + $0xa7c] ss:$324 sps:$4 sm:$0xff]  }
 0x242   : > { %15859 = vmatprep.mubr.msk.bf16.mxu1 %vm9552_vm2, %v18638_v9  ;;  %v16635_v51 = vld [vmem:[%s18338_s18 + $0x564] ss:$324 sps:$4 sm:$0xff]  }
 0x244   : > { %10203 = vmatpush2.bf16.msra.mxu0 %v16609_v8  ;;  %10216 = vmatpush1.bf16.msra.mxu1 %v16612_v44  ;;  %v16633_v8 = vld [vmem:[%s18338_s18 + $0x560] ss:$324 sps:$4 sm:$0xff]   ;;  %v16636_v44 = vld [vmem:[%s18338_s18 + $0xa78] ss:$324 sps:$4 sm:$0xff]  }
 0x245   : > { %10217 = vmatprep.subr.bf16.mxu1 %v16617_v33  ;;  %10254 = vmatprep.subr.bf16.mxu0 %v16620_v54  ;;  %v16641_v33 = vld [vmem:[%s18338_s18 + $0x2dc] ss:$324 sps:$4 sm:$0xff]   ;;  %v16644_v54 = vld [vmem:[%s18338_s18 + $0x7f4] ss:$324 sps:$4 sm:$0xff]  }
 0x247   : > { %10205 = vmatmul.mubr.bf16.vlgmr.msra.gmra.mxu0 %v18717_v13 }
 0x248   : > { %10218 = vmatpush1.bf16.msra.mxu1 %v16615_v45  ;;  %10255 = vmatpush1.bf16.msra.mxu0 %v16618_v1  ;;  %v16639_v45 = vld [vmem:[%s18338_s18 + $0x2d8] ss:$324 sps:$4 sm:$0xff]   ;;  %v16642_v1 = vld [vmem:[%s18338_s18 + $0x7f0] ss:$324 sps:$4 sm:$0xff]  }
 0x249   : > { %10219 = vmatprep.subr.bf16.mxu1 %v16623_v19  ;;  %10256 = vmatprep.subr.bf16.mxu0 %v16626_v53  ;;  %v16647_v19 = vld [vmem:[%s18338_s18 + $0x54] ss:$324 sps:$4 sm:$0xff]   ;;  %v16650_v53 = vld [vmem:[%s18338_s18 + $0x56c] ss:$324 sps:$4 sm:$0xff]  }
 0x24a   : > { %15860 = vmatprep.mubr.msk.bf16.mxu0 %vm9552_vm2, %v18638_v9 }
 0x24c   : > { %10220 = vmatpush1.bf16.msra.mxu1 %v16621_v22  ;;  %10257 = vmatpush1.bf16.msra.mxu0 %v16624_v24  ;;  %v16653_v22 = vld [vmem:[%s18338_s18 + $0x1eb4] ss:$324 sps:$4 sm:$0xff]  }
 0x24d   : > { %10221 = vmatprep.subr.bf16.mxu1 %v16629_v56  ;;  %10258 = vmatprep.subr.bf16.mxu0 %v16632_v57  ;;  %v16645_v24 = vld [vmem:[%s18338_s18 + $0x50] ss:$324 sps:$4 sm:$0xff]   ;;  %v16648_v56 = vld [vmem:[%s18338_s18 + $0x568] ss:$324 sps:$4 sm:$0xff]  }
 0x24e   : > { %v16651_v57 = vld [vmem:[%s18338_s18 + $0x1eb0] ss:$324 sps:$4 sm:$0xff]  }
 0x250   : > { %10222 = vmatpush1.bf16.msra.mxu1 %v16627_v0  ;;  %10259 = vmatpush1.bf16.msra.mxu0 %v16630_v10  ;;  %v9624_v0 = vand.u32 %v16653_v22, %v18675_v36  ;;  %v16656_v10 = vld [vmem:[%s18338_s18 + $0x2e4] ss:$324 sps:$4 sm:$0xff]  }
 0x251   : > { %10223 = vmatprep.subr.bf16.mxu1 %v16635_v51  ;;  %10260 = vmatprep.subr.bf16.mxu0 %v16638_v32  ;;  %v16654_v51 = vld [vmem:[%s18338_s18 + $0x2e0] ss:$324 sps:$4 sm:$0xff]   ;;  %v9621_v32 = vand.u32 %v16651_v57, %v18675_v36 }
 0x252   : > { %v16665_v22 = vld [vmem:[%s18338_s18 + $0x19a4] ss:$324 sps:$4 sm:$0xff]  }
 0x254   : > { %10224 = vmatpush1.bf16.msra.mxu1 %v16633_v8  ;;  %10261 = vmatpush1.bf16.msra.mxu0 %v16636_v44  ;;  %v16659_v8 = vld [vmem:[%s18338_s18 + $0x1c2c] ss:$324 sps:$4 sm:$0xff]   ;;  %v16662_v44 = vld [vmem:[%s18338_s18 + $0x5c] ss:$324 sps:$4 sm:$0xff]  }
 0x255   : > { %10225 = vmatprep.subr.bf16.mxu1 %v16641_v33  ;;  %10262 = vmatprep.subr.bf16.mxu0 %v16644_v54  ;;  %v16668_v33 = vld [vmem:[%s18338_s18 + $0x1ebc] ss:$324 sps:$4 sm:$0xff]   ;;  %v2808_v54 = vrot.slane %v19133_v52, %v18947_v16 }
 0x257   : > { %v3198_v57 = vadd.f32 %v2808_v54, %v18713_v12  ;;  %v16671_v12 = vld [vmem:[%s18338_s18 + $0x171c] ss:$324 sps:$4 sm:$0xff]  }
 0x258   : > { %10226 = vmatpush1.bf16.msra.mxu1 %v16639_v45  ;;  %10263 = vmatpush1.bf16.msra.mxu0 %v16642_v1  ;;  %v16657_v45 = vld [vmem:[%s18338_s18 + $0x1c28] ss:$324 sps:$4 sm:$0xff]   ;;  %v16660_v1 = vld [vmem:[%s18338_s18 + $0x58] ss:$324 sps:$4 sm:$0xff]  }
 0x259   : > { %10227 = vmatprep.subr.bf16.mxu1 %v16647_v19  ;;  %10264 = vmatprep.subr.bf16.mxu0 %v16650_v53  ;;  %v16666_v19 = vld [vmem:[%s18338_s18 + $0x1eb8] ss:$324 sps:$4 sm:$0xff]   ;;  %v2812_v53 = vrot.slane %v19133_v52, %v18954_v2 }
 0x25b   : > { %v3199_v55 = vadd.f32 %v2812_v53, %v18721_v15 }
 0x25c   : > { %10228 = vmatpush1.bf16.msra.mxu1 %v16645_v24  ;;  %10265 = vmatpush1.bf16.msra.mxu0 %v16648_v56  ;;  %v9630_v24 = vand.u32 %v16668_v33, %v18675_v36  ;;  %v19232_v56 = vsub.s32 6, %v18785_v23  ;;  %v16674_v33 = vld [vmem:[%s18338_s18 + $0x1c34] ss:$324 sps:$4 sm:$0xff]  }
 0x25d   : > { %10235 = vmatprep.subr.bf16.mxu1 %v9624_v0  ;;  %10266 = vmatprep.subr.bf16.mxu0 %v16656_v10  ;;  %v19236_v10 = vsub.s32 7, %v18785_v23 }
 0x25e   : > { %v2816_v54 = vrot.slane %v19133_v52, %v19232_v56 }
 0x260   : > { %10236 = vmatpush2.bf16.msra.mxu1 %v9621_v32  ;;  %10267 = vmatpush1.bf16.msra.mxu0 %v16654_v51  ;;  %v16663_v51 = vld [vmem:[%s18338_s18 + $0x19a0] ss:$324 sps:$4 sm:$0xff]  }
 0x261   : > { %10237 = vmatprep.subr.bf16.mxu1 %v16659_v8  ;;  %10268 = vmatprep.subr.bf16.mxu0 %v16662_v44  ;;  %v9627_v8 = vand.u32 %v16666_v19, %v18675_v36  ;;  %v16672_v19 = vld [vmem:[%s18338_s18 + $0x1c30] ss:$324 sps:$4 sm:$0xff]  }
 0x263   : > { %v9919_v0 = vpop.f32.mrf.mxu1 }
 0x264   : > { %v19239_v32 = vadd.f32 %v9919_v0, %v3198_v57  ;;  %10238 = vmatpush2.bf16.msra.mxu1 %v16657_v45  ;;  %10269 = vmatpush1.bf16.msra.mxu0 %v16660_v1  ;;  %v2820_v45 = vrot.slane %v19133_v52, %v19236_v10  ;;  %v16669_v1 = vld [vmem:[%s18338_s18 + $0x1718] ss:$324 sps:$4 sm:$0xff]   ;;  %v16680_v57 = vld [vmem:[%s18338_s18 + $0x19ac] ss:$324 sps:$4 sm:$0xff]  }
 0x265   : > { %v9921_v44 = vpop.f32.mrf.mxu1  ;;  %10239 = vmatprep.subr.bf16.mxu1 %v16665_v22  ;;  %10276 = vmatprep.subr.bf16.mxu0 %v9630_v24  ;;  %v16677_v24 = vld [vmem:[%s18338_s18 + $0x1494] ss:$324 sps:$4 sm:$0xff]  }
 0x266   : > { %21804 = vst [vmem:[#allocation63_spill] sm:$0xff] %v19239_v32  ;;  %v19247_v15 = vadd.f32 %v9921_v44, %v3199_v55  ;;  %v3200_v55 = vadd.f32 %v2816_v54, %v18711_v11  ;;  %v3201_v44 = vadd.f32 %v2820_v45, %v18719_v14  ;;  %v16681_v14 = vld [vmem:[%s18338_s18 + $0x1720] ss:$324 sps:$4 sm:$0xff]   ;;  %v16684_v45 = vld [vmem:[%s18338_s18 + $0x1218] ss:$324 sps:$4 sm:$0xff]  }
 0x267   : > { %v9923_v53 = vpop.f32.mrf.mxu1 }
 0x268   : > { %21805 = vst [vmem:[#allocation64_spill] sm:$0xff] %v19247_v15  ;;  %10240 = vmatpush2.bf16.msra.mxu1 %v16663_v51  ;;  %10277 = vmatpush2.bf16.msra.mxu0 %v9627_v8  ;;  %v16675_v51 = vld [vmem:[%s18338_s18 + $0x1490] ss:$324 sps:$4 sm:$0xff]   ;;  %v16678_v8 = vld [vmem:[%s18338_s18 + $0x19a8] ss:$324 sps:$4 sm:$0xff]  }
 0x269   : > { %v9924_v22 = vpop.f32.mrf.mxu1  ;;  %10241 = vmatprep.subr.bf16.mxu1 %v16671_v12  ;;  %10278 = vmatprep.subr.bf16.mxu0 %v16674_v33  ;;  %v16683_v33 = vld [vmem:[%s18338_s18 + $0x1724] ss:$324 sps:$4 sm:$0xff]   ;;  %v16686_v53 = vld [vmem:[%s18338_s18 + $0x121c] ss:$324 sps:$4 sm:$0xff]  }
 0x26a   : > { %v16692_v22 = vld [vmem:[%s18338_s18 + $0xf94] ss:$324 sps:$4 sm:$0xff]  }
 0x26b   : > { %v9960_v0 = vpop.f32.mrf.mxu0 }
 0x26c   : > { %v19257_v52 = vadd.f32 %v9960_v0, %v3200_v55  ;;  %10242 = vmatpush2.bf16.msra.mxu1 %v16669_v1  ;;  %10279 = vmatpush2.bf16.msra.mxu0 %v16672_v19  ;;  %v16689_v19 = vld [vmem:[%s18338_s18 + $0x149c] ss:$324 sps:$4 sm:$0xff]   ;;  %v16695_v55 = vld [vmem:[%s18338_s18 + $0xd0c] ss:$324 sps:$4 sm:$0xff]   ;;  %v16698_v0 = vld [vmem:[%s18338_s18 + $0x1224] ss:$324 sps:$4 sm:$0xff]  }
 0x26d   : > { %v9962_v12 = vpop.f32.mrf.mxu0  ;;  %10243 = vmatprep.subr.bf16.mxu1 %v16677_v24  ;;  %10280 = vmatprep.subr.bf16.mxu0 %v16680_v57  ;;  %v16687_v24 = vld [vmem:[%s18338_s18 + $0x1498] ss:$324 sps:$4 sm:$0xff]   ;;  %v16690_v57 = vld [vmem:[%s18338_s18 + $0xf90] ss:$324 sps:$4 sm:$0xff]  }
 0x26e   : > { %21806 = vst [vmem:[#allocation65_spill] sm:$0xff] %v19257_v52  ;;  %v19263_v11 = vadd.f32 %v9962_v12, %v3201_v44  ;;  %v16693_v44 = vld [vmem:[%s18338_s18 + $0xd08] ss:$324 sps:$4 sm:$0xff]   ;;  %v16704_v12 = vld [vmem:[%s18338_s18 + $0xf9c] ss:$324 sps:$4 sm:$0xff]  }
 0x26f   : > { %v9964_v54 = vpop.f32.mrf.mxu0 }
 0x270   : > { %21807 = vst [vmem:[#allocation66_spill] sm:$0xff] %v19263_v11  ;;  %10244 = vmatpush2.bf16.msra.mxu1 %v16675_v51  ;;  %10281 = vmatpush2.bf16.msra.mxu0 %v16678_v8  ;;  %v16696_v51 = vld [vmem:[%s18338_s18 + $0x1220] ss:$324 sps:$4 sm:$0xff]  }
 0x271   : > { %10282 = vmatprep.subr.bf16.mxu0 %v16683_v33  ;;  %10295 = vmatprep.subr.bf16.mxu1 %v16686_v53  ;;  %v9965_v1 = vpop.f32.mrf.mxu0  ;;  %v16701_v8 = vld [vmem:[%s18338_s18 + $0xa84] ss:$324 sps:$4 sm:$0xff]   ;;  %v16702_v53 = vld [vmem:[%s18338_s18 + $0xf98] ss:$324 sps:$4 sm:$0xff]  }
 0x272   : > { %v16699_v33 = vld [vmem:[%s18338_s18 + $0xa80] ss:$324 sps:$4 sm:$0xff]   ;;  %v16708_v1 = vld [vmem:[%s18338_s18 + $0xd10] ss:$324 sps:$4 sm:$0xff]  }
 0x273   : > { %10246 = vmatmul.mubr.bf16.vlgmr.msra.gmra.mxu1 %v18717_v13  ;;  %v16707_v54 = vld [vmem:[%s18338_s18 + $0x7fc] ss:$324 sps:$4 sm:$0xff]  }
 0x274   : > { %10283 = vmatpush2.bf16.msra.mxu0 %v16681_v14  ;;  %10296 = vmatpush1.bf16.msra.mxu1 %v16684_v45  ;;  %v16710_v14 = vld [vmem:[%s18338_s18 + $0xd14] ss:$324 sps:$4 sm:$0xff]  }
 0x275   : > { %10284 = vmatprep.subr.bf16.mxu0 %v16689_v19  ;;  %10297 = vmatprep.subr.bf16.mxu1 %v16692_v22  ;;  %v16705_v45 = vld [vmem:[%s18338_s18 + $0x7f8] ss:$324 sps:$4 sm:$0xff]   ;;  %v16716_v22 = vld [vmem:[%s18338_s18 + $0xa8c] ss:$324 sps:$4 sm:$0xff]  }
 0x276   : > { %15861 = vmatprep.mubr.msk.bf16.mxu1 %vm9552_vm2, %v18638_v9  ;;  %v16713_v19 = vld [vmem:[%s18338_s18 + $0x574] ss:$324 sps:$4 sm:$0xff]  }
 0x278   : > { %10285 = vmatpush2.bf16.msra.mxu0 %v16687_v24  ;;  %10298 = vmatpush1.bf16.msra.mxu1 %v16690_v57  ;;  %v16711_v24 = vld [vmem:[%s18338_s18 + $0x570] ss:$324 sps:$4 sm:$0xff]   ;;  %v16714_v57 = vld [vmem:[%s18338_s18 + $0xa88] ss:$324 sps:$4 sm:$0xff]  }
 0x279   : > { %10299 = vmatprep.subr.bf16.mxu1 %v16695_v55  ;;  %10336 = vmatprep.subr.bf16.mxu0 %v16698_v0  ;;  %v16719_v55 = vld [vmem:[%s18338_s18 + $0x2ec] ss:$324 sps:$4 sm:$0xff]   ;;  %v16722_v0 = vld [vmem:[%s18338_s18 + $0x804] ss:$324 sps:$4 sm:$0xff]  }
 0x27b   : > { %10287 = vmatmul.mubr.bf16.vlgmr.msra.gmra.mxu0 %v18717_v13 }
 0x27c   : > { %10300 = vmatpush1.bf16.msra.mxu1 %v16693_v44  ;;  %10337 = vmatpush1.bf16.msra.mxu0 %v16696_v51  ;;  %v16717_v44 = vld [vmem:[%s18338_s18 + $0x2e8] ss:$324 sps:$4 sm:$0xff]   ;;  %v16720_v51 = vld [vmem:[%s18338_s18 + $0x800] ss:$324 sps:$4 sm:$0xff]  }
 0x27d   : > { %10301 = vmatprep.subr.bf16.mxu1 %v16701_v8  ;;  %10338 = vmatprep.subr.bf16.mxu0 %v16704_v12  ;;  %v16725_v8 = vld [vmem:[%s18338_s18 + $0x64] ss:$324 sps:$4 sm:$0xff]   ;;  %v16728_v12 = vld [vmem:[%s18338_s18 + $0x57c] ss:$324 sps:$4 sm:$0xff]  }
 0x27e   : > { %15862 = vmatprep.mubr.msk.bf16.mxu0 %vm9552_vm2, %v18638_v9 }
 0x280   : > { %10302 = vmatpush1.bf16.msra.mxu1 %v16699_v33  ;;  %10339 = vmatpush1.bf16.msra.mxu0 %v16702_v53  ;;  %v16731_v33 = vld [vmem:[%s18338_s18 + $0x1ec4] ss:$324 sps:$4 sm:$0xff]  }
 0x281   : > { %10303 = vmatprep.subr.bf16.mxu1 %v16707_v54  ;;  %10340 = vmatprep.subr.bf16.mxu0 %v16710_v14  ;;  %v16723_v53 = vld [vmem:[%s18338_s18 + $0x60] ss:$324 sps:$4 sm:$0xff]   ;;  %v16726_v54 = vld [vmem:[%s18338_s18 + $0x578] ss:$324 sps:$4 sm:$0xff]  }
 0x282   : > { %v16729_v14 = vld [vmem:[%s18338_s18 + $0x1ec0] ss:$324 sps:$4 sm:$0xff]  }
 0x284   : > { %10304 = vmatpush1.bf16.msra.mxu1 %v16705_v45  ;;  %10341 = vmatpush1.bf16.msra.mxu0 %v16708_v1  ;;  %v9636_v45 = vand.u32 %v16731_v33, %v18675_v36  ;;  %v16734_v1 = vld [vmem:[%s18338_s18 + $0x2f4] ss:$324 sps:$4 sm:$0xff]  }
 0x285   : > { %10305 = vmatprep.subr.bf16.mxu1 %v16713_v19  ;;  %10342 = vmatprep.subr.bf16.mxu0 %v16716_v22  ;;  %v19306_v19 = vld [vmem:[%s18340_s27 + $0x8] sm:$0xff]  ;;  %v16732_v22 = vld [vmem:[%s18338_s18 + $0x2f0] ss:$324 sps:$4 sm:$0xff]  }
 0x286   : > { %v2828_v33 = vrot.slane %v19306_v19, %v18811_v50 }
 0x288   : > { %10306 = vmatpush1.bf16.msra.mxu1 %v16711_v24  ;;  %10343 = vmatpush1.bf16.msra.mxu0 %v16714_v57  ;;  %v9633_v24 = vand.u32 %v16729_v14, %v18675_v36  ;;  %v16737_v57 = vld [vmem:[%s18338_s18 + $0x1c3c] ss:$324 sps:$4 sm:$0xff]  }
 0x289   : > { %10307 = vmatprep.subr.bf16.mxu1 %v16719_v55  ;;  %10344 = vmatprep.subr.bf16.mxu0 %v16722_v0  ;;  %v16740_v55 = vld [vmem:[%s18338_s18 + $0x6c] ss:$324 sps:$4 sm:$0xff]  }
 0x28a   : > { %v16746_v0 = vld [vmem:[%s18338_s18 + $0x1ecc] ss:$324 sps:$4 sm:$0xff]  }
 0x28c   : > { %10308 = vmatpush1.bf16.msra.mxu1 %v16717_v44  ;;  %10345 = vmatpush1.bf16.msra.mxu0 %v16720_v51  ;;  %v2824_v44 = vrot.slane %v19306_v19, %v18805_v40  ;;  %v16735_v51 = vld [vmem:[%s18338_s18 + $0x1c38] ss:$324 sps:$4 sm:$0xff]  }
 0x28d   : > { %10309 = vmatprep.subr.bf16.mxu1 %v16725_v8  ;;  %10346 = vmatprep.subr.bf16.mxu0 %v16728_v12  ;;  %v16738_v8 = vld [vmem:[%s18338_s18 + $0x68] ss:$324 sps:$4 sm:$0xff]  }
 0x28e   : > { %v16744_v12 = vld [vmem:[%s18338_s18 + $0x1ec8] ss:$324 sps:$4 sm:$0xff]   ;;  %v3202_v14 = vadd.f32 %v2824_v44, %v18735_v26  ;;  %v2832_v26 = vrot.slane %v19306_v19, %v18802_v39 }
 0x290   : > { %10310 = vmatpush1.bf16.msra.mxu1 %v16723_v53  ;;  %10347 = vmatpush1.bf16.msra.mxu0 %v16726_v54  ;;  %v16743_v53 = vld [vmem:[%s18338_s18 + $0x19b4] ss:$324 sps:$4 sm:$0xff]   ;;  %v9642_v54 = vand.u32 %v16746_v0, %v18675_v36  ;;  %v16752_v0 = vld [vmem:[%s18338_s18 + $0x1c44] ss:$324 sps:$4 sm:$0xff]  }
 0x291   : > { %10317 = vmatprep.subr.bf16.mxu1 %v9636_v45  ;;  %10348 = vmatprep.subr.bf16.mxu0 %v16734_v1  ;;  %v3203_v1 = vadd.f32 %v2828_v33, %v18741_v30 }
 0x294   : > { %10318 = vmatpush2.bf16.msra.mxu1 %v9633_v24  ;;  %10349 = vmatpush1.bf16.msra.mxu0 %v16732_v22  ;;  %v16741_v24 = vld [vmem:[%s18338_s18 + $0x19b0] ss:$324 sps:$4 sm:$0xff]   ;;  %v9639_v22 = vand.u32 %v16744_v12, %v18675_v36  ;;  %v16750_v12 = vld [vmem:[%s18338_s18 + $0x1c40] ss:$324 sps:$4 sm:$0xff]  }
 0x295   : > { %10319 = vmatprep.subr.bf16.mxu1 %v16737_v57  ;;  %10350 = vmatprep.subr.bf16.mxu0 %v16740_v55  ;;  %v16749_v55 = vld [vmem:[%s18338_s18 + $0x172c] ss:$324 sps:$4 sm:$0xff]  }
 0x297   : > { %v10001_v45 = vpop.f32.mrf.mxu1 }
 0x298   : > { %v19324_v11 = vadd.f32 %v10001_v45, %v3202_v14  ;;  %10320 = vmatpush2.bf16.msra.mxu1 %v16735_v51  ;;  %10351 = vmatpush1.bf16.msra.mxu0 %v16738_v8  ;;  %v2836_v51 = vrot.slane %v19306_v19, %v18922_v62  ;;  %v16747_v8 = vld [vmem:[%s18338_s18 + $0x1728] ss:$324 sps:$4 sm:$0xff]   ;;  %v3204_v14 = vadd.f32 %v2832_v26, %v18733_v25 }
 0x299   : > { %v10003_v57 = vpop.f32.mrf.mxu1  ;;  %10321 = vmatprep.subr.bf16.mxu1 %v16743_v53  ;;  %10358 = vmatprep.subr.bf16.mxu0 %v9642_v54  ;;  %v16755_v53 = vld [vmem:[%s18338_s18 + $0x14a4] ss:$324 sps:$4 sm:$0xff]   ;;  %v16758_v54 = vld [vmem:[%s18338_s18 + $0x19bc] ss:$324 sps:$4 sm:$0xff]  }
 0x29a   : > { %21808 = vst [vmem:[#allocation67_spill] sm:$0xff] %v19324_v11  ;;  %v19332_v30 = vadd.f32 %v10003_v57, %v3203_v1  ;;  %v3205_v1 = vadd.f32 %v2836_v51, %v18739_v29  ;;  %v16759_v29 = vld [vmem:[%s18338_s18 + $0x1730] ss:$324 sps:$4 sm:$0xff]   ;;  %v16762_v51 = vld [vmem:[%s18338_s18 + $0x1228] ss:$324 sps:$4 sm:$0xff]  }
 0x29b   : > { %v10005_v44 = vpop.f32.mrf.mxu1  ;;  %v21847_v11 = vld [vmem:[#allocation37_spill] sm:$0xff] }
 0x29c   : > { %21809 = vst [vmem:[#allocation68_spill] sm:$0xff] %v19332_v30  ;;  %10322 = vmatpush2.bf16.msra.mxu1 %v16741_v24  ;;  %10359 = vmatpush2.bf16.msra.mxu0 %v9639_v22  ;;  %v16753_v24 = vld [vmem:[%s18338_s18 + $0x14a0] ss:$324 sps:$4 sm:$0xff]   ;;  %v16756_v22 = vld [vmem:[%s18338_s18 + $0x19b8] ss:$324 sps:$4 sm:$0xff]  }
 0x29d   : > { %v10006_v33 = vpop.f32.mrf.mxu1  ;;  %10323 = vmatprep.subr.bf16.mxu1 %v16749_v55  ;;  %10360 = vmatprep.subr.bf16.mxu0 %v16752_v0  ;;  %v16761_v0 = vld [vmem:[%s18338_s18 + $0x1734] ss:$324 sps:$4 sm:$0xff]   ;;  %v16764_v44 = vld [vmem:[%s18338_s18 + $0x122c] ss:$324 sps:$4 sm:$0xff]  }
 0x29e   : > { %v16770_v33 = vld [vmem:[%s18338_s18 + $0xfa4] ss:$324 sps:$4 sm:$0xff]  }
 0x29f   : > { %v10042_v45 = vpop.f32.mrf.mxu0 }
 0x2a0   : > { %v19342_v57 = vadd.f32 %v10042_v45, %v3204_v14  ;;  %10324 = vmatpush2.bf16.msra.mxu1 %v16747_v8  ;;  %10361 = vmatpush2.bf16.msra.mxu0 %v16750_v12  ;;  %v16767_v12 = vld [vmem:[%s18338_s18 + $0x14ac] ss:$324 sps:$4 sm:$0xff]   ;;  %v16773_v14 = vld [vmem:[%s18338_s18 + $0xd1c] ss:$324 sps:$4 sm:$0xff]   ;;  %v16776_v45 = vld [vmem:[%s18338_s18 + $0x1234] ss:$324 sps:$4 sm:$0xff]  }
 0x2a1   : > { %v10044_v55 = vpop.f32.mrf.mxu0  ;;  %10325 = vmatprep.subr.bf16.mxu1 %v16755_v53  ;;  %10362 = vmatprep.subr.bf16.mxu0 %v16758_v54  ;;  %v16765_v53 = vld [vmem:[%s18338_s18 + $0x14a8] ss:$324 sps:$4 sm:$0xff]   ;;  %v16768_v54 = vld [vmem:[%s18338_s18 + $0xfa0] ss:$324 sps:$4 sm:$0xff]  }
 0x2a2   : > { %21810 = vst [vmem:[#allocation69_spill] sm:$0xff] %v19342_v57  ;;  %v19348_v25 = vadd.f32 %v10044_v55, %v3205_v1  ;;  %v16771_v1 = vld [vmem:[%s18338_s18 + $0xd18] ss:$324 sps:$4 sm:$0xff]   ;;  %v16782_v55 = vld [vmem:[%s18338_s18 + $0xfac] ss:$324 sps:$4 sm:$0xff]  }
 0x2a3   : > { %v10046_v26 = vpop.f32.mrf.mxu0  ;;  %v17608_v57 = vld [vmem:[%s18338_s18 + $0x1cf0] ss:$324 sps:$4 sm:$0xff]  }
 0x2a4   : > { %21811 = vst [vmem:[#allocation70_spill] sm:$0xff] %v19348_v25  ;;  %10326 = vmatpush2.bf16.msra.mxu1 %v16753_v24  ;;  %10363 = vmatpush2.bf16.msra.mxu0 %v16756_v22  ;;  %v16774_v24 = vld [vmem:[%s18338_s18 + $0x1230] ss:$324 sps:$4 sm:$0xff]   ;;  %v17605_v25 = vld [vmem:[%s18338_s18 + $0x17d8] ss:$324 sps:$4 sm:$0xff]  }
 0x2a5   : > { %10364 = vmatprep.subr.bf16.mxu0 %v16761_v0  ;;  %10377 = vmatprep.subr.bf16.mxu1 %v16764_v44  ;;  %v10047_v8 = vpop.f32.mrf.mxu0  ;;  %v16779_v22 = vld [vmem:[%s18338_s18 + $0xa94] ss:$324 sps:$4 sm:$0xff]   ;;  %v16780_v44 = vld [vmem:[%s18338_s18 + $0xfa8] ss:$324 sps:$4 sm:$0xff]  }
 0x2a6   : > { %v16777_v0 = vld [vmem:[%s18338_s18 + $0xa90] ss:$324 sps:$4 sm:$0xff]   ;;  %v16786_v8 = vld [vmem:[%s18338_s18 + $0xd20] ss:$324 sps:$4 sm:$0xff]  }
 0x2a7   : > { %10328 = vmatmul.mubr.bf16.vlgmr.msra.gmra.mxu1 %v18717_v13  ;;  %v16785_v26 = vld [vmem:[%s18338_s18 + $0x80c] ss:$324 sps:$4 sm:$0xff]  }
 0x2a8   : > { %10365 = vmatpush2.bf16.msra.mxu0 %v16759_v29  ;;  %10378 = vmatpush1.bf16.msra.mxu1 %v16762_v51  ;;  %v16788_v29 = vld [vmem:[%s18338_s18 + $0xd24] ss:$324 sps:$4 sm:$0xff]  }
 0x2a9   : > { %10366 = vmatprep.subr.bf16.mxu0 %v16767_v12  ;;  %10379 = vmatprep.subr.bf16.mxu1 %v16770_v33  ;;  %v16783_v51 = vld [vmem:[%s18338_s18 + $0x808] ss:$324 sps:$4 sm:$0xff]   ;;  %v16794_v33 = vld [vmem:[%s18338_s18 + $0xa9c] ss:$324 sps:$4 sm:$0xff]  }
 0x2aa   : > { %15863 = vmatprep.mubr.msk.bf16.mxu1 %vm9552_vm2, %v18638_v9  ;;  %v16791_v12 = vld [vmem:[%s18338_s18 + $0x584] ss:$324 sps:$4 sm:$0xff]  }
 0x2ac   : > { %10367 = vmatpush2.bf16.msra.mxu0 %v16765_v53  ;;  %10380 = vmatpush1.bf16.msra.mxu1 %v16768_v54  ;;  %v16789_v53 = vld [vmem:[%s18338_s18 + $0x580] ss:$324 sps:$4 sm:$0xff]   ;;  %v16792_v54 = vld [vmem:[%s18338_s18 + $0xa98] ss:$324 sps:$4 sm:$0xff]  }
 0x2ad   : > { %10381 = vmatprep.subr.bf16.mxu1 %v16773_v14  ;;  %10418 = vmatprep.subr.bf16.mxu0 %v16776_v45  ;;  %v16797_v14 = vld [vmem:[%s18338_s18 + $0x2fc] ss:$324 sps:$4 sm:$0xff]   ;;  %v16800_v45 = vld [vmem:[%s18338_s18 + $0x814] ss:$324 sps:$4 sm:$0xff]  }
 0x2af   : > { %10369 = vmatmul.mubr.bf16.vlgmr.msra.gmra.mxu0 %v18717_v13 }
 0x2b0   : > { %10382 = vmatpush1.bf16.msra.mxu1 %v16771_v1  ;;  %10419 = vmatpush1.bf16.msra.mxu0 %v16774_v24  ;;  %v16795_v1 = vld [vmem:[%s18338_s18 + $0x2f8] ss:$324 sps:$4 sm:$0xff]   ;;  %v16798_v24 = vld [vmem:[%s18338_s18 + $0x810] ss:$324 sps:$4 sm:$0xff]  }
 0x2b1   : > { %10383 = vmatprep.subr.bf16.mxu1 %v16779_v22  ;;  %10420 = vmatprep.subr.bf16.mxu0 %v16782_v55  ;;  %v16803_v22 = vld [vmem:[%s18338_s18 + $0x74] ss:$324 sps:$4 sm:$0xff]   ;;  %v16806_v55 = vld [vmem:[%s18338_s18 + $0x58c] ss:$324 sps:$4 sm:$0xff]  }
 0x2b2   : > { %15864 = vmatprep.mubr.msk.bf16.mxu0 %vm9552_vm2, %v18638_v9 }
 0x2b4   : > { %10384 = vmatpush1.bf16.msra.mxu1 %v16777_v0  ;;  %10421 = vmatpush1.bf16.msra.mxu0 %v16780_v44  ;;  %v16809_v0 = vld [vmem:[%s18338_s18 + $0x1ed4] ss:$324 sps:$4 sm:$0xff]  }
 0x2b5   : > { %10385 = vmatprep.subr.bf16.mxu1 %v16785_v26  ;;  %10422 = vmatprep.subr.bf16.mxu0 %v16788_v29  ;;  %v16801_v44 = vld [vmem:[%s18338_s18 + $0x70] ss:$324 sps:$4 sm:$0xff]   ;;  %v16804_v26 = vld [vmem:[%s18338_s18 + $0x588] ss:$324 sps:$4 sm:$0xff]  }
 0x2b6   : > { %v16807_v29 = vld [vmem:[%s18338_s18 + $0x1ed0] ss:$324 sps:$4 sm:$0xff]  }
 0x2b8   : > { %10386 = vmatpush1.bf16.msra.mxu1 %v16783_v51  ;;  %10423 = vmatpush1.bf16.msra.mxu0 %v16786_v8  ;;  %v9648_v51 = vand.u32 %v16809_v0, %v18675_v36  ;;  %v16812_v8 = vld [vmem:[%s18338_s18 + $0x304] ss:$324 sps:$4 sm:$0xff]  }
 0x2b9   : > { %10387 = vmatprep.subr.bf16.mxu1 %v16791_v12  ;;  %10424 = vmatprep.subr.bf16.mxu0 %v16794_v33  ;;  %v16810_v12 = vld [vmem:[%s18338_s18 + $0x300] ss:$324 sps:$4 sm:$0xff]   ;;  %v9645_v33 = vand.u32 %v16807_v29, %v18675_v36 }
 0x2ba   : > { %v16821_v0 = vld [vmem:[%s18338_s18 + $0x19c4] ss:$324 sps:$4 sm:$0xff]  }
 0x2bc   : > { %10388 = vmatpush1.bf16.msra.mxu1 %v16789_v53  ;;  %10425 = vmatpush1.bf16.msra.mxu0 %v16792_v54  ;;  %v16815_v53 = vld [vmem:[%s18338_s18 + $0x1c4c] ss:$324 sps:$4 sm:$0xff]   ;;  %v16818_v54 = vld [vmem:[%s18338_s18 + $0x7c] ss:$324 sps:$4 sm:$0xff]  }
 0x2bd   : > { %10389 = vmatprep.subr.bf16.mxu1 %v16797_v14  ;;  %10426 = vmatprep.subr.bf16.mxu0 %v16800_v45  ;;  %v16824_v14 = vld [vmem:[%s18338_s18 + $0x1edc] ss:$324 sps:$4 sm:$0xff]   ;;  %v2840_v45 = vrot.slane %v19306_v19, %v18947_v16 }
 0x2c0   : > { %10390 = vmatpush1.bf16.msra.mxu1 %v16795_v1  ;;  %10427 = vmatpush1.bf16.msra.mxu0 %v16798_v24  ;;  %v16813_v1 = vld [vmem:[%s18338_s18 + $0x1c48] ss:$324 sps:$4 sm:$0xff]   ;;  %v16816_v24 = vld [vmem:[%s18338_s18 + $0x78] ss:$324 sps:$4 sm:$0xff]  }
 0x2c1   : > { %10391 = vmatprep.subr.bf16.mxu1 %v16803_v22  ;;  %10428 = vmatprep.subr.bf16.mxu0 %v16806_v55  ;;  %v16822_v22 = vld [vmem:[%s18338_s18 + $0x1ed8] ss:$324 sps:$4 sm:$0xff]   ;;  %v2844_v55 = vrot.slane %v19306_v19, %v18954_v2 }
 0x2c4   : > { %10392 = vmatpush1.bf16.msra.mxu1 %v16801_v44  ;;  %10429 = vmatpush1.bf16.msra.mxu0 %v16804_v26  ;;  %v9654_v44 = vand.u32 %v16824_v14, %v18675_v36  ;;  %v3206_v26 = vadd.f32 %v2840_v45, %v18754_v43  ;;  %v16830_v14 = vld [vmem:[%s18338_s18 + $0x1c54] ss:$324 sps:$4 sm:$0xff]   ;;  %v2848_v43 = vrot.slane %v19306_v19, %v19232_v56 }
 0x2c5   : > { %10399 = vmatprep.subr.bf16.mxu1 %v9648_v51  ;;  %10430 = vmatprep.subr.bf16.mxu0 %v16812_v8  ;;  %v3207_v51 = vadd.f32 %v2844_v55, %v18760_v47 }
 0x2c8   : > { %10400 = vmatpush2.bf16.msra.mxu1 %v9645_v33  ;;  %10431 = vmatpush1.bf16.msra.mxu0 %v16810_v12  ;;  %v16819_v33 = vld [vmem:[%s18338_s18 + $0x19c0] ss:$324 sps:$4 sm:$0xff]   ;;  %v9651_v12 = vand.u32 %v16822_v22, %v18675_v36  ;;  %v16828_v22 = vld [vmem:[%s18338_s18 + $0x1c50] ss:$324 sps:$4 sm:$0xff]  }
 0x2c9   : > { %10401 = vmatprep.subr.bf16.mxu1 %v16815_v53  ;;  %10432 = vmatprep.subr.bf16.mxu0 %v16818_v54  ;;  %v16827_v54 = vld [vmem:[%s18338_s18 + $0x173c] ss:$324 sps:$4 sm:$0xff]  }
 0x2cb   : > { %v10083_v29 = vpop.f32.mrf.mxu1 }
 0x2cc   : > { %v19406_v8 = vadd.f32 %v10083_v29, %v3206_v26  ;;  %10402 = vmatpush2.bf16.msra.mxu1 %v16813_v1  ;;  %10433 = vmatpush1.bf16.msra.mxu0 %v16816_v24  ;;  %v2852_v1 = vrot.slane %v19306_v19, %v19236_v10  ;;  %v16825_v24 = vld [vmem:[%s18338_s18 + $0x1738] ss:$324 sps:$4 sm:$0xff]   ;;  %v3208_v26 = vadd.f32 %v2848_v43, %v18752_v42 }
 0x2cd   : > { %v10085_v53 = vpop.f32.mrf.mxu1  ;;  %10403 = vmatprep.subr.bf16.mxu1 %v16821_v0  ;;  %10440 = vmatprep.subr.bf16.mxu0 %v9654_v44  ;;  %v16833_v0 = vld [vmem:[%s18338_s18 + $0x14b4] ss:$324 sps:$4 sm:$0xff]   ;;  %v16836_v44 = vld [vmem:[%s18338_s18 + $0x19cc] ss:$324 sps:$4 sm:$0xff]  }
 0x2ce   : > { %21812 = vst [vmem:[#allocation71_spill] sm:$0xff] %v19406_v8  ;;  %v19414_v47 = vadd.f32 %v10085_v53, %v3207_v51  ;;  %v3209_v51 = vadd.f32 %v2852_v1, %v18758_v46  ;;  %v16837_v46 = vld [vmem:[%s18338_s18 + $0x1740] ss:$324 sps:$4 sm:$0xff]  }
 0x2cf   : > { %v10087_v45 = vpop.f32.mrf.mxu1 }
 0x2d0   : > { %21813 = vst [vmem:[#allocation72_spill] sm:$0xff] %v19414_v47  ;;  %10404 = vmatpush2.bf16.msra.mxu1 %v16819_v33  ;;  %10441 = vmatpush2.bf16.msra.mxu0 %v9651_v12  ;;  %v16831_v33 = vld [vmem:[%s18338_s18 + $0x14b0] ss:$324 sps:$4 sm:$0xff]   ;;  %v16834_v12 = vld [vmem:[%s18338_s18 + $0x19c8] ss:$324 sps:$4 sm:$0xff]  }
 0x2d1   : > { %v10088_v55 = vpop.f32.mrf.mxu1  ;;  %10405 = vmatprep.subr.bf16.mxu1 %v16827_v54  ;;  %10442 = vmatprep.subr.bf16.mxu0 %v16830_v14  ;;  %v16839_v54 = vld [vmem:[%s18338_s18 + $0x1744] ss:$324 sps:$4 sm:$0xff]   ;;  %v16842_v14 = vld [vmem:[%s18338_s18 + $0x123c] ss:$324 sps:$4 sm:$0xff]  }
 0x2d2   : > { %v16840_v45 = vld [vmem:[%s18338_s18 + $0x1238] ss:$324 sps:$4 sm:$0xff]  }
 0x2d3   : > { %v10124_v29 = vpop.f32.mrf.mxu0  ;;  %v16843_v55 = vld [vmem:[%s18338_s18 + $0x14b8] ss:$324 sps:$4 sm:$0xff]  }
 0x2d4   : > { %v19424_v19 = vadd.f32 %v10124_v29, %v3208_v26  ;;  %10406 = vmatpush2.bf16.msra.mxu1 %v16825_v24  ;;  %10443 = vmatpush2.bf16.msra.mxu0 %v16828_v22  ;;  %v16845_v24 = vld [vmem:[%s18338_s18 + $0x14bc] ss:$324 sps:$4 sm:$0xff]   ;;  %v16848_v22 = vld [vmem:[%s18338_s18 + $0xfb4] ss:$324 sps:$4 sm:$0xff]   ;;  %v16854_v26 = vld [vmem:[%s18338_s18 + $0x1244] ss:$324 sps:$4 sm:$0xff]  }
 0x2d5   : > { %v10126_v53 = vpop.f32.mrf.mxu0  ;;  %10407 = vmatprep.subr.bf16.mxu1 %v16833_v0  ;;  %10444 = vmatprep.subr.bf16.mxu0 %v16836_v44  ;;  %v16846_v0 = vld [vmem:[%s18338_s18 + $0xfb0] ss:$324 sps:$4 sm:$0xff]   ;;  %v16849_v29 = vld [vmem:[%s18338_s18 + $0xd28] ss:$324 sps:$4 sm:$0xff]  }
 0x2d6   : > { %21814 = vst [vmem:[#allocation73_spill] sm:$0xff] %v19424_v19  ;;  %v19430_v42 = vadd.f32 %v10126_v53, %v3209_v51  ;;  %v16851_v44 = vld [vmem:[%s18338_s18 + $0xd2c] ss:$324 sps:$4 sm:$0xff]   ;;  %v16852_v51 = vld [vmem:[%s18338_s18 + $0x1240] ss:$324 sps:$4 sm:$0xff]  }
 0x2d7   : > { %v10128_v43 = vpop.f32.mrf.mxu0  ;;  %v16855_v53 = vld [vmem:[%s18338_s18 + $0xaa0] ss:$324 sps:$4 sm:$0xff]   ;;  %v21843_v47 = vld [vmem:[#allocation33_spill] sm:$0xff] }
 0x2d8   : > { %21815 = vst [vmem:[#allocation74_spill] sm:$0xff] %v19430_v42  ;;  %10408 = vmatpush2.bf16.msra.mxu1 %v16831_v33  ;;  %10445 = vmatpush2.bf16.msra.mxu0 %v16834_v12  ;;  %v16857_v33 = vld [vmem:[%s18338_s18 + $0xaa4] ss:$324 sps:$4 sm:$0xff]   ;;  %v16860_v12 = vld [vmem:[%s18338_s18 + $0xfbc] ss:$324 sps:$4 sm:$0xff]  }
 0x2d9   : > { %10446 = vmatprep.subr.bf16.mxu0 %v16839_v54  ;;  %10459 = vmatprep.subr.bf16.mxu1 %v16842_v14  ;;  %v10129_v1 = vpop.f32.mrf.mxu0  ;;  %v16858_v54 = vld [vmem:[%s18338_s18 + $0xfb8] ss:$324 sps:$4 sm:$0xff]  }
 0x2da   : > { %v16863_v14 = vld [vmem:[%s18338_s18 + $0x81c] ss:$324 sps:$4 sm:$0xff]   ;;  %v16866_v43 = vld [vmem:[%s18338_s18 + $0xd34] ss:$324 sps:$4 sm:$0xff]  }
 0x2db   : > { %10410 = vmatmul.mubr.bf16.vlgmr.msra.gmra.mxu1 %v18717_v13  ;;  %v16869_v1 = vld [vmem:[%s18338_s18 + $0x594] ss:$324 sps:$4 sm:$0xff]  }
 0x2dc   : > { %10447 = vmatpush2.bf16.msra.mxu0 %v16837_v46  ;;  %10460 = vmatpush1.bf16.msra.mxu1 %v16840_v45  ;;  %v16861_v46 = vld [vmem:[%s18338_s18 + $0x818] ss:$324 sps:$4 sm:$0xff]   ;;  %v16864_v45 = vld [vmem:[%s18338_s18 + $0xd30] ss:$324 sps:$4 sm:$0xff]  }
 0x2dd   : > { %10448 = vmatprep.subr.bf16.mxu0 %v16845_v24  ;;  %10461 = vmatprep.subr.bf16.mxu1 %v16848_v22  ;;  %v16872_v24 = vld [vmem:[%s18338_s18 + $0xaac] ss:$324 sps:$4 sm:$0xff]  }
 0x2de   : > { %15865 = vmatprep.mubr.msk.bf16.mxu1 %vm9552_vm2, %v18638_v9  ;;  %v16867_v22 = vld [vmem:[%s18338_s18 + $0x590] ss:$324 sps:$4 sm:$0xff]  }
 0x2e0   : > { %10449 = vmatpush2.bf16.msra.mxu0 %v16843_v55  ;;  %10462 = vmatpush1.bf16.msra.mxu1 %v16846_v0  ;;  %v16870_v55 = vld [vmem:[%s18338_s18 + $0xaa8] ss:$324 sps:$4 sm:$0xff]  }
 0x2e1   : > { %10463 = vmatprep.subr.bf16.mxu1 %v16851_v44  ;;  %10500 = vmatprep.subr.bf16.mxu0 %v16854_v26  ;;  %v16875_v0 = vld [vmem:[%s18338_s18 + $0x30c] ss:$324 sps:$4 sm:$0xff]   ;;  %v16878_v44 = vld [vmem:[%s18338_s18 + $0x824] ss:$324 sps:$4 sm:$0xff]  }
 0x2e2   : > { %v16873_v26 = vld [vmem:[%s18338_s18 + $0x308] ss:$324 sps:$4 sm:$0xff]  }
 0x2e3   : > { %10451 = vmatmul.mubr.bf16.vlgmr.msra.gmra.mxu0 %v18717_v13 }
 0x2e4   : > { %10464 = vmatpush1.bf16.msra.mxu1 %v16849_v29  ;;  %10501 = vmatpush1.bf16.msra.mxu0 %v16852_v51  ;;  %v16876_v29 = vld [vmem:[%s18338_s18 + $0x820] ss:$324 sps:$4 sm:$0xff]  }
 0x2e5   : > { %10465 = vmatprep.subr.bf16.mxu1 %v16857_v33  ;;  %10502 = vmatprep.subr.bf16.mxu0 %v16860_v12  ;;  %v16881_v51 = vld [vmem:[%s18338_s18 + $0x84] ss:$324 sps:$4 sm:$0xff]   ;;  %v16884_v33 = vld [vmem:[%s18338_s18 + $0x59c] ss:$324 sps:$4 sm:$0xff]  }
 0x2e6   : > { %15866 = vmatprep.mubr.msk.bf16.mxu0 %vm9552_vm2, %v18638_v9  ;;  %v16887_v12 = vld [vmem:[%s18338_s18 + $0x1ee4] ss:$324 sps:$4 sm:$0xff]  }
 0x2e8   : > { %10466 = vmatpush1.bf16.msra.mxu1 %v16855_v53  ;;  %10503 = vmatpush1.bf16.msra.mxu0 %v16858_v54  ;;  %v16879_v53 = vld [vmem:[%s18338_s18 + $0x80] ss:$324 sps:$4 sm:$0xff]   ;;  %v16882_v54 = vld [vmem:[%s18338_s18 + $0x598] ss:$324 sps:$4 sm:$0xff]  }
 0x2e9   : > { %10467 = vmatprep.subr.bf16.mxu1 %v16863_v14  ;;  %10504 = vmatprep.subr.bf16.mxu0 %v16866_v43  ;;  %v16885_v14 = vld [vmem:[%s18338_s18 + $0x1ee0] ss:$324 sps:$4 sm:$0xff]   ;;  %v9660_v43 = vand.u32 %v16887_v12, %v18675_v36  ;;  %v16899_v12 = vld [vmem:[%s18338_s18 + $0x19d4] ss:$324 sps:$4 sm:$0xff]  }
 0x2ec   : > { %10468 = vmatpush1.bf16.msra.mxu1 %v16861_v46  ;;  %10505 = vmatpush1.bf16.msra.mxu0 %v16864_v45  ;;  %v16890_v46 = vld [vmem:[%s18338_s18 + $0x314] ss:$324 sps:$4 sm:$0xff]   ;;  %v19473_v45 = vld [vmem:[%s18340_s27 + $0x10] sm:$0xff] }
 0x2ed   : > { %10469 = vmatprep.subr.bf16.mxu1 %v16869_v1  ;;  %10506 = vmatprep.subr.bf16.mxu0 %v16872_v24  ;;  %v16888_v1 = vld [vmem:[%s18338_s18 + $0x310] ss:$324 sps:$4 sm:$0xff]   ;;  %v9657_v24 = vand.u32 %v16885_v14, %v18675_v36 }
 0x2f0   : > { %10470 = vmatpush1.bf16.msra.mxu1 %v16867_v22  ;;  %10507 = vmatpush1.bf16.msra.mxu0 %v16870_v55  ;;  %v16893_v22 = vld [vmem:[%s18338_s18 + $0x1c5c] ss:$324 sps:$4 sm:$0xff]   ;;  %v16896_v55 = vld [vmem:[%s18338_s18 + $0x8c] ss:$324 sps:$4 sm:$0xff]  }
 0x2f1   : > { %10471 = vmatprep.subr.bf16.mxu1 %v16875_v0  ;;  %10508 = vmatprep.subr.bf16.mxu0 %v16878_v44  ;;  %v16902_v0 = vld [vmem:[%s18338_s18 + $0x1eec] ss:$324 sps:$4 sm:$0xff]   ;;  %v2856_v44 = vrot.slane %v19473_v45, %v18805_v40 }
 0x2f4   : > { %10472 = vmatpush1.bf16.msra.mxu1 %v16873_v26  ;;  %10509 = vmatpush1.bf16.msra.mxu0 %v16876_v29  ;;  %v16891_v26 = vld [vmem:[%s18338_s18 + $0x1c58] ss:$324 sps:$4 sm:$0xff]   ;;  %v16894_v29 = vld [vmem:[%s18338_s18 + $0x88] ss:$324 sps:$4 sm:$0xff]  }
 0x2f5   : > { %10473 = vmatprep.subr.bf16.mxu1 %v16881_v51  ;;  %10510 = vmatprep.subr.bf16.mxu0 %v16884_v33  ;;  %v16900_v51 = vld [vmem:[%s18338_s18 + $0x1ee8] ss:$324 sps:$4 sm:$0xff]   ;;  %v2860_v33 = vrot.slane %v19473_v45, %v18811_v50 }
 0x2f8   : > { %10474 = vmatpush1.bf16.msra.mxu1 %v16879_v53  ;;  %10511 = vmatpush1.bf16.msra.mxu0 %v16882_v54  ;;  %v9666_v53 = vand.u32 %v16902_v0, %v18675_v36  ;;  %v3210_v54 = vadd.f32 %v2856_v44, %v18769_v63  ;;  %v16908_v0 = vld [vmem:[%s18338_s18 + $0x1c64] ss:$324 sps:$4 sm:$0xff]   ;;  %v2864_v63 = vrot.slane %v19473_v45, %v18802_v39 }
 0x2f9   : > { %10481 = vmatprep.subr.bf16.mxu1 %v9660_v43  ;;  %10512 = vmatprep.subr.bf16.mxu0 %v16890_v46  ;;  %v3211_v43 = vadd.f32 %v2860_v33, %v18776_v5 }
 0x2fc   : > { %10482 = vmatpush2.bf16.msra.mxu1 %v9657_v24  ;;  %10513 = vmatpush1.bf16.msra.mxu0 %v16888_v1  ;;  %v16897_v24 = vld [vmem:[%s18338_s18 + $0x19d0] ss:$324 sps:$4 sm:$0xff]   ;;  %v9663_v1 = vand.u32 %v16900_v51, %v18675_v36  ;;  %v16906_v51 = vld [vmem:[%s18338_s18 + $0x1c60] ss:$324 sps:$4 sm:$0xff]  }
 0x2fd   : > { %10483 = vmatprep.subr.bf16.mxu1 %v16893_v22  ;;  %10514 = vmatprep.subr.bf16.mxu0 %v16896_v55  ;;  %v16905_v55 = vld [vmem:[%s18338_s18 + $0x174c] ss:$324 sps:$4 sm:$0xff]  }
 0x2ff   : > { %v10165_v14 = vpop.f32.mrf.mxu1 }
 0x300   : > { %v19491_v46 = vadd.f32 %v10165_v14, %v3210_v54  ;;  %10484 = vmatpush2.bf16.msra.mxu1 %v16891_v26  ;;  %10515 = vmatpush1.bf16.msra.mxu0 %v16894_v29  ;;  %v2868_v26 = vrot.slane %v19473_v45, %v18922_v62  ;;  %v16903_v29 = vld [vmem:[%s18338_s18 + $0x1748] ss:$324 sps:$4 sm:$0xff]   ;;  %v3212_v54 = vadd.f32 %v2864_v63, %v18767_v61 }
 0x301   : > { %v10167_v22 = vpop.f32.mrf.mxu1  ;;  %10485 = vmatprep.subr.bf16.mxu1 %v16899_v12  ;;  %10522 = vmatprep.subr.bf16.mxu0 %v9666_v53  ;;  %v16911_v12 = vld [vmem:[%s18338_s18 + $0x14c4] ss:$324 sps:$4 sm:$0xff]   ;;  %v16914_v53 = vld [vmem:[%s18338_s18 + $0x19dc] ss:$324 sps:$4 sm:$0xff]  }
 0x302   : > { %21816 = vst [vmem:[#allocation75_spill] sm:$0xff] %v19491_v46  ;;  %v19499_v5 = vadd.f32 %v10167_v22, %v3211_v43  ;;  %v3213_v43 = vadd.f32 %v2868_v26, %v18774_v4  ;;  %v16915_v4 = vld [vmem:[%s18338_s18 + $0x1750] ss:$324 sps:$4 sm:$0xff]   ;;  %v16918_v26 = vld [vmem:[%s18338_s18 + $0x1248] ss:$324 sps:$4 sm:$0xff]  }
 0x303   : > { %v10169_v44 = vpop.f32.mrf.mxu1  ;;  %v21839_v46 = vld [vmem:[#allocation29_spill] sm:$0xff] }
 0x304   : > { %21817 = vst [vmem:[#allocation76_spill] sm:$0xff] %v19499_v5  ;;  %10486 = vmatpush2.bf16.msra.mxu1 %v16897_v24  ;;  %10523 = vmatpush2.bf16.msra.mxu0 %v9663_v1  ;;  %v16909_v24 = vld [vmem:[%s18338_s18 + $0x14c0] ss:$324 sps:$4 sm:$0xff]   ;;  %v16912_v1 = vld [vmem:[%s18338_s18 + $0x19d8] ss:$324 sps:$4 sm:$0xff]  }
 0x305   : > { %v10170_v33 = vpop.f32.mrf.mxu1  ;;  %10487 = vmatprep.subr.bf16.mxu1 %v16905_v55  ;;  %10524 = vmatprep.subr.bf16.mxu0 %v16908_v0  ;;  %v16917_v0 = vld [vmem:[%s18338_s18 + $0x1754] ss:$324 sps:$4 sm:$0xff]   ;;  %v16920_v44 = vld [vmem:[%s18338_s18 + $0x124c] ss:$324 sps:$4 sm:$0xff]  }
 0x306   : > { %v16926_v33 = vld [vmem:[%s18338_s18 + $0xfc4] ss:$324 sps:$4 sm:$0xff]  }
 0x307   : > { %v10206_v14 = vpop.f32.mrf.mxu0 }
 0x308   : > { %v19509_v22 = vadd.f32 %v10206_v14, %v3212_v54  ;;  %10488 = vmatpush2.bf16.msra.mxu1 %v16903_v29  ;;  %10525 = vmatpush2.bf16.msra.mxu0 %v16906_v51  ;;  %v16923_v51 = vld [vmem:[%s18338_s18 + $0x14cc] ss:$324 sps:$4 sm:$0xff]   ;;  %v16929_v54 = vld [vmem:[%s18338_s18 + $0xd3c] ss:$324 sps:$4 sm:$0xff]   ;;  %v16932_v14 = vld [vmem:[%s18338_s18 + $0x1254] ss:$324 sps:$4 sm:$0xff]  }
 0x309   : > { %v10208_v55 = vpop.f32.mrf.mxu0  ;;  %10489 = vmatprep.subr.bf16.mxu1 %v16911_v12  ;;  %10526 = vmatprep.subr.bf16.mxu0 %v16914_v53  ;;  %v16921_v12 = vld [vmem:[%s18338_s18 + $0x14c8] ss:$324 sps:$4 sm:$0xff]   ;;  %v16924_v53 = vld [vmem:[%s18338_s18 + $0xfc0] ss:$324 sps:$4 sm:$0xff]  }
 0x30a   : > { %21818 = vst [vmem:[#allocation77_spill] sm:$0xff] %v19509_v22  ;;  %v19515_v61 = vadd.f32 %v10208_v55, %v3213_v43  ;;  %v16927_v43 = vld [vmem:[%s18338_s18 + $0xd38] ss:$324 sps:$4 sm:$0xff]   ;;  %v16938_v55 = vld [vmem:[%s18338_s18 + $0xfcc] ss:$324 sps:$4 sm:$0xff]  }
 0x30b   : > { %v10210_v63 = vpop.f32.mrf.mxu0 }
 0x30c   : > { %21819 = vst [vmem:[#allocation78_spill] sm:$0xff] %v19515_v61  ;;  %10490 = vmatpush2.bf16.msra.mxu1 %v16909_v24  ;;  %10527 = vmatpush2.bf16.msra.mxu0 %v16912_v1  ;;  %v16930_v24 = vld [vmem:[%s18338_s18 + $0x1250] ss:$324 sps:$4 sm:$0xff]  }
 0x30d   : > { %10528 = vmatprep.subr.bf16.mxu0 %v16917_v0  ;;  %10541 = vmatprep.subr.bf16.mxu1 %v16920_v44  ;;  %v10211_v29 = vpop.f32.mrf.mxu0  ;;  %v16935_v1 = vld [vmem:[%s18338_s18 + $0xab4] ss:$324 sps:$4 sm:$0xff]   ;;  %v16936_v44 = vld [vmem:[%s18338_s18 + $0xfc8] ss:$324 sps:$4 sm:$0xff]  }
 0x30e   : > { %v16933_v0 = vld [vmem:[%s18338_s18 + $0xab0] ss:$324 sps:$4 sm:$0xff]   ;;  %v16942_v29 = vld [vmem:[%s18338_s18 + $0xd40] ss:$324 sps:$4 sm:$0xff]  }
 0x30f   : > { %10492 = vmatmul.mubr.bf16.vlgmr.msra.gmra.mxu1 %v18717_v13  ;;  %v16941_v63 = vld [vmem:[%s18338_s18 + $0x82c] ss:$324 sps:$4 sm:$0xff]  }
 0x310   : > { %10529 = vmatpush2.bf16.msra.mxu0 %v16915_v4  ;;  %10542 = vmatpush1.bf16.msra.mxu1 %v16918_v26  ;;  %v16944_v4 = vld [vmem:[%s18338_s18 + $0xd44] ss:$324 sps:$4 sm:$0xff]  }
 0x311   : > { %10530 = vmatprep.subr.bf16.mxu0 %v16923_v51  ;;  %10543 = vmatprep.subr.bf16.mxu1 %v16926_v33  ;;  %v16939_v26 = vld [vmem:[%s18338_s18 + $0x828] ss:$324 sps:$4 sm:$0xff]   ;;  %v16950_v33 = vld [vmem:[%s18338_s18 + $0xabc] ss:$324 sps:$4 sm:$0xff]  }
 0x312   : > { %15867 = vmatprep.mubr.msk.bf16.mxu1 %vm9552_vm2, %v18638_v9  ;;  %v16947_v51 = vld [vmem:[%s18338_s18 + $0x5a4] ss:$324 sps:$4 sm:$0xff]  }
 0x314   : > { %10531 = vmatpush2.bf16.msra.mxu0 %v16921_v12  ;;  %10544 = vmatpush1.bf16.msra.mxu1 %v16924_v53  ;;  %v16945_v12 = vld [vmem:[%s18338_s18 + $0x5a0] ss:$324 sps:$4 sm:$0xff]   ;;  %v16948_v53 = vld [vmem:[%s18338_s18 + $0xab8] ss:$324 sps:$4 sm:$0xff]  }
 0x315   : > { %10545 = vmatprep.subr.bf16.mxu1 %v16929_v54  ;;  %10582 = vmatprep.subr.bf16.mxu0 %v16932_v14  ;;  %v16953_v54 = vld [vmem:[%s18338_s18 + $0x31c] ss:$324 sps:$4 sm:$0xff]   ;;  %v16956_v14 = vld [vmem:[%s18338_s18 + $0x834] ss:$324 sps:$4 sm:$0xff]  }
 0x317   : > { %10533 = vmatmul.mubr.bf16.vlgmr.msra.gmra.mxu0 %v18717_v13 }
 0x318   : > { %10546 = vmatpush1.bf16.msra.mxu1 %v16927_v43  ;;  %10583 = vmatpush1.bf16.msra.mxu0 %v16930_v24  ;;  %v16951_v43 = vld [vmem:[%s18338_s18 + $0x318] ss:$324 sps:$4 sm:$0xff]   ;;  %v16954_v24 = vld [vmem:[%s18338_s18 + $0x830] ss:$324 sps:$4 sm:$0xff]  }
 0x319   : > { %10547 = vmatprep.subr.bf16.mxu1 %v16935_v1  ;;  %10584 = vmatprep.subr.bf16.mxu0 %v16938_v55  ;;  %v16959_v1 = vld [vmem:[%s18338_s18 + $0x94] ss:$324 sps:$4 sm:$0xff]   ;;  %v16962_v55 = vld [vmem:[%s18338_s18 + $0x5ac] ss:$324 sps:$4 sm:$0xff]  }
 0x31a   : > { %15868 = vmatprep.mubr.msk.bf16.mxu0 %vm9552_vm2, %v18638_v9 }
 0x31c   : > { %10548 = vmatpush1.bf16.msra.mxu1 %v16933_v0  ;;  %10585 = vmatpush1.bf16.msra.mxu0 %v16936_v44  ;;  %v16965_v0 = vld [vmem:[%s18338_s18 + $0x1ef4] ss:$324 sps:$4 sm:$0xff]  }
 0x31d   : > { %10549 = vmatprep.subr.bf16.mxu1 %v16941_v63  ;;  %10586 = vmatprep.subr.bf16.mxu0 %v16944_v4  ;;  %v16957_v44 = vld [vmem:[%s18338_s18 + $0x90] ss:$324 sps:$4 sm:$0xff]   ;;  %v16960_v63 = vld [vmem:[%s18338_s18 + $0x5a8] ss:$324 sps:$4 sm:$0xff]  }
 0x31e   : > { %v16963_v4 = vld [vmem:[%s18338_s18 + $0x1ef0] ss:$324 sps:$4 sm:$0xff]  }
 0x320   : > { %10550 = vmatpush1.bf16.msra.mxu1 %v16939_v26  ;;  %10587 = vmatpush1.bf16.msra.mxu0 %v16942_v29  ;;  %v9672_v26 = vand.u32 %v16965_v0, %v18675_v36  ;;  %v16968_v29 = vld [vmem:[%s18338_s18 + $0x324] ss:$324 sps:$4 sm:$0xff]  }
 0x321   : > { %10551 = vmatprep.subr.bf16.mxu1 %v16947_v51  ;;  %10588 = vmatprep.subr.bf16.mxu0 %v16950_v33  ;;  %v16966_v51 = vld [vmem:[%s18338_s18 + $0x320] ss:$324 sps:$4 sm:$0xff]   ;;  %v9669_v33 = vand.u32 %v16963_v4, %v18675_v36 }
 0x322   : > { %v16977_v0 = vld [vmem:[%s18338_s18 + $0x19e4] ss:$324 sps:$4 sm:$0xff]  }
 0x324   : > { %10552 = vmatpush1.bf16.msra.mxu1 %v16945_v12  ;;  %10589 = vmatpush1.bf16.msra.mxu0 %v16948_v53  ;;  %v16971_v12 = vld [vmem:[%s18338_s18 + $0x1c6c] ss:$324 sps:$4 sm:$0xff]   ;;  %v16974_v53 = vld [vmem:[%s18338_s18 + $0x9c] ss:$324 sps:$4 sm:$0xff]  }
 0x325   : > { %10553 = vmatprep.subr.bf16.mxu1 %v16953_v54  ;;  %10590 = vmatprep.subr.bf16.mxu0 %v16956_v14  ;;  %v16980_v54 = vld [vmem:[%s18338_s18 + $0x1efc] ss:$324 sps:$4 sm:$0xff]   ;;  %v2872_v14 = vrot.slane %v19473_v45, %v18947_v16 }
 0x328   : > { %10554 = vmatpush1.bf16.msra.mxu1 %v16951_v43  ;;  %10591 = vmatpush1.bf16.msra.mxu0 %v16954_v24  ;;  %v2876_v43 = vrot.slane %v19473_v45, %v18954_v2  ;;  %v16969_v24 = vld [vmem:[%s18338_s18 + $0x1c68] ss:$324 sps:$4 sm:$0xff]  }
 0x329   : > { %10555 = vmatprep.subr.bf16.mxu1 %v16959_v1  ;;  %10592 = vmatprep.subr.bf16.mxu0 %v16962_v55  ;;  %v16972_v1 = vld [vmem:[%s18338_s18 + $0x98] ss:$324 sps:$4 sm:$0xff]  }
 0x32a   : > { %v16978_v55 = vld [vmem:[%s18338_s18 + $0x1ef8] ss:$324 sps:$4 sm:$0xff]  }
 0x32c   : > { %10556 = vmatpush1.bf16.msra.mxu1 %v16957_v44  ;;  %10593 = vmatpush1.bf16.msra.mxu0 %v16960_v63  ;;  %v9678_v44 = vand.u32 %v16980_v54, %v18675_v36  ;;  %v3214_v63 = vadd.f32 %v2872_v14, %v18790_v28  ;;  %v16986_v54 = vld [vmem:[%s18338_s18 + $0x1c74] ss:$324 sps:$4 sm:$0xff]   ;;  %v2880_v28 = vrot.slane %v19473_v45, %v19232_v56 }
 0x32d   : > { %10563 = vmatprep.subr.bf16.mxu1 %v9672_v26  ;;  %10594 = vmatprep.subr.bf16.mxu0 %v16968_v29  ;;  %v3215_v26 = vadd.f32 %v2876_v43, %v18797_v35  ;;  %v2884_v43 = vrot.slane %v19473_v45, %v19236_v10 }
 0x330   : > { %10564 = vmatpush2.bf16.msra.mxu1 %v9669_v33  ;;  %10595 = vmatpush1.bf16.msra.mxu0 %v16966_v51  ;;  %v16975_v51 = vld [vmem:[%s18338_s18 + $0x19e0] ss:$324 sps:$4 sm:$0xff]   ;;  %v9675_v33 = vand.u32 %v16978_v55, %v18675_v36 }
 0x331   : > { %10565 = vmatprep.subr.bf16.mxu1 %v16971_v12  ;;  %10596 = vmatprep.subr.bf16.mxu0 %v16974_v53  ;;  %v16983_v53 = vld [vmem:[%s18338_s18 + $0x175c] ss:$324 sps:$4 sm:$0xff]  }
 0x333   : > { %v10247_v4 = vpop.f32.mrf.mxu1 }
 0x334   : > { %v19573_v29 = vadd.f32 %v10247_v4, %v3214_v63  ;;  %10566 = vmatpush2.bf16.msra.mxu1 %v16969_v24  ;;  %10597 = vmatpush1.bf16.msra.mxu0 %v16972_v1  ;;  %v16981_v24 = vld [vmem:[%s18338_s18 + $0x1758] ss:$324 sps:$4 sm:$0xff]   ;;  %v16984_v1 = vld [vmem:[%s18338_s18 + $0x1c70] ss:$324 sps:$4 sm:$0xff]   ;;  %v3216_v63 = vadd.f32 %v2880_v28, %v18788_v27 }
 0x335   : > { %v10249_v12 = vpop.f32.mrf.mxu1  ;;  %10567 = vmatprep.subr.bf16.mxu1 %v16977_v0  ;;  %10604 = vmatprep.subr.bf16.mxu0 %v9678_v44  ;;  %v16989_v0 = vld [vmem:[%s18338_s18 + $0x14d4] ss:$324 sps:$4 sm:$0xff]   ;;  %v16992_v44 = vld [vmem:[%s18338_s18 + $0x19ec] ss:$324 sps:$4 sm:$0xff]  }
 0x336   : > { %21820 = vst [vmem:[#allocation79_spill] sm:$0xff] %v19573_v29  ;;  %v19581_v35 = vadd.f32 %v10249_v12, %v3215_v26  ;;  %v3217_v26 = vadd.f32 %v2884_v43, %v18795_v34  ;;  %v16993_v34 = vld [vmem:[%s18338_s18 + $0x1760] ss:$324 sps:$4 sm:$0xff]   ;;  %v21835_v29 = vld [vmem:[#allocation25_spill] sm:$0xff] }
 0x337   : > { %v10251_v14 = vpop.f32.mrf.mxu1 }
 0x338   : > { %21821 = vst [vmem:[#allocation80_spill] sm:$0xff] %v19581_v35  ;;  %10568 = vmatpush2.bf16.msra.mxu1 %v16975_v51  ;;  %10605 = vmatpush2.bf16.msra.mxu0 %v9675_v33  ;;  %v16987_v51 = vld [vmem:[%s18338_s18 + $0x14d0] ss:$324 sps:$4 sm:$0xff]   ;;  %v16990_v33 = vld [vmem:[%s18338_s18 + $0x19e8] ss:$324 sps:$4 sm:$0xff]  }
 0x339   : > { %v10252_v55 = vpop.f32.mrf.mxu1  ;;  %10569 = vmatprep.subr.bf16.mxu1 %v16983_v53  ;;  %10606 = vmatprep.subr.bf16.mxu0 %v16986_v54  ;;  %v16995_v53 = vld [vmem:[%s18338_s18 + $0x1764] ss:$324 sps:$4 sm:$0xff]   ;;  %v16998_v54 = vld [vmem:[%s18338_s18 + $0x125c] ss:$324 sps:$4 sm:$0xff]  }
 0x33a   : > { %v16996_v14 = vld [vmem:[%s18338_s18 + $0x1258] ss:$324 sps:$4 sm:$0xff]  }
 0x33b   : > { %v10288_v4 = vpop.f32.mrf.mxu0  ;;  %v16999_v55 = vld [vmem:[%s18338_s18 + $0x14d8] ss:$324 sps:$4 sm:$0xff]  }
 0x33c   : > { %v19591_v45 = vadd.f32 %v10288_v4, %v3216_v63  ;;  %10570 = vmatpush2.bf16.msra.mxu1 %v16981_v24  ;;  %10607 = vmatpush2.bf16.msra.mxu0 %v16984_v1  ;;  %v17001_v24 = vld [vmem:[%s18338_s18 + $0x14dc] ss:$324 sps:$4 sm:$0xff]   ;;  %v17004_v1 = vld [vmem:[%s18338_s18 + $0xfd4] ss:$324 sps:$4 sm:$0xff]   ;;  %v17010_v63 = vld [vmem:[%s18338_s18 + $0x1264] ss:$324 sps:$4 sm:$0xff]  }
 0x33d   : > { %v10290_v12 = vpop.f32.mrf.mxu0  ;;  %10571 = vmatprep.subr.bf16.mxu1 %v16989_v0  ;;  %10608 = vmatprep.subr.bf16.mxu0 %v16992_v44  ;;  %v17002_v0 = vld [vmem:[%s18338_s18 + $0xfd0] ss:$324 sps:$4 sm:$0xff]   ;;  %v17005_v4 = vld [vmem:[%s18338_s18 + $0xd48] ss:$324 sps:$4 sm:$0xff]  }
 0x33e   : > { %21822 = vst [vmem:[#allocation81_spill] sm:$0xff] %v19591_v45  ;;  %v19597_v27 = vadd.f32 %v10290_v12, %v3217_v26  ;;  %v17007_v44 = vld [vmem:[%s18338_s18 + $0xd4c] ss:$324 sps:$4 sm:$0xff]   ;;  %v17008_v26 = vld [vmem:[%s18338_s18 + $0x1260] ss:$324 sps:$4 sm:$0xff]  }
 0x33f   : > { %v10292_v28 = vpop.f32.mrf.mxu0  ;;  %v17011_v12 = vld [vmem:[%s18338_s18 + $0xac0] ss:$324 sps:$4 sm:$0xff]  }
 0x340   : > { %21823 = vst [vmem:[#allocation82_spill] sm:$0xff] %v19597_v27  ;;  %10572 = vmatpush2.bf16.msra.mxu1 %v16987_v51  ;;  %10609 = vmatpush2.bf16.msra.mxu0 %v16990_v33  ;;  %v17013_v51 = vld [vmem:[%s18338_s18 + $0xac4] ss:$324 sps:$4 sm:$0xff]   ;;  %v17016_v33 = vld [vmem:[%s18338_s18 + $0xfdc] ss:$324 sps:$4 sm:$0xff]  }
 0x341   : > { %10610 = vmatprep.subr.bf16.mxu0 %v16995_v53  ;;  %10623 = vmatprep.subr.bf16.mxu1 %v16998_v54  ;;  %v10293_v43 = vpop.f32.mrf.mxu0  ;;  %v17014_v53 = vld [vmem:[%s18338_s18 + $0xfd8] ss:$324 sps:$4 sm:$0xff]  }
 0x342   : > { %v17019_v54 = vld [vmem:[%s18338_s18 + $0x83c] ss:$324 sps:$4 sm:$0xff]   ;;  %v17022_v28 = vld [vmem:[%s18338_s18 + $0xd54] ss:$324 sps:$4 sm:$0xff]  }
 0x343   : > { %10574 = vmatmul.mubr.bf16.vlgmr.msra.gmra.mxu1 %v18717_v13  ;;  %v17025_v43 = vld [vmem:[%s18338_s18 + $0x5b4] ss:$324 sps:$4 sm:$0xff]  }
 0x344   : > { %10611 = vmatpush2.bf16.msra.mxu0 %v16993_v34  ;;  %10624 = vmatpush1.bf16.msra.mxu1 %v16996_v14  ;;  %v17017_v34 = vld [vmem:[%s18338_s18 + $0x838] ss:$324 sps:$4 sm:$0xff]   ;;  %v17020_v14 = vld [vmem:[%s18338_s18 + $0xd50] ss:$324 sps:$4 sm:$0xff]  }
 0x345   : > { %10612 = vmatprep.subr.bf16.mxu0 %v17001_v24  ;;  %10625 = vmatprep.subr.bf16.mxu1 %v17004_v1  ;;  %v17028_v24 = vld [vmem:[%s18338_s18 + $0xacc] ss:$324 sps:$4 sm:$0xff]  }
 0x346   : > { %15869 = vmatprep.mubr.msk.bf16.mxu1 %vm9552_vm2, %v18638_v9  ;;  %v17023_v1 = vld [vmem:[%s18338_s18 + $0x5b0] ss:$324 sps:$4 sm:$0xff]  }
 0x348   : > { %10613 = vmatpush2.bf16.msra.mxu0 %v16999_v55  ;;  %10626 = vmatpush1.bf16.msra.mxu1 %v17002_v0  ;;  %v17026_v55 = vld [vmem:[%s18338_s18 + $0xac8] ss:$324 sps:$4 sm:$0xff]  }
 0x349   : > { %10627 = vmatprep.subr.bf16.mxu1 %v17007_v44  ;;  %10664 = vmatprep.subr.bf16.mxu0 %v17010_v63  ;;  %v17031_v0 = vld [vmem:[%s18338_s18 + $0x32c] ss:$324 sps:$4 sm:$0xff]   ;;  %v17034_v44 = vld [vmem:[%s18338_s18 + $0x844] ss:$324 sps:$4 sm:$0xff]  }
 0x34a   : > { %v17029_v63 = vld [vmem:[%s18338_s18 + $0x328] ss:$324 sps:$4 sm:$0xff]  }
 0x34b   : > { %10615 = vmatmul.mubr.bf16.vlgmr.msra.gmra.mxu0 %v18717_v13 }
 0x34c   : > { %10628 = vmatpush1.bf16.msra.mxu1 %v17005_v4  ;;  %10665 = vmatpush1.bf16.msra.mxu0 %v17008_v26  ;;  %v17032_v4 = vld [vmem:[%s18338_s18 + $0x840] ss:$324 sps:$4 sm:$0xff]  }
 0x34d   : > { %10629 = vmatprep.subr.bf16.mxu1 %v17013_v51  ;;  %10666 = vmatprep.subr.bf16.mxu0 %v17016_v33  ;;  %v17037_v26 = vld [vmem:[%s18338_s18 + $0xa4] ss:$324 sps:$4 sm:$0xff]   ;;  %v17040_v51 = vld [vmem:[%s18338_s18 + $0x5bc] ss:$324 sps:$4 sm:$0xff]  }
 0x34e   : > { %15870 = vmatprep.mubr.msk.bf16.mxu0 %vm9552_vm2, %v18638_v9  ;;  %v17043_v33 = vld [vmem:[%s18338_s18 + $0x1f04] ss:$324 sps:$4 sm:$0xff]  }
 0x350   : > { %10630 = vmatpush1.bf16.msra.mxu1 %v17011_v12  ;;  %10667 = vmatpush1.bf16.msra.mxu0 %v17014_v53  ;;  %v17035_v12 = vld [vmem:[%s18338_s18 + $0xa0] ss:$324 sps:$4 sm:$0xff]   ;;  %v17038_v53 = vld [vmem:[%s18338_s18 + $0x5b8] ss:$324 sps:$4 sm:$0xff]  }
 0x351   : > { %10631 = vmatprep.subr.bf16.mxu1 %v17019_v54  ;;  %10668 = vmatprep.subr.bf16.mxu0 %v17022_v28  ;;  %v17041_v54 = vld [vmem:[%s18338_s18 + $0x1f00] ss:$324 sps:$4 sm:$0xff]   ;;  %v9684_v28 = vand.u32 %v17043_v33, %v18675_v36 }
 0x354   : > { %10632 = vmatpush1.bf16.msra.mxu1 %v17017_v34  ;;  %10669 = vmatpush1.bf16.msra.mxu0 %v17020_v14  ;;  %v17046_v34 = vld [vmem:[%s18338_s18 + $0x334] ss:$324 sps:$4 sm:$0xff]  }
 0x355   : > { %10633 = vmatprep.subr.bf16.mxu1 %v17025_v43  ;;  %10670 = vmatprep.subr.bf16.mxu0 %v17028_v24  ;;  %v17044_v14 = vld [vmem:[%s18338_s18 + $0x330] ss:$324 sps:$4 sm:$0xff]   ;;  %v9681_v43 = vand.u32 %v17041_v54, %v18675_v36  ;;  %v17049_v24 = vld [vmem:[%s18338_s18 + $0x1c7c] ss:$324 sps:$4 sm:$0xff]  }
 0x358   : > { %10634 = vmatpush1.bf16.msra.mxu1 %v17023_v1  ;;  %10671 = vmatpush1.bf16.msra.mxu0 %v17026_v55  ;;  %v17052_v1 = vld [vmem:[%s18338_s18 + $0xac] ss:$324 sps:$4 sm:$0xff]  }
 0x359   : > { %10635 = vmatprep.subr.bf16.mxu1 %v17031_v0  ;;  %10672 = vmatprep.subr.bf16.mxu0 %v17034_v44  ;;  %v17058_v55 = vld [vmem:[%s18338_s18 + $0x1f0c] ss:$324 sps:$4 sm:$0xff]   ;;  %v17047_v0 = vld [vmem:[%s18338_s18 + $0x1c78] ss:$324 sps:$4 sm:$0xff]  }
 0x35a   : > { %v17050_v44 = vld [vmem:[%s18338_s18 + $0xa8] ss:$324 sps:$4 sm:$0xff]  }
 0x35c   : > { %10636 = vmatpush1.bf16.msra.mxu1 %v17029_v63  ;;  %10673 = vmatpush1.bf16.msra.mxu0 %v17032_v4  ;;  %v17056_v63 = vld [vmem:[%s18338_s18 + $0x1f08] ss:$324 sps:$4 sm:$0xff]   ;;  %v17055_v4 = vld [vmem:[%s18338_s18 + $0x19f4] ss:$324 sps:$4 sm:$0xff]  }
 0x35d   : > { %10637 = vmatprep.subr.bf16.mxu1 %v17037_v26  ;;  %10674 = vmatprep.subr.bf16.mxu0 %v17040_v51  ;;  %v9690_v26 = vand.u32 %v17058_v55, %v18675_v36  ;;  %v17062_v55 = vld [vmem:[%s18338_s18 + $0x1c80] ss:$324 sps:$4 sm:$0xff]  }
 0x360   : > { %10638 = vmatpush1.bf16.msra.mxu1 %v17035_v12  ;;  %10675 = vmatpush1.bf16.msra.mxu0 %v17038_v53  ;;  %v17053_v12 = vld [vmem:[%s18338_s18 + $0x19f0] ss:$324 sps:$4 sm:$0xff]   ;;  %v9687_v53 = vand.u32 %v17056_v63, %v18675_v36 }
 0x361   : > { %10645 = vmatprep.subr.bf16.mxu1 %v9684_v28  ;;  %10676 = vmatprep.subr.bf16.mxu0 %v17046_v34  ;;  %v17061_v28 = vld [vmem:[%s18338_s18 + $0x176c] ss:$324 sps:$4 sm:$0xff]   ;;  %v17064_v34 = vld [vmem:[%s18338_s18 + $0x1c84] ss:$324 sps:$4 sm:$0xff]  }
 0x364   : > { %10646 = vmatpush2.bf16.msra.mxu1 %v9681_v43  ;;  %10677 = vmatpush1.bf16.msra.mxu0 %v17044_v14 }
 0x365   : > { %10647 = vmatprep.subr.bf16.mxu1 %v17049_v24  ;;  %10678 = vmatprep.subr.bf16.mxu0 %v17052_v1  ;;  %v17059_v1 = vld [vmem:[%s18338_s18 + $0x1768] ss:$324 sps:$4 sm:$0xff]  }
 0x367   : > { %v10329_v51 = vpop.f32.mrf.mxu1 }
 0x368   : > { %v19650_v33 = vadd.f32 %v10329_v51, %v18820_v7  ;;  %10648 = vmatpush2.bf16.msra.mxu1 %v17047_v0  ;;  %10679 = vmatpush1.bf16.msra.mxu0 %v17050_v44  ;;  %v19660_v7 = vld [vmem:[%s18340_s27 + $0x18] sm:$0xff]  ;;  %v17065_v51 = vld [vmem:[%s18338_s18 + $0x14e0] ss:$324 sps:$4 sm:$0xff]  }
 0x369   : > { %v10331_v54 = vpop.f32.mrf.mxu1  ;;  %10649 = vmatprep.subr.bf16.mxu1 %v17055_v4  ;;  %10686 = vmatprep.subr.bf16.mxu0 %v9690_v26  ;;  %v2900_v24 = vrot.slane %v19660_v7, %v18922_v62  ;;  %v17067_v44 = vld [vmem:[%s18338_s18 + $0x14e4] ss:$324 sps:$4 sm:$0xff]  }
 0x36a   : > { %21824 = vst [vmem:[#allocation83_spill] sm:$0xff] %v19650_v33  ;;  %v19657_v14 = vadd.f32 %v10331_v54, %v18828_v20  ;;  %v17070_v20 = vld [vmem:[%s18338_s18 + $0x19fc] ss:$324 sps:$4 sm:$0xff]   ;;  %v17073_v54 = vld [vmem:[%s18338_s18 + $0x1774] ss:$324 sps:$4 sm:$0xff]  }
 0x36b   : > { %v10333_v43 = vpop.f32.mrf.mxu1  ;;  %v3221_v4 = vadd.f32 %v2900_v24, %v18824_v17  ;;  %v21831_v33 = vld [vmem:[#allocation21_spill] sm:$0xff] }
 0x36c   : > { %21825 = vst [vmem:[#allocation84_spill] sm:$0xff] %v19657_v14  ;;  %10650 = vmatpush2.bf16.msra.mxu1 %v17053_v12  ;;  %10687 = vmatpush2.bf16.msra.mxu0 %v9687_v53  ;;  %v17068_v12 = vld [vmem:[%s18338_s18 + $0x19f8] ss:$324 sps:$4 sm:$0xff]   ;;  %v17074_v43 = vld [vmem:[%s18338_s18 + $0x1268] ss:$324 sps:$4 sm:$0xff]  }
 0x36d   : > { %v10334_v0 = vpop.f32.mrf.mxu1  ;;  %10651 = vmatprep.subr.bf16.mxu1 %v17061_v28  ;;  %10688 = vmatprep.subr.bf16.mxu0 %v17064_v34  ;;  %v17076_v28 = vld [vmem:[%s18338_s18 + $0x126c] ss:$324 sps:$4 sm:$0xff]  }
 0x36e   : > { %v17077_v0 = vld [vmem:[%s18338_s18 + $0x14e8] ss:$324 sps:$4 sm:$0xff]  }
 0x36f   : > { %v10370_v63 = vpop.f32.mrf.mxu0 }
 0x370   : > { %v19670_v26 = vadd.f32 %v10370_v63, %v18818_v6  ;;  %10652 = vmatpush2.bf16.msra.mxu1 %v17059_v1  ;;  %10689 = vmatpush2.bf16.msra.mxu0 %v17062_v55  ;;  %v17071_v6 = vld [vmem:[%s18338_s18 + $0x1770] ss:$324 sps:$4 sm:$0xff]   ;;  %v17082_v55 = vld [vmem:[%s18338_s18 + $0xfe4] ss:$324 sps:$4 sm:$0xff]  }
 0x371   : > { %v10372_v53 = vpop.f32.mrf.mxu0  ;;  %10653 = vmatprep.subr.bf16.mxu1 %v17067_v44  ;;  %10690 = vmatprep.subr.bf16.mxu0 %v17070_v20  ;;  %v17079_v1 = vld [vmem:[%s18338_s18 + $0x14ec] ss:$324 sps:$4 sm:$0xff]   ;;  %v17080_v44 = vld [vmem:[%s18338_s18 + $0xfe0] ss:$324 sps:$4 sm:$0xff]   ;;  %v17088_v63 = vld [vmem:[%s18338_s18 + $0x1274] ss:$324 sps:$4 sm:$0xff]  }
 0x372   : > { %21826 = vst [vmem:[#allocation85_spill] sm:$0xff] %v19670_v26  ;;  %v19676_v34 = vadd.f32 %v10372_v53, %v3221_v4  ;;  %v17085_v20 = vld [vmem:[%s18338_s18 + $0xd5c] ss:$324 sps:$4 sm:$0xff]   ;;  %v17094_v53 = vld [vmem:[%s18338_s18 + $0xfec] ss:$324 sps:$4 sm:$0xff]  }
 0x373   : > { %v10374_v17 = vpop.f32.mrf.mxu0  ;;  %v17083_v4 = vld [vmem:[%s18338_s18 + $0xd58] ss:$324 sps:$4 sm:$0xff]  }
 0x374   : > { %10654 = vmatpush2.bf16.msra.mxu1 %v17065_v51  ;;  %10691 = vmatpush2.bf16.msra.mxu0 %v17068_v12  ;;  %v17086_v51 = vld [vmem:[%s18338_s18 + $0x1270] ss:$324 sps:$4 sm:$0xff]  }
 0x375   : > { %10692 = vmatprep.subr.bf16.mxu0 %v17073_v54  ;;  %10705 = vmatprep.subr.bf16.mxu1 %v17076_v28  ;;  %v10375_v24 = vpop.f32.mrf.mxu0  ;;  %v17091_v12 = vld [vmem:[%s18338_s18 + $0xad4] ss:$324 sps:$4 sm:$0xff]   ;;  %v17092_v28 = vld [vmem:[%s18338_s18 + $0xfe8] ss:$324 sps:$4 sm:$0xff]  }
 0x376   : > { %v17089_v54 = vld [vmem:[%s18338_s18 + $0xad0] ss:$324 sps:$4 sm:$0xff]   ;;  %v17098_v24 = vld [vmem:[%s18338_s18 + $0xd60] ss:$324 sps:$4 sm:$0xff]  }
 0x377   : > { %10656 = vmatmul.mubr.bf16.vlgmr.msra.gmra.mxu1 %v18717_v13  ;;  %v17097_v17 = vld [vmem:[%s18338_s18 + $0x84c] ss:$324 sps:$4 sm:$0xff]  }
 0x378   : > { %10693 = vmatpush2.bf16.msra.mxu0 %v17071_v6  ;;  %10706 = vmatpush1.bf16.msra.mxu1 %v17074_v43  ;;  %v17100_v6 = vld [vmem:[%s18338_s18 + $0xd64] ss:$324 sps:$4 sm:$0xff]  }
 0x379   : > { %10694 = vmatprep.subr.bf16.mxu0 %v17079_v1  ;;  %10707 = vmatprep.subr.bf16.mxu1 %v17082_v55  ;;  %v17095_v43 = vld [vmem:[%s18338_s18 + $0x848] ss:$324 sps:$4 sm:$0xff]   ;;  %v17106_v55 = vld [vmem:[%s18338_s18 + $0xadc] ss:$324 sps:$4 sm:$0xff]  }
 0x37a   : > { %15871 = vmatprep.mubr.msk.bf16.mxu1 %vm9552_vm2, %v18638_v9  ;;  %v17103_v1 = vld [vmem:[%s18338_s18 + $0x5c4] ss:$324 sps:$4 sm:$0xff]  }
 0x37c   : > { %10695 = vmatpush2.bf16.msra.mxu0 %v17077_v0  ;;  %10708 = vmatpush1.bf16.msra.mxu1 %v17080_v44  ;;  %v17101_v0 = vld [vmem:[%s18338_s18 + $0x5c0] ss:$324 sps:$4 sm:$0xff]   ;;  %v17104_v44 = vld [vmem:[%s18338_s18 + $0xad8] ss:$324 sps:$4 sm:$0xff]  }
 0x37d   : > { %10709 = vmatprep.subr.bf16.mxu1 %v17085_v20  ;;  %10746 = vmatprep.subr.bf16.mxu0 %v17088_v63  ;;  %v17109_v20 = vld [vmem:[%s18338_s18 + $0x33c] ss:$324 sps:$4 sm:$0xff]   ;;  %v17112_v63 = vld [vmem:[%s18338_s18 + $0x854] ss:$324 sps:$4 sm:$0xff]  }
 0x37f   : > { %10697 = vmatmul.mubr.bf16.vlgmr.msra.gmra.mxu0 %v18717_v13 }
 0x380   : > { %10710 = vmatpush1.bf16.msra.mxu1 %v17083_v4  ;;  %10747 = vmatpush1.bf16.msra.mxu0 %v17086_v51  ;;  %v17107_v4 = vld [vmem:[%s18338_s18 + $0x338] ss:$324 sps:$4 sm:$0xff]   ;;  %v17110_v51 = vld [vmem:[%s18338_s18 + $0x850] ss:$324 sps:$4 sm:$0xff]  }
 0x381   : > { %10711 = vmatprep.subr.bf16.mxu1 %v17091_v12  ;;  %10748 = vmatprep.subr.bf16.mxu0 %v17094_v53  ;;  %v17115_v12 = vld [vmem:[%s18338_s18 + $0xb4] ss:$324 sps:$4 sm:$0xff]   ;;  %v17118_v53 = vld [vmem:[%s18338_s18 + $0x5cc] ss:$324 sps:$4 sm:$0xff]  }
 0x382   : > { %15872 = vmatprep.mubr.msk.bf16.mxu0 %vm9552_vm2, %v18638_v9 }
 0x384   : > { %10712 = vmatpush1.bf16.msra.mxu1 %v17089_v54  ;;  %10749 = vmatpush1.bf16.msra.mxu0 %v17092_v28  ;;  %v17121_v54 = vld [vmem:[%s18338_s18 + $0x1f14] ss:$324 sps:$4 sm:$0xff]  }
 0x385   : > { %10713 = vmatprep.subr.bf16.mxu1 %v17097_v17  ;;  %10750 = vmatprep.subr.bf16.mxu0 %v17100_v6  ;;  %v17113_v28 = vld [vmem:[%s18338_s18 + $0xb0] ss:$324 sps:$4 sm:$0xff]   ;;  %v17116_v17 = vld [vmem:[%s18338_s18 + $0x5c8] ss:$324 sps:$4 sm:$0xff]  }
 0x386   : > { %v17119_v6 = vld [vmem:[%s18338_s18 + $0x1f10] ss:$324 sps:$4 sm:$0xff]  }
 0x388   : > { %10714 = vmatpush1.bf16.msra.mxu1 %v17095_v43  ;;  %10751 = vmatpush1.bf16.msra.mxu0 %v17098_v24  ;;  %v9696_v43 = vand.u32 %v17121_v54, %v18675_v36  ;;  %v17124_v24 = vld [vmem:[%s18338_s18 + $0x344] ss:$324 sps:$4 sm:$0xff]  }
 0x389   : > { %10715 = vmatprep.subr.bf16.mxu1 %v17103_v1  ;;  %10752 = vmatprep.subr.bf16.mxu0 %v17106_v55  ;;  %v17122_v1 = vld [vmem:[%s18338_s18 + $0x340] ss:$324 sps:$4 sm:$0xff]   ;;  %v9693_v55 = vand.u32 %v17119_v6, %v18675_v36 }
 0x38a   : > { %v17133_v54 = vld [vmem:[%s18338_s18 + $0x1a04] ss:$324 sps:$4 sm:$0xff]  }
 0x38c   : > { %10716 = vmatpush1.bf16.msra.mxu1 %v17101_v0  ;;  %10753 = vmatpush1.bf16.msra.mxu0 %v17104_v44  ;;  %v17127_v0 = vld [vmem:[%s18338_s18 + $0x1c8c] ss:$324 sps:$4 sm:$0xff]   ;;  %v17130_v44 = vld [vmem:[%s18338_s18 + $0xbc] ss:$324 sps:$4 sm:$0xff]  }
 0x38d   : > { %10717 = vmatprep.subr.bf16.mxu1 %v17109_v20  ;;  %10754 = vmatprep.subr.bf16.mxu0 %v17112_v63  ;;  %v17136_v20 = vld [vmem:[%s18338_s18 + $0x1f1c] ss:$324 sps:$4 sm:$0xff]   ;;  %v2904_v63 = vrot.slane %v19660_v7, %v18947_v16 }
 0x390   : > { %10718 = vmatpush1.bf16.msra.mxu1 %v17107_v4  ;;  %10755 = vmatpush1.bf16.msra.mxu0 %v17110_v51  ;;  %v2908_v4 = vrot.slane %v19660_v7, %v18954_v2  ;;  %v17125_v51 = vld [vmem:[%s18338_s18 + $0x1c88] ss:$324 sps:$4 sm:$0xff]  }
 0x391   : > { %10719 = vmatprep.subr.bf16.mxu1 %v17115_v12  ;;  %10756 = vmatprep.subr.bf16.mxu0 %v17118_v53  ;;  %v17128_v12 = vld [vmem:[%s18338_s18 + $0xb8] ss:$324 sps:$4 sm:$0xff]  }
 0x392   : > { %v17134_v53 = vld [vmem:[%s18338_s18 + $0x1f18] ss:$324 sps:$4 sm:$0xff]  }
 0x394   : > { %10720 = vmatpush1.bf16.msra.mxu1 %v17113_v28  ;;  %10757 = vmatpush1.bf16.msra.mxu0 %v17116_v17  ;;  %v9702_v28 = vand.u32 %v17136_v20, %v18675_v36  ;;  %v3222_v17 = vadd.f32 %v2904_v63, %v18836_v41  ;;  %v17142_v20 = vld [vmem:[%s18338_s18 + $0x1c94] ss:$324 sps:$4 sm:$0xff]   ;;  %v2912_v41 = vrot.slane %v19660_v7, %v19232_v56 }
 0x395   : > { %10727 = vmatprep.subr.bf16.mxu1 %v9696_v43  ;;  %10758 = vmatprep.subr.bf16.mxu0 %v17124_v24  ;;  %v3223_v43 = vadd.f32 %v2908_v4, %v18842_v49  ;;  %v2916_v4 = vrot.slane %v19660_v7, %v19236_v10 }
 0x398   : > { %10728 = vmatpush2.bf16.msra.mxu1 %v9693_v55  ;;  %10759 = vmatpush1.bf16.msra.mxu0 %v17122_v1  ;;  %v17131_v1 = vld [vmem:[%s18338_s18 + $0x1a00] ss:$324 sps:$4 sm:$0xff]   ;;  %v9699_v55 = vand.u32 %v17134_v53, %v18675_v36 }
 0x399   : > { %10729 = vmatprep.subr.bf16.mxu1 %v17127_v0  ;;  %10760 = vmatprep.subr.bf16.mxu0 %v17130_v44  ;;  %v17139_v44 = vld [vmem:[%s18338_s18 + $0x177c] ss:$324 sps:$4 sm:$0xff]  }
 0x39b   : > { %v10411_v6 = vpop.f32.mrf.mxu1 }
 0x39c   : > { %v19734_v24 = vadd.f32 %v10411_v6, %v3222_v17  ;;  %10730 = vmatpush2.bf16.msra.mxu1 %v17125_v51  ;;  %10761 = vmatpush1.bf16.msra.mxu0 %v17128_v12  ;;  %v17137_v51 = vld [vmem:[%s18338_s18 + $0x1778] ss:$324 sps:$4 sm:$0xff]   ;;  %v17140_v12 = vld [vmem:[%s18338_s18 + $0x1c90] ss:$324 sps:$4 sm:$0xff]   ;;  %v3224_v17 = vadd.f32 %v2912_v41, %v18834_v38 }
 0x39d   : > { %v10413_v0 = vpop.f32.mrf.mxu1  ;;  %10731 = vmatprep.subr.bf16.mxu1 %v17133_v54  ;;  %10768 = vmatprep.subr.bf16.mxu0 %v9702_v28  ;;  %v17145_v54 = vld [vmem:[%s18338_s18 + $0x14f4] ss:$324 sps:$4 sm:$0xff]   ;;  %v17148_v28 = vld [vmem:[%s18338_s18 + $0x1a0c] ss:$324 sps:$4 sm:$0xff]  }
 0x39e   : > { %v19742_v49 = vadd.f32 %v10413_v0, %v3223_v43  ;;  %v3225_v43 = vadd.f32 %v2916_v4, %v18840_v48  ;;  %v17149_v48 = vld [vmem:[%s18338_s18 + $0x1780] ss:$324 sps:$4 sm:$0xff]  }
 0x39f   : > { %v10415_v63 = vpop.f32.mrf.mxu1 }
 0x3a0   : > { %10732 = vmatpush2.bf16.msra.mxu1 %v17131_v1  ;;  %10769 = vmatpush2.bf16.msra.mxu0 %v9699_v55  ;;  %v17143_v1 = vld [vmem:[%s18338_s18 + $0x14f0] ss:$324 sps:$4 sm:$0xff]   ;;  %v17146_v55 = vld [vmem:[%s18338_s18 + $0x1a08] ss:$324 sps:$4 sm:$0xff]   ;;  %v17152_v63 = vld [vmem:[%s18338_s18 + $0x1278] ss:$324 sps:$4 sm:$0xff]  }
 0x3a1   : > { %v10416_v53 = vpop.f32.mrf.mxu1  ;;  %10733 = vmatprep.subr.bf16.mxu1 %v17139_v44  ;;  %10770 = vmatprep.subr.bf16.mxu0 %v17142_v20  ;;  %v17151_v44 = vld [vmem:[%s18338_s18 + $0x1784] ss:$324 sps:$4 sm:$0xff]   ;;  %v17154_v20 = vld [vmem:[%s18338_s18 + $0x127c] ss:$324 sps:$4 sm:$0xff]  }
 0x3a2   : > { %v17155_v53 = vld [vmem:[%s18338_s18 + $0x14f8] ss:$324 sps:$4 sm:$0xff]  }
 0x3a3   : > { %v10452_v6 = vpop.f32.mrf.mxu0 }
 0x3a4   : > { %v19752_v7 = vadd.f32 %v10452_v6, %v3224_v17  ;;  %10734 = vmatpush2.bf16.msra.mxu1 %v17137_v51  ;;  %10771 = vmatpush2.bf16.msra.mxu0 %v17140_v12  ;;  %v17157_v51 = vld [vmem:[%s18338_s18 + $0x14fc] ss:$324 sps:$4 sm:$0xff]   ;;  %v17160_v12 = vld [vmem:[%s18338_s18 + $0xff4] ss:$324 sps:$4 sm:$0xff]   ;;  %v17166_v17 = vld [vmem:[%s18338_s18 + $0x1284] ss:$324 sps:$4 sm:$0xff]  }
 0x3a5   : > { %v10454_v0 = vpop.f32.mrf.mxu0  ;;  %10735 = vmatprep.subr.bf16.mxu1 %v17145_v54  ;;  %10772 = vmatprep.subr.bf16.mxu0 %v17148_v28  ;;  %v17158_v54 = vld [vmem:[%s18338_s18 + $0xff0] ss:$324 sps:$4 sm:$0xff]   ;;  %v17161_v6 = vld [vmem:[%s18338_s18 + $0xd68] ss:$324 sps:$4 sm:$0xff]  }
 0x3a6   : > { %v19758_v38 = vadd.f32 %v10454_v0, %v3225_v43  ;;  %v17163_v28 = vld [vmem:[%s18338_s18 + $0xd6c] ss:$324 sps:$4 sm:$0xff]   ;;  %v17164_v43 = vld [vmem:[%s18338_s18 + $0x1280] ss:$324 sps:$4 sm:$0xff]  }
 0x3a7   : > { %v10456_v41 = vpop.f32.mrf.mxu0  ;;  %v17167_v0 = vld [vmem:[%s18338_s18 + $0xae0] ss:$324 sps:$4 sm:$0xff]  }
 0x3a8   : > { %10736 = vmatpush2.bf16.msra.mxu1 %v17143_v1  ;;  %10773 = vmatpush2.bf16.msra.mxu0 %v17146_v55  ;;  %v17169_v1 = vld [vmem:[%s18338_s18 + $0xae4] ss:$324 sps:$4 sm:$0xff]   ;;  %v17172_v55 = vld [vmem:[%s18338_s18 + $0xffc] ss:$324 sps:$4 sm:$0xff]   ;;  %v17178_v41 = vld [vmem:[%s18338_s18 + $0xd74] ss:$324 sps:$4 sm:$0xff]  }
 0x3a9   : > { %10774 = vmatprep.subr.bf16.mxu0 %v17151_v44  ;;  %10787 = vmatprep.subr.bf16.mxu1 %v17154_v20  ;;  %v10457_v4 = vpop.f32.mrf.mxu0  ;;  %v17170_v44 = vld [vmem:[%s18338_s18 + $0xff8] ss:$324 sps:$4 sm:$0xff]  }
 0x3aa   : > { %v17175_v20 = vld [vmem:[%s18338_s18 + $0x85c] ss:$324 sps:$4 sm:$0xff]   ;;  %v17181_v4 = vld [vmem:[%s18338_s18 + $0x5d4] ss:$324 sps:$4 sm:$0xff]  }
 0x3ab   : > { %10738 = vmatmul.mubr.bf16.vlgmr.msra.gmra.mxu1 %v18717_v13 }
 0x3ac   : > { %10775 = vmatpush2.bf16.msra.mxu0 %v17149_v48  ;;  %10788 = vmatpush1.bf16.msra.mxu1 %v17152_v63  ;;  %v17173_v48 = vld [vmem:[%s18338_s18 + $0x858] ss:$324 sps:$4 sm:$0xff]   ;;  %v17176_v63 = vld [vmem:[%s18338_s18 + $0xd70] ss:$324 sps:$4 sm:$0xff]  }
 0x3ad   : > { %10776 = vmatprep.subr.bf16.mxu0 %v17157_v51  ;;  %10789 = vmatprep.subr.bf16.mxu1 %v17160_v12  ;;  %v17184_v51 = vld [vmem:[%s18338_s18 + $0xaec] ss:$324 sps:$4 sm:$0xff]  }
 0x3ae   : > { %15873 = vmatprep.mubr.msk.bf16.mxu1 %vm9552_vm2, %v18638_v9  ;;  %v17179_v12 = vld [vmem:[%s18338_s18 + $0x5d0] ss:$324 sps:$4 sm:$0xff]  }
 0x3b0   : > { %10777 = vmatpush2.bf16.msra.mxu0 %v17155_v53  ;;  %10790 = vmatpush1.bf16.msra.mxu1 %v17158_v54  ;;  %v17182_v53 = vld [vmem:[%s18338_s18 + $0xae8] ss:$324 sps:$4 sm:$0xff]  }
 0x3b1   : > { %10791 = vmatprep.subr.bf16.mxu1 %v17163_v28  ;;  %10828 = vmatprep.subr.bf16.mxu0 %v17166_v17  ;;  %v17187_v54 = vld [vmem:[%s18338_s18 + $0x34c] ss:$324 sps:$4 sm:$0xff]   ;;  %v17190_v28 = vld [vmem:[%s18338_s18 + $0x864] ss:$324 sps:$4 sm:$0xff]  }
 0x3b2   : > { %v17185_v17 = vld [vmem:[%s18338_s18 + $0x348] ss:$324 sps:$4 sm:$0xff]  }
 0x3b3   : > { %10779 = vmatmul.mubr.bf16.vlgmr.msra.gmra.mxu0 %v18717_v13 }
 0x3b4   : > { %10792 = vmatpush1.bf16.msra.mxu1 %v17161_v6  ;;  %10829 = vmatpush1.bf16.msra.mxu0 %v17164_v43  ;;  %v17188_v6 = vld [vmem:[%s18338_s18 + $0x860] ss:$324 sps:$4 sm:$0xff]  }
 0x3b5   : > { %10793 = vmatprep.subr.bf16.mxu1 %v17169_v1  ;;  %10830 = vmatprep.subr.bf16.mxu0 %v17172_v55  ;;  %v17193_v43 = vld [vmem:[%s18338_s18 + $0xc4] ss:$324 sps:$4 sm:$0xff]   ;;  %v17196_v1 = vld [vmem:[%s18338_s18 + $0x5dc] ss:$324 sps:$4 sm:$0xff]  }
 0x3b6   : > { %15874 = vmatprep.mubr.msk.bf16.mxu0 %vm9552_vm2, %v18638_v9  ;;  %v17199_v55 = vld [vmem:[%s18338_s18 + $0x1f24] ss:$324 sps:$4 sm:$0xff]  }
 0x3b8   : > { %10794 = vmatpush1.bf16.msra.mxu1 %v17167_v0  ;;  %10831 = vmatpush1.bf16.msra.mxu0 %v17170_v44  ;;  %v17191_v0 = vld [vmem:[%s18338_s18 + $0xc0] ss:$324 sps:$4 sm:$0xff]   ;;  %v17194_v44 = vld [vmem:[%s18338_s18 + $0x5d8] ss:$324 sps:$4 sm:$0xff]  }
 0x3b9   : > { %10795 = vmatprep.subr.bf16.mxu1 %v17175_v20  ;;  %10832 = vmatprep.subr.bf16.mxu0 %v17178_v41  ;;  %v17197_v20 = vld [vmem:[%s18338_s18 + $0x1f20] ss:$324 sps:$4 sm:$0xff]   ;;  %v9708_v41 = vand.u32 %v17199_v55, %v18675_v36  ;;  %v17211_v55 = vld [vmem:[%s18338_s18 + $0x1a14] ss:$324 sps:$4 sm:$0xff]  }
 0x3bc   : > { %10796 = vmatpush1.bf16.msra.mxu1 %v17173_v48  ;;  %10833 = vmatpush1.bf16.msra.mxu0 %v17176_v63  ;;  %v17202_v48 = vld [vmem:[%s18338_s18 + $0x354] ss:$324 sps:$4 sm:$0xff]  }
 0x3bd   : > { %10797 = vmatprep.subr.bf16.mxu1 %v17181_v4  ;;  %10834 = vmatprep.subr.bf16.mxu0 %v17184_v51  ;;  %v19801_v63 = vld [vmem:[%s18340_s27 + $0x20] sm:$0xff]  ;;  %v9705_v51 = vand.u32 %v17197_v20, %v18675_v36 }
 0x3be   : > { %v17200_v4 = vld [vmem:[%s18338_s18 + $0x350] ss:$324 sps:$4 sm:$0xff]  }
 0x3c0   : > { %10798 = vmatpush1.bf16.msra.mxu1 %v17179_v12  ;;  %10835 = vmatpush1.bf16.msra.mxu0 %v17182_v53  ;;  %v17205_v12 = vld [vmem:[%s18338_s18 + $0x1c9c] ss:$324 sps:$4 sm:$0xff]   ;;  %v17208_v53 = vld [vmem:[%s18338_s18 + $0xcc] ss:$324 sps:$4 sm:$0xff]  }
 0x3c1   : > { %10799 = vmatprep.subr.bf16.mxu1 %v17187_v54  ;;  %10836 = vmatprep.subr.bf16.mxu0 %v17190_v28  ;;  %v17214_v54 = vld [vmem:[%s18338_s18 + $0x1f2c] ss:$324 sps:$4 sm:$0xff]   ;;  %v2920_v28 = vrot.slane %v19801_v63, %v18805_v40 }
 0x3c4   : > { %10800 = vmatpush1.bf16.msra.mxu1 %v17185_v17  ;;  %10837 = vmatpush1.bf16.msra.mxu0 %v17188_v6  ;;  %v2924_v17 = vrot.slane %v19801_v63, %v18811_v50  ;;  %v17203_v6 = vld [vmem:[%s18338_s18 + $0x1c98] ss:$324 sps:$4 sm:$0xff]  }
 0x3c5   : > { %10801 = vmatprep.subr.bf16.mxu1 %v17193_v43  ;;  %10838 = vmatprep.subr.bf16.mxu0 %v17196_v1  ;;  %v17206_v43 = vld [vmem:[%s18338_s18 + $0xc8] ss:$324 sps:$4 sm:$0xff]  }
 0x3c6   : > { %v17212_v1 = vld [vmem:[%s18338_s18 + $0x1f28] ss:$324 sps:$4 sm:$0xff]  }
 0x3c8   : > { %10802 = vmatpush1.bf16.msra.mxu1 %v17191_v0  ;;  %10839 = vmatpush1.bf16.msra.mxu0 %v17194_v44  ;;  %v9714_v0 = vand.u32 %v17214_v54, %v18675_v36  ;;  %v3226_v44 = vadd.f32 %v2920_v28, %v18853_v18  ;;  %v17220_v54 = vld [vmem:[%s18338_s18 + $0x1ca4] ss:$324 sps:$4 sm:$0xff]   ;;  %v2928_v18 = vrot.slane %v19801_v63, %v18802_v39 }
 0x3c9   : > { %10809 = vmatprep.subr.bf16.mxu1 %v9708_v41  ;;  %10840 = vmatprep.subr.bf16.mxu0 %v17202_v48  ;;  %v21827_v41 = vld [vmem:[#allocation17_spill] sm:$0xff] }
 0x3ca   : > { %v3227_v48 = vadd.f32 %v2924_v17, %v21827_v41 }
 0x3cc   : > { %10810 = vmatpush2.bf16.msra.mxu1 %v9705_v51  ;;  %10841 = vmatpush1.bf16.msra.mxu0 %v17200_v4  ;;  %v17209_v4 = vld [vmem:[%s18338_s18 + $0x1a10] ss:$324 sps:$4 sm:$0xff]   ;;  %v9711_v51 = vand.u32 %v17212_v1, %v18675_v36  ;;  %v17218_v1 = vld [vmem:[%s18338_s18 + $0x1ca0] ss:$324 sps:$4 sm:$0xff]  }
 0x3cd   : > { %10811 = vmatprep.subr.bf16.mxu1 %v17205_v12  ;;  %10842 = vmatprep.subr.bf16.mxu0 %v17208_v53  ;;  %v17217_v53 = vld [vmem:[%s18338_s18 + $0x178c] ss:$324 sps:$4 sm:$0xff]  }
 0x3cf   : > { %v10493_v20 = vpop.f32.mrf.mxu1 }
 0x3d0   : > { %v19819_v26 = vadd.f32 %v10493_v20, %v3226_v44  ;;  %10812 = vmatpush2.bf16.msra.mxu1 %v17203_v6  ;;  %10843 = vmatpush1.bf16.msra.mxu0 %v17206_v43  ;;  %v2932_v6 = vrot.slane %v19801_v63, %v18922_v62  ;;  %v17215_v43 = vld [vmem:[%s18338_s18 + $0x1788] ss:$324 sps:$4 sm:$0xff]   ;;  %v17226_v44 = vld [vmem:[%s18338_s18 + $0x1a1c] ss:$324 sps:$4 sm:$0xff]  }
 0x3d1   : > { %v10495_v12 = vpop.f32.mrf.mxu1  ;;  %10813 = vmatprep.subr.bf16.mxu1 %v17211_v55  ;;  %10850 = vmatprep.subr.bf16.mxu0 %v9714_v0  ;;  %v17223_v0 = vld [vmem:[%s18338_s18 + $0x1504] ss:$324 sps:$4 sm:$0xff]  }
 0x3d2   : > { %v19827_v28 = vadd.f32 %v10495_v12, %v3227_v48  ;;  %v21828_v20 = vld [vmem:[#allocation15_spill] sm:$0xff]  ;;  %v21829_v12 = vld [vmem:[#allocation16_spill] sm:$0xff] }
 0x3d3   : > { %v10497_v17 = vpop.f32.mrf.mxu1  ;;  %v3228_v41 = vadd.f32 %v2928_v18, %v21828_v20 }
 0x3d4   : > { %10814 = vmatpush2.bf16.msra.mxu1 %v17209_v4  ;;  %10851 = vmatpush2.bf16.msra.mxu0 %v9711_v51  ;;  %v3229_v17 = vadd.f32 %v2932_v6, %v21829_v12  ;;  %v17221_v4 = vld [vmem:[%s18338_s18 + $0x1500] ss:$324 sps:$4 sm:$0xff]   ;;  %v17224_v51 = vld [vmem:[%s18338_s18 + $0x1a18] ss:$324 sps:$4 sm:$0xff]   ;;  %v17227_v6 = vld [vmem:[%s18338_s18 + $0x1790] ss:$324 sps:$4 sm:$0xff]  }
 0x3d5   : > { %v10498_v55 = vpop.f32.mrf.mxu1  ;;  %10815 = vmatprep.subr.bf16.mxu1 %v17217_v53  ;;  %10852 = vmatprep.subr.bf16.mxu0 %v17220_v54  ;;  %v17229_v54 = vld [vmem:[%s18338_s18 + $0x1794] ss:$324 sps:$4 sm:$0xff]   ;;  %v17241_v12 = vld [vmem:[%s18338_s18 + $0xd7c] ss:$324 sps:$4 sm:$0xff]  }
 0x3d6   : > { %v17232_v55 = vld [vmem:[%s18338_s18 + $0x128c] ss:$324 sps:$4 sm:$0xff]  }
 0x3d7   : > { %v10534_v48 = vpop.f32.mrf.mxu0 }
 0x3d8   : > { %v19837_v14 = vadd.f32 %v10534_v48, %v3228_v41  ;;  %10816 = vmatpush2.bf16.msra.mxu1 %v17215_v43  ;;  %10853 = vmatpush2.bf16.msra.mxu0 %v17218_v1  ;;  %v17230_v43 = vld [vmem:[%s18338_s18 + $0x1288] ss:$324 sps:$4 sm:$0xff]   ;;  %v17236_v48 = vld [vmem:[%s18338_s18 + $0x1000] ss:$324 sps:$4 sm:$0xff]  }
 0x3d9   : > { %v10536_v53 = vpop.f32.mrf.mxu0  ;;  %10817 = vmatprep.subr.bf16.mxu1 %v17223_v0  ;;  %10854 = vmatprep.subr.bf16.mxu0 %v17226_v44  ;;  %v17235_v0 = vld [vmem:[%s18338_s18 + $0x150c] ss:$324 sps:$4 sm:$0xff]   ;;  %v17238_v44 = vld [vmem:[%s18338_s18 + $0x1004] ss:$324 sps:$4 sm:$0xff]  }
 0x3da   : > { %v19843_v18 = vadd.f32 %v10536_v53, %v3229_v17  ;;  %v17233_v41 = vld [vmem:[%s18338_s18 + $0x1508] ss:$324 sps:$4 sm:$0xff]   ;;  %v17244_v17 = vld [vmem:[%s18338_s18 + $0x1294] ss:$324 sps:$4 sm:$0xff]  }
 0x3db   : > { %v10538_v20 = vpop.f32.mrf.mxu0  ;;  %v17247_v53 = vld [vmem:[%s18338_s18 + $0xaf4] ss:$324 sps:$4 sm:$0xff]  }
 0x3dc   : > { %10818 = vmatpush2.bf16.msra.mxu1 %v17221_v4  ;;  %10855 = vmatpush2.bf16.msra.mxu0 %v17224_v51  ;;  %v17239_v4 = vld [vmem:[%s18338_s18 + $0xd78] ss:$324 sps:$4 sm:$0xff]   ;;  %v17242_v51 = vld [vmem:[%s18338_s18 + $0x1290] ss:$324 sps:$4 sm:$0xff]   ;;  %v17248_v20 = vld [vmem:[%s18338_s18 + $0x1008] ss:$324 sps:$4 sm:$0xff]  }
 0x3dd   : > { %10856 = vmatprep.subr.bf16.mxu0 %v17229_v54  ;;  %10869 = vmatprep.subr.bf16.mxu1 %v17232_v55  ;;  %v10539_v1 = vpop.f32.mrf.mxu0  ;;  %v17250_v54 = vld [vmem:[%s18338_s18 + $0x100c] ss:$324 sps:$4 sm:$0xff]  }
 0x3de   : > { %v17245_v55 = vld [vmem:[%s18338_s18 + $0xaf0] ss:$324 sps:$4 sm:$0xff]   ;;  %v17251_v1 = vld [vmem:[%s18338_s18 + $0x868] ss:$324 sps:$4 sm:$0xff]  }
 0x3df   : > { %10820 = vmatmul.mubr.bf16.vlgmr.msra.gmra.mxu1 %v18717_v13 }
 0x3e0   : > { %10857 = vmatpush2.bf16.msra.mxu0 %v17227_v6  ;;  %10870 = vmatpush1.bf16.msra.mxu1 %v17230_v43  ;;  %v17253_v6 = vld [vmem:[%s18338_s18 + $0x86c] ss:$324 sps:$4 sm:$0xff]   ;;  %v17256_v43 = vld [vmem:[%s18338_s18 + $0xd84] ss:$324 sps:$4 sm:$0xff]  }
 0x3e1   : > { %10858 = vmatprep.subr.bf16.mxu0 %v17235_v0  ;;  %10871 = vmatprep.subr.bf16.mxu1 %v17238_v44  ;;  %v17254_v0 = vld [vmem:[%s18338_s18 + $0xd80] ss:$324 sps:$4 sm:$0xff]  }
 0x3e2   : > { %15875 = vmatprep.mubr.msk.bf16.mxu1 %vm9552_vm2, %v18638_v9  ;;  %v17259_v44 = vld [vmem:[%s18338_s18 + $0x5e4] ss:$324 sps:$4 sm:$0xff]  }
 0x3e4   : > { %10859 = vmatpush2.bf16.msra.mxu0 %v17233_v41  ;;  %10872 = vmatpush1.bf16.msra.mxu1 %v17236_v48  ;;  %v17262_v41 = vld [vmem:[%s18338_s18 + $0xafc] ss:$324 sps:$4 sm:$0xff]  }
 0x3e5   : > { %10873 = vmatprep.subr.bf16.mxu1 %v17241_v12  ;;  %10910 = vmatprep.subr.bf16.mxu0 %v17244_v17  ;;  %v17257_v48 = vld [vmem:[%s18338_s18 + $0x5e0] ss:$324 sps:$4 sm:$0xff]   ;;  %v17260_v12 = vld [vmem:[%s18338_s18 + $0xaf8] ss:$324 sps:$4 sm:$0xff]  }
 0x3e6   : > { %v17265_v17 = vld [vmem:[%s18338_s18 + $0x35c] ss:$324 sps:$4 sm:$0xff]  }
 0x3e7   : > { %10861 = vmatmul.mubr.bf16.vlgmr.msra.gmra.mxu0 %v18717_v13 }
 0x3e8   : > { %10874 = vmatpush1.bf16.msra.mxu1 %v17239_v4  ;;  %10911 = vmatpush1.bf16.msra.mxu0 %v17242_v51  ;;  %v17268_v4 = vld [vmem:[%s18338_s18 + $0x874] ss:$324 sps:$4 sm:$0xff]  }
 0x3e9   : > { %10875 = vmatprep.subr.bf16.mxu1 %v17247_v53  ;;  %10912 = vmatprep.subr.bf16.mxu0 %v17250_v54  ;;  %v17263_v51 = vld [vmem:[%s18338_s18 + $0x358] ss:$324 sps:$4 sm:$0xff]   ;;  %v17266_v53 = vld [vmem:[%s18338_s18 + $0x870] ss:$324 sps:$4 sm:$0xff]  }
 0x3ea   : > { %15876 = vmatprep.mubr.msk.bf16.mxu0 %vm9552_vm2, %v18638_v9  ;;  %v17271_v54 = vld [vmem:[%s18338_s18 + $0xd4] ss:$324 sps:$4 sm:$0xff]  }
 0x3ec   : > { %10876 = vmatpush1.bf16.msra.mxu1 %v17245_v55  ;;  %10913 = vmatpush1.bf16.msra.mxu0 %v17248_v20  ;;  %v17274_v55 = vld [vmem:[%s18338_s18 + $0x5ec] ss:$324 sps:$4 sm:$0xff]   ;;  %v17277_v20 = vld [vmem:[%s18338_s18 + $0x1f34] ss:$324 sps:$4 sm:$0xff]  }
 0x3ed   : > { %10877 = vmatprep.subr.bf16.mxu1 %v17253_v6  ;;  %10914 = vmatprep.subr.bf16.mxu0 %v17256_v43  ;;  %v17269_v6 = vld [vmem:[%s18338_s18 + $0xd0] ss:$324 sps:$4 sm:$0xff]   ;;  %v17272_v43 = vld [vmem:[%s18338_s18 + $0x5e8] ss:$324 sps:$4 sm:$0xff]  }
 0x3f0   : > { %10878 = vmatpush1.bf16.msra.mxu1 %v17251_v1  ;;  %10915 = vmatpush1.bf16.msra.mxu0 %v17254_v0  ;;  %v17275_v1 = vld [vmem:[%s18338_s18 + $0x1f30] ss:$324 sps:$4 sm:$0xff]   ;;  %v9720_v0 = vand.u32 %v17277_v20, %v18675_v36  ;;  %v17290_v20 = vld [vmem:[%s18338_s18 + $0x1f38] ss:$324 sps:$4 sm:$0xff]  }
 0x3f1   : > { %10879 = vmatprep.subr.bf16.mxu1 %v17259_v44  ;;  %10916 = vmatprep.subr.bf16.mxu0 %v17262_v41  ;;  %v17280_v44 = vld [vmem:[%s18338_s18 + $0x364] ss:$324 sps:$4 sm:$0xff]  }
 0x3f2   : > { %v17278_v41 = vld [vmem:[%s18338_s18 + $0x360] ss:$324 sps:$4 sm:$0xff]  }
 0x3f4   : > { %10880 = vmatpush1.bf16.msra.mxu1 %v17257_v48  ;;  %10917 = vmatpush1.bf16.msra.mxu0 %v17260_v12  ;;  %v9717_v48 = vand.u32 %v17275_v1, %v18675_v36  ;;  %v17283_v12 = vld [vmem:[%s18338_s18 + $0x1cac] ss:$324 sps:$4 sm:$0xff]   ;;  %v21830_v1 = vld [vmem:[#allocation19_spill] sm:$0xff] }
 0x3f5   : > { %10881 = vmatprep.subr.bf16.mxu1 %v17265_v17  ;;  %10918 = vmatprep.subr.bf16.mxu0 %v17268_v4  ;;  %v17286_v17 = vld [vmem:[%s18338_s18 + $0xdc] ss:$324 sps:$4 sm:$0xff]  }
 0x3f6   : > { %v17292_v4 = vld [vmem:[%s18338_s18 + $0x1f3c] ss:$324 sps:$4 sm:$0xff]  }
 0x3f8   : > { %10882 = vmatpush1.bf16.msra.mxu1 %v17263_v51  ;;  %10919 = vmatpush1.bf16.msra.mxu0 %v17266_v53  ;;  %v2936_v51 = vrot.slane %v19801_v63, %v18947_v16  ;;  %v2940_v53 = vrot.slane %v19801_v63, %v18954_v2 }
 0x3f9   : > { %10883 = vmatprep.subr.bf16.mxu1 %v17271_v54  ;;  %10920 = vmatprep.subr.bf16.mxu0 %v17274_v55  ;;  %v17281_v54 = vld [vmem:[%s18338_s18 + $0x1ca8] ss:$324 sps:$4 sm:$0xff]   ;;  %v17284_v55 = vld [vmem:[%s18338_s18 + $0xd8] ss:$324 sps:$4 sm:$0xff]  }
 0x3fa   : > { %v3231_v27 = vadd.f32 %v2940_v53, %v21831_v33 }
 0x3fc   : > { %10884 = vmatpush1.bf16.msra.mxu1 %v17269_v6  ;;  %10921 = vmatpush1.bf16.msra.mxu0 %v17272_v43  ;;  %v17289_v6 = vld [vmem:[%s18338_s18 + $0x1a24] ss:$324 sps:$4 sm:$0xff]   ;;  %v9726_v43 = vand.u32 %v17292_v4, %v18675_v36  ;;  %v17298_v4 = vld [vmem:[%s18338_s18 + $0x1cb4] ss:$324 sps:$4 sm:$0xff]  }
 0x3fd   : > { %10891 = vmatprep.subr.bf16.mxu1 %v9720_v0  ;;  %10922 = vmatprep.subr.bf16.mxu0 %v17280_v44  ;;  %v3230_v0 = vadd.f32 %v2936_v51, %v21830_v1  ;;  %v2944_v51 = vrot.slane %v19801_v63, %v19232_v56  ;;  %v17304_v1 = vld [vmem:[%s18338_s18 + $0x1a2c] ss:$324 sps:$4 sm:$0xff]  }
 0x400   : > { %10892 = vmatpush2.bf16.msra.mxu1 %v9717_v48  ;;  %10923 = vmatpush1.bf16.msra.mxu0 %v17278_v41  ;;  %v17287_v41 = vld [vmem:[%s18338_s18 + $0x1a20] ss:$324 sps:$4 sm:$0xff]   ;;  %v9723_v48 = vand.u32 %v17290_v20, %v18675_v36  ;;  %v17296_v20 = vld [vmem:[%s18338_s18 + $0x1cb0] ss:$324 sps:$4 sm:$0xff]  }
 0x401   : > { %10893 = vmatprep.subr.bf16.mxu1 %v17283_v12  ;;  %10924 = vmatprep.subr.bf16.mxu0 %v17286_v17  ;;  %v17295_v17 = vld [vmem:[%s18338_s18 + $0x179c] ss:$324 sps:$4 sm:$0xff]  }
 0x403   : > { %v10575_v44 = vpop.f32.mrf.mxu1 }
 0x404   : > { %v19901_v45 = vadd.f32 %v10575_v44, %v3230_v0  ;;  %10894 = vmatpush2.bf16.msra.mxu1 %v17281_v54  ;;  %10925 = vmatpush1.bf16.msra.mxu0 %v17284_v55  ;;  %v2948_v54 = vrot.slane %v19801_v63, %v19236_v10  ;;  %v17293_v55 = vld [vmem:[%s18338_s18 + $0x1798] ss:$324 sps:$4 sm:$0xff]  }
 0x405   : > { %v10577_v12 = vpop.f32.mrf.mxu1  ;;  %10895 = vmatprep.subr.bf16.mxu1 %v17289_v6  ;;  %10932 = vmatprep.subr.bf16.mxu0 %v9726_v43  ;;  %v17301_v43 = vld [vmem:[%s18338_s18 + $0x1514] ss:$324 sps:$4 sm:$0xff]  }
 0x406   : > { %v19909_v33 = vadd.f32 %v10577_v12, %v3231_v27  ;;  %v21832_v0 = vld [vmem:[#allocation18_spill] sm:$0xff]  ;;  %v21833_v12 = vld [vmem:[#allocation20_spill] sm:$0xff] }
 0x407   : > { %v10579_v53 = vpop.f32.mrf.mxu1  ;;  %v3232_v27 = vadd.f32 %v2944_v51, %v21832_v0 }
 0x408   : > { %10896 = vmatpush2.bf16.msra.mxu1 %v17287_v41  ;;  %10933 = vmatpush2.bf16.msra.mxu0 %v9723_v48  ;;  %v3233_v53 = vadd.f32 %v2948_v54, %v21833_v12  ;;  %v17299_v41 = vld [vmem:[%s18338_s18 + $0x1510] ss:$324 sps:$4 sm:$0xff]   ;;  %v17302_v48 = vld [vmem:[%s18338_s18 + $0x1a28] ss:$324 sps:$4 sm:$0xff]   ;;  %v17305_v54 = vld [vmem:[%s18338_s18 + $0x17a0] ss:$324 sps:$4 sm:$0xff]  }
 0x409   : > { %v10580_v6 = vpop.f32.mrf.mxu1  ;;  %10897 = vmatprep.subr.bf16.mxu1 %v17295_v17  ;;  %10934 = vmatprep.subr.bf16.mxu0 %v17298_v4  ;;  %v17307_v4 = vld [vmem:[%s18338_s18 + $0x17a4] ss:$324 sps:$4 sm:$0xff]   ;;  %v17319_v12 = vld [vmem:[%s18338_s18 + $0xd8c] ss:$324 sps:$4 sm:$0xff]  }
 0x40a   : > { %v17310_v6 = vld [vmem:[%s18338_s18 + $0x129c] ss:$324 sps:$4 sm:$0xff]  }
 0x40b   : > { %v10616_v44 = vpop.f32.mrf.mxu0 }
 0x40c   : > { %v19919_v63 = vadd.f32 %v10616_v44, %v3232_v27  ;;  %10898 = vmatpush2.bf16.msra.mxu1 %v17293_v55  ;;  %10935 = vmatpush2.bf16.msra.mxu0 %v17296_v20  ;;  %v17308_v55 = vld [vmem:[%s18338_s18 + $0x1298] ss:$324 sps:$4 sm:$0xff]   ;;  %v17314_v44 = vld [vmem:[%s18338_s18 + $0x1010] ss:$324 sps:$4 sm:$0xff]  }
 0x40d   : > { %v10618_v17 = vpop.f32.mrf.mxu0  ;;  %10899 = vmatprep.subr.bf16.mxu1 %v17301_v43  ;;  %10936 = vmatprep.subr.bf16.mxu0 %v17304_v1  ;;  %v17313_v43 = vld [vmem:[%s18338_s18 + $0x151c] ss:$324 sps:$4 sm:$0xff]   ;;  %v17316_v1 = vld [vmem:[%s18338_s18 + $0x1014] ss:$324 sps:$4 sm:$0xff]  }
 0x40e   : > { %v19925_v51 = vadd.f32 %v10618_v17, %v3233_v53  ;;  %v17311_v27 = vld [vmem:[%s18338_s18 + $0x1518] ss:$324 sps:$4 sm:$0xff]   ;;  %v17322_v53 = vld [vmem:[%s18338_s18 + $0x12a4] ss:$324 sps:$4 sm:$0xff]  }
 0x40f   : > { %v10620_v0 = vpop.f32.mrf.mxu0  ;;  %v17325_v17 = vld [vmem:[%s18338_s18 + $0xb04] ss:$324 sps:$4 sm:$0xff]  }
 0x410   : > { %10900 = vmatpush2.bf16.msra.mxu1 %v17299_v41  ;;  %10937 = vmatpush2.bf16.msra.mxu0 %v17302_v48  ;;  %v17317_v41 = vld [vmem:[%s18338_s18 + $0xd88] ss:$324 sps:$4 sm:$0xff]   ;;  %v17320_v48 = vld [vmem:[%s18338_s18 + $0x12a0] ss:$324 sps:$4 sm:$0xff]   ;;  %v17326_v0 = vld [vmem:[%s18338_s18 + $0x1018] ss:$324 sps:$4 sm:$0xff]  }
 0x411   : > { %10938 = vmatprep.subr.bf16.mxu0 %v17307_v4  ;;  %10951 = vmatprep.subr.bf16.mxu1 %v17310_v6  ;;  %v10621_v20 = vpop.f32.mrf.mxu0  ;;  %v17328_v4 = vld [vmem:[%s18338_s18 + $0x101c] ss:$324 sps:$4 sm:$0xff]  }
 0x412   : > { %v17323_v6 = vld [vmem:[%s18338_s18 + $0xb00] ss:$324 sps:$4 sm:$0xff]   ;;  %v17329_v20 = vld [vmem:[%s18338_s18 + $0x878] ss:$324 sps:$4 sm:$0xff]  }
 0x413   : > { %10902 = vmatmul.mubr.bf16.vlgmr.msra.gmra.mxu1 %v18717_v13 }
 0x414   : > { %10939 = vmatpush2.bf16.msra.mxu0 %v17305_v54  ;;  %10952 = vmatpush1.bf16.msra.mxu1 %v17308_v55  ;;  %v17331_v54 = vld [vmem:[%s18338_s18 + $0x87c] ss:$324 sps:$4 sm:$0xff]   ;;  %v17334_v55 = vld [vmem:[%s18338_s18 + $0xd94] ss:$324 sps:$4 sm:$0xff]  }
 0x415   : > { %10940 = vmatprep.subr.bf16.mxu0 %v17313_v43  ;;  %10953 = vmatprep.subr.bf16.mxu1 %v17316_v1  ;;  %v17332_v43 = vld [vmem:[%s18338_s18 + $0xd90] ss:$324 sps:$4 sm:$0xff]  }
 0x416   : > { %15877 = vmatprep.mubr.msk.bf16.mxu1 %vm9552_vm2, %v18638_v9  ;;  %v17337_v1 = vld [vmem:[%s18338_s18 + $0x5f4] ss:$324 sps:$4 sm:$0xff]  }
 0x418   : > { %10941 = vmatpush2.bf16.msra.mxu0 %v17311_v27  ;;  %10954 = vmatpush1.bf16.msra.mxu1 %v17314_v44  ;;  %v17340_v27 = vld [vmem:[%s18338_s18 + $0xb0c] ss:$324 sps:$4 sm:$0xff]  }
 0x419   : > { %10955 = vmatprep.subr.bf16.mxu1 %v17319_v12  ;;  %10992 = vmatprep.subr.bf16.mxu0 %v17322_v53  ;;  %v17335_v44 = vld [vmem:[%s18338_s18 + $0x5f0] ss:$324 sps:$4 sm:$0xff]   ;;  %v17338_v12 = vld [vmem:[%s18338_s18 + $0xb08] ss:$324 sps:$4 sm:$0xff]  }
 0x41a   : > { %v17343_v53 = vld [vmem:[%s18338_s18 + $0x36c] ss:$324 sps:$4 sm:$0xff]  }
 0x41b   : > { %10943 = vmatmul.mubr.bf16.vlgmr.msra.gmra.mxu0 %v18717_v13 }
 0x41c   : > { %10956 = vmatpush1.bf16.msra.mxu1 %v17317_v41  ;;  %10993 = vmatpush1.bf16.msra.mxu0 %v17320_v48  ;;  %v17346_v41 = vld [vmem:[%s18338_s18 + $0x884] ss:$324 sps:$4 sm:$0xff]  }
 0x41d   : > { %10957 = vmatprep.subr.bf16.mxu1 %v17325_v17  ;;  %10994 = vmatprep.subr.bf16.mxu0 %v17328_v4  ;;  %v17341_v48 = vld [vmem:[%s18338_s18 + $0x368] ss:$324 sps:$4 sm:$0xff]   ;;  %v17344_v17 = vld [vmem:[%s18338_s18 + $0x880] ss:$324 sps:$4 sm:$0xff]  }
 0x41e   : > { %15878 = vmatprep.mubr.msk.bf16.mxu0 %vm9552_vm2, %v18638_v9  ;;  %v17349_v4 = vld [vmem:[%s18338_s18 + $0xe4] ss:$324 sps:$4 sm:$0xff]  }
 0x420   : > { %10958 = vmatpush1.bf16.msra.mxu1 %v17323_v6  ;;  %10995 = vmatpush1.bf16.msra.mxu0 %v17326_v0  ;;  %v17352_v6 = vld [vmem:[%s18338_s18 + $0x5fc] ss:$324 sps:$4 sm:$0xff]   ;;  %v17355_v0 = vld [vmem:[%s18338_s18 + $0x1f44] ss:$324 sps:$4 sm:$0xff]  }
 0x421   : > { %10959 = vmatprep.subr.bf16.mxu1 %v17331_v54  ;;  %10996 = vmatprep.subr.bf16.mxu0 %v17334_v55  ;;  %v17347_v54 = vld [vmem:[%s18338_s18 + $0xe0] ss:$324 sps:$4 sm:$0xff]   ;;  %v17350_v55 = vld [vmem:[%s18338_s18 + $0x5f8] ss:$324 sps:$4 sm:$0xff]  }
 0x424   : > { %10960 = vmatpush1.bf16.msra.mxu1 %v17329_v20  ;;  %10997 = vmatpush1.bf16.msra.mxu0 %v17332_v43  ;;  %v17353_v20 = vld [vmem:[%s18338_s18 + $0x1f40] ss:$324 sps:$4 sm:$0xff]   ;;  %v9732_v43 = vand.u32 %v17355_v0, %v18675_v36  ;;  %v17362_v0 = vld [vmem:[%s18338_s18 + $0xe8] ss:$324 sps:$4 sm:$0xff]  }
 0x425   : > { %10961 = vmatprep.subr.bf16.mxu1 %v17337_v1  ;;  %10998 = vmatprep.subr.bf16.mxu0 %v17340_v27  ;;  %v17358_v1 = vld [vmem:[%s18338_s18 + $0x374] ss:$324 sps:$4 sm:$0xff]  }
 0x426   : > { %v19968_v27 = vld [vmem:[%s18340_s27 + $0x28] sm:$0xff] }
 0x428   : > { %10962 = vmatpush1.bf16.msra.mxu1 %v17335_v44  ;;  %10999 = vmatpush1.bf16.msra.mxu0 %v17338_v12  ;;  %v17356_v44 = vld [vmem:[%s18338_s18 + $0x370] ss:$324 sps:$4 sm:$0xff]   ;;  %v9729_v12 = vand.u32 %v17353_v20, %v18675_v36 }
 0x429   : > { %10963 = vmatprep.subr.bf16.mxu1 %v17343_v53  ;;  %11000 = vmatprep.subr.bf16.mxu0 %v17346_v41  ;;  %v17361_v53 = vld [vmem:[%s18338_s18 + $0x1cbc] ss:$324 sps:$4 sm:$0xff]   ;;  %v17364_v41 = vld [vmem:[%s18338_s18 + $0xec] ss:$324 sps:$4 sm:$0xff]  }
 0x42c   : > { %10964 = vmatpush1.bf16.msra.mxu1 %v17341_v48  ;;  %11001 = vmatpush1.bf16.msra.mxu0 %v17344_v17  ;;  %v17370_v48 = vld [vmem:[%s18338_s18 + $0x1f4c] ss:$324 sps:$4 sm:$0xff]   ;;  %v2952_v17 = vrot.slane %v19968_v27, %v18805_v40 }
 0x42d   : > { %10965 = vmatprep.subr.bf16.mxu1 %v17349_v4  ;;  %11002 = vmatprep.subr.bf16.mxu0 %v17352_v6  ;;  %v2956_v4 = vrot.slane %v19968_v27, %v18811_v50  ;;  %v17359_v6 = vld [vmem:[%s18338_s18 + $0x1cb8] ss:$324 sps:$4 sm:$0xff]   ;;  %v9738_v20 = vand.u32 %v17370_v48, %v18675_v36  ;;  %v17376_v48 = vld [vmem:[%s18338_s18 + $0x1cc4] ss:$324 sps:$4 sm:$0xff]  }
 0x42f   : > { %v3235_v61 = vadd.f32 %v2956_v4, %v21835_v29  ;;  %v2964_v4 = vrot.slane %v19968_v27, %v18922_v62 }
 0x430   : > { %10966 = vmatpush1.bf16.msra.mxu1 %v17347_v54  ;;  %11003 = vmatpush1.bf16.msra.mxu0 %v17350_v55  ;;  %v17368_v54 = vld [vmem:[%s18338_s18 + $0x1f48] ss:$324 sps:$4 sm:$0xff]   ;;  %v17367_v55 = vld [vmem:[%s18338_s18 + $0x1a34] ss:$324 sps:$4 sm:$0xff]  }
 0x431   : > { %10973 = vmatprep.subr.bf16.mxu1 %v9732_v43  ;;  %11004 = vmatprep.subr.bf16.mxu0 %v17358_v1  ;;  %v21834_v43 = vld [vmem:[#allocation23_spill] sm:$0xff] }
 0x432   : > { %v3234_v1 = vadd.f32 %v2952_v17, %v21834_v43  ;;  %v2960_v17 = vrot.slane %v19968_v27, %v18802_v39  ;;  %v21836_v43 = vld [vmem:[#allocation22_spill] sm:$0xff] }
 0x434   : > { %10974 = vmatpush2.bf16.msra.mxu1 %v9729_v12  ;;  %11005 = vmatpush1.bf16.msra.mxu0 %v17356_v44  ;;  %v17365_v44 = vld [vmem:[%s18338_s18 + $0x1a30] ss:$324 sps:$4 sm:$0xff]   ;;  %v9735_v12 = vand.u32 %v17368_v54, %v18675_v36 }
 0x435   : > { %10975 = vmatprep.subr.bf16.mxu1 %v17361_v53  ;;  %11006 = vmatprep.subr.bf16.mxu0 %v17364_v41  ;;  %v17373_v41 = vld [vmem:[%s18338_s18 + $0x17ac] ss:$324 sps:$4 sm:$0xff]  }
 0x437   : > { %v10657_v35 = vpop.f32.mrf.mxu1 }
 0x438   : > { %v19986_v22 = vadd.f32 %v10657_v35, %v3234_v1  ;;  %10976 = vmatpush2.bf16.msra.mxu1 %v17359_v6  ;;  %11007 = vmatpush1.bf16.msra.mxu0 %v17362_v0  ;;  %v17371_v6 = vld [vmem:[%s18338_s18 + $0x17a8] ss:$324 sps:$4 sm:$0xff]   ;;  %v17374_v0 = vld [vmem:[%s18338_s18 + $0x1cc0] ss:$324 sps:$4 sm:$0xff]  }
 0x439   : > { %v10659_v53 = vpop.f32.mrf.mxu1  ;;  %10977 = vmatprep.subr.bf16.mxu1 %v17367_v55  ;;  %11014 = vmatprep.subr.bf16.mxu0 %v9738_v20  ;;  %v17379_v55 = vld [vmem:[%s18338_s18 + $0x1524] ss:$324 sps:$4 sm:$0xff]   ;;  %v17382_v20 = vld [vmem:[%s18338_s18 + $0x1a3c] ss:$324 sps:$4 sm:$0xff]  }
 0x43a   : > { %v19994_v29 = vadd.f32 %v10659_v53, %v3235_v61  ;;  %v3236_v61 = vadd.f32 %v2960_v17, %v21836_v43  ;;  %v21837_v53 = vld [vmem:[#allocation24_spill] sm:$0xff] }
 0x43b   : > { %v10661_v35 = vpop.f32.mrf.mxu1 }
 0x43c   : > { %10978 = vmatpush2.bf16.msra.mxu1 %v17365_v44  ;;  %11015 = vmatpush2.bf16.msra.mxu0 %v9735_v12  ;;  %v3237_v35 = vadd.f32 %v2964_v4, %v21837_v53  ;;  %v17377_v44 = vld [vmem:[%s18338_s18 + $0x1520] ss:$324 sps:$4 sm:$0xff]   ;;  %v17380_v12 = vld [vmem:[%s18338_s18 + $0x1a38] ss:$324 sps:$4 sm:$0xff]   ;;  %v17383_v4 = vld [vmem:[%s18338_s18 + $0x17b0] ss:$324 sps:$4 sm:$0xff]  }
 0x43d   : > { %v10662_v54 = vpop.f32.mrf.mxu1  ;;  %10979 = vmatprep.subr.bf16.mxu1 %v17373_v41  ;;  %11016 = vmatprep.subr.bf16.mxu0 %v17376_v48  ;;  %v17385_v48 = vld [vmem:[%s18338_s18 + $0x17b4] ss:$324 sps:$4 sm:$0xff]   ;;  %v17397_v53 = vld [vmem:[%s18338_s18 + $0xd9c] ss:$324 sps:$4 sm:$0xff]  }
 0x43e   : > { %v17388_v54 = vld [vmem:[%s18338_s18 + $0x12ac] ss:$324 sps:$4 sm:$0xff]  }
 0x43f   : > { %v10698_v1 = vpop.f32.mrf.mxu0 }
 0x440   : > { %v20004_v5 = vadd.f32 %v10698_v1, %v3236_v61  ;;  %10980 = vmatpush2.bf16.msra.mxu1 %v17371_v6  ;;  %11017 = vmatpush2.bf16.msra.mxu0 %v17374_v0  ;;  %v17386_v6 = vld [vmem:[%s18338_s18 + $0x12a8] ss:$324 sps:$4 sm:$0xff]   ;;  %v17392_v1 = vld [vmem:[%s18338_s18 + $0x1020] ss:$324 sps:$4 sm:$0xff]  }
 0x441   : > { %v10700_v41 = vpop.f32.mrf.mxu0  ;;  %10981 = vmatprep.subr.bf16.mxu1 %v17379_v55  ;;  %11018 = vmatprep.subr.bf16.mxu0 %v17382_v20  ;;  %v17391_v55 = vld [vmem:[%s18338_s18 + $0x152c] ss:$324 sps:$4 sm:$0xff]   ;;  %v17394_v20 = vld [vmem:[%s18338_s18 + $0x1024] ss:$324 sps:$4 sm:$0xff]  }
 0x442   : > { %v20010_v17 = vadd.f32 %v10700_v41, %v3237_v35  ;;  %v17389_v61 = vld [vmem:[%s18338_s18 + $0x1528] ss:$324 sps:$4 sm:$0xff]   ;;  %v17400_v35 = vld [vmem:[%s18338_s18 + $0x12b4] ss:$324 sps:$4 sm:$0xff]  }
 0x443   : > { %v10702_v43 = vpop.f32.mrf.mxu0  ;;  %v17403_v41 = vld [vmem:[%s18338_s18 + $0xb14] ss:$324 sps:$4 sm:$0xff]  }
 0x444   : > { %10982 = vmatpush2.bf16.msra.mxu1 %v17377_v44  ;;  %11019 = vmatpush2.bf16.msra.mxu0 %v17380_v12  ;;  %v17395_v44 = vld [vmem:[%s18338_s18 + $0xd98] ss:$324 sps:$4 sm:$0xff]   ;;  %v17398_v12 = vld [vmem:[%s18338_s18 + $0x12b0] ss:$324 sps:$4 sm:$0xff]   ;;  %v17404_v43 = vld [vmem:[%s18338_s18 + $0x1028] ss:$324 sps:$4 sm:$0xff]  }
 0x445   : > { %11020 = vmatprep.subr.bf16.mxu0 %v17385_v48  ;;  %11033 = vmatprep.subr.bf16.mxu1 %v17388_v54  ;;  %v10703_v0 = vpop.f32.mrf.mxu0  ;;  %v17406_v48 = vld [vmem:[%s18338_s18 + $0x102c] ss:$324 sps:$4 sm:$0xff]  }
 0x446   : > { %v17401_v54 = vld [vmem:[%s18338_s18 + $0xb10] ss:$324 sps:$4 sm:$0xff]   ;;  %v17407_v0 = vld [vmem:[%s18338_s18 + $0x888] ss:$324 sps:$4 sm:$0xff]  }
 0x447   : > { %10984 = vmatmul.mubr.bf16.vlgmr.msra.gmra.mxu1 %v18717_v13 }
 0x448   : > { %11021 = vmatpush2.bf16.msra.mxu0 %v17383_v4  ;;  %11034 = vmatpush1.bf16.msra.mxu1 %v17386_v6  ;;  %v17409_v4 = vld [vmem:[%s18338_s18 + $0x88c] ss:$324 sps:$4 sm:$0xff]   ;;  %v17412_v6 = vld [vmem:[%s18338_s18 + $0xda4] ss:$324 sps:$4 sm:$0xff]  }
 0x449   : > { %11022 = vmatprep.subr.bf16.mxu0 %v17391_v55  ;;  %11035 = vmatprep.subr.bf16.mxu1 %v17394_v20  ;;  %v17410_v55 = vld [vmem:[%s18338_s18 + $0xda0] ss:$324 sps:$4 sm:$0xff]  }
 0x44a   : > { %15879 = vmatprep.mubr.msk.bf16.mxu1 %vm9552_vm2, %v18638_v9  ;;  %v17415_v20 = vld [vmem:[%s18338_s18 + $0x604] ss:$324 sps:$4 sm:$0xff]  }
 0x44c   : > { %11023 = vmatpush2.bf16.msra.mxu0 %v17389_v61  ;;  %11036 = vmatpush1.bf16.msra.mxu1 %v17392_v1  ;;  %v17418_v61 = vld [vmem:[%s18338_s18 + $0xb1c] ss:$324 sps:$4 sm:$0xff]  }
 0x44d   : > { %11037 = vmatprep.subr.bf16.mxu1 %v17397_v53  ;;  %11074 = vmatprep.subr.bf16.mxu0 %v17400_v35  ;;  %v17413_v1 = vld [vmem:[%s18338_s18 + $0x600] ss:$324 sps:$4 sm:$0xff]   ;;  %v17416_v53 = vld [vmem:[%s18338_s18 + $0xb18] ss:$324 sps:$4 sm:$0xff]  }
 0x44e   : > { %v17421_v35 = vld [vmem:[%s18338_s18 + $0x37c] ss:$324 sps:$4 sm:$0xff]  }
 0x44f   : > { %11025 = vmatmul.mubr.bf16.vlgmr.msra.gmra.mxu0 %v18717_v13 }
 0x450   : > { %11038 = vmatpush1.bf16.msra.mxu1 %v17395_v44  ;;  %11075 = vmatpush1.bf16.msra.mxu0 %v17398_v12  ;;  %v17424_v44 = vld [vmem:[%s18338_s18 + $0x894] ss:$324 sps:$4 sm:$0xff]  }
 0x451   : > { %11039 = vmatprep.subr.bf16.mxu1 %v17403_v41  ;;  %11076 = vmatprep.subr.bf16.mxu0 %v17406_v48  ;;  %v17419_v12 = vld [vmem:[%s18338_s18 + $0x378] ss:$324 sps:$4 sm:$0xff]   ;;  %v17422_v41 = vld [vmem:[%s18338_s18 + $0x890] ss:$324 sps:$4 sm:$0xff]  }
 0x452   : > { %15880 = vmatprep.mubr.msk.bf16.mxu0 %vm9552_vm2, %v18638_v9  ;;  %v17427_v48 = vld [vmem:[%s18338_s18 + $0xf4] ss:$324 sps:$4 sm:$0xff]  }
 0x454   : > { %11040 = vmatpush1.bf16.msra.mxu1 %v17401_v54  ;;  %11077 = vmatpush1.bf16.msra.mxu0 %v17404_v43  ;;  %v17430_v54 = vld [vmem:[%s18338_s18 + $0x60c] ss:$324 sps:$4 sm:$0xff]   ;;  %v17433_v43 = vld [vmem:[%s18338_s18 + $0x1f54] ss:$324 sps:$4 sm:$0xff]  }
 0x455   : > { %11041 = vmatprep.subr.bf16.mxu1 %v17409_v4  ;;  %11078 = vmatprep.subr.bf16.mxu0 %v17412_v6  ;;  %v17425_v4 = vld [vmem:[%s18338_s18 + $0xf0] ss:$324 sps:$4 sm:$0xff]   ;;  %v17428_v6 = vld [vmem:[%s18338_s18 + $0x608] ss:$324 sps:$4 sm:$0xff]  }
 0x458   : > { %11042 = vmatpush1.bf16.msra.mxu1 %v17407_v0  ;;  %11079 = vmatpush1.bf16.msra.mxu0 %v17410_v55  ;;  %v17431_v0 = vld [vmem:[%s18338_s18 + $0x1f50] ss:$324 sps:$4 sm:$0xff]   ;;  %v9744_v55 = vand.u32 %v17433_v43, %v18675_v36  ;;  %v17446_v43 = vld [vmem:[%s18338_s18 + $0x1f58] ss:$324 sps:$4 sm:$0xff]  }
 0x459   : > { %11043 = vmatprep.subr.bf16.mxu1 %v17415_v20  ;;  %11080 = vmatprep.subr.bf16.mxu0 %v17418_v61  ;;  %v17436_v20 = vld [vmem:[%s18338_s18 + $0x384] ss:$324 sps:$4 sm:$0xff]  }
 0x45a   : > { %v17434_v61 = vld [vmem:[%s18338_s18 + $0x380] ss:$324 sps:$4 sm:$0xff]  }
 0x45c   : > { %11044 = vmatpush1.bf16.msra.mxu1 %v17413_v1  ;;  %11081 = vmatpush1.bf16.msra.mxu0 %v17416_v53  ;;  %v9741_v1 = vand.u32 %v17431_v0, %v18675_v36  ;;  %v17439_v53 = vld [vmem:[%s18338_s18 + $0x1ccc] ss:$324 sps:$4 sm:$0xff]   ;;  %v21838_v0 = vld [vmem:[#allocation27_spill] sm:$0xff] }
 0x45d   : > { %11045 = vmatprep.subr.bf16.mxu1 %v17421_v35  ;;  %11082 = vmatprep.subr.bf16.mxu0 %v17424_v44  ;;  %v17442_v35 = vld [vmem:[%s18338_s18 + $0xfc] ss:$324 sps:$4 sm:$0xff]  }
 0x45e   : > { %v17448_v44 = vld [vmem:[%s18338_s18 + $0x1f5c] ss:$324 sps:$4 sm:$0xff]  }
 0x460   : > { %11046 = vmatpush1.bf16.msra.mxu1 %v17419_v12  ;;  %11083 = vmatpush1.bf16.msra.mxu0 %v17422_v41  ;;  %v2968_v12 = vrot.slane %v19968_v27, %v18947_v16  ;;  %v2972_v41 = vrot.slane %v19968_v27, %v18954_v2 }
 0x461   : > { %11047 = vmatprep.subr.bf16.mxu1 %v17427_v48  ;;  %11084 = vmatprep.subr.bf16.mxu0 %v17430_v54  ;;  %v17437_v48 = vld [vmem:[%s18338_s18 + $0x1cc8] ss:$324 sps:$4 sm:$0xff]   ;;  %v17440_v54 = vld [vmem:[%s18338_s18 + $0xf8] ss:$324 sps:$4 sm:$0xff]  }
 0x462   : > { %v3239_v42 = vadd.f32 %v2972_v41, %v21839_v46 }
 0x464   : > { %11048 = vmatpush1.bf16.msra.mxu1 %v17425_v4  ;;  %11085 = vmatpush1.bf16.msra.mxu0 %v17428_v6  ;;  %v17445_v4 = vld [vmem:[%s18338_s18 + $0x1a44] ss:$324 sps:$4 sm:$0xff]   ;;  %v9750_v6 = vand.u32 %v17448_v44, %v18675_v36  ;;  %v17454_v44 = vld [vmem:[%s18338_s18 + $0x1cd4] ss:$324 sps:$4 sm:$0xff]  }
 0x465   : > { %11055 = vmatprep.subr.bf16.mxu1 %v9744_v55  ;;  %11086 = vmatprep.subr.bf16.mxu0 %v17436_v20  ;;  %v3238_v55 = vadd.f32 %v2968_v12, %v21838_v0  ;;  %v2976_v12 = vrot.slane %v19968_v27, %v19232_v56  ;;  %v17460_v0 = vld [vmem:[%s18338_s18 + $0x1a4c] ss:$324 sps:$4 sm:$0xff]  }
 0x468   : > { %11056 = vmatpush2.bf16.msra.mxu1 %v9741_v1  ;;  %11087 = vmatpush1.bf16.msra.mxu0 %v17434_v61  ;;  %v17443_v61 = vld [vmem:[%s18338_s18 + $0x1a40] ss:$324 sps:$4 sm:$0xff]   ;;  %v9747_v1 = vand.u32 %v17446_v43, %v18675_v36  ;;  %v17452_v43 = vld [vmem:[%s18338_s18 + $0x1cd0] ss:$324 sps:$4 sm:$0xff]  }
 0x469   : > { %11057 = vmatprep.subr.bf16.mxu1 %v17439_v53  ;;  %11088 = vmatprep.subr.bf16.mxu0 %v17442_v35  ;;  %v17451_v35 = vld [vmem:[%s18338_s18 + $0x17bc] ss:$324 sps:$4 sm:$0xff]  }
 0x46b   : > { %v10739_v20 = vpop.f32.mrf.mxu1 }
 0x46c   : > { %v20068_v19 = vadd.f32 %v10739_v20, %v3238_v55  ;;  %11058 = vmatpush2.bf16.msra.mxu1 %v17437_v48  ;;  %11089 = vmatpush1.bf16.msra.mxu0 %v17440_v54  ;;  %v2980_v48 = vrot.slane %v19968_v27, %v19236_v10  ;;  %v17449_v54 = vld [vmem:[%s18338_s18 + $0x17b8] ss:$324 sps:$4 sm:$0xff]  }
 0x46d   : > { %v10741_v53 = vpop.f32.mrf.mxu1  ;;  %11059 = vmatprep.subr.bf16.mxu1 %v17445_v4  ;;  %11096 = vmatprep.subr.bf16.mxu0 %v9750_v6  ;;  %v17457_v6 = vld [vmem:[%s18338_s18 + $0x1534] ss:$324 sps:$4 sm:$0xff]  }
 0x46e   : > { %v20076_v46 = vadd.f32 %v10741_v53, %v3239_v42  ;;  %v21840_v55 = vld [vmem:[#allocation26_spill] sm:$0xff]  ;;  %v21841_v53 = vld [vmem:[#allocation28_spill] sm:$0xff] }
 0x46f   : > { %v10743_v41 = vpop.f32.mrf.mxu1  ;;  %v3240_v42 = vadd.f32 %v2976_v12, %v21840_v55 }
 0x470   : > { %11060 = vmatpush2.bf16.msra.mxu1 %v17443_v61  ;;  %11097 = vmatpush2.bf16.msra.mxu0 %v9747_v1  ;;  %v3241_v41 = vadd.f32 %v2980_v48, %v21841_v53  ;;  %v17455_v61 = vld [vmem:[%s18338_s18 + $0x1530] ss:$324 sps:$4 sm:$0xff]   ;;  %v17458_v1 = vld [vmem:[%s18338_s18 + $0x1a48] ss:$324 sps:$4 sm:$0xff]   ;;  %v17461_v48 = vld [vmem:[%s18338_s18 + $0x17c0] ss:$324 sps:$4 sm:$0xff]  }
 0x471   : > { %v10744_v4 = vpop.f32.mrf.mxu1  ;;  %11061 = vmatprep.subr.bf16.mxu1 %v17451_v35  ;;  %11098 = vmatprep.subr.bf16.mxu0 %v17454_v44  ;;  %v17463_v44 = vld [vmem:[%s18338_s18 + $0x17c4] ss:$324 sps:$4 sm:$0xff]   ;;  %v17475_v53 = vld [vmem:[%s18338_s18 + $0xdac] ss:$324 sps:$4 sm:$0xff]  }
 0x472   : > { %v17466_v4 = vld [vmem:[%s18338_s18 + $0x12bc] ss:$324 sps:$4 sm:$0xff]  }
 0x473   : > { %v10780_v20 = vpop.f32.mrf.mxu0 }
 0x474   : > { %v20086_v27 = vadd.f32 %v10780_v20, %v3240_v42  ;;  %11062 = vmatpush2.bf16.msra.mxu1 %v17449_v54  ;;  %11099 = vmatpush2.bf16.msra.mxu0 %v17452_v43  ;;  %v17464_v54 = vld [vmem:[%s18338_s18 + $0x12b8] ss:$324 sps:$4 sm:$0xff]   ;;  %v17470_v20 = vld [vmem:[%s18338_s18 + $0x1030] ss:$324 sps:$4 sm:$0xff]  }
 0x475   : > { %v10782_v35 = vpop.f32.mrf.mxu0  ;;  %11063 = vmatprep.subr.bf16.mxu1 %v17457_v6  ;;  %11100 = vmatprep.subr.bf16.mxu0 %v17460_v0  ;;  %v17469_v6 = vld [vmem:[%s18338_s18 + $0x153c] ss:$324 sps:$4 sm:$0xff]   ;;  %v17472_v0 = vld [vmem:[%s18338_s18 + $0x1034] ss:$324 sps:$4 sm:$0xff]  }
 0x476   : > { %v20092_v12 = vadd.f32 %v10782_v35, %v3241_v41  ;;  %v17467_v42 = vld [vmem:[%s18338_s18 + $0x1538] ss:$324 sps:$4 sm:$0xff]   ;;  %v17478_v41 = vld [vmem:[%s18338_s18 + $0x12c4] ss:$324 sps:$4 sm:$0xff]  }
 0x477   : > { %v10784_v55 = vpop.f32.mrf.mxu0  ;;  %v17481_v35 = vld [vmem:[%s18338_s18 + $0xb24] ss:$324 sps:$4 sm:$0xff]  }
 0x478   : > { %11064 = vmatpush2.bf16.msra.mxu1 %v17455_v61  ;;  %11101 = vmatpush2.bf16.msra.mxu0 %v17458_v1  ;;  %v17473_v61 = vld [vmem:[%s18338_s18 + $0xda8] ss:$324 sps:$4 sm:$0xff]   ;;  %v17476_v1 = vld [vmem:[%s18338_s18 + $0x12c0] ss:$324 sps:$4 sm:$0xff]   ;;  %v17482_v55 = vld [vmem:[%s18338_s18 + $0x1038] ss:$324 sps:$4 sm:$0xff]  }
 0x479   : > { %11102 = vmatprep.subr.bf16.mxu0 %v17463_v44  ;;  %11115 = vmatprep.subr.bf16.mxu1 %v17466_v4  ;;  %v10785_v43 = vpop.f32.mrf.mxu0  ;;  %v17484_v44 = vld [vmem:[%s18338_s18 + $0x103c] ss:$324 sps:$4 sm:$0xff]  }
 0x47a   : > { %v17479_v4 = vld [vmem:[%s18338_s18 + $0xb20] ss:$324 sps:$4 sm:$0xff]   ;;  %v17485_v43 = vld [vmem:[%s18338_s18 + $0x898] ss:$324 sps:$4 sm:$0xff]  }
 0x47b   : > { %11066 = vmatmul.mubr.bf16.vlgmr.msra.gmra.mxu1 %v18717_v13 }
 0x47c   : > { %11103 = vmatpush2.bf16.msra.mxu0 %v17461_v48  ;;  %11116 = vmatpush1.bf16.msra.mxu1 %v17464_v54  ;;  %v17487_v48 = vld [vmem:[%s18338_s18 + $0x89c] ss:$324 sps:$4 sm:$0xff]   ;;  %v17490_v54 = vld [vmem:[%s18338_s18 + $0xdb4] ss:$324 sps:$4 sm:$0xff]  }
 0x47d   : > { %11104 = vmatprep.subr.bf16.mxu0 %v17469_v6  ;;  %11117 = vmatprep.subr.bf16.mxu1 %v17472_v0  ;;  %v17488_v6 = vld [vmem:[%s18338_s18 + $0xdb0] ss:$324 sps:$4 sm:$0xff]  }
 0x47e   : > { %15881 = vmatprep.mubr.msk.bf16.mxu1 %vm9552_vm2, %v18638_v9  ;;  %v17493_v0 = vld [vmem:[%s18338_s18 + $0x614] ss:$324 sps:$4 sm:$0xff]  }
 0x480   : > { %11105 = vmatpush2.bf16.msra.mxu0 %v17467_v42  ;;  %11118 = vmatpush1.bf16.msra.mxu1 %v17470_v20  ;;  %v17496_v42 = vld [vmem:[%s18338_s18 + $0xb2c] ss:$324 sps:$4 sm:$0xff]  }
 0x481   : > { %11119 = vmatprep.subr.bf16.mxu1 %v17475_v53  ;;  %11156 = vmatprep.subr.bf16.mxu0 %v17478_v41  ;;  %v17491_v20 = vld [vmem:[%s18338_s18 + $0x610] ss:$324 sps:$4 sm:$0xff]   ;;  %v17494_v53 = vld [vmem:[%s18338_s18 + $0xb28] ss:$324 sps:$4 sm:$0xff]  }
 0x482   : > { %v17499_v41 = vld [vmem:[%s18338_s18 + $0x38c] ss:$324 sps:$4 sm:$0xff]  }
 0x483   : > { %11107 = vmatmul.mubr.bf16.vlgmr.msra.gmra.mxu0 %v18717_v13 }
 0x484   : > { %11120 = vmatpush1.bf16.msra.mxu1 %v17473_v61  ;;  %11157 = vmatpush1.bf16.msra.mxu0 %v17476_v1  ;;  %v17502_v61 = vld [vmem:[%s18338_s18 + $0x8a4] ss:$324 sps:$4 sm:$0xff]  }
 0x485   : > { %11121 = vmatprep.subr.bf16.mxu1 %v17481_v35  ;;  %11158 = vmatprep.subr.bf16.mxu0 %v17484_v44  ;;  %v17497_v1 = vld [vmem:[%s18338_s18 + $0x388] ss:$324 sps:$4 sm:$0xff]   ;;  %v17500_v35 = vld [vmem:[%s18338_s18 + $0x8a0] ss:$324 sps:$4 sm:$0xff]  }
 0x486   : > { %15882 = vmatprep.mubr.msk.bf16.mxu0 %vm9552_vm2, %v18638_v9  ;;  %v17505_v44 = vld [vmem:[%s18338_s18 + $0x104] ss:$324 sps:$4 sm:$0xff]  }
 0x488   : > { %11122 = vmatpush1.bf16.msra.mxu1 %v17479_v4  ;;  %11159 = vmatpush1.bf16.msra.mxu0 %v17482_v55  ;;  %v17508_v4 = vld [vmem:[%s18338_s18 + $0x61c] ss:$324 sps:$4 sm:$0xff]   ;;  %v17511_v55 = vld [vmem:[%s18338_s18 + $0x1f64] ss:$324 sps:$4 sm:$0xff]  }
 0x489   : > { %11123 = vmatprep.subr.bf16.mxu1 %v17487_v48  ;;  %11160 = vmatprep.subr.bf16.mxu0 %v17490_v54  ;;  %v17503_v48 = vld [vmem:[%s18338_s18 + $0x100] ss:$324 sps:$4 sm:$0xff]   ;;  %v17506_v54 = vld [vmem:[%s18338_s18 + $0x618] ss:$324 sps:$4 sm:$0xff]  }
 0x48c   : > { %11124 = vmatpush1.bf16.msra.mxu1 %v17485_v43  ;;  %11161 = vmatpush1.bf16.msra.mxu0 %v17488_v6  ;;  %v17509_v43 = vld [vmem:[%s18338_s18 + $0x1f60] ss:$324 sps:$4 sm:$0xff]   ;;  %v9756_v6 = vand.u32 %v17511_v55, %v18675_v36 }
 0x48d   : > { %11125 = vmatprep.subr.bf16.mxu1 %v17493_v0  ;;  %11162 = vmatprep.subr.bf16.mxu0 %v17496_v42  ;;  %v17514_v0 = vld [vmem:[%s18338_s18 + $0x394] ss:$324 sps:$4 sm:$0xff]  }
 0x48e   : > { %v17512_v42 = vld [vmem:[%s18338_s18 + $0x390] ss:$324 sps:$4 sm:$0xff]  }
 0x490   : > { %11126 = vmatpush1.bf16.msra.mxu1 %v17491_v20  ;;  %11163 = vmatpush1.bf16.msra.mxu0 %v17494_v53  ;;  %v9753_v20 = vand.u32 %v17509_v43, %v18675_v36  ;;  %v17517_v53 = vld [vmem:[%s18338_s18 + $0x1cdc] ss:$324 sps:$4 sm:$0xff]   ;;  %v17521_v43 = vld [vmem:[%s18338_s18 + $0x1a50] ss:$324 sps:$4 sm:$0xff]  }
 0x491   : > { %11127 = vmatprep.subr.bf16.mxu1 %v17499_v41  ;;  %11164 = vmatprep.subr.bf16.mxu0 %v17502_v61  ;;  %v17520_v41 = vld [vmem:[%s18338_s18 + $0x10c] ss:$324 sps:$4 sm:$0xff]  }
 0x492   : > { %v17526_v61 = vld [vmem:[%s18338_s18 + $0x1f6c] ss:$324 sps:$4 sm:$0xff]  }
 0x493   : > { %v9762_v55 = vand.u32 %v17526_v61, %v18675_v36  ;;  %v17530_v61 = vld [vmem:[%s18338_s18 + $0x1ce0] ss:$324 sps:$4 sm:$0xff]  }
 0x494   : > { %11128 = vmatpush1.bf16.msra.mxu1 %v17497_v1  ;;  %11165 = vmatpush1.bf16.msra.mxu0 %v17500_v35  ;;  %v17515_v1 = vld [vmem:[%s18338_s18 + $0x1cd8] ss:$324 sps:$4 sm:$0xff]   ;;  %v17518_v35 = vld [vmem:[%s18338_s18 + $0x108] ss:$324 sps:$4 sm:$0xff]  }
 0x495   : > { %11129 = vmatprep.subr.bf16.mxu1 %v17505_v44  ;;  %11166 = vmatprep.subr.bf16.mxu0 %v17508_v4  ;;  %v17524_v44 = vld [vmem:[%s18338_s18 + $0x1f68] ss:$324 sps:$4 sm:$0xff]   ;;  %v17523_v4 = vld [vmem:[%s18338_s18 + $0x1a54] ss:$324 sps:$4 sm:$0xff]  }
 0x498   : > { %11130 = vmatpush1.bf16.msra.mxu1 %v17503_v48  ;;  %11167 = vmatpush1.bf16.msra.mxu0 %v17506_v54 }
 0x499   : > { %11137 = vmatprep.subr.bf16.mxu1 %v9756_v6  ;;  %11168 = vmatprep.subr.bf16.mxu0 %v17514_v0  ;;  %v9759_v6 = vand.u32 %v17524_v44, %v18675_v36  ;;  %v17538_v44 = vld [vmem:[%s18338_s18 + $0x1a5c] ss:$324 sps:$4 sm:$0xff]  }
 0x49c   : > { %11138 = vmatpush2.bf16.msra.mxu1 %v9753_v20  ;;  %11169 = vmatpush1.bf16.msra.mxu0 %v17512_v42  ;;  %v17529_v42 = vld [vmem:[%s18338_s18 + $0x17cc] ss:$324 sps:$4 sm:$0xff]   ;;  %v17532_v20 = vld [vmem:[%s18338_s18 + $0x1ce4] ss:$324 sps:$4 sm:$0xff]  }
 0x49d   : > { %11139 = vmatprep.subr.bf16.mxu1 %v17517_v53  ;;  %11170 = vmatprep.subr.bf16.mxu0 %v17520_v41 }
 0x49f   : > { %v10821_v48 = vpop.f32.mrf.mxu1 }
 0x4a0   : > { %v20145_v54 = vadd.f32 %v10821_v48, %v18942_v3  ;;  %11140 = vmatpush2.bf16.msra.mxu1 %v17515_v1  ;;  %11171 = vmatpush1.bf16.msra.mxu0 %v17518_v35  ;;  %v17527_v3 = vld [vmem:[%s18338_s18 + $0x17c8] ss:$324 sps:$4 sm:$0xff]   ;;  %v17536_v48 = vld [vmem:[%s18338_s18 + $0x1a58] ss:$324 sps:$4 sm:$0xff]  }
 0x4a1   : > { %v10823_v0 = vpop.f32.mrf.mxu1  ;;  %11141 = vmatprep.subr.bf16.mxu1 %v17523_v4  ;;  %11178 = vmatprep.subr.bf16.mxu0 %v9762_v55  ;;  %v17535_v35 = vld [vmem:[%s18338_s18 + $0x1544] ss:$324 sps:$4 sm:$0xff]  }
 0x4a2   : > { %v20152_v53 = vadd.f32 %v10823_v0, %v18951_v59  ;;  %v17533_v59 = vld [vmem:[%s18338_s18 + $0x1540] ss:$324 sps:$4 sm:$0xff]   ;;  %v17544_v0 = vld [vmem:[%s18338_s18 + $0x12cc] ss:$324 sps:$4 sm:$0xff]  }
 0x4a3   : > { %v10825_v41 = vpop.f32.mrf.mxu1 }
 0x4a4   : > { %11142 = vmatpush2.bf16.msra.mxu1 %v17521_v43  ;;  %11179 = vmatpush2.bf16.msra.mxu0 %v9759_v6  ;;  %v17541_v6 = vld [vmem:[%s18338_s18 + $0x17d4] ss:$324 sps:$4 sm:$0xff]   ;;  %v17542_v41 = vld [vmem:[%s18338_s18 + $0x12c8] ss:$324 sps:$4 sm:$0xff]  }
 0x4a5   : > { %v10826_v1 = vpop.f32.mrf.mxu1  ;;  %11143 = vmatprep.subr.bf16.mxu1 %v17529_v42  ;;  %11180 = vmatprep.subr.bf16.mxu0 %v17532_v20 }
 0x4a6   : > { %v17550_v1 = vld [vmem:[%s18338_s18 + $0x1044] ss:$324 sps:$4 sm:$0xff]  }
 0x4a7   : > { %v10862_v4 = vpop.f32.mrf.mxu0 }
 0x4a8   : > { %v20159_v55 = vadd.f32 %v10862_v4, %v18940_v60  ;;  %11144 = vmatpush2.bf16.msra.mxu1 %v17527_v3  ;;  %11181 = vmatpush2.bf16.msra.mxu0 %v17530_v61  ;;  %v17539_v60 = vld [vmem:[%s18338_s18 + $0x17d0] ss:$324 sps:$4 sm:$0xff]  }
 0x4a9   : > { %v10864_v43 = vpop.f32.mrf.mxu0  ;;  %11145 = vmatprep.subr.bf16.mxu1 %v17535_v35  ;;  %11182 = vmatprep.subr.bf16.mxu0 %v17538_v44  ;;  %v17547_v61 = vld [vmem:[%s18338_s18 + $0x154c] ss:$324 sps:$4 sm:$0xff]   ;;  %v17548_v35 = vld [vmem:[%s18338_s18 + $0x1040] ss:$324 sps:$4 sm:$0xff]   ;;  %v17556_v4 = vld [vmem:[%s18338_s18 + $0x12d4] ss:$324 sps:$4 sm:$0xff]  }
 0x4aa   : > { %v20166_v42 = vadd.f32 %v10864_v43, %v18949_v21  ;;  %v17545_v21 = vld [vmem:[%s18338_s18 + $0x1548] ss:$324 sps:$4 sm:$0xff]   ;;  %v17553_v44 = vld [vmem:[%s18338_s18 + $0xdbc] ss:$324 sps:$4 sm:$0xff]   ;;  %v17559_v43 = vld [vmem:[%s18338_s18 + $0xb34] ss:$324 sps:$4 sm:$0xff]  }
 0x4ab   : > { %v10866_v20 = vpop.f32.mrf.mxu0 }
 0x4ac   : > { %11146 = vmatpush2.bf16.msra.mxu1 %v17533_v59  ;;  %11183 = vmatpush2.bf16.msra.mxu0 %v17536_v48  ;;  %v17551_v59 = vld [vmem:[%s18338_s18 + $0xdb8] ss:$324 sps:$4 sm:$0xff]   ;;  %v17554_v48 = vld [vmem:[%s18338_s18 + $0x12d0] ss:$324 sps:$4 sm:$0xff]   ;;  %v17560_v20 = vld [vmem:[%s18338_s18 + $0x1048] ss:$324 sps:$4 sm:$0xff]  }
 0x4ad   : > { %11184 = vmatprep.subr.bf16.mxu0 %v17541_v6  ;;  %11197 = vmatprep.subr.bf16.mxu1 %v17544_v0  ;;  %v10867_v3 = vpop.f32.mrf.mxu0  ;;  %v17562_v6 = vld [vmem:[%s18338_s18 + $0x104c] ss:$324 sps:$4 sm:$0xff]  }
 0x4ae   : > { %v17557_v0 = vld [vmem:[%s18338_s18 + $0xb30] ss:$324 sps:$4 sm:$0xff]   ;;  %v17563_v3 = vld [vmem:[%s18338_s18 + $0x8a8] ss:$324 sps:$4 sm:$0xff]  }
 0x4af   : > { %11148 = vmatmul.mubr.bf16.vlgmr.msra.gmra.mxu1 %v18717_v13 }
 0x4b0   : > { %11185 = vmatpush2.bf16.msra.mxu0 %v17539_v60  ;;  %11198 = vmatpush1.bf16.msra.mxu1 %v17542_v41  ;;  %v17565_v60 = vld [vmem:[%s18338_s18 + $0x8ac] ss:$324 sps:$4 sm:$0xff]   ;;  %v17568_v41 = vld [vmem:[%s18338_s18 + $0xdc4] ss:$324 sps:$4 sm:$0xff]  }
 0x4b1   : > { %11186 = vmatprep.subr.bf16.mxu0 %v17547_v61  ;;  %11199 = vmatprep.subr.bf16.mxu1 %v17550_v1  ;;  %v17566_v61 = vld [vmem:[%s18338_s18 + $0xdc0] ss:$324 sps:$4 sm:$0xff]  }
 0x4b2   : > { %15883 = vmatprep.mubr.msk.bf16.mxu1 %vm9552_vm2, %v18638_v9  ;;  %v17571_v1 = vld [vmem:[%s18338_s18 + $0x624] ss:$324 sps:$4 sm:$0xff]  }
 0x4b4   : > { %11187 = vmatpush2.bf16.msra.mxu0 %v17545_v21  ;;  %11200 = vmatpush1.bf16.msra.mxu1 %v17548_v35  ;;  %v17574_v21 = vld [vmem:[%s18338_s18 + $0xb3c] ss:$324 sps:$4 sm:$0xff]  }
 0x4b5   : > { %11201 = vmatprep.subr.bf16.mxu1 %v17553_v44  ;;  %11238 = vmatprep.subr.bf16.mxu0 %v17556_v4  ;;  %v17569_v35 = vld [vmem:[%s18338_s18 + $0x620] ss:$324 sps:$4 sm:$0xff]   ;;  %v17572_v44 = vld [vmem:[%s18338_s18 + $0xb38] ss:$324 sps:$4 sm:$0xff]  }
 0x4b6   : > { %v17577_v4 = vld [vmem:[%s18338_s18 + $0x39c] ss:$324 sps:$4 sm:$0xff]  }
 0x4b7   : > { %11189 = vmatmul.mubr.bf16.vlgmr.msra.gmra.mxu0 %v18717_v13 }
 0x4b8   : > { %11202 = vmatpush1.bf16.msra.mxu1 %v17551_v59  ;;  %11239 = vmatpush1.bf16.msra.mxu0 %v17554_v48  ;;  %v17580_v59 = vld [vmem:[%s18338_s18 + $0x8b4] ss:$324 sps:$4 sm:$0xff]  }
 0x4b9   : > { %11203 = vmatprep.subr.bf16.mxu1 %v17559_v43  ;;  %11240 = vmatprep.subr.bf16.mxu0 %v17562_v6  ;;  %v17575_v48 = vld [vmem:[%s18338_s18 + $0x398] ss:$324 sps:$4 sm:$0xff]   ;;  %v17578_v43 = vld [vmem:[%s18338_s18 + $0x8b0] ss:$324 sps:$4 sm:$0xff]  }
 0x4ba   : > { %15884 = vmatprep.mubr.msk.bf16.mxu0 %vm9552_vm2, %v18638_v9  ;;  %v17583_v6 = vld [vmem:[%s18338_s18 + $0x114] ss:$324 sps:$4 sm:$0xff]  }
 0x4bc   : > { %11204 = vmatpush1.bf16.msra.mxu1 %v17557_v0  ;;  %11241 = vmatpush1.bf16.msra.mxu0 %v17560_v20  ;;  %v17586_v0 = vld [vmem:[%s18338_s18 + $0x62c] ss:$324 sps:$4 sm:$0xff]   ;;  %v17589_v20 = vld [vmem:[%s18338_s18 + $0x1f74] ss:$324 sps:$4 sm:$0xff]  }
 0x4bd   : > { %11205 = vmatprep.subr.bf16.mxu1 %v17565_v60  ;;  %11242 = vmatprep.subr.bf16.mxu0 %v17568_v41  ;;  %v17581_v60 = vld [vmem:[%s18338_s18 + $0x110] ss:$324 sps:$4 sm:$0xff]   ;;  %v17584_v41 = vld [vmem:[%s18338_s18 + $0x628] ss:$324 sps:$4 sm:$0xff]  }
 0x4c0   : > { %11206 = vmatpush1.bf16.msra.mxu1 %v17563_v3  ;;  %11243 = vmatpush1.bf16.msra.mxu0 %v17566_v61  ;;  %v17587_v3 = vld [vmem:[%s18338_s18 + $0x1f70] ss:$324 sps:$4 sm:$0xff]   ;;  %v9768_v61 = vand.u32 %v17589_v20, %v18675_v36 }
 0x4c1   : > { %11207 = vmatprep.subr.bf16.mxu1 %v17571_v1  ;;  %11244 = vmatprep.subr.bf16.mxu0 %v17574_v21  ;;  %v17592_v1 = vld [vmem:[%s18338_s18 + $0x3a4] ss:$324 sps:$4 sm:$0xff]  }
 0x4c2   : > { %v17590_v21 = vld [vmem:[%s18338_s18 + $0x3a0] ss:$324 sps:$4 sm:$0xff]  }
 0x4c4   : > { %11208 = vmatpush1.bf16.msra.mxu1 %v17569_v35  ;;  %11245 = vmatpush1.bf16.msra.mxu0 %v17572_v44  ;;  %v9765_v35 = vand.u32 %v17587_v3, %v18675_v36  ;;  %v17595_v44 = vld [vmem:[%s18338_s18 + $0x1cec] ss:$324 sps:$4 sm:$0xff]   ;;  %v21842_v3 = vld [vmem:[#allocation31_spill] sm:$0xff] }
 0x4c5   : > { %11209 = vmatprep.subr.bf16.mxu1 %v17577_v4  ;;  %11246 = vmatprep.subr.bf16.mxu0 %v17580_v59  ;;  %v17598_v4 = vld [vmem:[%s18338_s18 + $0x11c] ss:$324 sps:$4 sm:$0xff]  }
 0x4c6   : > { %v17604_v59 = vld [vmem:[%s18338_s18 + $0x1f7c] ss:$324 sps:$4 sm:$0xff]  }
 0x4c7   : > { %v9774_v20 = vand.u32 %v17604_v59, %v18675_v36 }
 0x4c8   : > { %11210 = vmatpush1.bf16.msra.mxu1 %v17575_v48  ;;  %11247 = vmatpush1.bf16.msra.mxu0 %v17578_v43  ;;  %v17593_v48 = vld [vmem:[%s18338_s18 + $0x1ce8] ss:$324 sps:$4 sm:$0xff]   ;;  %v17596_v43 = vld [vmem:[%s18338_s18 + $0x118] ss:$324 sps:$4 sm:$0xff]  }
 0x4c9   : > { %11211 = vmatprep.subr.bf16.mxu1 %v17583_v6  ;;  %11248 = vmatprep.subr.bf16.mxu0 %v17586_v0  ;;  %v17602_v6 = vld [vmem:[%s18338_s18 + $0x1f78] ss:$324 sps:$4 sm:$0xff]   ;;  %v17601_v0 = vld [vmem:[%s18338_s18 + $0x1a64] ss:$324 sps:$4 sm:$0xff]  }
 0x4cc   : > { %11212 = vmatpush1.bf16.msra.mxu1 %v17581_v60  ;;  %11249 = vmatpush1.bf16.msra.mxu0 %v17584_v41  ;;  %v17599_v60 = vld [vmem:[%s18338_s18 + $0x1a60] ss:$324 sps:$4 sm:$0xff]  }
 0x4cd   : > { %11219 = vmatprep.subr.bf16.mxu1 %v9768_v61  ;;  %11250 = vmatprep.subr.bf16.mxu0 %v17592_v1  ;;  %v9771_v1 = vand.u32 %v17602_v6, %v18675_v36 }
 0x4d0   : > { %11220 = vmatpush2.bf16.msra.mxu1 %v9765_v35  ;;  %11251 = vmatpush1.bf16.msra.mxu0 %v17590_v21  ;;  %v17607_v35 = vld [vmem:[%s18338_s18 + $0x17dc] ss:$324 sps:$4 sm:$0xff]  }
 0x4d1   : > { %11221 = vmatprep.subr.bf16.mxu1 %v17595_v44  ;;  %11252 = vmatprep.subr.bf16.mxu0 %v17598_v4  ;;  %v17610_v44 = vld [vmem:[%s18338_s18 + $0x1cf4] ss:$324 sps:$4 sm:$0xff]   ;;  %v17862_v4 = vld [vmem:[%s18340_s27 + $0x30] sm:$0xff] }
 0x4d2   : > { %v3008_v59 = vrot.slane %v17862_v4, %v19232_v56 }
 0x4d3   : > { %v10903_v41 = vpop.f32.mrf.mxu1 }
 0x4d4   : > { %v20223_v61 = vadd.f32 %v10903_v41, %v21842_v3  ;;  %11222 = vmatpush2.bf16.msra.mxu1 %v17593_v48  ;;  %11253 = vmatpush1.bf16.msra.mxu0 %v17596_v43  ;;  %v17613_v48 = vld [vmem:[%s18338_s18 + $0x1554] ss:$324 sps:$4 sm:$0xff]   ;;  %v3012_v43 = vrot.slane %v17862_v4, %v19236_v10 }
 0x4d5   : > { %v10905_v21 = vpop.f32.mrf.mxu1  ;;  %11223 = vmatprep.subr.bf16.mxu1 %v17601_v0  ;;  %11260 = vmatprep.subr.bf16.mxu0 %v9774_v20  ;;  %v17616_v0 = vld [vmem:[%s18338_s18 + $0x1a6c] ss:$324 sps:$4 sm:$0xff]  }
 0x4d6   : > { %v20231_v8 = vadd.f32 %v10905_v21, %v21843_v47  ;;  %v21844_v20 = vld [vmem:[#allocation30_spill] sm:$0xff]  ;;  %v21845_v21 = vld [vmem:[#allocation32_spill] sm:$0xff] }
 0x4d7   : > { %v10907_v41 = vpop.f32.mrf.mxu1  ;;  %v3248_v3 = vadd.f32 %v3008_v59, %v21844_v20  ;;  %v3249_v30 = vadd.f32 %v3012_v43, %v21845_v21  ;;  %v17611_v4 = vld [vmem:[%s18338_s18 + $0x1550] ss:$324 sps:$4 sm:$0xff]   ;;  %v17629_v21 = vld [vmem:[%s18338_s18 + $0xdc8] ss:$324 sps:$4 sm:$0xff]  }
 0x4d8   : > { %11224 = vmatpush2.bf16.msra.mxu1 %v17599_v60  ;;  %11261 = vmatpush2.bf16.msra.mxu0 %v9771_v1  ;;  %v17614_v60 = vld [vmem:[%s18338_s18 + $0x1a68] ss:$324 sps:$4 sm:$0xff]   ;;  %v17626_v20 = vld [vmem:[%s18338_s18 + $0x1050] ss:$324 sps:$4 sm:$0xff]  }
 0x4d9   : > { %v10908_v6 = vpop.f32.mrf.mxu1  ;;  %11225 = vmatprep.subr.bf16.mxu1 %v17607_v35  ;;  %11262 = vmatprep.subr.bf16.mxu0 %v17610_v44  ;;  %v17619_v35 = vld [vmem:[%s18338_s18 + $0x17e4] ss:$324 sps:$4 sm:$0xff]   ;;  %v17622_v44 = vld [vmem:[%s18338_s18 + $0x12dc] ss:$324 sps:$4 sm:$0xff]  }
 0x4db   : > { %v10944_v47 = vpop.f32.mrf.mxu0 }
 0x4dc   : > { %v20240_v41 = vadd.f32 %v10944_v47, %v3248_v3  ;;  %11226 = vmatpush2.bf16.msra.mxu1 %v17605_v25  ;;  %11263 = vmatpush2.bf16.msra.mxu0 %v17608_v57  ;;  %v17617_v25 = vld [vmem:[%s18338_s18 + $0x17e0] ss:$324 sps:$4 sm:$0xff]   ;;  %v17620_v57 = vld [vmem:[%s18338_s18 + $0x12d8] ss:$324 sps:$4 sm:$0xff]   ;;  %v17631_v3 = vld [vmem:[%s18338_s18 + $0xdcc] ss:$324 sps:$4 sm:$0xff]  }
 0x4dd   : > { %v10946_v1 = vpop.f32.mrf.mxu0  ;;  %11227 = vmatprep.subr.bf16.mxu1 %v17613_v48  ;;  %11264 = vmatprep.subr.bf16.mxu0 %v17616_v0  ;;  %v17625_v48 = vld [vmem:[%s18338_s18 + $0x155c] ss:$324 sps:$4 sm:$0xff]   ;;  %v17628_v0 = vld [vmem:[%s18338_s18 + $0x1054] ss:$324 sps:$4 sm:$0xff]   ;;  %v17634_v47 = vld [vmem:[%s18338_s18 + $0x12e4] ss:$324 sps:$4 sm:$0xff]  }
 0x4de   : > { %v20246_v59 = vadd.f32 %v10946_v1, %v3249_v30  ;;  %v17623_v30 = vld [vmem:[%s18338_s18 + $0x1558] ss:$324 sps:$4 sm:$0xff]  }
 0x4df   : > { %v10948_v6 = vpop.f32.mrf.mxu0  ;;  %v17640_v1 = vld [vmem:[%s18338_s18 + $0x105c] ss:$324 sps:$4 sm:$0xff]  }
 0x4e0   : > { %11228 = vmatpush2.bf16.msra.mxu1 %v17611_v4  ;;  %11265 = vmatpush2.bf16.msra.mxu0 %v17614_v60  ;;  %v17632_v4 = vld [vmem:[%s18338_s18 + $0x12e0] ss:$324 sps:$4 sm:$0xff]  }
 0x4e1   : > { %11266 = vmatprep.subr.bf16.mxu0 %v17619_v35  ;;  %11279 = vmatprep.subr.bf16.mxu1 %v17622_v44  ;;  %v10949_v43 = vpop.f32.mrf.mxu0  ;;  %v17637_v60 = vld [vmem:[%s18338_s18 + $0xb44] ss:$324 sps:$4 sm:$0xff]   ;;  %v17638_v44 = vld [vmem:[%s18338_s18 + $0x1058] ss:$324 sps:$4 sm:$0xff]  }
 0x4e2   : > { %v17635_v35 = vld [vmem:[%s18338_s18 + $0xb40] ss:$324 sps:$4 sm:$0xff]   ;;  %v17644_v43 = vld [vmem:[%s18338_s18 + $0xdd0] ss:$324 sps:$4 sm:$0xff]  }
 0x4e3   : > { %11230 = vmatmul.mubr.bf16.vlgmr.msra.gmra.mxu1 %v18717_v13  ;;  %v17643_v6 = vld [vmem:[%s18338_s18 + $0x8bc] ss:$324 sps:$4 sm:$0xff]  }
 0x4e4   : > { %11267 = vmatpush2.bf16.msra.mxu0 %v17617_v25  ;;  %11280 = vmatpush1.bf16.msra.mxu1 %v17620_v57  ;;  %v17646_v25 = vld [vmem:[%s18338_s18 + $0xdd4] ss:$324 sps:$4 sm:$0xff]  }
 0x4e5   : > { %11268 = vmatprep.subr.bf16.mxu0 %v17625_v48  ;;  %11281 = vmatprep.subr.bf16.mxu1 %v17628_v0  ;;  %v17641_v57 = vld [vmem:[%s18338_s18 + $0x8b8] ss:$324 sps:$4 sm:$0xff]   ;;  %v17652_v0 = vld [vmem:[%s18338_s18 + $0xb4c] ss:$324 sps:$4 sm:$0xff]  }
 0x4e6   : > { %15885 = vmatprep.mubr.msk.bf16.mxu1 %vm9552_vm2, %v18638_v9  ;;  %v17649_v48 = vld [vmem:[%s18338_s18 + $0x634] ss:$324 sps:$4 sm:$0xff]  }
 0x4e8   : > { %11269 = vmatpush2.bf16.msra.mxu0 %v17623_v30  ;;  %11282 = vmatpush1.bf16.msra.mxu1 %v17626_v20  ;;  %v17647_v30 = vld [vmem:[%s18338_s18 + $0x630] ss:$324 sps:$4 sm:$0xff]   ;;  %v17650_v20 = vld [vmem:[%s18338_s18 + $0xb48] ss:$324 sps:$4 sm:$0xff]  }
 0x4e9   : > { %11283 = vmatprep.subr.bf16.mxu1 %v17631_v3  ;;  %11320 = vmatprep.subr.bf16.mxu0 %v17634_v47  ;;  %v17655_v3 = vld [vmem:[%s18338_s18 + $0x3ac] ss:$324 sps:$4 sm:$0xff]   ;;  %v17658_v47 = vld [vmem:[%s18338_s18 + $0x8c4] ss:$324 sps:$4 sm:$0xff]  }
 0x4eb   : > { %11271 = vmatmul.mubr.bf16.vlgmr.msra.gmra.mxu0 %v18717_v13 }
 0x4ec   : > { %11284 = vmatpush1.bf16.msra.mxu1 %v17629_v21  ;;  %11321 = vmatpush1.bf16.msra.mxu0 %v17632_v4  ;;  %v17653_v21 = vld [vmem:[%s18338_s18 + $0x3a8] ss:$324 sps:$4 sm:$0xff]   ;;  %v17656_v4 = vld [vmem:[%s18338_s18 + $0x8c0] ss:$324 sps:$4 sm:$0xff]  }
 0x4ed   : > { %11285 = vmatprep.subr.bf16.mxu1 %v17637_v60  ;;  %11322 = vmatprep.subr.bf16.mxu0 %v17640_v1  ;;  %v17661_v60 = vld [vmem:[%s18338_s18 + $0x124] ss:$324 sps:$4 sm:$0xff]   ;;  %v17664_v1 = vld [vmem:[%s18338_s18 + $0x63c] ss:$324 sps:$4 sm:$0xff]  }
 0x4ee   : > { %15886 = vmatprep.mubr.msk.bf16.mxu0 %vm9552_vm2, %v18638_v9 }
 0x4f0   : > { %11286 = vmatpush1.bf16.msra.mxu1 %v17635_v35  ;;  %11323 = vmatpush1.bf16.msra.mxu0 %v17638_v44  ;;  %v17667_v35 = vld [vmem:[%s18338_s18 + $0x1f84] ss:$324 sps:$4 sm:$0xff]  }
 0x4f1   : > { %11287 = vmatprep.subr.bf16.mxu1 %v17643_v6  ;;  %11324 = vmatprep.subr.bf16.mxu0 %v17646_v25  ;;  %v17659_v44 = vld [vmem:[%s18338_s18 + $0x120] ss:$324 sps:$4 sm:$0xff]   ;;  %v17662_v6 = vld [vmem:[%s18338_s18 + $0x638] ss:$324 sps:$4 sm:$0xff]  }
 0x4f2   : > { %v17665_v25 = vld [vmem:[%s18338_s18 + $0x1f80] ss:$324 sps:$4 sm:$0xff]  }
 0x4f4   : > { %11288 = vmatpush1.bf16.msra.mxu1 %v17641_v57  ;;  %11325 = vmatpush1.bf16.msra.mxu0 %v17644_v43  ;;  %v9780_v57 = vand.u32 %v17667_v35, %v18675_v36  ;;  %v17670_v43 = vld [vmem:[%s18338_s18 + $0x3b4] ss:$324 sps:$4 sm:$0xff]   ;;  %v17680_v35 = vld [vmem:[%s18338_s18 + $0x1f88] ss:$324 sps:$4 sm:$0xff]  }
 0x4f5   : > { %11289 = vmatprep.subr.bf16.mxu1 %v17649_v48  ;;  %11326 = vmatprep.subr.bf16.mxu0 %v17652_v0  ;;  %v20289_v48 = vld [vmem:[%s18340_s27 + $0x38] sm:$0xff] }
 0x4f6   : > { %v17668_v0 = vld [vmem:[%s18338_s18 + $0x3b0] ss:$324 sps:$4 sm:$0xff]  }
 0x4f8   : > { %11290 = vmatpush1.bf16.msra.mxu1 %v17647_v30  ;;  %11327 = vmatpush1.bf16.msra.mxu0 %v17650_v20  ;;  %v9777_v30 = vand.u32 %v17665_v25, %v18675_v36  ;;  %v17673_v20 = vld [vmem:[%s18338_s18 + $0x1cfc] ss:$324 sps:$4 sm:$0xff]  }
 0x4f9   : > { %11291 = vmatprep.subr.bf16.mxu1 %v17655_v3  ;;  %11328 = vmatprep.subr.bf16.mxu0 %v17658_v47  ;;  %v17676_v3 = vld [vmem:[%s18338_s18 + $0x12c] ss:$324 sps:$4 sm:$0xff]   ;;  %v21846_v25 = vld [vmem:[#allocation35_spill] sm:$0xff] }
 0x4fa   : > { %v17682_v47 = vld [vmem:[%s18338_s18 + $0x1f8c] ss:$324 sps:$4 sm:$0xff]  }
 0x4fc   : > { %11292 = vmatpush1.bf16.msra.mxu1 %v17653_v21  ;;  %11329 = vmatpush1.bf16.msra.mxu0 %v17656_v4  ;;  %v3016_v21 = vrot.slane %v20289_v48, %v18805_v40  ;;  %v3020_v4 = vrot.slane %v20289_v48, %v18811_v50 }
 0x4fd   : > { %11293 = vmatprep.subr.bf16.mxu1 %v17661_v60  ;;  %11330 = vmatprep.subr.bf16.mxu0 %v17664_v1  ;;  %v17671_v60 = vld [vmem:[%s18338_s18 + $0x1cf8] ss:$324 sps:$4 sm:$0xff]   ;;  %v17674_v1 = vld [vmem:[%s18338_s18 + $0x128] ss:$324 sps:$4 sm:$0xff]  }
 0x4fe   : > { %v3251_v52 = vadd.f32 %v3020_v4, %v21847_v11 }
 0x500   : > { %11294 = vmatpush1.bf16.msra.mxu1 %v17659_v44  ;;  %11331 = vmatpush1.bf16.msra.mxu0 %v17662_v6  ;;  %v17679_v44 = vld [vmem:[%s18338_s18 + $0x1a74] ss:$324 sps:$4 sm:$0xff]   ;;  %v9786_v6 = vand.u32 %v17682_v47, %v18675_v36  ;;  %v17688_v47 = vld [vmem:[%s18338_s18 + $0x1d04] ss:$324 sps:$4 sm:$0xff]  }
 0x501   : > { %11301 = vmatprep.subr.bf16.mxu1 %v9780_v57  ;;  %11332 = vmatprep.subr.bf16.mxu0 %v17670_v43  ;;  %v3250_v57 = vadd.f32 %v3016_v21, %v21846_v25  ;;  %v3024_v21 = vrot.slane %v20289_v48, %v18802_v39  ;;  %v17694_v25 = vld [vmem:[%s18338_s18 + $0x1a7c] ss:$324 sps:$4 sm:$0xff]  }
 0x504   : > { %11302 = vmatpush2.bf16.msra.mxu1 %v9777_v30  ;;  %11333 = vmatpush1.bf16.msra.mxu0 %v17668_v0  ;;  %v17677_v0 = vld [vmem:[%s18338_s18 + $0x1a70] ss:$324 sps:$4 sm:$0xff]   ;;  %v9783_v30 = vand.u32 %v17680_v35, %v18675_v36  ;;  %v17686_v35 = vld [vmem:[%s18338_s18 + $0x1d00] ss:$324 sps:$4 sm:$0xff]  }
 0x505   : > { %11303 = vmatprep.subr.bf16.mxu1 %v17673_v20  ;;  %11334 = vmatprep.subr.bf16.mxu0 %v17676_v3  ;;  %v17685_v3 = vld [vmem:[%s18338_s18 + $0x17ec] ss:$324 sps:$4 sm:$0xff]  }
 0x507   : > { %v10985_v43 = vpop.f32.mrf.mxu1 }
 0x508   : > { %v20307_v15 = vadd.f32 %v10985_v43, %v3250_v57  ;;  %11304 = vmatpush2.bf16.msra.mxu1 %v17671_v60  ;;  %11335 = vmatpush1.bf16.msra.mxu0 %v17674_v1  ;;  %v3028_v60 = vrot.slane %v20289_v48, %v18922_v62  ;;  %v17683_v1 = vld [vmem:[%s18338_s18 + $0x17e8] ss:$324 sps:$4 sm:$0xff]   ;;  %v21848_v57 = vld [vmem:[#allocation34_spill] sm:$0xff] }
 0x509   : > { %v10987_v20 = vpop.f32.mrf.mxu1  ;;  %11305 = vmatprep.subr.bf16.mxu1 %v17679_v44  ;;  %11342 = vmatprep.subr.bf16.mxu0 %v9786_v6  ;;  %v17691_v6 = vld [vmem:[%s18338_s18 + $0x1564] ss:$324 sps:$4 sm:$0xff]  }
 0x50a   : > { %v20315_v11 = vadd.f32 %v10987_v20, %v3251_v52  ;;  %v3252_v52 = vadd.f32 %v3024_v21, %v21848_v57  ;;  %v21849_v20 = vld [vmem:[#allocation36_spill] sm:$0xff] }
 0x50b   : > { %v10989_v4 = vpop.f32.mrf.mxu1 }
 0x50c   : > { %11306 = vmatpush2.bf16.msra.mxu1 %v17677_v0  ;;  %11343 = vmatpush2.bf16.msra.mxu0 %v9783_v30  ;;  %v3253_v4 = vadd.f32 %v3028_v60, %v21849_v20  ;;  %v17689_v0 = vld [vmem:[%s18338_s18 + $0x1560] ss:$324 sps:$4 sm:$0xff]   ;;  %v17692_v30 = vld [vmem:[%s18338_s18 + $0x1a78] ss:$324 sps:$4 sm:$0xff]   ;;  %v17695_v60 = vld [vmem:[%s18338_s18 + $0x17f0] ss:$324 sps:$4 sm:$0xff]  }
 0x50d   : > { %v10990_v44 = vpop.f32.mrf.mxu1  ;;  %11307 = vmatprep.subr.bf16.mxu1 %v17685_v3  ;;  %11344 = vmatprep.subr.bf16.mxu0 %v17688_v47  ;;  %v17697_v47 = vld [vmem:[%s18338_s18 + $0x17f4] ss:$324 sps:$4 sm:$0xff]   ;;  %v17709_v20 = vld [vmem:[%s18338_s18 + $0xddc] ss:$324 sps:$4 sm:$0xff]  }
 0x50e   : > { %v17700_v44 = vld [vmem:[%s18338_s18 + $0x12ec] ss:$324 sps:$4 sm:$0xff]  }
 0x50f   : > { %v11026_v43 = vpop.f32.mrf.mxu0 }
 0x510   : > { %v20325_v32 = vadd.f32 %v11026_v43, %v3252_v52  ;;  %11308 = vmatpush2.bf16.msra.mxu1 %v17683_v1  ;;  %11345 = vmatpush2.bf16.msra.mxu0 %v17686_v35  ;;  %v17698_v1 = vld [vmem:[%s18338_s18 + $0x12e8] ss:$324 sps:$4 sm:$0xff]   ;;  %v17704_v43 = vld [vmem:[%s18338_s18 + $0x1060] ss:$324 sps:$4 sm:$0xff]  }
 0x511   : > { %v11028_v3 = vpop.f32.mrf.mxu0  ;;  %11309 = vmatprep.subr.bf16.mxu1 %v17691_v6  ;;  %11346 = vmatprep.subr.bf16.mxu0 %v17694_v25  ;;  %v17703_v6 = vld [vmem:[%s18338_s18 + $0x156c] ss:$324 sps:$4 sm:$0xff]   ;;  %v17706_v25 = vld [vmem:[%s18338_s18 + $0x1064] ss:$324 sps:$4 sm:$0xff]  }
 0x512   : > { %v20331_v21 = vadd.f32 %v11028_v3, %v3253_v4  ;;  %v17701_v52 = vld [vmem:[%s18338_s18 + $0x1568] ss:$324 sps:$4 sm:$0xff]   ;;  %v17712_v4 = vld [vmem:[%s18338_s18 + $0x12f4] ss:$324 sps:$4 sm:$0xff]  }
 0x513   : > { %v11030_v57 = vpop.f32.mrf.mxu0  ;;  %v17715_v3 = vld [vmem:[%s18338_s18 + $0xb54] ss:$324 sps:$4 sm:$0xff]  }
 0x514   : > { %11310 = vmatpush2.bf16.msra.mxu1 %v17689_v0  ;;  %11347 = vmatpush2.bf16.msra.mxu0 %v17692_v30  ;;  %v17707_v0 = vld [vmem:[%s18338_s18 + $0xdd8] ss:$324 sps:$4 sm:$0xff]   ;;  %v17710_v30 = vld [vmem:[%s18338_s18 + $0x12f0] ss:$324 sps:$4 sm:$0xff]   ;;  %v17716_v57 = vld [vmem:[%s18338_s18 + $0x1068] ss:$324 sps:$4 sm:$0xff]  }
 0x515   : > { %11348 = vmatprep.subr.bf16.mxu0 %v17697_v47  ;;  %11361 = vmatprep.subr.bf16.mxu1 %v17700_v44  ;;  %v11031_v35 = vpop.f32.mrf.mxu0  ;;  %v17718_v47 = vld [vmem:[%s18338_s18 + $0x106c] ss:$324 sps:$4 sm:$0xff]  }
 0x516   : > { %v17713_v44 = vld [vmem:[%s18338_s18 + $0xb50] ss:$324 sps:$4 sm:$0xff]   ;;  %v17719_v35 = vld [vmem:[%s18338_s18 + $0x8c8] ss:$324 sps:$4 sm:$0xff]  }
 0x517   : > { %11312 = vmatmul.mubr.bf16.vlgmr.msra.gmra.mxu1 %v18717_v13 }
 0x518   : > { %11349 = vmatpush2.bf16.msra.mxu0 %v17695_v60  ;;  %11362 = vmatpush1.bf16.msra.mxu1 %v17698_v1  ;;  %v17721_v60 = vld [vmem:[%s18338_s18 + $0x8cc] ss:$324 sps:$4 sm:$0xff]   ;;  %v17724_v1 = vld [vmem:[%s18338_s18 + $0xde4] ss:$324 sps:$4 sm:$0xff]  }
 0x519   : > { %11350 = vmatprep.subr.bf16.mxu0 %v17703_v6  ;;  %11363 = vmatprep.subr.bf16.mxu1 %v17706_v25  ;;  %v17722_v6 = vld [vmem:[%s18338_s18 + $0xde0] ss:$324 sps:$4 sm:$0xff]  }
 0x51a   : > { %15887 = vmatprep.mubr.msk.bf16.mxu1 %vm9552_vm2, %v18638_v9  ;;  %v17727_v25 = vld [vmem:[%s18338_s18 + $0x644] ss:$324 sps:$4 sm:$0xff]  }
 0x51c   : > { %11351 = vmatpush2.bf16.msra.mxu0 %v17701_v52  ;;  %11364 = vmatpush1.bf16.msra.mxu1 %v17704_v43  ;;  %v17730_v52 = vld [vmem:[%s18338_s18 + $0xb5c] ss:$324 sps:$4 sm:$0xff]  }
 0x51d   : > { %11365 = vmatprep.subr.bf16.mxu1 %v17709_v20  ;;  %11402 = vmatprep.subr.bf16.mxu0 %v17712_v4  ;;  %v17725_v43 = vld [vmem:[%s18338_s18 + $0x640] ss:$324 sps:$4 sm:$0xff]   ;;  %v17728_v20 = vld [vmem:[%s18338_s18 + $0xb58] ss:$324 sps:$4 sm:$0xff]  }
 0x51e   : > { %v17733_v4 = vld [vmem:[%s18338_s18 + $0x3bc] ss:$324 sps:$4 sm:$0xff]  }
 0x51f   : > { %11353 = vmatmul.mubr.bf16.vlgmr.msra.gmra.mxu0 %v18717_v13 }
 0x520   : > { %11366 = vmatpush1.bf16.msra.mxu1 %v17707_v0  ;;  %11403 = vmatpush1.bf16.msra.mxu0 %v17710_v30  ;;  %v17736_v0 = vld [vmem:[%s18338_s18 + $0x8d4] ss:$324 sps:$4 sm:$0xff]  }
 0x521   : > { %11367 = vmatprep.subr.bf16.mxu1 %v17715_v3  ;;  %11404 = vmatprep.subr.bf16.mxu0 %v17718_v47  ;;  %v17731_v30 = vld [vmem:[%s18338_s18 + $0x3b8] ss:$324 sps:$4 sm:$0xff]   ;;  %v17734_v3 = vld [vmem:[%s18338_s18 + $0x8d0] ss:$324 sps:$4 sm:$0xff]  }
 0x522   : > { %15888 = vmatprep.mubr.msk.bf16.mxu0 %vm9552_vm2, %v18638_v9  ;;  %v17739_v47 = vld [vmem:[%s18338_s18 + $0x134] ss:$324 sps:$4 sm:$0xff]  }
 0x524   : > { %11368 = vmatpush1.bf16.msra.mxu1 %v17713_v44  ;;  %11405 = vmatpush1.bf16.msra.mxu0 %v17716_v57  ;;  %v17742_v44 = vld [vmem:[%s18338_s18 + $0x64c] ss:$324 sps:$4 sm:$0xff]   ;;  %v17745_v57 = vld [vmem:[%s18338_s18 + $0x1f94] ss:$324 sps:$4 sm:$0xff]  }
 0x525   : > { %11369 = vmatprep.subr.bf16.mxu1 %v17721_v60  ;;  %11406 = vmatprep.subr.bf16.mxu0 %v17724_v1  ;;  %v17737_v60 = vld [vmem:[%s18338_s18 + $0x130] ss:$324 sps:$4 sm:$0xff]   ;;  %v17740_v1 = vld [vmem:[%s18338_s18 + $0x648] ss:$324 sps:$4 sm:$0xff]  }
 0x528   : > { %11370 = vmatpush1.bf16.msra.mxu1 %v17719_v35  ;;  %11407 = vmatpush1.bf16.msra.mxu0 %v17722_v6  ;;  %v17743_v35 = vld [vmem:[%s18338_s18 + $0x1f90] ss:$324 sps:$4 sm:$0xff]   ;;  %v9792_v6 = vand.u32 %v17745_v57, %v18675_v36  ;;  %v17758_v57 = vld [vmem:[%s18338_s18 + $0x1f98] ss:$324 sps:$4 sm:$0xff]  }
 0x529   : > { %11371 = vmatprep.subr.bf16.mxu1 %v17727_v25  ;;  %11408 = vmatprep.subr.bf16.mxu0 %v17730_v52  ;;  %v17748_v25 = vld [vmem:[%s18338_s18 + $0x3c4] ss:$324 sps:$4 sm:$0xff]  }
 0x52a   : > { %v17746_v52 = vld [vmem:[%s18338_s18 + $0x3c0] ss:$324 sps:$4 sm:$0xff]  }
 0x52c   : > { %11372 = vmatpush1.bf16.msra.mxu1 %v17725_v43  ;;  %11409 = vmatpush1.bf16.msra.mxu0 %v17728_v20  ;;  %v9789_v43 = vand.u32 %v17743_v35, %v18675_v36  ;;  %v17751_v20 = vld [vmem:[%s18338_s18 + $0x1d0c] ss:$324 sps:$4 sm:$0xff]   ;;  %v21850_v35 = vld [vmem:[#allocation39_spill] sm:$0xff] }
 0x52d   : > { %11373 = vmatprep.subr.bf16.mxu1 %v17733_v4  ;;  %11410 = vmatprep.subr.bf16.mxu0 %v17736_v0  ;;  %v17754_v4 = vld [vmem:[%s18338_s18 + $0x13c] ss:$324 sps:$4 sm:$0xff]  }
 0x52e   : > { %v17760_v0 = vld [vmem:[%s18338_s18 + $0x1f9c] ss:$324 sps:$4 sm:$0xff]  }
 0x530   : > { %11374 = vmatpush1.bf16.msra.mxu1 %v17731_v30  ;;  %11411 = vmatpush1.bf16.msra.mxu0 %v17734_v3  ;;  %v3032_v30 = vrot.slane %v20289_v48, %v18947_v16  ;;  %v3036_v3 = vrot.slane %v20289_v48, %v18954_v2 }
 0x531   : > { %11375 = vmatprep.subr.bf16.mxu1 %v17739_v47  ;;  %11412 = vmatprep.subr.bf16.mxu0 %v17742_v44  ;;  %v17749_v47 = vld [vmem:[%s18338_s18 + $0x1d08] ss:$324 sps:$4 sm:$0xff]   ;;  %v17752_v44 = vld [vmem:[%s18338_s18 + $0x138] ss:$324 sps:$4 sm:$0xff]  }
 0x532   : > { %v3255_v23 = vadd.f32 %v3036_v3, %v21851_v37 }
 0x534   : > { %11376 = vmatpush1.bf16.msra.mxu1 %v17737_v60  ;;  %11413 = vmatpush1.bf16.msra.mxu0 %v17740_v1  ;;  %v17757_v60 = vld [vmem:[%s18338_s18 + $0x1a84] ss:$324 sps:$4 sm:$0xff]   ;;  %v9798_v1 = vand.u32 %v17760_v0, %v18675_v36  ;;  %v17766_v0 = vld [vmem:[%s18338_s18 + $0x1d14] ss:$324 sps:$4 sm:$0xff]  }
 0x535   : > { %11383 = vmatprep.subr.bf16.mxu1 %v9792_v6  ;;  %11414 = vmatprep.subr.bf16.mxu0 %v17748_v25  ;;  %v3254_v6 = vadd.f32 %v3032_v30, %v21850_v35  ;;  %v3040_v30 = vrot.slane %v20289_v48, %v19232_v56  ;;  %v17772_v35 = vld [vmem:[%s18338_s18 + $0x1a8c] ss:$324 sps:$4 sm:$0xff]  }
 0x538   : > { %11384 = vmatpush2.bf16.msra.mxu1 %v9789_v43  ;;  %11415 = vmatpush1.bf16.msra.mxu0 %v17746_v52  ;;  %v17755_v52 = vld [vmem:[%s18338_s18 + $0x1a80] ss:$324 sps:$4 sm:$0xff]   ;;  %v9795_v43 = vand.u32 %v17758_v57, %v18675_v36  ;;  %v17764_v57 = vld [vmem:[%s18338_s18 + $0x1d10] ss:$324 sps:$4 sm:$0xff]  }
 0x539   : > { %11385 = vmatprep.subr.bf16.mxu1 %v17751_v20  ;;  %11416 = vmatprep.subr.bf16.mxu0 %v17754_v4  ;;  %v17763_v4 = vld [vmem:[%s18338_s18 + $0x17fc] ss:$324 sps:$4 sm:$0xff]  }
 0x53b   : > { %v11067_v25 = vpop.f32.mrf.mxu1 }
 0x53c   : > { %v20389_v58 = vadd.f32 %v11067_v25, %v3254_v6  ;;  %11386 = vmatpush2.bf16.msra.mxu1 %v17749_v47  ;;  %11417 = vmatpush1.bf16.msra.mxu0 %v17752_v44  ;;  %v3044_v47 = vrot.slane %v20289_v48, %v19236_v10  ;;  %v17761_v44 = vld [vmem:[%s18338_s18 + $0x17f8] ss:$324 sps:$4 sm:$0xff]  }
 0x53d   : > { %v11069_v20 = vpop.f32.mrf.mxu1  ;;  %11387 = vmatprep.subr.bf16.mxu1 %v17757_v60  ;;  %11424 = vmatprep.subr.bf16.mxu0 %v9798_v1  ;;  %v17769_v1 = vld [vmem:[%s18338_s18 + $0x1574] ss:$324 sps:$4 sm:$0xff]  }
 0x53e   : > { %v20397_v37 = vadd.f32 %v11069_v20, %v3255_v23  ;;  %v21853_v6 = vld [vmem:[#allocation38_spill] sm:$0xff]  ;;  %v21854_v20 = vld [vmem:[#allocation40_spill] sm:$0xff] }
 0x53f   : > { %v11071_v3 = vpop.f32.mrf.mxu1  ;;  %v3256_v25 = vadd.f32 %v3040_v30, %v21853_v6  ;;  %v17776_v6 = vld [vmem:[%s18338_s18 + $0x12f8] ss:$324 sps:$4 sm:$0xff]  }
 0x540   : > { %21852 = vst [vmem:[#allocation17_spill] sm:$0xff] %v20397_v37  ;;  %11388 = vmatpush2.bf16.msra.mxu1 %v17755_v52  ;;  %11425 = vmatpush2.bf16.msra.mxu0 %v9795_v43  ;;  %v3257_v3 = vadd.f32 %v3044_v47, %v21854_v20  ;;  %v17767_v52 = vld [vmem:[%s18338_s18 + $0x1570] ss:$324 sps:$4 sm:$0xff]   ;;  %v17770_v43 = vld [vmem:[%s18338_s18 + $0x1a88] ss:$324 sps:$4 sm:$0xff]  }
 0x541   : > { %v11072_v60 = vpop.f32.mrf.mxu1  ;;  %11389 = vmatprep.subr.bf16.mxu1 %v17763_v4  ;;  %11426 = vmatprep.subr.bf16.mxu0 %v17766_v0  ;;  %v17775_v4 = vld [vmem:[%s18338_s18 + $0x1804] ss:$324 sps:$4 sm:$0xff]  }
 0x542   : > { %v17773_v47 = vld [vmem:[%s18338_s18 + $0x1800] ss:$324 sps:$4 sm:$0xff]  }
 0x543   : > { %v11108_v23 = vpop.f32.mrf.mxu0 }
 0x544   : > { %v20407_v48 = vadd.f32 %v11108_v23, %v3256_v25  ;;  %11390 = vmatpush2.bf16.msra.mxu1 %v17761_v44  ;;  %11427 = vmatpush2.bf16.msra.mxu0 %v17764_v57  ;;  %v21857_v44 = vmov 0   ;;  %v17779_v25 = vld [vmem:[%s18338_s18 + $0x157c] ss:$324 sps:$4 sm:$0xff]   ;;  %v11595_v23 = vld [vmem:[%s20218_s17 + $0xd8] sm:$0xff] }
 0x545   : > { %v11110_v60 = vpop.f32.mrf.mxu0  ;;  %11391 = vmatprep.subr.bf16.mxu1 %v17769_v1  ;;  %11428 = vmatprep.subr.bf16.mxu0 %v17772_v35  ;;  %v17777_v1 = vld [vmem:[%s18338_s18 + $0x1578] ss:$324 sps:$4 sm:$0xff]   ;;  %v17780_v35 = vld [vmem:[%s18338_s18 + $0x1070] ss:$324 sps:$4 sm:$0xff]   ;;  %v15920_v20 = vcombine.high %v11595_v23, %v11595_v23 }
 0x546   : > { %21855 = vst [vmem:[#allocation15_spill] sm:$0xff] %v20407_v48  ;;  %v20412_v0 = vadd.f32 %v11110_v60, %v3257_v3  ;;  %v15919_v3 = vcombine.low %v11595_v23, %v11595_v23  ;;  %v17786_v60 = vld [vmem:[%s20218_s17 + $0x4] ss:$108 sps:$4 sm:$0xff]  }
 0x547   : > { %v11112_v30 = vpop.f32.mrf.mxu0  ;;  %v17802_v48 = vld [vmem:[%s18338_s18 + $0x1a90] ss:$324 sps:$4 sm:$0xff]  }
 0x548   : > { %21856 = vst [vmem:[#allocation16_spill] sm:$0xff] %v20412_v0  ;;  %11392 = vmatpush2.bf16.msra.mxu1 %v17767_v52  ;;  %11429 = vmatpush2.bf16.msra.mxu0 %v17770_v43  ;;  %v17782_v52 = vld [vmem:[%s18338_s18 + $0xde8] ss:$324 sps:$4 sm:$0xff]   ;;  %v11830_v43 = vsel %vm11828_vm6, %v15919_v3, 0 }
 0x549   : > { %11430 = vmatprep.subr.bf16.mxu0 %v17775_v4  ;;  %11443 = vmatprep.subr.bf16.mxu1 %v21857_v44  ;;  %v11113_v57 = vpop.f32.mrf.mxu0  ;;  %v11596_v4 = vld [vmem:[%s20218_s17 + $0xe0] sm:$0xff]  ;;  %v17795_v3 = vld [vmem:[%s20218_s17 + $0x8] ss:$108 sps:$4 sm:$0xff]  }
 0x54a   : > { %v17784_v30 = vld [vmem:[%s20218_s17] ss:$108 sps:$4 sm:$0xff]  }
 0x54b   : > { %11394 = vmatmul.mubr.bf16.vlgmr.msra.gmra.mxu1 %v18717_v13  ;;  %v20439_v57 = vld [vmem:[%s21652_s2] sm:$0xff]  }
 0x54c   : > { %11431 = vmatpush2.bf16.msra.mxu0 %v17773_v47  ;;  %11444 = vmatpush1.bf16.msra.mxu1 %v17776_v6  ;;  %v17787_v47 = vld [vmem:[%s18338_s18 + $0xb60] ss:$324 sps:$4 sm:$0xff]   ;;  %v15921_v6 = vcombine.low %v11596_v4, %v11596_v4 }
 0x54d   : > { %11432 = vmatprep.subr.bf16.mxu0 %v17779_v25  ;;  %11445 = vmatprep.subr.bf16.mxu1 %v21857_v44  ;;  %v17789_v25 = vld [vmem:[%s18338_s18 + $0x8d8] ss:$324 sps:$4 sm:$0xff]  }
 0x54e   : > { %15889 = vmatprep.mubr.msk.bf16.mxu1 %vm9552_vm2, %v18638_v9  ;;  %v15922_v9 = vcombine.high %v11596_v4, %v11596_v4  ;;  %v11836_v23 = vsel %vm11828_vm6, %v15921_v6, 0  ;;  %v17798_v4 = vld [vmem:[%s18338_s18 + $0x140] ss:$324 sps:$4 sm:$0xff]  }
 0x54f   : > { %v20469_v6 = vld [vmem:[%s18340_s27 + $0x40] sm:$0xff] }
 0x550   : > { %11433 = vmatpush2.bf16.msra.mxu0 %v17777_v1  ;;  %11446 = vmatpush1.bf16.msra.mxu1 %v17780_v35  ;;  %v17797_v1 = vld [vmem:[%s20218_s17 + $0xc] ss:$108 sps:$4 sm:$0xff]  }
 0x551   : > { %11447 = vmatprep.subr.bf16.mxu1 %v21857_v44  ;;  %15946 = vmatprep.subr.msk.bf16.mxu0 %vm11828_vm6, %v15920_v20  ;;  %v11597_v35 = vld [vmem:[%s20218_s17 + $0xe8] sm:$0xff] }
 0x552   : > { %v17790_v20 = vld [vmem:[%s18338_s18 + $0x650] ss:$324 sps:$4 sm:$0xff]  }
 0x553   : > { %11435 = vmatmul.mubr.bf16.vlgmr.msra.gmra.mxu0 %v18717_v13 }
 0x554   : > { %11448 = vmatpush1.bf16.msra.mxu1 %v17782_v52  ;;  %11923 = vmatpush1.bf16.msra.mxu0 %v11830_v43  ;;  %v15924_v52 = vcombine.high %v11597_v35, %v11597_v35  ;;  %v20456_v43 = vld [vmem:[%s21652_s2 + $0x8] ss:$0 sps:$4 sm:$0xff]  }
 0x555   : > { %11449 = vmatprep.subr.bf16.mxu1 %v21857_v44  ;;  %11924 = vmatprep.subr.bf16.mxu0 %v17786_v60  ;;  %v17793_v60 = vld [vmem:[%s18338_s18 + $0x3c8] ss:$324 sps:$4 sm:$0xff]  }
 0x556   : > { %11942 = vmatprep.mubr.bf16.mxu0 %v21857_v44 }
 0x558   : > { %11450 = vmatpush1.bf16.msra.mxu1 %v17787_v47  ;;  %11925 = vmatpush1.bf16.msra.mxu0 %v17784_v30  ;;  %v17799_v30 = vld [vmem:[%s18338_s18 + $0x1fa0] ss:$324 sps:$4 sm:$0xff]   ;;  %v15923_v47 = vcombine.low %v11597_v35, %v11597_v35  ;;  %v3052_v35 = vrot.slane %v20469_v6, %v18811_v50 }
 0x559   : > { %11451 = vmatprep.subr.bf16.mxu1 %v21857_v44  ;;  %15949 = vmatprep.subr.msk.bf16.mxu0 %vm11828_vm6, %v15922_v9  ;;  %v9801_v9 = vand.u32 %v17799_v30, %v18675_v36  ;;  %v17800_v36 = vld [vmem:[%s18338_s18 + $0x1d18] ss:$324 sps:$4 sm:$0xff]  }
 0x55b   : > { %15947 = vmatmul.mubr.msk.bf16.vlgmr.msra.gmra.mxu0 %vm11821_vm7, %v20439_v57 }
 0x55c   : > { %11452 = vmatpush1.bf16.msra.mxu1 %v17789_v25  ;;  %11952 = vmatprep.mubr.bf16.mxu0 %v21857_v44  ;;  %v3048_v25 = vrot.slane %v20469_v6, %v18805_v40 }
 0x55d   : > { %11453 = vmatprep.subr.bf16.mxu1 %v21857_v44  ;;  %11974 = vmatpush1.bf16.msra.mxu0 %v11836_v23  ;;  %v11842_v23 = vsel %vm11828_vm6, %v15923_v47, 0  ;;  %v21859_v47 = vld [vmem:[#allocation45_spill] sm:$0xff] }
 0x55e   : > { %11975 = vmatprep.subr.bf16.mxu0 %v17797_v1  ;;  %v17806_v1 = vld [vmem:[%s20218_s17 + $0x14] ss:$108 sps:$4 sm:$0xff]   ;;  %v3259_v31 = vadd.f32 %v3052_v35, %v21859_v47 }
 0x55f   : > { %v17807_v35 = vld [vmem:[%s18338_s18 + $0x1808] ss:$324 sps:$4 sm:$0xff]  }
 0x560   : > { %11454 = vmatpush1.bf16.msra.mxu1 %v17790_v20  ;;  %v11599_v20 = vld [vmem:[%s20218_s17 + $0xf8] sm:$0xff] }
 0x561   : > { %11455 = vmatprep.subr.bf16.mxu1 %v21857_v44  ;;  %11976 = vmatpush1.bf16.msra.mxu0 %v17795_v3  ;;  %v17804_v3 = vld [vmem:[%s20218_s17 + $0x10] ss:$108 sps:$4 sm:$0xff]  }
 0x562   : > { %15952 = vmatprep.subr.msk.bf16.mxu0 %vm11828_vm6, %v15924_v52  ;;  %v21858_v52 = vld [vmem:[#allocation43_spill] sm:$0xff] }
 0x563   : > { %15948 = vmatmul.mubr.msk.bf16.gmra.mxu0 %vm11821_vm7, %v20456_v43 }
 0x564   : > { %11456 = vmatpush1.bf16.msra.mxu1 %v17793_v60  ;;  %11993 = vmatprep.mubr.bf16.mxu0 %v21857_v44  ;;  %v3258_v60 = vadd.f32 %v3048_v25, %v21858_v52  ;;  %v11598_v52 = vld [vmem:[%s20218_s17 + $0xf0] sm:$0xff] }
 0x565   : > { %11457 = vmatprep.subr.bf16.mxu1 %v21857_v44 }
 0x568   : > { %11458 = vmatpush1.bf16.msra.mxu1 %v17798_v4  ;;  %v15928_v4 = vcombine.high %v11599_v20, %v11599_v20 }
 0x569   : > { %11465 = vmatprep.subr.bf16.mxu1 %v21857_v44 }
 0x56b   : > { %15950 = vmatmul.mubr.msk.bf16.vlgmr.msra.gmra.mxu0 %vm11821_vm7, %v20439_v57 }
 0x56c   : > { %11466 = vmatpush2.bf16.msra.mxu1 %v9801_v9  ;;  %12003 = vmatprep.mubr.bf16.mxu0 %v21857_v44 }
 0x56d   : > { %11467 = vmatprep.subr.bf16.mxu1 %v21857_v44  ;;  %12025 = vmatpush1.bf16.msra.mxu0 %v11842_v23  ;;  %v3056_v23 = vrot.slane %v20469_v6, %v18802_v39 }
 0x56e   : > { %12026 = vmatprep.subr.bf16.mxu0 %v17806_v1  ;;  %v3060_v1 = vrot.slane %v20469_v6, %v18922_v62 }
 0x56f   : > { %v11149_v30 = vpop.f32.mrf.mxu1 }
 0x570   : > { %v20487_v0 = vadd.f32 %v11149_v30, %v3258_v60  ;;  %11468 = vmatpush2.bf16.msra.mxu1 %v17800_v36  ;;  %v15927_v60 = vcombine.low %v11599_v20, %v11599_v20  ;;  %v21863_v30 = vld [vmem:[#allocation44_spill] sm:$0xff]  ;;  %v17818_v20 = vld [vmem:[%s20218_s17 + $0x24] ss:$108 sps:$4 sm:$0xff]  }
 0x571   : > { %v11151_v9 = vpop.f32.mrf.mxu1  ;;  %11469 = vmatprep.subr.bf16.mxu1 %v21857_v44  ;;  %12027 = vmatpush1.bf16.msra.mxu0 %v17804_v3  ;;  %v3261_v47 = vadd.f32 %v3060_v1, %v21863_v30 }
 0x572   : > { %21860 = vst [vmem:[#allocation19_spill] sm:$0xff] %v20487_v0  ;;  %v20493_v37 = vadd.f32 %v11151_v9, %v3259_v31  ;;  %15958 = vmatprep.subr.msk.bf16.mxu0 %vm11828_vm6, %v15928_v4  ;;  %v21862_v31 = vld [vmem:[#allocation42_spill] sm:$0xff] }
 0x573   : > { %v11153_v25 = vpop.f32.mrf.mxu1  ;;  %15951 = vmatmul.mubr.msk.bf16.gmra.mxu0 %vm11821_vm7, %v20456_v43  ;;  %v3260_v3 = vadd.f32 %v3056_v23, %v21862_v31  ;;  %v11854_v23 = vsel %vm11828_vm6, %v15927_v60, 0  ;;  %v11600_v60 = vld [vmem:[%s20218_s17 + $0x100] sm:$0xff] }
 0x574   : > { %21861 = vst [vmem:[#allocation21_spill] sm:$0xff] %v20493_v37  ;;  %11470 = vmatpush2.bf16.msra.mxu1 %v17802_v48  ;;  %12044 = vmatprep.mubr.bf16.mxu0 %v21857_v44  ;;  %v17808_v25 = vld [vmem:[%s18338_s18 + $0x1580] ss:$324 sps:$4 sm:$0xff]   ;;  %v15925_v37 = vcombine.low %v11598_v52, %v11598_v52 }
 0x575   : > { %v11154_v36 = vpop.f32.mrf.mxu1  ;;  %11471 = vmatprep.subr.bf16.mxu1 %v21857_v44 }
 0x576   : > { %v15926_v36 = vcombine.high %v11598_v52, %v11598_v52  ;;  %v17813_v52 = vld [vmem:[%s20218_s17 + $0x1c] ss:$108 sps:$4 sm:$0xff]  }
 0x577   : > { %v11190_v4 = vpop.f32.mrf.mxu0 }
 0x578   : > { %v20506_v9 = vadd.f32 %v11190_v4, %v3260_v3  ;;  %11472 = vmatpush2.bf16.msra.mxu1 %v17807_v35  ;;  %v11601_v35 = vld [vmem:[%s20218_s17 + $0x108] sm:$0xff]  ;;  %v11848_v3 = vsel %vm11828_vm6, %v15925_v37, 0 }
 0x579   : > { %v11192_v48 = vpop.f32.mrf.mxu0  ;;  %11473 = vmatprep.subr.bf16.mxu1 %v21857_v44  ;;  %v17816_v4 = vld [vmem:[%s20218_s17 + $0x20] ss:$108 sps:$4 sm:$0xff]   ;;  %v15932_v30 = vcombine.high %v11601_v35, %v11601_v35 }
 0x57a   : > { %v20510_v0 = vadd.f32 %v11192_v48, %v3261_v47  ;;  %v17811_v47 = vld [vmem:[%s20218_s17 + $0x18] ss:$108 sps:$4 sm:$0xff]   ;;  %v15929_v48 = vcombine.low %v11600_v60, %v11600_v60 }
 0x57b   : > { %15953 = vmatmul.mubr.msk.bf16.vlgmr.msra.gmra.mxu0 %vm11821_vm7, %v20439_v57  ;;  %v11194_v1 = vpop.f32.mrf.mxu0  ;;  %v17823_v37 = vld [vmem:[%s20218_s17 + $0x2c] ss:$108 sps:$4 sm:$0xff]  }
 0x57c   : > { %11474 = vmatpush2.bf16.msra.mxu1 %v17808_v25  ;;  %12054 = vmatprep.mubr.bf16.mxu0 %v21857_v44  ;;  %v15930_v25 = vcombine.high %v11600_v60, %v11600_v60 }
 0x57d   : > { %15955 = vmatprep.subr.msk.bf16.mxu1 %vm11828_vm6, %v15926_v36  ;;  %v11195_v31 = vpop.f32.mrf.mxu0  ;;  %12127 = vmatpush1.bf16.msra.mxu0 %v11854_v23  ;;  %v15931_v36 = vcombine.low %v11601_v35, %v11601_v35  ;;  %v11602_v23 = vld [vmem:[%s20218_s17 + $0x110] sm:$0xff] }
 0x57e   : > { %12128 = vmatprep.subr.bf16.mxu0 %v17818_v20  ;;  %v17821_v20 = vld [vmem:[%s20218_s17 + $0x28] ss:$108 sps:$4 sm:$0xff]   ;;  %v15934_v1 = vcombine.high %v11602_v23, %v11602_v23  ;;  %v17826_v35 = vld [vmem:[%s20218_s17 + $0x30] ss:$108 sps:$4 sm:$0xff]   ;;  %v15933_v60 = vcombine.low %v11602_v23, %v11602_v23 }
 0x57f   : > { %11476 = vmatmul.mubr.bf16.vlgmr.msra.gmra.mxu1 %v18717_v13  ;;  %v11860_v13 = vsel %vm11828_vm6, %v15929_v48, 0  ;;  %v11866_v31 = vsel %vm11828_vm6, %v15931_v36, 0  ;;  %v11604_v48 = vld [vmem:[%s20218_s17 + $0x120] sm:$0xff] }
 0x580   : > { %12076 = vmatpush1.bf16.msra.mxu1 %v11848_v3  ;;  %12095 = vmatprep.mubr.bf16.mxu1 %v21857_v44  ;;  %v17828_v3 = vld [vmem:[%s20218_s17 + $0x34] ss:$108 sps:$4 sm:$0xff]   ;;  %v17838_v23 = vld [vmem:[%s20218_s17 + $0x44] ss:$108 sps:$4 sm:$0xff]  }
 0x581   : > { %12077 = vmatprep.subr.bf16.mxu1 %v17813_v52  ;;  %12129 = vmatpush1.bf16.msra.mxu0 %v17816_v4  ;;  %v11603_v52 = vld [vmem:[%s20218_s17 + $0x118] sm:$0xff] }
 0x582   : > { %15964 = vmatprep.subr.msk.bf16.mxu0 %vm11828_vm6, %v15932_v30  ;;  %v15936_v4 = vcombine.high %v11603_v52, %v11603_v52  ;;  %v11872_v30 = vsel %vm11828_vm6, %v15933_v60, 0 }
 0x583   : > { %15954 = vmatmul.mubr.msk.bf16.gmra.mxu0 %vm11821_vm7, %v20456_v43 }
 0x584   : > { %12078 = vmatpush1.bf16.msra.mxu1 %v17811_v47  ;;  %12146 = vmatprep.mubr.bf16.mxu0 %v21857_v44  ;;  %v17833_v47 = vld [vmem:[%s20218_s17 + $0x3c] ss:$108 sps:$4 sm:$0xff]  }
 0x585   : > { %15961 = vmatprep.subr.msk.bf16.mxu1 %vm11828_vm6, %v15930_v25  ;;  %v15935_v25 = vcombine.low %v11603_v52, %v11603_v52  ;;  %v3068_v52 = vrot.slane %v20469_v6, %v18954_v2 }
 0x587   : > { %15956 = vmatmul.mubr.msk.bf16.vlgmr.msra.gmra.mxu1 %vm11821_vm7, %v20439_v57  ;;  %v11878_v36 = vsel %vm11828_vm6, %v15935_v25, 0 }
 0x588   : > { %12178 = vmatpush1.bf16.msra.mxu1 %v11860_v13  ;;  %12105 = vmatprep.mubr.bf16.mxu1 %v21857_v44  ;;  %v17831_v13 = vld [vmem:[%s20218_s17 + $0x38] ss:$108 sps:$4 sm:$0xff]  }
 0x589   : > { %12179 = vmatprep.subr.bf16.mxu1 %v17823_v37  ;;  %v15938_v37 = vcombine.high %v11604_v48, %v11604_v48 }
 0x58b   : > { %15959 = vmatmul.mubr.msk.bf16.vlgmr.msra.gmra.mxu0 %vm11821_vm7, %v20439_v57 }
 0x58c   : > { %12180 = vmatpush1.bf16.msra.mxu1 %v17821_v20  ;;  %12156 = vmatprep.mubr.bf16.mxu0 %v21857_v44  ;;  %v11605_v20 = vld [vmem:[%s20218_s17 + $0x128] sm:$0xff] }
 0x58d   : > { %12229 = vmatpush1.bf16.msra.mxu0 %v11866_v31  ;;  %15967 = vmatprep.subr.msk.bf16.mxu1 %vm11828_vm6, %v15934_v1  ;;  %v17836_v1 = vld [vmem:[%s20218_s17 + $0x40] ss:$108 sps:$4 sm:$0xff]   ;;  %v3064_v31 = vrot.slane %v20469_v6, %v18947_v16 }
 0x58e   : > { %12230 = vmatprep.subr.bf16.mxu0 %v17828_v3  ;;  %v15940_v3 = vcombine.high %v11605_v20, %v11605_v20 }
 0x58f   : > { %15957 = vmatmul.mubr.msk.bf16.gmra.mxu1 %vm11821_vm7, %v20456_v43 }
 0x590   : > { %12197 = vmatprep.mubr.bf16.mxu1 %v21857_v44 }
 0x591   : > { %12231 = vmatpush1.bf16.msra.mxu0 %v17826_v35  ;;  %v15937_v35 = vcombine.low %v11604_v48, %v11604_v48  ;;  %v3072_v48 = vrot.slane %v20469_v6, %v19232_v56 }
 0x592   : > { %15970 = vmatprep.subr.msk.bf16.mxu0 %vm11828_vm6, %v15936_v4  ;;  %v21864_v4 = vld [vmem:[#allocation47_spill] sm:$0xff] }
 0x593   : > { %15960 = vmatmul.mubr.msk.bf16.gmra.mxu0 %vm11821_vm7, %v20456_v43  ;;  %v3262_v60 = vadd.f32 %v3064_v31, %v21864_v4  ;;  %v15939_v31 = vcombine.low %v11605_v20, %v11605_v20 }
 0x594   : > { %12248 = vmatprep.mubr.bf16.mxu0 %v21857_v44 }
 0x595   : > { %v11890_v20 = vsel %vm11828_vm6, %v15939_v31, 0 }
 0x597   : > { %15962 = vmatmul.mubr.msk.bf16.vlgmr.msra.gmra.mxu1 %vm11821_vm7, %v20439_v57 }
 0x598   : > { %12280 = vmatpush1.bf16.msra.mxu1 %v11872_v30  ;;  %12207 = vmatprep.mubr.bf16.mxu1 %v21857_v44 }
 0x599   : > { %12281 = vmatprep.subr.bf16.mxu1 %v17833_v47  ;;  %v21865_v47 = vld [vmem:[#allocation49_spill] sm:$0xff] }
 0x59a   : > { %v3263_v25 = vadd.f32 %v3068_v52, %v21865_v47  ;;  %v3076_v52 = vrot.slane %v20469_v6, %v19236_v10  ;;  %v21868_v47 = vld [vmem:[#allocation46_spill] sm:$0xff] }
 0x59b   : > { %15965 = vmatmul.mubr.msk.bf16.vlgmr.msra.gmra.mxu0 %vm11821_vm7, %v20439_v57 }
 0x59c   : > { %12282 = vmatpush1.bf16.msra.mxu1 %v17831_v13  ;;  %12258 = vmatprep.mubr.bf16.mxu0 %v21857_v44 }
 0x59d   : > { %12331 = vmatpush1.bf16.msra.mxu0 %v11878_v36  ;;  %15973 = vmatprep.subr.msk.bf16.mxu1 %vm11828_vm6, %v15938_v37  ;;  %v11884_v36 = vsel %vm11828_vm6, %v15937_v35, 0  ;;  %v17841_v35 = vld [vmem:[%s20218_s17 + $0x48] ss:$108 sps:$4 sm:$0xff]  }
 0x59e   : > { %12332 = vmatprep.subr.bf16.mxu0 %v17838_v23  ;;  %v17843_v23 = vld [vmem:[%s20218_s17 + $0x4c] ss:$108 sps:$4 sm:$0xff]  }
 0x59f   : > { %15963 = vmatmul.mubr.msk.bf16.gmra.mxu1 %vm11821_vm7, %v20456_v43 }
 0x5a0   : > { %12299 = vmatprep.mubr.bf16.mxu1 %v21857_v44 }
 0x5a1   : > { %12333 = vmatpush1.bf16.msra.mxu0 %v17836_v1 }
 0x5a2   : > { %15976 = vmatprep.subr.msk.bf16.mxu0 %vm11828_vm6, %v15940_v3  ;;  %v11606_v3 = vld [vmem:[%s20218_s17 + $0x130] sm:$0xff] }
 0x5a3   : > { %v11231_v30 = vpop.f32.mrf.mxu1  ;;  %15966 = vmatmul.mubr.msk.bf16.gmra.mxu0 %vm11821_vm7, %v20456_v43 }
 0x5a4   : > { %v20580_v13 = vadd.f32 %v11231_v30, %v3262_v60  ;;  %12350 = vmatprep.mubr.bf16.mxu0 %v21857_v44  ;;  %v15942_v30 = vcombine.high %v11606_v3, %v11606_v3 }
 0x5a5   : > { %v11233_v37 = vpop.f32.mrf.mxu1 }
 0x5a6   : > { %21866 = vst [vmem:[#allocation18_spill] sm:$0xff] %v20580_v13  ;;  %v20587_v1 = vadd.f32 %v11233_v37, %v3263_v25  ;;  %v3264_v25 = vadd.f32 %v3072_v48, %v21868_v47  ;;  %v17848_v37 = vld [vmem:[%s20218_s17 + $0x54] ss:$108 sps:$4 sm:$0xff]   ;;  %v17853_v47 = vld [vmem:[%s20218_s17 + $0x5c] ss:$108 sps:$4 sm:$0xff]  }
 0x5a7   : > { %v11235_v4 = vpop.f32.mrf.mxu1  ;;  %15968 = vmatmul.mubr.msk.bf16.vlgmr.msra.gmra.mxu1 %vm11821_vm7, %v20439_v57  ;;  %v21869_v13 = vld [vmem:[#allocation48_spill] sm:$0xff] }
 0x5a8   : > { %21867 = vst [vmem:[#allocation20_spill] sm:$0xff] %v20587_v1  ;;  %12382 = vmatpush1.bf16.msra.mxu1 %v11884_v36  ;;  %12309 = vmatprep.mubr.bf16.mxu1 %v21857_v44  ;;  %v11607_v1 = vld [vmem:[%s20218_s17 + $0x138] sm:$0xff]  ;;  %v3265_v6 = vadd.f32 %v3076_v52, %v21869_v13 }
 0x5a9   : > { %v11236_v60 = vpop.f32.mrf.mxu1  ;;  %12383 = vmatprep.subr.bf16.mxu1 %v17843_v23  ;;  %v17846_v23 = vld [vmem:[%s20218_s17 + $0x50] ss:$108 sps:$4 sm:$0xff]   ;;  %v15944_v31 = vcombine.high %v11607_v1, %v11607_v1 }
 0x5ab   : > { %v11272_v4 = vpop.f32.mrf.mxu0  ;;  %15971 = vmatmul.mubr.msk.bf16.vlgmr.msra.gmra.mxu0 %vm11821_vm7, %v20439_v57 }
 0x5ac   : > { %v20603_v36 = vadd.f32 %v11272_v4, %v3264_v25  ;;  %12384 = vmatpush1.bf16.msra.mxu1 %v17841_v35  ;;  %12360 = vmatprep.mubr.bf16.mxu0 %v21857_v44  ;;  %v15941_v35 = vcombine.low %v11606_v3, %v11606_v3  ;;  %v15943_v25 = vcombine.low %v11607_v1, %v11607_v1  ;;  %v17859_v3 = vld [vmem:[%s20218_s17 + $0x140] ss:$0 sps:$4 sm:$0xff]   ;;  %v17858_v4 = vld [vmem:[%s20218_s17 + $0x64] ss:$108 sps:$4 sm:$0xff]  }
 0x5ad   : > { %v11274_v60 = vpop.f32.mrf.mxu0  ;;  %12433 = vmatpush1.bf16.msra.mxu0 %v11890_v20  ;;  %15979 = vmatprep.subr.msk.bf16.mxu1 %vm11828_vm6, %v15942_v30  ;;  %v17851_v20 = vld [vmem:[%s20218_s17 + $0x58] ss:$108 sps:$4 sm:$0xff]   ;;  %v17856_v1 = vld [vmem:[%s20218_s17 + $0x60] ss:$108 sps:$4 sm:$0xff]  }
 0x5ae   : > { %v20608_v48 = vadd.f32 %v11274_v60, %v3265_v6  ;;  %12434 = vmatprep.subr.bf16.mxu0 %v17848_v37  ;;  %v11896_v30 = vsel %vm11828_vm6, %v15941_v35, 0  ;;  %v11902_v37 = vsel %vm11828_vm6, %v15943_v25, 0  ;;  %v11908_v6 = vsel %vm11828_vm6, %v17859_v3, 0  ;;  %v17860_v60 = vld [vmem:[%s20218_s17 + $0x68] ss:$108 sps:$4 sm:$0xff]  }
 0x5af   : > { %15969 = vmatmul.mubr.msk.bf16.gmra.mxu1 %vm11821_vm7, %v20456_v43  ;;  %v11276_v13 = vpop.f32.mrf.mxu0 }
 0x5b0   : > { %12401 = vmatprep.mubr.bf16.mxu1 %v21857_v44 }
 0x5b1   : > { %v11277_v52 = vpop.f32.mrf.mxu0  ;;  %12435 = vmatpush1.bf16.msra.mxu0 %v17846_v23  ;;  %v439_v23 = vld [vmem:[%s18340_s27 + $0x48] sm:$0xff] }
 0x5b2   : > { %15982 = vmatprep.subr.msk.bf16.mxu0 %vm11828_vm6, %v15944_v31  ;;  %v3080_v31 = vrot.slane %v439_v23, %v18805_v40  ;;  %v3084_v13 = vrot.slane %v439_v23, %v18811_v50  ;;  %v21870_v52 = vld [vmem:[#allocation51_spill] sm:$0xff]  ;;  %v21872_v50 = vld [vmem:[#allocation50_spill] sm:$0xff] }
 0x5b3   : > { %15972 = vmatmul.mubr.msk.bf16.gmra.mxu0 %vm11821_vm7, %v20456_v43 }
 0x5b4   : > { %12452 = vmatprep.mubr.bf16.mxu0 %v21857_v44  ;;  %v3266_v35 = vadd.f32 %v3080_v31, %v21870_v52 }
 0x5b7   : > { %15974 = vmatmul.mubr.msk.bf16.vlgmr.msra.gmra.mxu1 %vm11821_vm7, %v20439_v57 }
 0x5b8   : > { %12484 = vmatpush1.bf16.msra.mxu1 %v11896_v30  ;;  %12411 = vmatprep.mubr.bf16.mxu1 %v21857_v44 }
 0x5b9   : > { %12485 = vmatprep.subr.bf16.mxu1 %v17853_v47 }
 0x5bb   : > { %15977 = vmatmul.mubr.msk.bf16.vlgmr.msra.gmra.mxu0 %vm11821_vm7, %v20439_v57 }
 0x5bc   : > { %12486 = vmatpush1.bf16.msra.mxu1 %v17851_v20  ;;  %12462 = vmatprep.mubr.bf16.mxu0 %v21857_v44 }
 0x5bd   : > { %12535 = vmatpush1.bf16.msra.mxu0 %v11902_v37  ;;  %16013 = vmatprep.subr.msk.bf16.mxu1 %vm11828_vm6, %v17859_v3  ;;  %v3092_v37 = vrot.slane %v439_v23, %v18922_v62 }
 0x5be   : > { %12536 = vmatprep.subr.bf16.mxu0 %v17858_v4 }
 0x5bf   : > { %15975 = vmatmul.mubr.msk.bf16.gmra.mxu1 %vm11821_vm7, %v20456_v43 }
 0x5c0   : > { %12503 = vmatprep.mubr.bf16.mxu1 %v21857_v44 }
 0x5c1   : > { %12537 = vmatpush1.bf16.msra.mxu0 %v17856_v1 }
 0x5c3   : > { %15978 = vmatmul.mubr.msk.bf16.gmra.mxu0 %vm11821_vm7, %v20456_v43 }
 0x5c4   : > { %12554 = vmatprep.mubr.bf16.mxu0 %v21857_v44 }
 0x5c7   : > { %15980 = vmatmul.mubr.msk.bf16.vlgmr.msra.gmra.mxu1 %vm11821_vm7, %v20439_v57 }
 0x5c8   : > { %16006 = vmatpush3.bf16.msra.mxu1 %v11908_v6  ;;  %12513 = vmatprep.mubr.bf16.mxu1 %v21857_v44 }
 0x5c9   : > { %16007 = vmatprep.subr.bf16.mxu1 %v17860_v60 }
 0x5cb   : > { %15983 = vmatmul.mubr.msk.bf16.vlgmr.msra.gmra.mxu0 %vm11821_vm7, %v20439_v57 }
 0x5cc   : > { %16008 = vmatpush3.bf16.msra.mxu1 %v17860_v60  ;;  %12564 = vmatprep.mubr.bf16.mxu0 %v21857_v44  ;;  %v21871_v44 = vld [vmem:[#allocation53_spill] sm:$0xff]  ;;  %v21873_v60 = vld [vmem:[#allocation52_spill] sm:$0xff] }
 0x5cd   : > { %v3267_v47 = vadd.f32 %v3084_v13, %v21871_v44  ;;  %v3269_v31 = vadd.f32 %v3092_v37, %v21873_v60  ;;  %v3100_v44 = vrot.slane %v439_v23, %v18954_v2  ;;  %v3104_v37 = vrot.slane %v439_v23, %v19232_v56 }
 0x5ce   : > { %v20690_v56 = vrot.slane %v19734_v24, 6  ;;  %v20711_v24 = vrot.slane %v19843_v18, 6  ;;  %v20731_v18 = vrot.slane %v19994_v29, 6  ;;  %v20751_v29 = vrot.slane %v20092_v12, 6 }
 0x5cf   : > { %15981 = vmatmul.mubr.msk.bf16.gmra.mxu1 %vm11821_vm7, %v20456_v43  ;;  %v20769_v12 = vrot.slane %v20231_v8, 6  ;;  %v20788_v8 = vrot.slane %v20389_v58, 4  ;;  %v21899_v58 = vld [vmem:[#allocation21_spill] sm:$0xff] }
 0x5d0   : > { %16009 = vmatprep.mubr.msk.bf16.mxu1 %vm11821_vm7, %v20439_v57  ;;  %v3088_v57 = vrot.slane %v439_v23, %v18802_v39  ;;  %v3096_v39 = vrot.slane %v439_v23, %v18947_v16  ;;  %21881 = vst [vmem:[#allocation22_spill] sm:$0xff] %v20731_v18  ;;  %21887 = vst [vmem:[#allocation31_spill] sm:$0xff] %v20751_v29  ;;  %v21907_v29 = vld [vmem:[#allocation14_spill] sm:$0xff] }
 0x5d1   : > { %21893 = vst [vmem:[#allocation34_spill] sm:$0xff] %v20769_v12 }
 0x5d2   : > { %v3268_v1 = vadd.f32 %v3088_v57, %v21872_v50  ;;  %v3108_v50 = vrot.slane %v439_v23, %v19236_v10  ;;  %v20693_v10 = vrot.slane %v19742_v49, 6  ;;  %v20696_v23 = vrot.slane %v19752_v7, 6 }
 0x5d3   : > { %15984 = vmatmul.mubr.msk.bf16.gmra.mxu0 %vm11821_vm7, %v20456_v43  ;;  %v20717_v7 = vrot.slane %v19909_v33, 6  ;;  %v20737_v33 = vrot.slane %v20010_v17, 6  ;;  %v20754_v17 = vrot.slane %v20145_v54, 6  ;;  %v20773_v54 = vrot.slane %v20246_v59, 4  ;;  %v21895_v59 = vld [vmem:[#allocation15_spill] sm:$0xff] }
 0x5d5   : > { %21883 = vst [vmem:[#allocation27_spill] sm:$0xff] %v20737_v33  ;;  %21888 = vst [vmem:[#allocation33_spill] sm:$0xff] %v20754_v17 }
 0x5d7   : > { %v11313_v30 = vpop.f32.mrf.mxu1  ;;  %16010 = vmatmul.mubr.msk.bf16.vlgmr.msra.gmra.mxu1 %vm11821_vm7, %v20456_v43 }
 0x5d8   : > { %v20658_v25 = vadd.f32 %v11313_v30, %v3266_v35 }
 0x5d9   : > { %v11315_v20 = vpop.f32.mrf.mxu1 }
 0x5da   : > { %v20661_v3 = vadd.f32 %v11315_v20, %v3267_v47  ;;  %v21874_v47 = vld [vmem:[#allocation55_spill] sm:$0xff] }
 0x5db   : > { %v11317_v40 = vpop.f32.mrf.mxu1  ;;  %v3270_v62 = vadd.f32 %v3096_v39, %v21874_v47 }
 0x5dc   : > { %v21875_v40 = vld [vmem:[#allocation57_spill] sm:$0xff] }
 0x5dd   : > { %v11318_v4 = vpop.f32.mrf.mxu1  ;;  %v3271_v57 = vadd.f32 %v3100_v44, %v21875_v40  ;;  %v20687_v44 = vrot.slane %v19676_v34, 6  ;;  %v20705_v40 = vrot.slane %v19827_v28, 6  ;;  %v20708_v34 = vrot.slane %v19837_v14, 6 }
 0x5de   : > { %v20725_v28 = vrot.slane %v19925_v51, 6  ;;  %v20728_v14 = vrot.slane %v19986_v22, 6  ;;  %v20745_v51 = vrot.slane %v20076_v46, 6  ;;  %v20748_v22 = vrot.slane %v20086_v27, 6 }
 0x5df   : > { %v11354_v6 = vpop.f32.mrf.mxu0  ;;  %v20763_v46 = vrot.slane %v20166_v42, 6  ;;  %v20766_v27 = vrot.slane %v20223_v61, 6  ;;  %v20782_v42 = vrot.slane %v20325_v32, 4  ;;  %v20785_v61 = vrot.slane %v20331_v21, 4 }
 0x5e0   : > { %v20666_v43 = vadd.f32 %v11354_v6, %v3268_v1  ;;  %v14794_v6 = vld [vmem:[%s18340_s27 + $0x50] ss:$0 sm:$0xff]  ;;  %21879 = vst [vmem:[#allocation23_spill] sm:$0xff] %v20725_v28  ;;  %21880 = vst [vmem:[#allocation25_spill] sm:$0xff] %v20728_v14 }
 0x5e1   : > { %v11356_v13 = vpop.f32.mrf.mxu0  ;;  %21885 = vst [vmem:[#allocation26_spill] sm:$0xff] %v20745_v51  ;;  %21886 = vst [vmem:[#allocation28_spill] sm:$0xff] %v20748_v22 }
 0x5e2   : > { %v20668_v52 = vadd.f32 %v11356_v13, %v3269_v31  ;;  %v21876_v13 = vld [vmem:[#allocation54_spill] sm:$0xff]  ;;  %21891 = vst [vmem:[#allocation35_spill] sm:$0xff] %v20763_v46  ;;  %21892 = vst [vmem:[#allocation37_spill] sm:$0xff] %v20766_v27 }
 0x5e3   : > { %v11358_v35 = vpop.f32.mrf.mxu0  ;;  %v3272_v16 = vadd.f32 %v3104_v37, %v21876_v13  ;;  %v12999_v13 = vrot.slane %v20240_v41, 4  ;;  %v21894_v41 = vld [vmem:[#allocation17_spill] sm:$0xff] }
 0x5e4   : > { %v21877_v35 = vld [vmem:[#allocation56_spill] sm:$0xff] }
 0x5e5   : > { %v11359_v30 = vpop.f32.mrf.mxu0  ;;  %v3273_v2 = vadd.f32 %v3108_v50, %v21877_v35  ;;  %v20740_v50 = vrot.slane %v20068_v19, 6  ;;  %v20757_v19 = vrot.slane %v20152_v53, 6  ;;  %v20776_v53 = vrot.slane %v20307_v15, 4 }
 0x5e6   : > { %v21878_v30 = vld [vmem:[#allocation58_spill] sm:$0xff]  ;;  %v20791_v35 = vrot.slane %v21894_v41, 4  ;;  %v20811_v41 = vrot.slane %v20510_v0, 4 }
 0x5e7   : > { %v20684_v39 = vadd.f32 %v14794_v6, %v21878_v30  ;;  %21884 = vst [vmem:[#allocation29_spill] sm:$0xff] %v20740_v50  ;;  %21889 = vst [vmem:[#allocation30_spill] sm:$0xff] %v20757_v19 }
 0x5e8   : > { %21901 = vst [vmem:[#allocation39_spill] sm:$0xff] %v20811_v41 }
 0x60b   : > { %v11395_v20 = vpop.f32.mrf.mxu1 }
 0x60c   : > { %v20674_v4 = vadd.f32 %v11395_v20, %v3270_v62  ;;  %v20699_v62 = vrot.slane %v19758_v38, 6  ;;  %v20702_v20 = vrot.slane %v19819_v26, 6  ;;  %v20722_v26 = vrot.slane %v19919_v63, 6 }
 0x60d   : > { %v11397_v1 = vpop.f32.mrf.mxu1 }
 0x60e   : > { %v20679_v60 = vadd.f32 %v11397_v1, %v3271_v57  ;;  %v20714_v57 = vrot.slane %v19901_v45, 6  ;;  %v20734_v45 = vrot.slane %v20004_v5, 6  ;;  %v18060_v5 = vmov 1983009808  }
 0x60f   : > { %v11399_v31 = vpop.f32.mrf.mxu1  ;;  %v13218_v6 = vunpack.c.l.s4 %v18060_v5  ;;  %v20805_v5 = vrot.slane %v21899_v58, 4 }
 0x610   : > { %21882 = vst [vmem:[#allocation24_spill] sm:$0xff] %v20734_v45  ;;  %v20760_v31 = vrot.slane %v20159_v55, 6  ;;  %v20779_v55 = vrot.slane %v20315_v11, 4 }
 0x611   : > { %v11400_v47 = vpop.f32.mrf.mxu1  ;;  %v13219_v30 = vunpack.c.0.s8 %v13218_v6 }
 0x612   : > { %21890 = vst [vmem:[#allocation32_spill] sm:$0xff] %v20760_v31  ;;  %v21896_v47 = vld [vmem:[#allocation16_spill] sm:$0xff] }
 0x613   : > { %v11436_v49 = vpop.f32.mrf.mxu0  ;;  %v20797_v11 = vrot.slane %v21896_v47, 4  ;;  %v21902_v47 = vld [vmem:[#allocation18_spill] sm:$0xff]  ;;  %v21906_v31 = vld [vmem:[#allocation60_spill] sm:$0xff]  ;;  %v20823_v22 = vsub.s32 %v13219_v30, %v21907_v29 }
 0x614   : > { %v20719_v38 = vadd.f32 %v11436_v49, %v3272_v16  ;;  %v21897_v49 = vld [vmem:[#allocation19_spill] sm:$0xff]  ;;  %v20814_v12 = vrot.slane %v21902_v47, 4 }
 0x615   : > { %v11438_v37 = vpop.f32.mrf.mxu0  ;;  %v20800_v32 = vrot.slane %v21897_v49, 4  ;;  %v21904_v49 = vld [vmem:[#allocation20_spill] sm:$0xff] }
 0x616   : > { %v20742_v63 = vadd.f32 %v11438_v37, %v3273_v2  ;;  %v20794_v2 = vrot.slane %v21895_v59, 4  ;;  %v21898_v37 = vld [vmem:[#allocation59_spill] sm:$0xff]  ;;  %21903 = vst [vmem:[#allocation41_spill] sm:$0xff] %v20814_v12  ;;  %v20817_v27 = vrot.slane %v21904_v49, 4  ;;  %v20828_v49 = vrot.slane %v20603_v36, 4 }
 0x617   : > { %v11440_v1 = vpop.f32.mrf.mxu0 }
 0x618   : > { %21905 = vst [vmem:[#allocation38_spill] sm:$0xff] %v20817_v27  ;;  %21908 = vst [vmem:[#allocation40_spill] sm:$0xff] %v20828_v49 }
 0x619   : > { %v11441_v16 = vpop.f32.mrf.mxu0 }
 0x61a   : > { %v20808_v16 = vrot.slane %v20506_v9, 4 }
 0x61b   : > { %v11944_v15 = vpop.f32.mrf.mxu0 }
 0x61c   : > { %v12621_v21 = vmul.f32 %v11944_v15, %v21898_v37  ;;  %v12837_v1 = vmul.f32 %v20687_v44, %v11944_v15  ;;  %21900 = vst [vmem:[#allocation36_spill] sm:$0xff] %v20808_v16  ;;  %v13053_v6 = vmul.f32 %v12999_v13, %v11944_v15 }
 0x61d   : > { %v11946_v59 = vpop.f32.mrf.mxu0 }
 0x61e   : > { %v12675_v46 = vrot.slane %v12621_v21, 2  ;;  %v12622_v19 = vmul.f32 %v11946_v59, %v21906_v31  ;;  %v12891_v17 = vrot.slane %v12837_v1, 4  ;;  %v12838_v58 = vmul.f32 %v20690_v56, %v11946_v59 }
 0x61f   : > { %v13054_v9 = vmul.f32 %v20773_v54, %v11946_v59  ;;  %v11948_v0 = vpop.f32.mrf.mxu0  ;;  %v20831_v21 = vrot.slane %v20608_v48, 4  ;;  %v13107_v1 = vrot.slane %v13053_v6, 6 }
 0x620   : > { %v12729_v51 = vadd.f32 %v12675_v46, %v11944_v15  ;;  %v12676_v50 = vrot.slane %v12622_v19, 2  ;;  %v13348_v47 = vmul.f32 %v11948_v0, %v21898_v37  ;;  %v13483_v33 = vmul.f32 %v20687_v44, %v11948_v0 }
 0x621   : > { %21909 = vst [vmem:[#allocation43_spill] sm:$0xff] %v20831_v21  ;;  %v13618_v27 = vmul.f32 %v12999_v13, %v11948_v0  ;;  %v11950_v45 = vpop.f32.mrf.mxu0  ;;  %v12892_v29 = vrot.slane %v12838_v58, 4  ;;  %v13108_v41 = vrot.slane %v13054_v9, 6 }
 0x622   : > { %v12945_v12 = vadd.f32 %v12891_v17, %v12729_v51  ;;  %v12730_v18 = vadd.f32 %v12676_v50, %v11946_v59  ;;  %v13402_v30 = vrot.slane %v13348_v47, 2  ;;  %v13537_v46 = vrot.slane %v13483_v33, 4 }
 0x623   : > { %v13349_v19 = vmul.f32 %v11950_v45, %v21906_v31  ;;  %v13484_v15 = vmul.f32 %v20690_v56, %v11950_v45  ;;  %v11954_v14 = vpop.f32.mrf.mxu0  ;;  %v13672_v6 = vrot.slane %v13618_v27, 6  ;;  %v13619_v51 = vmul.f32 %v20773_v54, %v11950_v45 }
 0x624   : > { %v20835_v16 = vadd.f32 %v13107_v1, %v12945_v12  ;;  %v12946_v36 = vadd.f32 %v12892_v29, %v12730_v18  ;;  %v13456_v49 = vadd.f32 %v13402_v30, %v11948_v0  ;;  %v13913_v48 = vmul.f32 %v11954_v14, %v21898_v37 }
 0x625   : > { %v13403_v21 = vrot.slane %v13349_v19, 2  ;;  %v14048_v50 = vmul.f32 %v20687_v44, %v11954_v14  ;;  %v11956_v17 = vpop.f32.mrf.mxu0  ;;  %v14183_v9 = vmul.f32 %v12999_v13, %v11954_v14  ;;  %v13538_v28 = vrot.slane %v13484_v15, 4 }
 0x626   : > { %v20840_v59 = vadd.f32 %v13108_v41, %v12946_v36  ;;  %v13591_v33 = vadd.f32 %v13537_v46, %v13456_v49  ;;  %v13967_v58 = vrot.slane %v13913_v48, 2  ;;  %v13914_v12 = vmul.f32 %v11956_v17, %v21906_v31 }
 0x627   : > { %v13457_v47 = vadd.f32 %v13403_v21, %v11950_v45  ;;  %v14049_v18 = vmul.f32 %v20690_v56, %v11956_v17  ;;  %v11958_v0 = vpop.f32.mrf.mxu0  ;;  %v14102_v44 = vrot.slane %v14048_v50, 4  ;;  %v13673_v41 = vrot.slane %v13619_v51, 6 }
 0x628   : > { %v20846_v37 = vadd.f32 %v13672_v6, %v13591_v33  ;;  %v14021_v1 = vadd.f32 %v13967_v58, %v11954_v14  ;;  %v13968_v30 = vrot.slane %v13914_v12, 2  ;;  %v14184_v13 = vmul.f32 %v20773_v54, %v11956_v17 }
 0x629   : > { %v13592_v29 = vadd.f32 %v13538_v28, %v13457_v47  ;;  %v11959_v45 = vpop.f32.mrf.mxu0  ;;  %v20850_v49 = vrot.slane %v20658_v25, 4  ;;  %v20853_v56 = vrot.slane %v20661_v3, 4  ;;  %v14237_v21 = vrot.slane %v14183_v9, 6  ;;  %v21910_v25 = vld [vmem:[#allocation61_spill] sm:$0xff]  ;;  %v21913_v9 = vld [vmem:[#allocation62_spill] sm:$0xff] }
 0x62a   : > { %v14156_v31 = vadd.f32 %v14102_v44, %v14021_v1  ;;  %v20856_v46 = vrot.slane %v20666_v43, 4  ;;  %v14022_v28 = vadd.f32 %v13968_v30, %v11956_v17  ;;  %v14103_v19 = vrot.slane %v14049_v18, 4 }
 0x62b   : > { %v20858_v14 = vadd.f32 %v13673_v41, %v13592_v29  ;;  %v11995_v15 = vpop.f32.mrf.mxu0  ;;  %v20861_v36 = vrot.slane %v20668_v52, 4  ;;  %v14238_v51 = vrot.slane %v14184_v13, 6  ;;  %v20872_v33 = vrot.slane %v20674_v4, 4 }
 0x62c   : > { %v20863_v54 = vadd.f32 %v14237_v21, %v14156_v31  ;;  %v12623_v48 = vmul.f32 %v11995_v15, %v21910_v25  ;;  %v12839_v3 = vmul.f32 %v20693_v10, %v11995_v15  ;;  %v14157_v6 = vadd.f32 %v14103_v19, %v14022_v28 }
 0x62d   : > { %v13055_v50 = vmul.f32 %v20776_v53, %v11995_v15  ;;  %v11997_v17 = vpop.f32.mrf.mxu0  ;;  %21911 = vst [vmem:[#allocation45_spill] sm:$0xff] %v20872_v33  ;;  %v20875_v52 = vrot.slane %v20679_v60, 4  ;;  %v20891_v30 = vrot.slane %v20719_v38, 4  ;;  %v21956_v33 = vld [vmem:[#allocation76_spill] sm:$0xff] }
 0x62e   : > { %v12677_v58 = vrot.slane %v12623_v48, 2  ;;  %v12624_v47 = vmul.f32 %v11997_v17, %v21913_v9  ;;  %v20878_v12 = vadd.f32 %v14238_v51, %v14157_v6  ;;  %v12893_v18 = vrot.slane %v12839_v3, 4 }
 0x62f   : > { %21912 = vst [vmem:[#allocation42_spill] sm:$0xff] %v20875_v52  ;;  %v12840_v0 = vmul.f32 %v20696_v23, %v11997_v17  ;;  %v13056_v1 = vmul.f32 %v20779_v55, %v11997_v17  ;;  %v11999_v44 = vpop.f32.mrf.mxu0  ;;  %21915 = vst [vmem:[#allocation44_spill] sm:$0xff] %v20891_v30  ;;  %v13109_v45 = vrot.slane %v13055_v50, 6 }
 0x630   : > { %v12731_v29 = vadd.f32 %v12677_v58, %v11995_v15  ;;  %v12678_v4 = vrot.slane %v12624_v47, 2  ;;  %v13350_v60 = vmul.f32 %v11999_v44, %v21910_v25  ;;  %v13485_v41 = vmul.f32 %v20693_v10, %v11999_v44 }
 0x631   : > { %v14345_v13 = vcombine.high %v20863_v54, %v20878_v12  ;;  %v13620_v31 = vmul.f32 %v20776_v53, %v11999_v44  ;;  %v12001_v21 = vpop.f32.mrf.mxu0  ;;  %v12894_v15 = vrot.slane %v12840_v0, 4  ;;  %v13110_v3 = vrot.slane %v13056_v1, 6 }
 0x632   : > { %v12947_v28 = vadd.f32 %v12893_v18, %v12731_v29  ;;  %v12732_v19 = vadd.f32 %v12678_v4, %v11997_v17  ;;  %v13404_v48 = vrot.slane %v13350_v60, 2  ;;  %v13539_v6 = vrot.slane %v13485_v41, 4 }
 0x633   : > { %v13351_v51 = vmul.f32 %v12001_v21, %v21913_v9  ;;  %v13486_v58 = vmul.f32 %v20696_v23, %v12001_v21  ;;  %v12005_v47 = vpop.f32.mrf.mxu0  ;;  %v13621_v12 = vmul.f32 %v20779_v55, %v12001_v21  ;;  %v13674_v17 = vrot.slane %v13620_v31, 6 }
 0x634   : > { %v13163_v38 = vadd.f32 %v13109_v45, %v12947_v28  ;;  %v12948_v54 = vadd.f32 %v12894_v15, %v12732_v19  ;;  %v13458_v50 = vadd.f32 %v13404_v48, %v11999_v44  ;;  %v13915_v0 = vmul.f32 %v12005_v47, %v21910_v25 }
 0x635   : > { %v13405_v18 = vrot.slane %v13351_v51, 2  ;;  %v14050_v1 = vmul.f32 %v20693_v10, %v12005_v47  ;;  %v12007_v29 = vpop.f32.mrf.mxu0  ;;  %v13540_v41 = vrot.slane %v13486_v58, 4  ;;  %v14185_v45 = vmul.f32 %v20776_v53, %v12005_v47 }
 0x636   : > { %v13164_v4 = vadd.f32 %v13110_v3, %v12948_v54  ;;  %v13593_v60 = vadd.f32 %v13539_v6, %v13458_v50  ;;  %v13675_v43 = vrot.slane %v13621_v12, 6  ;;  %v13969_v27 = vrot.slane %v13915_v0, 2  ;;  %v21918_v12 = vld [vmem:[#allocation63_spill] sm:$0xff] }
 0x637   : > { %v13459_v28 = vadd.f32 %v13405_v18, %v12001_v21  ;;  %v13916_v44 = vmul.f32 %v12007_v29, %v21913_v9  ;;  %v12009_v19 = vpop.f32.mrf.mxu0  ;;  %v14104_v48 = vrot.slane %v14050_v1, 4  ;;  %v14051_v25 = vmul.f32 %v20696_v23, %v12007_v29 }
 0x638   : > { %v13216_v15 = vcombine.high %v13163_v38, %v13164_v4  ;;  %v13728_v31 = vadd.f32 %v13674_v17, %v13593_v60  ;;  %v14023_v10 = vadd.f32 %v13969_v27, %v12005_v47  ;;  %v14186_v3 = vmul.f32 %v20779_v55, %v12007_v29 }
 0x639   : > { %v13594_v51 = vadd.f32 %v13540_v41, %v13459_v28  ;;  %v13970_v30 = vrot.slane %v13916_v44, 2  ;;  %v12010_v6 = vpop.f32.mrf.mxu0  ;;  %v21916_v53 = vcombine.high %v20835_v16, %v20840_v59  ;;  %v21917_v9 = vcombine.high %v20846_v37, %v20858_v14 }
 0x63a   : > { %v13230_v38 = vrot.slane %v13216_v15, %v20823_v22  ;;  %v14239_v54 = vrot.slane %v14185_v45, 6  ;;  %v14158_v55 = vadd.f32 %v14104_v48, %v14023_v10  ;;  %v14105_v47 = vrot.slane %v14051_v25, 4 }
 0x63b   : > { %v13223_v21 = vrot.slane %v21916_v53, %v20823_v22  ;;  %v13788_v58 = vrot.slane %v21917_v9, %v20823_v22  ;;  %v13729_v23 = vadd.f32 %v13675_v43, %v13594_v51  ;;  %v14024_v27 = vadd.f32 %v13970_v30, %v12007_v29  ;;  %v12046_v16 = vpop.f32.mrf.mxu0  ;;  %v21919_v30 = vld [vmem:[#allocation64_spill] sm:$0xff] }
 0x63c   : > { %v14240_v50 = vrot.slane %v14186_v3, 6  ;;  %v12625_v17 = vmul.f32 %v12046_v16, %v21918_v12  ;;  %v12841_v37 = vmul.f32 %v20699_v62, %v12046_v16  ;;  %v14293_v18 = vadd.f32 %v14239_v54, %v14158_v55 }
 0x63d   : > { %v13231_v59 = vcombine.high %v13223_v21, %v13230_v38  ;;  %v13781_v14 = vcombine.high %v13728_v31, %v13729_v23  ;;  %v14159_v0 = vadd.f32 %v14105_v47, %v14024_v27  ;;  %v13057_v1 = vmul.f32 %v20782_v42, %v12046_v16  ;;  %v12048_v4 = vpop.f32.mrf.mxu0 }
 0x63e   : > { %v14353_v60 = vrot.slane %v14345_v13, %v20823_v22  ;;  %v12679_v43 = vrot.slane %v12625_v17, 2  ;;  %v12895_v41 = vrot.slane %v12841_v37, 4  ;;  %v12626_v29 = vmul.f32 %v12048_v4, %v21919_v30 }
 0x63f   : > { %13341 = vst [vmem:[%s20924_s13] sm:$0xff] %v13231_v59  ;;  %v13795_v45 = vrot.slane %v13781_v14, %v20823_v22  ;;  %v14294_v28 = vadd.f32 %v14240_v50, %v14159_v0  ;;  %v12842_v44 = vmul.f32 %v20702_v20, %v12048_v4  ;;  %v13058_v19 = vmul.f32 %v20785_v61, %v12048_v4  ;;  %v11477_v15 = vpop.f32.mrf.mxu1  ;;  %v12050_v31 = vpop.f32.mrf.mxu0 }
 0x640   : > { %v12733_v48 = vadd.f32 %v12679_v43, %v12046_v16  ;;  %v12680_v25 = vrot.slane %v12626_v29, 2  ;;  %v20936_v51 = vadd.f32 %v11477_v15, %v20684_v39  ;;  %v13352_v13 = vmul.f32 %v12050_v31, %v21918_v12 }
 0x641   : > { %v13796_v10 = vcombine.high %v13788_v58, %v13795_v45  ;;  %v14346_v3 = vcombine.high %v14293_v18, %v14294_v28  ;;  %v13111_v6 = vrot.slane %v13057_v1, 6  ;;  %v12896_v53 = vrot.slane %v12842_v44, 4  ;;  %v11479_v21 = vpop.f32.mrf.mxu1  ;;  %v12052_v9 = vpop.f32.mrf.mxu0 }
 0x642   : > { %21920 = vst [vmem:[#allocation47_spill] sm:$0xff] %v20936_v51  ;;  %v12949_v38 = vadd.f32 %v12895_v41, %v12733_v48  ;;  %v12734_v54 = vadd.f32 %v12680_v25, %v12048_v4  ;;  %v13112_v23 = vrot.slane %v13058_v19, 6  ;;  %v13406_v55 = vrot.slane %v13352_v13, 2 }
 0x643   : > { %13906 = vst [vmem:[%s20924_s13 + $0x36] sm:$0xff] %v13796_v10  ;;  %v14360_v27 = vrot.slane %v14346_v3, %v20823_v22  ;;  %v13487_v47 = vmul.f32 %v20699_v62, %v12050_v31  ;;  %v13622_v39 = vmul.f32 %v20782_v42, %v12050_v31  ;;  %v13353_v16 = vmul.f32 %v12052_v9, %v21919_v30  ;;  %v11480_v59 = vpop.f32.mrf.mxu1  ;;  %v12056_v58 = vpop.f32.mrf.mxu0 }
 0x644   : > { %v13165_v50 = vadd.f32 %v13111_v6, %v12949_v38  ;;  %v12950_v17 = vadd.f32 %v12896_v53, %v12734_v54  ;;  %v13460_v37 = vadd.f32 %v13406_v55, %v12050_v31  ;;  %v13488_v14 = vmul.f32 %v20702_v20, %v12052_v9 }
 0x645   : > { %v14361_v18 = vcombine.high %v14353_v60, %v14360_v27  ;;  %v13541_v0 = vrot.slane %v13487_v47, 4  ;;  %v13676_v1 = vrot.slane %v13622_v39, 6  ;;  %v13407_v4 = vrot.slane %v13353_v16, 2  ;;  %v11481_v43 = vpop.f32.mrf.mxu1  ;;  %v12058_v41 = vpop.f32.mrf.mxu0 }
 0x646   : > { %v13166_v29 = vadd.f32 %v13112_v23, %v12950_v17  ;;  %v13542_v45 = vrot.slane %v13488_v14, 4  ;;  %v13623_v28 = vmul.f32 %v20785_v61, %v12052_v9  ;;  %v13917_v44 = vmul.f32 %v12056_v58, %v21918_v12 }
 0x647   : > { %14471 = vst [vmem:[%s20924_s13 + $0x6c] sm:$0xff] %v14361_v18  ;;  %v13595_v19 = vadd.f32 %v13541_v0, %v13460_v37  ;;  %v13461_v15 = vadd.f32 %v13407_v4, %v12052_v9  ;;  %v14052_v48 = vmul.f32 %v20699_v62, %v12056_v58  ;;  %v14187_v31 = vmul.f32 %v20782_v42, %v12056_v58  ;;  %v12060_v25 = vpop.f32.mrf.mxu0  ;;  %v12097_v60 = vpop.f32.mrf.mxu1 }
 0x648   : > { %v20951_v13 = vrot.slane %v20742_v63, 4  ;;  %v13232_v10 = vcombine.high %v13165_v50, %v13166_v29  ;;  %v13971_v3 = vrot.slane %v13917_v44, 2  ;;  %v13918_v6 = vmul.f32 %v12058_v41, %v21919_v30  ;;  %v21922_v63 = vld [vmem:[#allocation65_spill] sm:$0xff] }
 0x649   : > { %v13730_v53 = vadd.f32 %v13676_v1, %v13595_v19  ;;  %v13596_v21 = vadd.f32 %v13542_v45, %v13461_v15  ;;  %v13677_v38 = vrot.slane %v13623_v28, 6  ;;  %v14106_v12 = vrot.slane %v14052_v48, 4  ;;  %v12061_v54 = vpop.f32.mrf.mxu0  ;;  %v12099_v23 = vpop.f32.mrf.mxu1  ;;  %v21923_v45 = vld [vmem:[#allocation66_spill] sm:$0xff] }
 0x64a   : > { %21921 = vst [vmem:[#allocation49_spill] sm:$0xff] %v20951_v13  ;;  %v14025_v9 = vadd.f32 %v13971_v3, %v12056_v58  ;;  %v14241_v55 = vrot.slane %v14187_v31, 6  ;;  %v13972_v62 = vrot.slane %v13918_v6, 2  ;;  %v14053_v42 = vmul.f32 %v20702_v20, %v12058_v41 }
 0x64b   : > { %v13731_v27 = vadd.f32 %v13677_v38, %v13596_v21  ;;  %v14188_v47 = vmul.f32 %v20785_v61, %v12058_v41  ;;  %v12627_v39 = vmul.f32 %v12097_v60, %v21922_v63  ;;  %v12843_v16 = vmul.f32 %v20705_v40, %v12097_v60  ;;  %v12101_v59 = vpop.f32.mrf.mxu1  ;;  %v12148_v30 = vpop.f32.mrf.mxu0 }
 0x64c   : > { %v14160_v50 = vadd.f32 %v14106_v12, %v14025_v9  ;;  %v14026_v17 = vadd.f32 %v13972_v62, %v12058_v41  ;;  %v14107_v37 = vrot.slane %v14053_v42, 4  ;;  %v13059_v14 = vmul.f32 %v20788_v8, %v12097_v60 }
 0x64d   : > { %v20960_v58 = vrot.slane %v13232_v10, %v20823_v22  ;;  %v13797_v18 = vcombine.high %v13730_v53, %v13731_v27  ;;  %v14242_v0 = vrot.slane %v14188_v47, 6  ;;  %v12681_v20 = vrot.slane %v12627_v39, 2  ;;  %v12103_v1 = vpop.f32.mrf.mxu1  ;;  %v20962_v4 = vpop.f32.mrf.mxu0  ;;  %v21924_v39 = vld [vmem:[#allocation67_spill] sm:$0xff] }
 0x64e   : > { %v14295_v61 = vadd.f32 %v14241_v55, %v14160_v50  ;;  %v14161_v43 = vadd.f32 %v14107_v37, %v14026_v17  ;;  %v12897_v29 = vrot.slane %v12843_v16, 4  ;;  %v12628_v28 = vmul.f32 %v12099_v23, %v21923_v45 }
 0x64f   : > { %v12735_v44 = vadd.f32 %v12681_v20, %v12097_v60  ;;  %v13113_v19 = vrot.slane %v13059_v14, 6  ;;  %v12844_v41 = vmul.f32 %v20708_v34, %v12099_v23  ;;  %v13060_v15 = vmul.f32 %v20791_v35, %v12099_v23  ;;  %v20967_v48 = vpop.f32.mrf.mxu1  ;;  %v20969_v31 = vpop.f32.mrf.mxu0 }
 0x650   : > { %v14296_v25 = vadd.f32 %v14242_v0, %v14161_v43  ;;  %v12682_v10 = vrot.slane %v12628_v28, 2  ;;  %v13354_v3 = vmul.f32 %v12101_v59, %v21922_v63  ;;  %v13489_v6 = vmul.f32 %v20705_v40, %v12101_v59 }
 0x651   : > { %v20974_v53 = vrot.slane %v13797_v18, %v20823_v22  ;;  %v12951_v21 = vadd.f32 %v12897_v29, %v12735_v44  ;;  %v12898_v60 = vrot.slane %v12844_v41, 4  ;;  %v13624_v38 = vmul.f32 %v20788_v8, %v12101_v59  ;;  %v20977_v12 = vpop.f32.mrf.mxu1  ;;  %v20979_v54 = vpop.f32.mrf.mxu0 }
 0x652   : > { %v14362_v9 = vcombine.high %v14295_v61, %v14296_v25  ;;  %v12736_v55 = vadd.f32 %v12682_v10, %v12099_v23  ;;  %v13114_v62 = vrot.slane %v13060_v15, 6  ;;  %v13408_v42 = vrot.slane %v13354_v3, 2 }
 0x653   : > { %v13167_v27 = vadd.f32 %v13113_v19, %v12951_v21  ;;  %v13543_v47 = vrot.slane %v13489_v6, 4  ;;  %v12629_v16 = vmul.f32 %v12148_v30, %v21924_v39  ;;  %v12845_v50 = vmul.f32 %v20711_v24, %v12148_v30  ;;  %v12111_v17 = vpop.f32.mrf.mxu1  ;;  %v20983_v37 = vpop.f32.mrf.mxu0  ;;  %v21925_v6 = vld [vmem:[#allocation68_spill] sm:$0xff] }
 0x654   : > { %v12952_v14 = vadd.f32 %v12898_v60, %v12736_v55  ;;  %v13462_v18 = vadd.f32 %v13408_v42, %v12101_v59  ;;  %v13678_v0 = vrot.slane %v13624_v38, 6  ;;  %v13061_v20 = vmul.f32 %v20794_v2, %v12148_v30 }
 0x655   : > { %v20987_v43 = vrot.slane %v14362_v9, %v20823_v22  ;;  %v12683_v23 = vrot.slane %v12629_v16, 2  ;;  %v13355_v61 = vmul.f32 %v12103_v1, %v21923_v45  ;;  %v13490_v29 = vmul.f32 %v20708_v34, %v12103_v1  ;;  %v12112_v28 = vpop.f32.mrf.mxu1  ;;  %v20991_v44 = vpop.f32.mrf.mxu0 }
 0x656   : > { %v13168_v19 = vadd.f32 %v13114_v62, %v12952_v14  ;;  %v13597_v41 = vadd.f32 %v13543_v47, %v13462_v18  ;;  %v12899_v15 = vrot.slane %v12845_v50, 4  ;;  %v13625_v25 = vmul.f32 %v20791_v35, %v12103_v1 }
 0x657   : > { %v12737_v59 = vadd.f32 %v12683_v23, %v12148_v30  ;;  %v13115_v10 = vrot.slane %v13061_v20, 6  ;;  %v13409_v3 = vrot.slane %v13355_v61, 2  ;;  %v12630_v21 = vmul.f32 %v20962_v4, %v21925_v6  ;;  %v12162_v60 = vpop.f32.mrf.mxu0  ;;  %v20996_v38 = vpop.f32.mrf.mxu1 }
 0x658   : > { %v13233_v9 = vcombine.high %v13167_v27, %v13168_v19  ;;  %v13732_v55 = vadd.f32 %v13678_v0, %v13597_v41  ;;  %v13544_v42 = vrot.slane %v13490_v29, 4  ;;  %v12846_v16 = vmul.f32 %v20714_v57, %v20962_v4 }
 0x659   : > { %v12953_v62 = vadd.f32 %v12899_v15, %v12737_v59  ;;  %v13463_v47 = vadd.f32 %v13409_v3, %v12103_v1  ;;  %v12684_v50 = vrot.slane %v12630_v21, 2  ;;  %v13062_v30 = vmul.f32 %v20797_v11, %v20962_v4  ;;  %v12163_v17 = vpop.f32.mrf.mxu0  ;;  %v21002_v14 = vpop.f32.mrf.mxu1 }
 0x65a   : > { %v13247_v18 = vrot.slane %v13233_v9, %v20823_v22  ;;  %v13679_v20 = vrot.slane %v13625_v25, 6  ;;  %v13919_v27 = vmul.f32 %v20967_v48, %v21922_v63  ;;  %v14054_v0 = vmul.f32 %v20705_v40, %v20967_v48 }
 0x65b   : > { %v21009_v23 = vadd.f32 %v13115_v10, %v12953_v62  ;;  %v13598_v1 = vadd.f32 %v13544_v42, %v13463_v47  ;;  %v12738_v61 = vadd.f32 %v12684_v50, %v20962_v4  ;;  %v12900_v29 = vrot.slane %v12846_v16, 4  ;;  %v21012_v28 = vpop.f32.mrf.mxu1  ;;  %v21014_v19 = vpop.f32.mrf.mxu0 }
 0x65c   : > { %v13248_v41 = vcombine.high %v20960_v58, %v13247_v18  ;;  %v13116_v15 = vrot.slane %v13062_v30, 6  ;;  %v13973_v25 = vrot.slane %v13919_v27, 2  ;;  %v14189_v63 = vmul.f32 %v20788_v8, %v20967_v48 }
 0x65d   : > { %v13733_v59 = vadd.f32 %v13679_v20, %v13598_v1  ;;  %v12954_v40 = vadd.f32 %v12900_v29, %v12738_v61  ;;  %v13356_v10 = vmul.f32 %v20969_v31, %v21924_v39  ;;  %v13491_v4 = vmul.f32 %v20711_v24, %v20969_v31  ;;  %v21023_v3 = vpop.f32.mrf.mxu1  ;;  %v21025_v21 = vpop.f32.mrf.mxu0 }
 0x65e   : > { %13342 = vst [vmem:[%s20924_s13 + $0x8] sm:$0xff] %v13248_v41  ;;  %v14027_v58 = vadd.f32 %v13973_v25, %v20967_v48  ;;  %v14108_v60 = vrot.slane %v14054_v0, 4  ;;  %v14243_v9 = vrot.slane %v14189_v63, 6  ;;  %v13920_v8 = vmul.f32 %v20977_v12, %v21923_v45 }
 0x65f   : > { %v13798_v42 = vcombine.high %v13732_v55, %v13733_v59  ;;  %v21031_v16 = vadd.f32 %v13116_v15, %v12954_v40  ;;  %v13410_v62 = vrot.slane %v13356_v10, 2  ;;  %v13626_v47 = vmul.f32 %v20794_v2, %v20969_v31  ;;  %v21035_v50 = vpop.f32.mrf.mxu1  ;;  %v21037_v30 = vpop.f32.mrf.mxu0 }
 0x660   : > { %v14162_v17 = vadd.f32 %v14108_v60, %v14027_v58  ;;  %v13545_v18 = vrot.slane %v13491_v4, 4  ;;  %v13974_v20 = vrot.slane %v13920_v8, 2  ;;  %v14055_v48 = vmul.f32 %v20708_v34, %v20977_v12 }
 0x661   : > { %v13812_v27 = vrot.slane %v13798_v42, %v20823_v22  ;;  %v13249_v45 = vcombine.high %v21009_v23, %v21031_v16  ;;  %v13464_v55 = vadd.f32 %v13410_v62, %v20969_v31  ;;  %v14190_v0 = vmul.f32 %v20791_v35, %v20977_v12  ;;  %v21047_v1 = vpop.f32.mrf.mxu1  ;;  %v21049_v61 = vpop.f32.mrf.mxu0 }
 0x662   : > { %v14297_v29 = vadd.f32 %v14243_v9, %v14162_v17  ;;  %v14028_v41 = vadd.f32 %v13974_v20, %v20977_v12  ;;  %v14109_v15 = vrot.slane %v14055_v48, 4  ;;  %v13357_v34 = vmul.f32 %v20979_v54, %v21925_v6 }
 0x663   : > { %v13813_v25 = vcombine.high %v20974_v53, %v13812_v27  ;;  %v13599_v63 = vadd.f32 %v13545_v18, %v13464_v55  ;;  %v13680_v59 = vrot.slane %v13626_v47, 6  ;;  %v14244_v31 = vrot.slane %v14190_v0, 6  ;;  %v12213_v40 = vpop.f32.mrf.mxu1  ;;  %v21055_v10 = vpop.f32.mrf.mxu0 }
 0x664   : > { %v14163_v35 = vadd.f32 %v14109_v15, %v14028_v41  ;;  %v13411_v4 = vrot.slane %v13357_v34, 2  ;;  %v13492_v58 = vmul.f32 %v20714_v57, %v20979_v54  ;;  %v13627_v12 = vmul.f32 %v20797_v11, %v20979_v54 }
 0x665   : > { %13907 = vst [vmem:[%s20924_s13 + $0x3e] sm:$0xff] %v13813_v25  ;;  %v13734_v60 = vadd.f32 %v13680_v59, %v13599_v63  ;;  %v13921_v9 = vmul.f32 %v20983_v37, %v21924_v39  ;;  %v14056_v53 = vmul.f32 %v20711_v24, %v20983_v37  ;;  %v14191_v8 = vmul.f32 %v20794_v2, %v20983_v37  ;;  %v12214_v42 = vpop.f32.mrf.mxu1  ;;  %v21068_v62 = vpop.f32.mrf.mxu0  ;;  %v21926_v63 = vld [vmem:[#allocation69_spill] sm:$0xff] }
 0x666   : > { %v14298_v47 = vadd.f32 %v14244_v31, %v14163_v35  ;;  %v13465_v17 = vadd.f32 %v13411_v4, %v20979_v54  ;;  %v13546_v18 = vrot.slane %v13492_v58, 4  ;;  %v13681_v20 = vrot.slane %v13627_v12, 6 }
 0x667   : > { %v13975_v48 = vrot.slane %v13921_v9, 2  ;;  %v14110_v27 = vrot.slane %v14056_v53, 4  ;;  %v14245_v55 = vrot.slane %v14191_v8, 6  ;;  %v13922_v39 = vmul.f32 %v20991_v44, %v21925_v6  ;;  %v12264_v0 = vpop.f32.mrf.mxu0  ;;  %v21073_v41 = vpop.f32.mrf.mxu1 }
 0x668   : > { %v14363_v24 = vcombine.high %v14297_v29, %v14298_v47  ;;  %v13600_v15 = vadd.f32 %v13546_v18, %v13465_v17  ;;  %v14057_v2 = vmul.f32 %v20714_v57, %v20991_v44  ;;  %v14192_v34 = vmul.f32 %v20797_v11, %v20991_v44  ;;  %v21927_v17 = vld [vmem:[#allocation70_spill] sm:$0xff] }
 0x669   : > { %v14029_v54 = vadd.f32 %v13975_v48, %v20983_v37  ;;  %v13976_v25 = vrot.slane %v13922_v39, 2  ;;  %v12631_v59 = vmul.f32 %v20996_v38, %v21926_v63  ;;  %v12847_v6 = vmul.f32 %v20717_v7, %v20996_v38  ;;  %v12265_v31 = vpop.f32.mrf.mxu0  ;;  %v21084_v40 = vpop.f32.mrf.mxu1 }
 0x66a   : > { %v14377_v29 = vrot.slane %v14363_v24, %v20823_v22  ;;  %v13735_v35 = vadd.f32 %v13681_v20, %v13600_v15  ;;  %v14111_v4 = vrot.slane %v14057_v2, 4  ;;  %v14246_v57 = vrot.slane %v14192_v34, 6 }
 0x66b   : > { %v14164_v58 = vadd.f32 %v14110_v27, %v14029_v54  ;;  %v14030_v11 = vadd.f32 %v13976_v25, %v20991_v44  ;;  %v12685_v37 = vrot.slane %v12631_v59, 2  ;;  %v12901_v12 = vrot.slane %v12847_v6, 4  ;;  %v21088_v9 = vpop.f32.mrf.mxu1  ;;  %v21090_v53 = vpop.f32.mrf.mxu0 }
 0x66c   : > { %v14378_v8 = vcombine.high %v20987_v43, %v14377_v29  ;;  %v13814_v42 = vcombine.high %v13734_v60, %v13735_v35  ;;  %v13063_v47 = vmul.f32 %v20800_v32, %v20996_v38  ;;  %v12632_v18 = vmul.f32 %v21002_v14, %v21927_v17  ;;  %v21928_v35 = vld [vmem:[#allocation71_spill] sm:$0xff] }
 0x66d   : > { %v21097_v20 = vadd.f32 %v14245_v55, %v14164_v58  ;;  %v14165_v48 = vadd.f32 %v14111_v4, %v14030_v11  ;;  %v12739_v44 = vadd.f32 %v12685_v37, %v20996_v38  ;;  %v12848_v27 = vmul.f32 %v20722_v26, %v21002_v14  ;;  %v21102_v39 = vpop.f32.mrf.mxu1  ;;  %v21104_v0 = vpop.f32.mrf.mxu0 }
 0x66e   : > { %v21110_v43 = vrot.slane %v13249_v45, %v20823_v22  ;;  %14472 = vst [vmem:[%s20924_s13 + $0x74] sm:$0xff] %v14378_v8  ;;  %v21114_v60 = vrot.slane %v13814_v42, %v20823_v22  ;;  %v12686_v55 = vrot.slane %v12632_v18, 2  ;;  %v13064_v38 = vmul.f32 %v20805_v5, %v21002_v14 }
 0x66f   : > { %v21118_v24 = vadd.f32 %v14246_v57, %v14165_v48  ;;  %v12955_v15 = vadd.f32 %v12901_v12, %v12739_v44  ;;  %v13117_v2 = vrot.slane %v13063_v47, 6  ;;  %v13358_v34 = vmul.f32 %v21012_v28, %v21926_v63  ;;  %v21122_v54 = vpop.f32.mrf.mxu1  ;;  %v21124_v23 = vpop.f32.mrf.mxu0  ;;  %v21929_v12 = vld [vmem:[#allocation23_spill] sm:$0xff]  ;;  %v21930_v48 = vld [vmem:[#allocation36_spill] sm:$0xff] }
 0x670   : > { %v12740_v16 = vadd.f32 %v12686_v55, %v21002_v14  ;;  %v12902_v45 = vrot.slane %v12848_v27, 4  ;;  %v13493_v25 = vmul.f32 %v20717_v7, %v21012_v28  ;;  %v13628_v59 = vmul.f32 %v20800_v32, %v21012_v28 }
 0x671   : > { %v13171_v31 = vadd.f32 %v13117_v2, %v12955_v15  ;;  %v13412_v29 = vrot.slane %v13358_v34, 2  ;;  %v12633_v4 = vmul.f32 %v21014_v19, %v21928_v35  ;;  %v21135_v57 = vpop.f32.mrf.mxu1  ;;  %v21137_v58 = vpop.f32.mrf.mxu0  ;;  %v13118_v11 = vrot.slane %v13064_v38, 6 }
 0x672   : > { %v12956_v14 = vadd.f32 %v12902_v45, %v12740_v16  ;;  %v13547_v37 = vrot.slane %v13493_v25, 4  ;;  %v12849_v8 = vmul.f32 %v21929_v12, %v21014_v19  ;;  %v13682_v47 = vrot.slane %v13628_v59, 6 }
 0x673   : > { %v13466_v42 = vadd.f32 %v13412_v29, %v21012_v28  ;;  %v12687_v18 = vrot.slane %v12633_v4, 2  ;;  %v13065_v44 = vmul.f32 %v21930_v48, %v21014_v19  ;;  %v12315_v27 = vpop.f32.mrf.mxu1  ;;  %v21144_v55 = vpop.f32.mrf.mxu0  ;;  %v13359_v34 = vmul.f32 %v21023_v3, %v21927_v17 }
 0x674   : > { %v13172_v15 = vadd.f32 %v13118_v11, %v12956_v14  ;;  %v12903_v2 = vrot.slane %v12849_v8, 4  ;;  %v13494_v38 = vmul.f32 %v20722_v26, %v21023_v3  ;;  %v13629_v25 = vmul.f32 %v20805_v5, %v21023_v3  ;;  %v21931_v11 = vld [vmem:[#allocation72_spill] sm:$0xff] }
 0x675   : > { %v13601_v16 = vadd.f32 %v13547_v37, %v13466_v42  ;;  %v12741_v45 = vadd.f32 %v12687_v18, %v21014_v19  ;;  %v13119_v28 = vrot.slane %v13065_v44, 6  ;;  %v12316_v59 = vpop.f32.mrf.mxu1  ;;  %v21153_v29 = vpop.f32.mrf.mxu0  ;;  %v13413_v27 = vrot.slane %v13359_v34, 2  ;;  %v21932_v37 = vld [vmem:[#allocation25_spill] sm:$0xff] }
 0x676   : > { %v13250_v4 = vcombine.high %v13171_v31, %v13172_v15  ;;  %v13548_v14 = vrot.slane %v13494_v38, 4  ;;  %v12634_v8 = vmul.f32 %v21025_v21, %v21931_v11  ;;  %v13683_v52 = vrot.slane %v13629_v25, 6  ;;  %v21933_v31 = vld [vmem:[#allocation39_spill] sm:$0xff] }
 0x677   : > { %v13736_v6 = vadd.f32 %v13682_v47, %v13601_v16  ;;  %v12957_v13 = vadd.f32 %v12903_v2, %v12741_v45  ;;  %v12850_v42 = vmul.f32 %v21932_v37, %v21025_v21  ;;  %v12366_v19 = vpop.f32.mrf.mxu0  ;;  %v21159_v18 = vpop.f32.mrf.mxu1  ;;  %v13467_v59 = vadd.f32 %v13413_v27, %v21023_v3 }
 0x678   : > { %v13264_v44 = vrot.slane %v13250_v4, %v20823_v22  ;;  %v12688_v51 = vrot.slane %v12634_v8, 2  ;;  %v13066_v15 = vmul.f32 %v21933_v31, %v21025_v21  ;;  %v13923_v2 = vmul.f32 %v21035_v50, %v21926_v63 }
 0x679   : > { %v21165_v34 = vadd.f32 %v13119_v28, %v12957_v13  ;;  %v12904_v47 = vrot.slane %v12850_v42, 4  ;;  %v14058_v38 = vmul.f32 %v20717_v7, %v21035_v50  ;;  %v12367_v16 = vpop.f32.mrf.mxu0  ;;  %v21171_v45 = vpop.f32.mrf.mxu1  ;;  %v13602_v3 = vadd.f32 %v13548_v14, %v13467_v59 }
 0x67a   : > { %v13265_v25 = vcombine.high %v21110_v43, %v13264_v44  ;;  %v12742_v4 = vadd.f32 %v12688_v51, %v21025_v21  ;;  %v13120_v27 = vrot.slane %v13066_v15, 6  ;;  %v13977_v8 = vrot.slane %v13923_v2, 2 }
 0x67b   : > { %v14112_v13 = vrot.slane %v14058_v38, 4  ;;  %v14193_v28 = vmul.f32 %v20800_v32, %v21035_v50  ;;  %v13360_v63 = vmul.f32 %v21037_v30, %v21928_v35  ;;  %v21179_v42 = vpop.f32.mrf.mxu1  ;;  %v21181_v7 = vpop.f32.mrf.mxu0  ;;  %v13737_v19 = vadd.f32 %v13683_v52, %v13602_v3 }
 0x67c   : > { %13343 = vst [vmem:[%s20924_s13 + $0x10] sm:$0xff] %v13265_v25  ;;  %v12958_v16 = vadd.f32 %v12904_v47, %v12742_v4  ;;  %v13495_v43 = vmul.f32 %v21929_v12, %v21037_v30  ;;  %v13630_v51 = vmul.f32 %v21930_v48, %v21037_v30  ;;  %v14031_v21 = vadd.f32 %v13977_v8, %v21035_v50 }
 0x67d   : > { %v14247_v14 = vrot.slane %v14193_v28, 6  ;;  %v13414_v32 = vrot.slane %v13360_v63, 2  ;;  %v13924_v44 = vmul.f32 %v21047_v1, %v21927_v17  ;;  %v21191_v59 = vpop.f32.mrf.mxu1  ;;  %v21193_v15 = vpop.f32.mrf.mxu0  ;;  %v13815_v2 = vcombine.high %v13736_v6, %v13737_v19 }
 0x67e   : > { %v13174_v52 = vadd.f32 %v13120_v27, %v12958_v16  ;;  %v13549_v47 = vrot.slane %v13495_v43, 4  ;;  %v13684_v38 = vrot.slane %v13630_v51, 6  ;;  %v14166_v25 = vadd.f32 %v14112_v13, %v14031_v21 }
 0x67f   : > { %v13468_v3 = vadd.f32 %v13414_v32, %v21037_v30  ;;  %v13978_v4 = vrot.slane %v13924_v44, 2  ;;  %v14059_v50 = vmul.f32 %v20722_v26, %v21047_v1  ;;  %v21198_v8 = vpop.f32.mrf.mxu1  ;;  %v21200_v28 = vpop.f32.mrf.mxu0  ;;  %v13829_v17 = vrot.slane %v13815_v2, %v20823_v22 }
 0x680   : > { %v13266_v63 = vcombine.high %v21165_v34, %v13174_v52  ;;  %v14194_v6 = vmul.f32 %v20805_v5, %v21047_v1  ;;  %v13361_v27 = vmul.f32 %v21049_v61, %v21931_v11  ;;  %v14301_v13 = vadd.f32 %v14247_v14, %v14166_v25 }
 0x681   : > { %v13603_v30 = vadd.f32 %v13549_v47, %v13468_v3  ;;  %v14032_v19 = vadd.f32 %v13978_v4, %v21047_v1  ;;  %v14113_v26 = vrot.slane %v14059_v50, 4  ;;  %v21209_v16 = vpop.f32.mrf.mxu1  ;;  %v21211_v43 = vpop.f32.mrf.mxu0  ;;  %v21934_v34 = vcombine.high %v21097_v20, %v21118_v24 }
 0x682   : > { %v13830_v5 = vcombine.high %v21114_v60, %v13829_v17  ;;  %v14248_v21 = vrot.slane %v14194_v6, 6  ;;  %v13415_v32 = vrot.slane %v13361_v27, 2  ;;  %v13496_v2 = vmul.f32 %v21932_v37, %v21049_v61 }
 0x683   : > { %v14387_v51 = vrot.slane %v21934_v34, %v20823_v22  ;;  %v13738_v44 = vadd.f32 %v13684_v38, %v13603_v30  ;;  %v14167_v14 = vadd.f32 %v14113_v26, %v14032_v19  ;;  %v13631_v1 = vmul.f32 %v21933_v31, %v21049_v61  ;;  %v12417_v52 = vpop.f32.mrf.mxu1  ;;  %v21222_v47 = vpop.f32.mrf.mxu0 }
 0x684   : > { %13908 = vst [vmem:[%s20924_s13 + $0x46] sm:$0xff] %v13830_v5  ;;  %v13469_v25 = vadd.f32 %v13415_v32, %v21049_v61  ;;  %v13925_v20 = vmul.f32 %v21055_v10, %v21928_v35  ;;  %v14060_v60 = vmul.f32 %v21929_v12, %v21055_v10  ;;  %v14195_v24 = vmul.f32 %v21930_v48, %v21055_v10 }
 0x685   : > { %v21233_v38 = vrot.slane %v13266_v63, %v20823_v22  ;;  %v14302_v3 = vadd.f32 %v14248_v21, %v14167_v14  ;;  %v13550_v4 = vrot.slane %v13496_v2, 4  ;;  %v13926_v50 = vmul.f32 %v21068_v62, %v21931_v11  ;;  %v12418_v17 = vpop.f32.mrf.mxu1  ;;  %v21237_v6 = vpop.f32.mrf.mxu0  ;;  %v21937_v21 = vld [vmem:[#allocation73_spill] sm:$0xff]  ;;  %v21938_v14 = vld [vmem:[#allocation22_spill] sm:$0xff] }
 0x686   : > { %21935 = vst [vmem:[#allocation46_spill] sm:$0xff] %v21237_v6  ;;  %v13685_v61 = vrot.slane %v13631_v1, 6  ;;  %v13979_v27 = vrot.slane %v13925_v20, 2  ;;  %v14114_v35 = vrot.slane %v14060_v60, 4  ;;  %v14061_v12 = vmul.f32 %v21932_v37, %v21068_v62 }
 0x687   : > { %v14380_v30 = vcombine.high %v14301_v13, %v14302_v3  ;;  %v13604_v19 = vadd.f32 %v13550_v4, %v13469_v25  ;;  %v13980_v48 = vrot.slane %v13926_v50, 2  ;;  %v14196_v63 = vmul.f32 %v21933_v31, %v21068_v62  ;;  %v12468_v26 = vpop.f32.mrf.mxu0  ;;  %v21243_v34 = vpop.f32.mrf.mxu1 }
 0x688   : > { %21936 = vst [vmem:[#allocation48_spill] sm:$0xff] %v21243_v34  ;;  %v14033_v11 = vadd.f32 %v13979_v27, %v21055_v10  ;;  %v14249_v5 = vrot.slane %v14195_v24, 6  ;;  %v12635_v32 = vmul.f32 %v21073_v41, %v21937_v21  ;;  %v12851_v2 = vmul.f32 %v21938_v14, %v21073_v41  ;;  %v21940_v24 = vld [vmem:[#allocation41_spill] sm:$0xff]  ;;  %v21941_v27 = vld [vmem:[#allocation74_spill] sm:$0xff] }
 0x689   : > { %v14394_v37 = vrot.slane %v14380_v30, %v20823_v22  ;;  %v13739_v13 = vadd.f32 %v13685_v61, %v13604_v19  ;;  %v14034_v1 = vadd.f32 %v13980_v48, %v21068_v62  ;;  %v14115_v52 = vrot.slane %v14061_v12, 4  ;;  %v12469_v25 = vpop.f32.mrf.mxu0  ;;  %v21252_v31 = vpop.f32.mrf.mxu1  ;;  %v21944_v48 = vld [vmem:[#allocation24_spill] sm:$0xff] }
 0x68a   : > { %21939 = vst [vmem:[#allocation51_spill] sm:$0xff] %v21252_v31  ;;  %v14168_v20 = vadd.f32 %v14114_v35, %v14033_v11  ;;  %v14250_v60 = vrot.slane %v14196_v63, 6  ;;  %v12689_v10 = vrot.slane %v12635_v32, 2  ;;  %v13067_v3 = vmul.f32 %v21940_v24, %v21073_v41  ;;  %v21945_v11 = vld [vmem:[#allocation38_spill] sm:$0xff] }
 0x68b   : > { %v14395_v4 = vcombine.high %v14387_v51, %v14394_v37  ;;  %v13831_v50 = vcombine.high %v13738_v44, %v13739_v13  ;;  %v14169_v17 = vadd.f32 %v14115_v52, %v14034_v1  ;;  %v12636_v30 = vmul.f32 %v21084_v40, %v21941_v27  ;;  %v21258_v61 = vpop.f32.mrf.mxu1  ;;  %v21260_v62 = vpop.f32.mrf.mxu0  ;;  %v21951_v52 = vld [vmem:[#allocation27_spill] sm:$0xff] }
 0x68c   : > { %21942 = vst [vmem:[#allocation53_spill] sm:$0xff] %v21258_v61  ;;  %21943 = vst [vmem:[#allocation50_spill] sm:$0xff] %v21260_v62  ;;  %v21262_v12 = vadd.f32 %v14249_v5, %v14168_v20  ;;  %v12743_v19 = vadd.f32 %v12689_v10, %v21073_v41  ;;  %v12905_v35 = vrot.slane %v12851_v2, 4  ;;  %v12852_v63 = vmul.f32 %v21944_v48, %v21084_v40 }
 0x68d   : > { %14473 = vst [vmem:[%s20924_s13 + $0x7c] sm:$0xff] %v14395_v4  ;;  %v21268_v26 = vadd.f32 %v14250_v60, %v14169_v17  ;;  %v13121_v51 = vrot.slane %v13067_v3, 6  ;;  %v12690_v44 = vrot.slane %v12636_v30, 2  ;;  %v13068_v32 = vmul.f32 %v21945_v11, %v21084_v40  ;;  %v21272_v37 = vpop.f32.mrf.mxu1  ;;  %v21274_v13 = vpop.f32.mrf.mxu0  ;;  %v21950_v30 = vld [vmem:[#allocation75_spill] sm:$0xff] }
 0x68e   : > { %21946 = vst [vmem:[#allocation52_spill] sm:$0xff] %v21272_v37  ;;  %21947 = vst [vmem:[#allocation55_spill] sm:$0xff] %v21274_v13  ;;  %v21277_v5 = vrot.slane %v13831_v50, %v20823_v22  ;;  %v12959_v41 = vadd.f32 %v12905_v35, %v12743_v19  ;;  %v13362_v2 = vmul.f32 %v21088_v9, %v21937_v21  ;;  %v12906_v20 = vrot.slane %v12852_v63, 4 }
 0x68f   : > { %v13497_v1 = vmul.f32 %v21938_v14, %v21088_v9  ;;  %v12744_v25 = vadd.f32 %v12690_v44, %v21084_v40  ;;  %v13632_v60 = vmul.f32 %v21940_v24, %v21088_v9  ;;  %v21288_v10 = vpop.f32.mrf.mxu1  ;;  %v21290_v3 = vpop.f32.mrf.mxu0  ;;  %v13122_v50 = vrot.slane %v13068_v32, 6 }
 0x690   : > { %21948 = vst [vmem:[#allocation57_spill] sm:$0xff] %v21288_v10  ;;  %21949 = vst [vmem:[#allocation54_spill] sm:$0xff] %v21290_v3  ;;  %v13175_v4 = vadd.f32 %v13121_v51, %v12959_v41  ;;  %v13416_v17 = vrot.slane %v13362_v2, 2  ;;  %v12637_v19 = vmul.f32 %v21090_v53, %v21950_v30  ;;  %v12853_v40 = vmul.f32 %v21951_v52, %v21090_v53  ;;  %v21954_v51 = vld [vmem:[#allocation40_spill] sm:$0xff] }
 0x691   : > { %v12960_v35 = vadd.f32 %v12906_v20, %v12744_v25  ;;  %v13551_v13 = vrot.slane %v13497_v1, 4  ;;  %v13686_v37 = vrot.slane %v13632_v60, 6  ;;  %v21296_v63 = vpop.f32.mrf.mxu1  ;;  %v21298_v44 = vpop.f32.mrf.mxu0  ;;  %v13069_v32 = vmul.f32 %v21954_v51, %v21090_v53 }
 0x692   : > { %21952 = vst [vmem:[#allocation56_spill] sm:$0xff] %v21296_v63  ;;  %21953 = vst [vmem:[#allocation58_spill] sm:$0xff] %v21298_v44  ;;  %v13470_v10 = vadd.f32 %v13416_v17, %v21088_v9  ;;  %v12691_v62 = vrot.slane %v12637_v19, 2  ;;  %v13363_v41 = vmul.f32 %v21102_v39, %v21941_v27  ;;  %v12907_v25 = vrot.slane %v12853_v40, 4 }
 0x693   : > { %v13176_v2 = vadd.f32 %v13122_v50, %v12960_v35  ;;  %v13498_v1 = vmul.f32 %v21944_v48, %v21102_v39  ;;  %v13633_v20 = vmul.f32 %v21945_v11, %v21102_v39  ;;  %v12519_v60 = vpop.f32.mrf.mxu1  ;;  %v21309_v63 = vpop.f32.mrf.mxu0  ;;  %v13123_v17 = vrot.slane %v13069_v32, 6 }
 0x694   : > { %21955 = vst [vmem:[#allocation17_spill] sm:$0xff] %v21309_v63  ;;  %v13605_v44 = vadd.f32 %v13551_v13, %v13470_v10  ;;  %v12745_v9 = vadd.f32 %v12691_v62, %v21090_v53  ;;  %v13417_v19 = vrot.slane %v13363_v41, 2  ;;  %v12638_v50 = vmul.f32 %v21104_v0, %v21956_v33  ;;  %v21957_v63 = vld [vmem:[#allocation29_spill] sm:$0xff]  ;;  %v21958_v10 = vld [vmem:[#allocation43_spill] sm:$0xff] }
 0x695   : > { %v13267_v3 = vcombine.high %v13175_v4, %v13176_v2  ;;  %v13552_v61 = vrot.slane %v13498_v1, 4  ;;  %v13687_v31 = vrot.slane %v13633_v20, 6  ;;  %v12520_v35 = vpop.f32.mrf.mxu1  ;;  %v21314_v40 = vpop.f32.mrf.mxu0  ;;  %v12854_v13 = vmul.f32 %v21957_v63, %v21104_v0 }
 0x696   : > { %v13740_v34 = vadd.f32 %v13686_v37, %v13605_v44  ;;  %v12961_v6 = vadd.f32 %v12907_v25, %v12745_v9  ;;  %v13471_v60 = vadd.f32 %v13417_v19, %v21102_v39  ;;  %v12692_v62 = vrot.slane %v12638_v50, 2 }
 0x697   : > { %v13281_v53 = vrot.slane %v13267_v3, %v20823_v22  ;;  %v13070_v4 = vmul.f32 %v21958_v10, %v21104_v0  ;;  %v13927_v32 = vmul.f32 %v21122_v54, %v21937_v21  ;;  %v21324_v41 = vpop.f32.mrf.mxu1  ;;  %v12570_v2 = vpop.f32.mrf.mxu0  ;;  %v12908_v25 = vrot.slane %v12854_v13, 4 }
 0x698   : > { %v13177_v37 = vadd.f32 %v13123_v17, %v12961_v6  ;;  %v13606_v44 = vadd.f32 %v13552_v61, %v13471_v60  ;;  %v14062_v39 = vmul.f32 %v21938_v14, %v21122_v54  ;;  %v12746_v3 = vadd.f32 %v12692_v62, %v21104_v0 }
 0x699   : > { %v13282_v1 = vcombine.high %v21233_v38, %v13281_v53  ;;  %v13124_v20 = vrot.slane %v13070_v4, 6  ;;  %v13981_v9 = vrot.slane %v13927_v32, 2  ;;  %v21330_v19 = vpop.f32.mrf.mxu1  ;;  %v12571_v50 = vpop.f32.mrf.mxu0  ;;  %v14197_v2 = vmul.f32 %v21940_v24, %v21122_v54 }
 0x69a   : > { %v13741_v21 = vadd.f32 %v13687_v31, %v13606_v44  ;;  %v14116_v35 = vrot.slane %v14062_v39, 4  ;;  %v13364_v6 = vmul.f32 %v21124_v23, %v21950_v30  ;;  %v12962_v61 = vadd.f32 %v12908_v25, %v12746_v3 }
 0x69b   : > { %13344 = vst [vmem:[%s20924_s13 + $0x18] sm:$0xff] %v13282_v1  ;;  %v14035_v14 = vadd.f32 %v13981_v9, %v21122_v54  ;;  %v13499_v0 = vmul.f32 %v21951_v52, %v21124_v23  ;;  %v13634_v38 = vmul.f32 %v21954_v51, %v21124_v23  ;;  %v16012_v17 = vpop.f32.mrf.mxu1  ;;  %v14251_v31 = vrot.slane %v14197_v2, 6 }
 0x69c   : > { %v13832_v60 = vcombine.high %v13740_v34, %v13741_v21  ;;  %v13418_v13 = vrot.slane %v13364_v6, 2  ;;  %v13928_v24 = vmul.f32 %v21135_v57, %v21941_v27  ;;  %v13178_v53 = vadd.f32 %v13124_v20, %v12962_v61 }
 0x69d   : > { %v14170_v62 = vadd.f32 %v14116_v35, %v14035_v14  ;;  %v13553_v4 = vrot.slane %v13499_v0, 4  ;;  %v13688_v32 = vrot.slane %v13634_v38, 6  ;;  %v14063_v39 = vmul.f32 %v21944_v48, %v21135_v57 }
 0x69e   : > { %v13846_v44 = vrot.slane %v13832_v60, %v20823_v22  ;;  %v13472_v54 = vadd.f32 %v13418_v13, %v21124_v23  ;;  %v13982_v25 = vrot.slane %v13928_v24, 2  ;;  %v13283_v1 = vcombine.high %v13177_v37, %v13178_v53 }
 0x69f   : > { %v14305_v34 = vadd.f32 %v14251_v31, %v14170_v62  ;;  %v14198_v3 = vmul.f32 %v21945_v11, %v21135_v57  ;;  %v13365_v27 = vmul.f32 %v21137_v58, %v21956_v33  ;;  %v14117_v21 = vrot.slane %v14063_v39, 4 }
 0x6a0   : > { %v13847_v20 = vcombine.high %v21277_v5, %v13846_v44  ;;  %v13607_v9 = vadd.f32 %v13553_v4, %v13472_v54  ;;  %v14036_v50 = vadd.f32 %v13982_v25, %v21135_v57  ;;  %v21959_v23 = vcombine.high %v21262_v12, %v21268_v26 }
 0x6a1   : > { %v14252_v48 = vrot.slane %v14198_v3, 6  ;;  %v13419_v37 = vrot.slane %v13365_v27, 2  ;;  %v13500_v2 = vmul.f32 %v21957_v63, %v21137_v58  ;;  %v13635_v5 = vmul.f32 %v21958_v10, %v21137_v58 }
 0x6a2   : > { %v14404_v35 = vrot.slane %v21959_v23, %v20823_v22  ;;  %13909 = vst [vmem:[%s20924_s13 + $0x4e] sm:$0xff] %v13847_v20  ;;  %v13742_v11 = vadd.f32 %v13688_v32, %v13607_v9  ;;  %v14171_v6 = vadd.f32 %v14117_v21, %v14036_v50  ;;  %v13929_v57 = vmul.f32 %v21144_v55, %v21950_v30  ;;  %v21960_v32 = vld [vmem:[#allocation77_spill] sm:$0xff]  ;;  %v21962_v50 = vld [vmem:[#allocation78_spill] sm:$0xff] }
 0x6a3   : > { %v13473_v61 = vadd.f32 %v13419_v37, %v21137_v58  ;;  %v13554_v14 = vrot.slane %v13500_v2, 4  ;;  %v14064_v12 = vmul.f32 %v21951_v52, %v21144_v55  ;;  %v14199_v26 = vmul.f32 %v21954_v51, %v21144_v55  ;;  %v21963_v37 = vld [vmem:[#allocation28_spill] sm:$0xff] }
 0x6a4   : > { %v21371_v0 = vrot.slane %v13283_v1, %v20823_v22  ;;  %v14306_v38 = vadd.f32 %v14252_v48, %v14171_v6  ;;  %v13983_v17 = vrot.slane %v13929_v57, 2  ;;  %v13930_v60 = vmul.f32 %v21153_v29, %v21956_v33  ;;  %v21961_v33 = vld [vmem:[#allocation26_spill] sm:$0xff] }
 0x6a5   : > { %v13608_v31 = vadd.f32 %v13554_v14, %v13473_v61  ;;  %v13689_v13 = vrot.slane %v13635_v5, 6  ;;  %v14118_v30 = vrot.slane %v14064_v12, 4  ;;  %v14065_v58 = vmul.f32 %v21957_v63, %v21153_v29 }
 0x6a6   : > { %v14397_v24 = vcombine.high %v14305_v34, %v14306_v38  ;;  %v14037_v52 = vadd.f32 %v13983_v17, %v21144_v55  ;;  %v13984_v53 = vrot.slane %v13930_v60, 2  ;;  %v14200_v51 = vmul.f32 %v21958_v10, %v21153_v29 }
 0x6a7   : > { %v13743_v62 = vadd.f32 %v13689_v13, %v13608_v31  ;;  %v14253_v4 = vrot.slane %v14199_v26, 6  ;;  %v12639_v44 = vmul.f32 %v21159_v18, %v21960_v32  ;;  %v12855_v54 = vmul.f32 %v21961_v33, %v21159_v18 }
 0x6a8   : > { %v14411_v25 = vrot.slane %v14397_v24, %v20823_v22  ;;  %v14172_v39 = vadd.f32 %v14118_v30, %v14037_v52  ;;  %v14038_v63 = vadd.f32 %v13984_v53, %v21153_v29  ;;  %v14119_v1 = vrot.slane %v14065_v58, 4  ;;  %v21964_v30 = vld [vmem:[#allocation79_spill] sm:$0xff] }
 0x6a9   : > { %v13848_v55 = vcombine.high %v13742_v11, %v13743_v62  ;;  %v14254_v34 = vrot.slane %v14200_v51, 6  ;;  %v12693_v3 = vrot.slane %v12639_v44, 2  ;;  %v13071_v10 = vmul.f32 %v20850_v49, %v21159_v18  ;;  %v21965_v51 = vld [vmem:[#allocation31_spill] sm:$0xff] }
 0x6aa   : > { %v14412_v27 = vcombine.high %v14404_v35, %v14411_v25  ;;  %v21388_v20 = vadd.f32 %v14253_v4, %v14172_v39  ;;  %v14173_v9 = vadd.f32 %v14119_v1, %v14038_v63  ;;  %v12640_v21 = vmul.f32 %v21171_v45, %v21962_v50 }
 0x6ab   : > { %v21393_v23 = vrot.slane %v13848_v55, %v20823_v22  ;;  %v12747_v48 = vadd.f32 %v12693_v3, %v21159_v18  ;;  %v12909_v29 = vrot.slane %v12855_v54, 4  ;;  %v12856_v2 = vmul.f32 %v21963_v37, %v21171_v45 }
 0x6ac   : > { %14474 = vst [vmem:[%s20924_s13 + $0x84] sm:$0xff] %v14412_v27  ;;  %v14308_v11 = vadd.f32 %v14254_v34, %v14173_v9  ;;  %v12694_v6 = vrot.slane %v12640_v21, 2  ;;  %v13072_v35 = vmul.f32 %v20853_v56, %v21171_v45  ;;  %v13366_v5 = vmul.f32 %v21179_v42, %v21960_v32  ;;  %v21966_v9 = vld [vmem:[#allocation80_spill] sm:$0xff] }
 0x6ad   : > { %v12963_v57 = vadd.f32 %v12909_v29, %v12747_v48  ;;  %v13125_v61 = vrot.slane %v13071_v10, 6  ;;  %v13501_v14 = vmul.f32 %v21961_v33, %v21179_v42  ;;  %v13636_v18 = vmul.f32 %v20850_v49, %v21179_v42 }
 0x6ae   : > { %v14413_v12 = vcombine.high %v21388_v20, %v14308_v11  ;;  %v12748_v26 = vadd.f32 %v12694_v6, %v21171_v45  ;;  %v12910_v38 = vrot.slane %v12856_v2, 4  ;;  %v13420_v17 = vrot.slane %v13366_v5, 2  ;;  %v21967_v2 = vld [vmem:[#allocation33_spill] sm:$0xff] }
 0x6af   : > { %v13179_v60 = vadd.f32 %v13125_v61, %v12963_v57  ;;  %v13126_v31 = vrot.slane %v13072_v35, 6  ;;  %v13555_v13 = vrot.slane %v13501_v14, 4  ;;  %v12641_v58 = vmul.f32 %v21181_v7, %v21964_v30 }
 0x6b0   : > { %v12964_v24 = vadd.f32 %v12910_v38, %v12748_v26  ;;  %v13474_v52 = vadd.f32 %v13420_v17, %v21179_v42  ;;  %v13690_v53 = vrot.slane %v13636_v18, 6  ;;  %v12857_v62 = vmul.f32 %v21965_v51, %v21181_v7 }
 0x6b1   : > { %v12695_v4 = vrot.slane %v12641_v58, 2  ;;  %v13073_v44 = vmul.f32 %v20856_v46, %v21181_v7  ;;  %v13367_v45 = vmul.f32 %v21191_v59, %v21962_v50  ;;  %v13502_v54 = vmul.f32 %v21963_v37, %v21191_v59 }
 0x6b2   : > { %v13180_v25 = vadd.f32 %v13126_v31, %v12964_v24  ;;  %v13609_v39 = vadd.f32 %v13555_v13, %v13474_v52  ;;  %v12911_v63 = vrot.slane %v12857_v62, 4  ;;  %v13637_v42 = vmul.f32 %v20853_v56, %v21191_v59 }
 0x6b3   : > { %v12749_v1 = vadd.f32 %v12695_v4, %v21181_v7  ;;  %v13127_v55 = vrot.slane %v13073_v44, 6  ;;  %v13421_v34 = vrot.slane %v13367_v45, 2  ;;  %v13556_v3 = vrot.slane %v13502_v54, 4 }
 0x6b4   : > { %v13284_v10 = vcombine.high %v13179_v60, %v13180_v25  ;;  %v13744_v27 = vadd.f32 %v13690_v53, %v13609_v39  ;;  %v13691_v20 = vrot.slane %v13637_v42, 6  ;;  %v12642_v21 = vmul.f32 %v21193_v15, %v21966_v9 }
 0x6b5   : > { %v12965_v48 = vadd.f32 %v12911_v63, %v12749_v1  ;;  %v13475_v29 = vadd.f32 %v13421_v34, %v21191_v59  ;;  %v12858_v11 = vmul.f32 %v21967_v2, %v21193_v15  ;;  %v13074_v6 = vmul.f32 %v20861_v36, %v21193_v15 }
 0x6b6   : > { %v13298_v7 = vrot.slane %v13284_v10, %v20823_v22  ;;  %v12696_v35 = vrot.slane %v12642_v21, 2  ;;  %v13931_v5 = vmul.f32 %v21198_v8, %v21960_v32  ;;  %v14066_v57 = vmul.f32 %v21961_v33, %v21198_v8 }
 0x6b7   : > { %v21435_v61 = vadd.f32 %v13127_v55, %v12965_v48  ;;  %v13610_v14 = vadd.f32 %v13556_v3, %v13475_v29  ;;  %v12912_v59 = vrot.slane %v12858_v11, 4  ;;  %v13128_v18 = vrot.slane %v13074_v6, 6 }
 0x6b8   : > { %v13299_v26 = vcombine.high %v21371_v0, %v13298_v7  ;;  %v12750_v38 = vadd.f32 %v12696_v35, %v21193_v15  ;;  %v13985_v17 = vrot.slane %v13931_v5, 2  ;;  %v14120_v60 = vrot.slane %v14066_v57, 4  ;;  %v21968_v57 = vld [vmem:[#allocation46_spill] sm:$0xff] }
 0x6b9   : > { %v13745_v31 = vadd.f32 %v13691_v20, %v13610_v14  ;;  %v14201_v13 = vmul.f32 %v20850_v49, %v21198_v8  ;;  %v13368_v32 = vmul.f32 %v21200_v28, %v21964_v30  ;;  %v13503_v33 = vmul.f32 %v21965_v51, %v21200_v28 }
 0x6ba   : > { %13345 = vst [vmem:[%s20924_s13 + $0x20] sm:$0xff] %v13299_v26  ;;  %v12966_v58 = vadd.f32 %v12912_v59, %v12750_v38  ;;  %v14039_v24 = vadd.f32 %v13985_v17, %v21198_v8  ;;  %v13638_v0 = vmul.f32 %v20856_v46, %v21200_v28  ;;  %v13932_v15 = vmul.f32 %v21209_v16, %v21962_v50  ;;  %v21969_v38 = vld [vmem:[#allocation81_spill] sm:$0xff] }
 0x6bb   : > { %v21452_v52 = vrot.slane %v14413_v12, %v20823_v22  ;;  %v13849_v49 = vcombine.high %v13744_v27, %v13745_v31  ;;  %v14255_v53 = vrot.slane %v14201_v13, 6  ;;  %v13422_v62 = vrot.slane %v13368_v32, 2 }
 0x6bc   : > { %v21454_v4 = vadd.f32 %v13128_v18, %v12966_v58  ;;  %v14174_v44 = vadd.f32 %v14120_v60, %v14039_v24  ;;  %v13557_v45 = vrot.slane %v13503_v33, 4  ;;  %v13986_v54 = vrot.slane %v13932_v15, 2 }
 0x6bd   : > { %v13863_v25 = vrot.slane %v13849_v49, %v20823_v22  ;;  %v13476_v8 = vadd.f32 %v13422_v62, %v21200_v28  ;;  %v14067_v39 = vmul.f32 %v21963_v37, %v21209_v16  ;;  %v14202_v50 = vmul.f32 %v20853_v56, %v21209_v16  ;;  %v21973_v49 = vld [vmem:[#allocation82_spill] sm:$0xff] }
 0x6be   : > { %v13300_v12 = vcombine.high %v21435_v61, %v21454_v4  ;;  %v14309_v63 = vadd.f32 %v14255_v53, %v14174_v44  ;;  %v14040_v42 = vadd.f32 %v13986_v54, %v21209_v16  ;;  %v13369_v1 = vmul.f32 %v21211_v43, %v21966_v9  ;;  %v21974_v53 = vld [vmem:[#allocation51_spill] sm:$0xff] }
 0x6bf   : > { %v13864_v55 = vcombine.high %v21393_v23, %v13863_v25  ;;  %v13611_v34 = vadd.f32 %v13557_v45, %v13476_v8  ;;  %v13692_v3 = vrot.slane %v13638_v0, 6  ;;  %v14121_v28 = vrot.slane %v14067_v39, 4  ;;  %v21975_v25 = vld [vmem:[#allocation47_spill] sm:$0xff] }
 0x6c0   : > { %v14256_v10 = vrot.slane %v14202_v50, 6  ;;  %v13423_v27 = vrot.slane %v13369_v1, 2  ;;  %v13504_v37 = vmul.f32 %v21967_v2, %v21211_v43  ;;  %v13639_v56 = vmul.f32 %v20861_v36, %v21211_v43 }
 0x6c1   : > { %13910 = vst [vmem:[%s20924_s13 + $0x56] sm:$0xff] %v13864_v55  ;;  %v13746_v20 = vadd.f32 %v13692_v3, %v13611_v34  ;;  %v14175_v21 = vadd.f32 %v14121_v28, %v14040_v42  ;;  %v13933_v16 = vmul.f32 %v21222_v47, %v21964_v30  ;;  %v14068_v23 = vmul.f32 %v21965_v51, %v21222_v47  ;;  %v21977_v34 = vld [vmem:[#allocation42_spill] sm:$0xff]  ;;  %v21978_v3 = vld [vmem:[#allocation53_spill] sm:$0xff] }
 0x6c2   : > { %v13477_v48 = vadd.f32 %v13423_v27, %v21211_v43  ;;  %v13558_v29 = vrot.slane %v13504_v37, 4  ;;  %v13693_v11 = vrot.slane %v13639_v56, 6  ;;  %v14203_v6 = vmul.f32 %v20856_v46, %v21222_v47  ;;  %v21970_v46 = vld [vmem:[#allocation48_spill] sm:$0xff] }
 0x6c3   : > { %v14310_v7 = vadd.f32 %v14256_v10, %v14175_v21  ;;  %v13987_v35 = vrot.slane %v13933_v16, 2  ;;  %v14122_v5 = vrot.slane %v14068_v23, 4  ;;  %v13934_v61 = vmul.f32 %v21968_v57, %v21966_v9  ;;  %v21971_v9 = vld [vmem:[#allocation30_spill] sm:$0xff] }
 0x6c4   : > { %v13612_v14 = vadd.f32 %v13558_v29, %v13477_v48  ;;  %v14257_v59 = vrot.slane %v14203_v6, 6  ;;  %v14069_v30 = vmul.f32 %v21967_v2, %v21968_v57  ;;  %v14204_v51 = vmul.f32 %v20861_v36, %v21968_v57  ;;  %v21980_v6 = vld [vmem:[#allocation50_spill] sm:$0xff] }
 0x6c5   : > { %v14414_v43 = vcombine.high %v14309_v63, %v14310_v7  ;;  %v14041_v18 = vadd.f32 %v13987_v35, %v21222_v47  ;;  %v13988_v26 = vrot.slane %v13934_v61, 2  ;;  %v12643_v17 = vmul.f32 %v21970_v46, %v21969_v38  ;;  %v21972_v47 = vld [vmem:[#allocation45_spill] sm:$0xff]  ;;  %v21976_v63 = vld [vmem:[#allocation32_spill] sm:$0xff] }
 0x6c6   : > { %v13747_v60 = vadd.f32 %v13693_v11, %v13612_v14  ;;  %v14123_v31 = vrot.slane %v14069_v30, 4  ;;  %v14258_v13 = vrot.slane %v14204_v51, 6  ;;  %v12859_v32 = vmul.f32 %v21971_v9, %v21970_v46  ;;  %v21982_v14 = vld [vmem:[#allocation44_spill] sm:$0xff] }
 0x6c7   : > { %v14428_v33 = vrot.slane %v14414_v43, %v20823_v22  ;;  %v14176_v2 = vadd.f32 %v14122_v5, %v14041_v18  ;;  %v14042_v58 = vadd.f32 %v13988_v26, %v21968_v57  ;;  %v12697_v36 = vrot.slane %v12643_v17, 2  ;;  %v21981_v57 = vld [vmem:[#allocation35_spill] sm:$0xff]  ;;  %v21983_v43 = vld [vmem:[#allocation52_spill] sm:$0xff] }
 0x6c8   : > { %v13865_v24 = vcombine.high %v13746_v20, %v13747_v60  ;;  %v12913_v0 = vrot.slane %v12859_v32, 4  ;;  %v13075_v15 = vmul.f32 %v21972_v47, %v21970_v46  ;;  %v12644_v62 = vmul.f32 %v21974_v53, %v21973_v49 }
 0x6c9   : > { %v14429_v4 = vcombine.high %v21452_v52, %v14428_v33  ;;  %v21498_v44 = vadd.f32 %v14257_v59, %v14176_v2  ;;  %v14177_v45 = vadd.f32 %v14123_v31, %v14042_v58  ;;  %v12751_v54 = vadd.f32 %v12697_v36, %v21970_v46 }
 0x6ca   : > { %v21502_v8 = vrot.slane %v21975_v25, 4  ;;  %v13129_v39 = vrot.slane %v13075_v15, 6  ;;  %v12698_v50 = vrot.slane %v12644_v62, 2  ;;  %v12860_v42 = vmul.f32 %v21976_v63, %v21974_v53  ;;  %v21987_v25 = vld [vmem:[#allocation49_spill] sm:$0xff] }
 0x6cb   : > { %14475 = vst [vmem:[%s20924_s13 + $0x8c] sm:$0xff] %v14429_v4  ;;  %v21507_v1 = vadd.f32 %v14258_v13, %v14177_v45  ;;  %v12967_v55 = vadd.f32 %v12913_v0, %v12751_v54  ;;  %v13076_v52 = vmul.f32 %v21977_v34, %v21974_v53  ;;  %v13370_v28 = vmul.f32 %v21978_v3, %v21969_v38  ;;  %v21985_v0 = vld [vmem:[#allocation55_spill] sm:$0xff] }
 0x6cc   : > { %v13308_v10 = vrot.slane %v13300_v12, %v20823_v22  ;;  %v12752_v27 = vadd.f32 %v12698_v50, %v21974_v53  ;;  %v12914_v37 = vrot.slane %v12860_v42, 4  ;;  %v13505_v56 = vmul.f32 %v21971_v9, %v21978_v3  ;;  %v21979_v12 = vld [vmem:[#allocation83_spill] sm:$0xff]  ;;  %v21986_v53 = vld [vmem:[#allocation37_spill] sm:$0xff] }
 0x6cd   : > { %v14430_v20 = vcombine.high %v21498_v44, %v21507_v1  ;;  %v13183_v21 = vadd.f32 %v13129_v39, %v12967_v55  ;;  %v13424_v16 = vrot.slane %v13370_v28, 2  ;;  %v13640_v23 = vmul.f32 %v21972_v47, %v21978_v3  ;;  %v21988_v55 = vld [vmem:[#allocation57_spill] sm:$0xff] }
 0x6ce   : > { %v21522_v48 = vrot.slane %v13865_v24, %v20823_v22  ;;  %v12968_v29 = vadd.f32 %v12914_v37, %v12752_v27  ;;  %v13130_v11 = vrot.slane %v13076_v52, 6  ;;  %v12645_v7 = vmul.f32 %v21980_v6, %v21979_v12  ;;  %v21984_v24 = vld [vmem:[#allocation84_spill] sm:$0xff] }
 0x6cf   : > { %v13478_v35 = vadd.f32 %v13424_v16, %v21978_v3  ;;  %v13559_v5 = vrot.slane %v13505_v56, 4  ;;  %v12861_v61 = vmul.f32 %v21981_v57, %v21980_v6  ;;  %v13077_v59 = vmul.f32 %v21982_v14, %v21980_v6 }
 0x6d0   : > { %v13184_v30 = vadd.f32 %v13130_v11, %v12968_v29  ;;  %v12699_v51 = vrot.slane %v12645_v7, 2  ;;  %v13371_v18 = vmul.f32 %v21983_v43, %v21973_v49  ;;  %v13506_v26 = vmul.f32 %v21976_v63, %v21983_v43 }
 0x6d1   : > { %v13613_v46 = vadd.f32 %v13559_v5, %v13478_v35  ;;  %v13694_v17 = vrot.slane %v13640_v23, 6  ;;  %v12915_v60 = vrot.slane %v12861_v61, 4  ;;  %v13641_v31 = vmul.f32 %v21977_v34, %v21983_v43  ;;  %v21990_v61 = vld [vmem:[#allocation56_spill] sm:$0xff] }
 0x6d2   : > { %v13301_v13 = vcombine.high %v13183_v21, %v13184_v30  ;;  %v12753_v32 = vadd.f32 %v12699_v51, %v21980_v6  ;;  %v13131_v33 = vrot.slane %v13077_v59, 6  ;;  %v13425_v2 = vrot.slane %v13371_v18, 2 }
 0x6d3   : > { %v13748_v58 = vadd.f32 %v13694_v17, %v13613_v46  ;;  %v13560_v36 = vrot.slane %v13506_v26, 4  ;;  %v12646_v15 = vmul.f32 %v21985_v0, %v21984_v24  ;;  %v12862_v62 = vmul.f32 %v21986_v53, %v21985_v0 }
 0x6d4   : > { %v13315_v4 = vrot.slane %v13301_v13, %v20823_v22  ;;  %v12969_v45 = vadd.f32 %v12915_v60, %v12753_v32  ;;  %v13479_v54 = vadd.f32 %v13425_v2, %v21983_v43  ;;  %v13078_v39 = vmul.f32 %v21987_v25, %v21985_v0 }
 0x6d5   : > { %v13695_v50 = vrot.slane %v13641_v31, 6  ;;  %v12700_v42 = vrot.slane %v12646_v15, 2  ;;  %v13935_v52 = vmul.f32 %v21988_v55, %v21969_v38  ;;  %v14070_v3 = vmul.f32 %v21971_v9, %v21988_v55  ;;  %v21989_v38 = vld [vmem:[#allocation54_spill] sm:$0xff] }
 0x6d6   : > { %v13316_v28 = vcombine.high %v13308_v10, %v13315_v4  ;;  %v21550_v27 = vadd.f32 %v13131_v33, %v12969_v45  ;;  %v13614_v37 = vadd.f32 %v13560_v36, %v13479_v54  ;;  %v12916_v56 = vrot.slane %v12862_v62, 4 }
 0x6d7   : > { %v12754_v21 = vadd.f32 %v12700_v42, %v21985_v0  ;;  %v13132_v16 = vrot.slane %v13078_v39, 6  ;;  %v13989_v23 = vrot.slane %v13935_v52, 2  ;;  %v14205_v29 = vmul.f32 %v21972_v47, %v21988_v55  ;;  %v21992_v42 = vld [vmem:[#allocation17_spill] sm:$0xff] }
 0x6d8   : > { %13346 = vst [vmem:[%s20924_s13 + $0x28] sm:$0xff] %v13316_v28  ;;  %v13749_v11 = vadd.f32 %v13695_v50, %v13614_v37  ;;  %v14124_v6 = vrot.slane %v14070_v3, 4  ;;  %v13372_v7 = vmul.f32 %v21989_v38, %v21979_v12  ;;  %v13507_v9 = vmul.f32 %v21981_v57, %v21989_v38 }
 0x6d9   : > { %v12970_v10 = vadd.f32 %v12916_v56, %v12754_v21  ;;  %v14043_v35 = vadd.f32 %v13989_v23, %v21988_v55  ;;  %v13642_v5 = vmul.f32 %v21982_v14, %v21989_v38  ;;  %v13936_v59 = vmul.f32 %v21990_v61, %v21973_v49  ;;  %v21991_v49 = vld [vmem:[#allocation58_spill] sm:$0xff] }
 0x6da   : > { %v13866_v30 = vcombine.high %v13748_v58, %v13749_v11  ;;  %v14259_v47 = vrot.slane %v14205_v29, 6  ;;  %v13426_v51 = vrot.slane %v13372_v7, 2  ;;  %v13561_v43 = vrot.slane %v13507_v9, 4  ;;  %v21994_v9 = vld [vmem:[#allocation34_spill] sm:$0xff] }
 0x6db   : > { %v21565_v18 = vadd.f32 %v13132_v16, %v12970_v10  ;;  %v14178_v26 = vadd.f32 %v14124_v6, %v14043_v35  ;;  %v13990_v46 = vrot.slane %v13936_v59, 2  ;;  %v14071_v17 = vmul.f32 %v21976_v63, %v21990_v61  ;;  %v21993_v6 = vld [vmem:[#allocation85_spill] sm:$0xff] }
 0x6dc   : > { %v13880_v60 = vrot.slane %v13866_v30, %v20823_v22  ;;  %v13480_v31 = vadd.f32 %v13426_v51, %v21989_v38  ;;  %v14206_v13 = vmul.f32 %v21977_v34, %v21990_v61  ;;  %v13373_v32 = vmul.f32 %v21991_v49, %v21984_v24  ;;  %v12610_v51 = vpop.f32.mrf.mxu1 }
 0x6dd   : > { %v13317_v33 = vcombine.high %v21550_v27, %v21565_v18  ;;  %v14313_v2 = vadd.f32 %v14259_v47, %v14178_v26  ;;  %v14044_v58 = vadd.f32 %v13990_v46, %v21990_v61  ;;  %v14125_v36 = vrot.slane %v14071_v17, 4 }
 0x6de   : > { %v13881_v63 = vcombine.high %v21522_v48, %v13880_v60  ;;  %v13615_v0 = vadd.f32 %v13561_v43, %v13480_v31  ;;  %v13696_v15 = vrot.slane %v13642_v5, 6  ;;  %v13427_v62 = vrot.slane %v13373_v32, 2 }
 0x6df   : > { %v14179_v4 = vadd.f32 %v14125_v36, %v14044_v58  ;;  %v14260_v45 = vrot.slane %v14206_v13, 6  ;;  %v13508_v34 = vmul.f32 %v21986_v53, %v21991_v49  ;;  %v13643_v54 = vmul.f32 %v21987_v25, %v21991_v49 }
 0x6e0   : > { %13911 = vst [vmem:[%s20924_s13 + $0x5e] sm:$0xff] %v13881_v63  ;;  %v21584_v39 = vadd.f32 %v13696_v15, %v13615_v0  ;;  %v13481_v50 = vadd.f32 %v13427_v62, %v21991_v49  ;;  %v13937_v55 = vmul.f32 %v21992_v42, %v21979_v12  ;;  %v14072_v48 = vmul.f32 %v21981_v57, %v21992_v42 }
 0x6e1   : > { %v14438_v52 = vrot.slane %v14430_v20, %v20823_v22  ;;  %v14314_v3 = vadd.f32 %v14260_v45, %v14179_v4  ;;  %v13562_v28 = vrot.slane %v13508_v34, 4  ;;  %v14207_v37 = vmul.f32 %v21982_v14, %v21992_v42 }
 0x6e2   : > { %v13697_v56 = vrot.slane %v13643_v54, 6  ;;  %v13991_v21 = vrot.slane %v13937_v55, 2  ;;  %v13938_v16 = vmul.f32 %v21314_v40, %v21984_v24  ;;  %v14073_v12 = vmul.f32 %v21986_v53, %v21314_v40 }
 0x6e3   : > { %v14431_v23 = vcombine.high %v14313_v2, %v14314_v3  ;;  %v13616_v57 = vadd.f32 %v13562_v28, %v13481_v50  ;;  %v14126_v29 = vrot.slane %v14072_v48, 4  ;;  %v14208_v44 = vmul.f32 %v21987_v25, %v21314_v40 }
 0x6e4   : > { %v14045_v1 = vadd.f32 %v13991_v21, %v21992_v42  ;;  %v14261_v20 = vrot.slane %v14207_v37, 6  ;;  %v13992_v11 = vrot.slane %v13938_v16, 2  ;;  %v13939_v14 = vmul.f32 %v21324_v41, %v21993_v6 }
 0x6e5   : > { %v14445_v38 = vrot.slane %v14431_v23, %v20823_v22  ;;  %v13751_v7 = vadd.f32 %v13697_v56, %v13616_v57  ;;  %v14127_v24 = vrot.slane %v14073_v12, 4  ;;  %v14074_v53 = vmul.f32 %v21324_v41, %v21994_v9 }
 0x6e6   : > { %v14180_v10 = vadd.f32 %v14126_v29, %v14045_v1  ;;  %v14046_v35 = vadd.f32 %v13992_v11, %v21314_v40  ;;  %v13993_v5 = vrot.slane %v13939_v14, 2  ;;  %v14209_v25 = vmul.f32 %v21324_v41, %v21502_v8 }
 0x6e7   : > { %v14446_v61 = vcombine.high %v14438_v52, %v14445_v38  ;;  %v13882_v59 = vcombine.high %v21584_v39, %v13751_v7  ;;  %v14262_v30 = vrot.slane %v14208_v44, 6  ;;  %v12647_v47 = vmul.f32 %v21330_v19, %v21993_v6 }
 0x6e8   : > { %v14315_v43 = vadd.f32 %v14261_v20, %v14180_v10  ;;  %v14181_v26 = vadd.f32 %v14127_v24, %v14046_v35  ;;  %v14047_v46 = vadd.f32 %v21324_v41, %v13993_v5  ;;  %v14128_v17 = vrot.slane %v14074_v53, 4 }
 0x6e9   : > { %14476 = vst [vmem:[%s20924_s13 + $0x94] sm:$0xff] %v14446_v61  ;;  %v14263_v60 = vrot.slane %v14209_v25, 6  ;;  %v12701_v40 = vrot.slane %v12647_v47, 2  ;;  %v12863_v31 = vmul.f32 %v21994_v9, %v21330_v19  ;;  %v13079_v13 = vmul.f32 %v21502_v8, %v21330_v19 }
 0x6ea   : > { %v14316_v49 = vadd.f32 %v14262_v30, %v14181_v26  ;;  %v14182_v32 = vadd.f32 %v14128_v17, %v14047_v46  ;;  %v13374_v2 = vmul.f32 %v12610_v51, %v21993_v6  ;;  %v13509_v58 = vmul.f32 %v21994_v9, %v12610_v51 }
 0x6eb   : > { %v12755_v36 = vadd.f32 %v12701_v40, %v21330_v19  ;;  %v12917_v63 = vrot.slane %v12863_v31, 4  ;;  %v13644_v62 = vmul.f32 %v21502_v8, %v12610_v51  ;;  %v13133_v45 = vrot.slane %v13079_v13, 6 }
 0x6ec   : > { %v14447_v41 = vcombine.high %v14315_v43, %v14316_v49  ;;  %v14317_v0 = vadd.f32 %v14263_v60, %v14182_v32  ;;  %v13428_v15 = vrot.slane %v13374_v2, 2  ;;  %v13563_v39 = vrot.slane %v13509_v58, 4 }
 0x6ed   : > { %v12971_v4 = vadd.f32 %v12917_v63, %v12755_v36  ;;  %v13698_v48 = vrot.slane %v13644_v62, 6  ;;  %v13325_v8 = vrot.slane %v13317_v33, %v20823_v22  ;;  %v13890_v16 = vrot.slane %v13882_v59, %v20823_v22 }
 0x6ee   : > { %v14448_v34 = vcombine.high %v14317_v0, %v14317_v0  ;;  %v13482_v54 = vadd.f32 %v13428_v15, %v12610_v51  ;;  %v14455_v42 = vrot.slane %v14447_v41, %v20823_v22 }
 0x6ef   : > { %v13187_v50 = vadd.f32 %v13133_v45, %v12971_v4 }
 0x6f0   : > { %v14462_v55 = vrot.slane %v14448_v34, %v20823_v22  ;;  %v13617_v19 = vadd.f32 %v13563_v39, %v13482_v54 }
 0x6f1   : > { %v13318_v52 = vcombine.high %v13187_v50, %v13187_v50 }
 0x6f2   : > { %v14463_v3 = vcombine.high %v14455_v42, %v14462_v55  ;;  %v13752_v28 = vadd.f32 %v13698_v48, %v13617_v19 }
 0x6f3   : > { %v13332_v37 = vrot.slane %v13318_v52, %v20823_v22 }
 0x6f4   : > { %14477 = vst [vmem:[%s20924_s13 + $0x9c] sm:$0x3f] %v14463_v3  ;;  %v13883_v56 = vcombine.high %v13752_v28, %v13752_v28 }
 0x6f5   : > { %v13333_v21 = vcombine.high %v13325_v8, %v13332_v37 }
 0x6f6   : > { %v13897_v12 = vrot.slane %v13883_v56, %v20823_v22 }
 0x6f7   : > { %13347 = vst [vmem:[%s20924_s13 + $0x30] sm:$0x3f] %v13333_v21 }
 0x6f8   : > { %v13898_v23 = vcombine.high %v13890_v16, %v13897_v12 }
 0x6fa   : > { %13912 = vst [vmem:[%s20924_s13 + $0x66] sm:$0x3f] %v13898_v23 }
 0x6fb PF: > { %s21995_s9 = sld [smem:[#allocation13_spill]]  ;;  %p21_p11 = scmp.ge.s32.totalorder %s18122_s28, 4  }
 0x6fc   : > { %s21996_s24 = smov %s18035_s25  ;;  %s21997_s25 = smov %s18039_s26 }
 0x6fd   : > { %s21999_s27 = smov %s18122_s28  ;;  %23 = sbr.rel (!%p21_p11) target bundleno = 9 (0x9), region = 128 }
 0x701   : > { %s21998_s26 = smov %s21995_s9 }
 0x702   :  { %14500 = vsyncpa [#allocation3], 1 }
 0x703   :  { %14502 = vsyncpa [#allocation3 + $0x1], 1 }
 0x704   :  { %14503 = vsyncpa [#allocation5], 1 }
 0x705   :  { %14505 = vsyncpa [#allocation5 + $0x1], 1 }
 0x706   :  { %14506 = vsyncpa [#allocation8], 1 }
 0x707   :  { %14508 = vsyncpa [#allocation8 + $0x1], 1 }

</bundles_post_ra>
